<compile_context>
chip_gen: v7x
topology: tpu7x:2x2x1
jax: 0.10.0
libtpu: 0.0.40
codegen_flags: <defaults>
</compile_context>

<pallas_src>
import functools

import jax
import jax.numpy as jnp
from jax.experimental import pallas as pl
from jax.experimental.pallas import tpu as pltpu


def _sinkhorn_kernel(k_ref, kc_ref, mu_ref, nu_ref, out_ref, *, niter):
    """Process Bt batch columns at once.

    k_ref, kc_ref : (Np, Np) bf16   K = exp(-C/eps), KC = K*C (VMEM-resident, zero-padded)
    mu_ref, nu_ref: (Np, Bt) f32    normalized marginals (zero rows/cols in padding)
    out_ref       : (1, Bt)  f32    per-sample OT cost
    """
    k = k_ref[...]     # bf16 (Np, Np); symmetric (same grid for both measures)
    kc = kc_ref[...]   # bf16 (Np, Np)
    mu = mu_ref[...]   # f32 (Np, Bt), already clamped/+1e-9/normalized in wrapper
    nu = nu_ref[...]

    # ---- matrix-scaling form of the un-stabilized log-domain iterations ----
    # u = v = 0  <=>  a = b = 1
    a = jnp.ones_like(mu)
    b = jnp.ones_like(nu)
    for _ in range(niter):
        kb = jnp.dot(k, b.astype(jnp.bfloat16),
                     preferred_element_type=jnp.float32)          # (Np, Bt)
        a = a * mu * pl.reciprocal(a * kb + 1e-6, approx=True)
        ka = jnp.dot(k, a.astype(jnp.bfloat16),                   # K^T a == K a (symmetric)
                     preferred_element_type=jnp.float32)          # (Np, Bt)
        b = b * nu * pl.reciprocal(b * ka + 1e-6, approx=True)

    # cost_t = sum_ij a_it K_ij C_ij b_jt = sum_i a_it * (KC @ b)_it
    kcb = jnp.dot(kc, b.astype(jnp.bfloat16),
                  preferred_element_type=jnp.float32)             # (Np, Bt)
    out_ref[...] = jnp.sum(a * kcb, axis=0, keepdims=True)        # (1, Bt) lane-dense


def _mesh_points(h, w):
    """Flattened mesh grid exactly as SinkhornLoss._mesh_grids builds it."""
    ys = jnp.arange(h, dtype=jnp.float32) / h     # linspace(0, h-1, h) / h
    xs = jnp.arange(w, dtype=jnp.float32) / w     # linspace(0, w-1, w) / w
    yy = jnp.repeat(ys, w)                        # point n -> (n // w) / h
    xx = jnp.tile(xs, h)                          # point n -> (n %  w) / w
    return yy, xx


def sinkhorn_loss_pallas(y, y_target, *, epsilon=0.01, niter=5):
    """SinkhornLoss.forward (normalize=False). y, y_target: (B, 1, H, W)."""
    batch_size, c, h, w = y_target.shape
    assert c == 1, "original module's broadcasting requires C == 1"
    # TODO(synk): area-interpolation resize to 24x24 for h > 24 is not implemented.
    assert h <= 24 and w <= 24
    n = h * w
    n_pad = (-n) % 128
    n_padded = n + n_pad

    # Cost matrix depends only on (h, w): build K = exp(-C/eps) and KC = K*C once
    # in plain JAX, zero-pad N to a 128 multiple (exact: zeros contribute nothing),
    # and hand them to the kernel in bf16 (MXU-native; bf16 keeps the f32 exponent
    # range needed for exp(-C/0.01)).
    yy, xx = _mesh_points(h, w)
    cost = (yy[:, None] - yy[None, :]) ** 2 + (xx[:, None] - xx[None, :]) ** 2
    k_mat = jnp.exp(-cost / float(epsilon))
    kc_mat = k_mat * cost
    if n_pad:
        k_mat = jnp.pad(k_mat, ((0, n_pad), (0, n_pad)))
        kc_mat = jnp.pad(kc_mat, ((0, n_pad), (0, n_pad)))
    k_bf16 = k_mat.astype(jnp.bfloat16)
    kc_bf16 = kc_mat.astype(jnp.bfloat16)

    # Marginals: clamp + 1e-9 + normalize over the TRUE n in the wrapper (hoisted
    # out of the kernel), then lay the batch on the lane axis as (Np, B) columns.
    mx = jnp.clip(y.reshape(batch_size, n).astype(jnp.float32), 0.0, 1e9) + 1e-9
    mu = (mx / jnp.sum(mx, axis=-1, keepdims=True)).T              # (n, B)
    my = jnp.clip(y_target.reshape(batch_size, n).astype(jnp.float32), 0.0, 1e9) + 1e-9
    nu = (my / jnp.sum(my, axis=-1, keepdims=True)).T              # (n, B)
    if n_pad:
        mu = jnp.pad(mu, ((0, n_pad), (0, 0)))
        nu = jnp.pad(nu, ((0, n_pad), (0, 0)))

    # Batch tile: keep native 128-wide MXU RHS on v5e, >=2 parallel tiles for
    # v7x's two TensorCores once B >= 256, full 256-wide MXU on v6e/v7x for B >= 512.
    if batch_size <= 128:
        bt = batch_size
    elif batch_size < 512:
        bt = 128
    else:
        bt = 256
    pad_b = (-batch_size) % bt
    if pad_b:
        # Zero-padded columns stay exactly zero through the iterations (mu = nu = 0)
        # and are sliced off before the mean.
        mu = jnp.pad(mu, ((0, 0), (0, pad_b)))
        nu = jnp.pad(nu, ((0, 0), (0, pad_b)))
    b_padded = batch_size + pad_b
    num_tiles = b_padded // bt

    kernel = functools.partial(_sinkhorn_kernel, niter=int(niter))
    costs = pl.pallas_call(
        kernel,
        out_shape=jax.ShapeDtypeStruct((1, b_padded), jnp.float32),
        grid_spec=pltpu.PrefetchScalarGridSpec(
            num_scalar_prefetch=0,
            grid=(num_tiles,),
            in_specs=[
                # K / KC: constant block index -> stay VMEM-resident across the grid.
                pl.BlockSpec((n_padded, n_padded), lambda g: (0, 0)),
                pl.BlockSpec((n_padded, n_padded), lambda g: (0, 0)),
                pl.BlockSpec((n_padded, bt), lambda g: (0, g)),   # source marginal cols
                pl.BlockSpec((n_padded, bt), lambda g: (0, g)),   # target marginal cols
            ],
            out_specs=pl.BlockSpec((1, bt), lambda g: (0, g)),
        ),
        compiler_params=pltpu.CompilerParams(
            dimension_semantics=("parallel",)
        ),
    )(k_bf16, kc_bf16, mu, nu)
    return jnp.mean(costs[0, :batch_size])


# ---------------- pure-JAX reference (mirrors the torch code) ----------------
def _mesh_grids_ref(batch_size, h, w):
    a = jnp.linspace(0.0, h - 1.0, h)
    b = jnp.linspace(0.0, w - 1.0, w)
    y_grid = jnp.broadcast_to(a[:, None], (h, w)) / h
    x_grid = jnp.broadcast_to(b[None, :], (h, w)) / w
    g = jnp.stack([y_grid.reshape(-1), x_grid.reshape(-1)], axis=-1)  # (N, 2)
    return jnp.broadcast_to(g[None], (batch_size, h * w, 2))


def _sinkhorn_ref(y, y_target, epsilon, niter):
    B, c, h, w = y_target.shape
    x = _mesh_grids_ref(B, h, w)
    yg = x
    C = jnp.sum(jnp.abs(x[:, :, None, :] - yg[:, None, :, :]) ** 2, -1)
    mx = jnp.clip(y.reshape(B, -1), 0.0, 1e9) + 1e-9
    mu = mx / jnp.sum(mx, -1, keepdims=True)
    my = jnp.clip(y_target.reshape(B, -1), 0.0, 1e9) + 1e-9
    nu = my / jnp.sum(my, -1, keepdims=True)

    def M(u, v):
        return (-C + u[:, :, None] + v[:, None, :]) / epsilon

    u = jnp.zeros_like(mu)
    v = jnp.zeros_like(nu)
    for _ in range(niter):
        u = epsilon * (jnp.log(mu) - jnp.log(jnp.sum(jnp.exp(M(u, v)), 2) + 1e-6)) + u
        v = epsilon * (jnp.log(nu) - jnp.log(jnp.sum(jnp.exp(M(u, v)), 1) + 1e-6)) + v
    pi = jnp.exp(M(u, v))
    return jnp.mean(jnp.sum(pi * C, axis=(1, 2)))


if __name__ == "__main__":
    key = jax.random.PRNGKey(0)
    k1, k2 = jax.random.split(key)
    B, C, H, W = 2, 1, 16, 16
    y = jax.random.uniform(k1, (B, C, H, W), dtype=jnp.float32)
    y_target = jax.random.uniform(k2, (B, C, H, W), dtype=jnp.float32)

    loss = sinkhorn_loss_pallas(y, y_target, epsilon=0.01, niter=5)
    loss = jax.block_until_ready(loss)

    ref = _sinkhorn_ref(y, y_target, 0.01, 5)
    assert jnp.isfinite(loss)
    assert jnp.allclose(loss, ref, rtol=2e-2, atol=1e-4), (float(loss), float(ref))
    print("KERNEL_OK")
</pallas_src>

<mosaic_0001>
module attributes {stable_mosaic.version = 11 : i64} {
  func.func @_sinkhorn_kernel(%arg0: i32, %arg1: memref<256x256xbf16, #tpu.memory_space<vmem>>, %arg2: memref<256x256xbf16, #tpu.memory_space<vmem>>, %arg3: memref<256x2xf32, #tpu.memory_space<vmem>>, %arg4: memref<256x2xf32, #tpu.memory_space<vmem>>, %arg5: memref<1x2xf32, #tpu.memory_space<vmem>>) attributes {dimension_semantics = [#tpu.dimension_semantics<parallel>], iteration_bounds = array<i64: 1>, scalar_prefetch = 0 : i64, scratch_operands = 0 : i64, tpu.core_type = #tpu.core_type<tc>, window_params = [{pipeline_mode = #tpu.pipeline_mode<synchronous>, transform_indices = @transform_0, window_bounds = array<i64: 256, 256>}, {pipeline_mode = #tpu.pipeline_mode<synchronous>, transform_indices = @transform_1, window_bounds = array<i64: 256, 256>}, {transform_indices = @transform_2, window_bounds = array<i64: 256, 2>}, {transform_indices = @transform_3, window_bounds = array<i64: 256, 2>}, {transform_indices = @transform_4, window_bounds = array<i64: 1, 2>}]} {
    %c0 = arith.constant 0 : index
    %c0_0 = arith.constant 0 : index
    %0 = vector.load %arg1[%c0, %c0_0] : memref<256x256xbf16, #tpu.memory_space<vmem>>, vector<256x256xbf16>
    %c0_1 = arith.constant 0 : index
    %c0_2 = arith.constant 0 : index
    %1 = vector.load %arg2[%c0_1, %c0_2] : memref<256x256xbf16, #tpu.memory_space<vmem>>, vector<256x256xbf16>
    %c0_3 = arith.constant 0 : index
    %c0_4 = arith.constant 0 : index
    %2 = vector.load %arg3[%c0_3, %c0_4] : memref<256x2xf32, #tpu.memory_space<vmem>>, vector<256x2xf32>
    %c0_5 = arith.constant 0 : index
    %c0_6 = arith.constant 0 : index
    %3 = vector.load %arg4[%c0_5, %c0_6] : memref<256x2xf32, #tpu.memory_space<vmem>>, vector<256x2xf32>
    %cst = arith.constant 1.000000e+00 : f32
    %4 = vector.broadcast %cst : f32 to vector<256x2xf32>
    %cst_7 = arith.constant 1.000000e+00 : f32
    %5 = vector.broadcast %cst_7 : f32 to vector<256x2xf32>
    %6 = arith.truncf %5 : vector<256x2xf32> to vector<256x2xbf16>
    %cst_8 = arith.constant dense<0.000000e+00> : vector<256x2xf32>
    %7 = tpu.matmul %0, %6, %cst_8 {dimension_numbers = #tpu.dot_dimension_numbers<[1], [0], [0], [1], [0, 0, 1, 1], [], []>} : vector<256x256xbf16>, vector<256x2xbf16>, vector<256x2xf32> -> vector<256x2xf32>
    %8 = arith.mulf %4, %2 : vector<256x2xf32>
    %9 = arith.mulf %4, %7 : vector<256x2xf32>
    %cst_9 = arith.constant 9.99999997E-7 : f32
    %10 = vector.broadcast %cst_9 : f32 to vector<256x2xf32>
    %11 = arith.addf %9, %10 : vector<256x2xf32>
    %12 = tpu.reciprocal %11 {approx = true} : vector<256x2xf32> -> vector<256x2xf32>
    %13 = arith.mulf %8, %12 : vector<256x2xf32>
    %14 = arith.truncf %13 : vector<256x2xf32> to vector<256x2xbf16>
    %cst_10 = arith.constant dense<0.000000e+00> : vector<256x2xf32>
    %15 = tpu.matmul %0, %14, %cst_10 {dimension_numbers = #tpu.dot_dimension_numbers<[1], [0], [0], [1], [0, 0, 1, 1], [], []>} : vector<256x256xbf16>, vector<256x2xbf16>, vector<256x2xf32> -> vector<256x2xf32>
    %16 = arith.mulf %5, %3 : vector<256x2xf32>
    %17 = arith.mulf %5, %15 : vector<256x2xf32>
    %cst_11 = arith.constant 9.99999997E-7 : f32
    %18 = vector.broadcast %cst_11 : f32 to vector<256x2xf32>
    %19 = arith.addf %17, %18 : vector<256x2xf32>
    %20 = tpu.reciprocal %19 {approx = true} : vector<256x2xf32> -> vector<256x2xf32>
    %21 = arith.mulf %16, %20 : vector<256x2xf32>
    %22 = arith.truncf %21 : vector<256x2xf32> to vector<256x2xbf16>
    %cst_12 = arith.constant dense<0.000000e+00> : vector<256x2xf32>
    %23 = tpu.matmul %0, %22, %cst_12 {dimension_numbers = #tpu.dot_dimension_numbers<[1], [0], [0], [1], [0, 0, 1, 1], [], []>} : vector<256x256xbf16>, vector<256x2xbf16>, vector<256x2xf32> -> vector<256x2xf32>
    %24 = arith.mulf %13, %2 : vector<256x2xf32>
    %25 = arith.mulf %13, %23 : vector<256x2xf32>
    %cst_13 = arith.constant 9.99999997E-7 : f32
    %26 = vector.broadcast %cst_13 : f32 to vector<256x2xf32>
    %27 = arith.addf %25, %26 : vector<256x2xf32>
    %28 = tpu.reciprocal %27 {approx = true} : vector<256x2xf32> -> vector<256x2xf32>
    %29 = arith.mulf %24, %28 : vector<256x2xf32>
    %30 = arith.truncf %29 : vector<256x2xf32> to vector<256x2xbf16>
    %cst_14 = arith.constant dense<0.000000e+00> : vector<256x2xf32>
    %31 = tpu.matmul %0, %30, %cst_14 {dimension_numbers = #tpu.dot_dimension_numbers<[1], [0], [0], [1], [0, 0, 1, 1], [], []>} : vector<256x256xbf16>, vector<256x2xbf16>, vector<256x2xf32> -> vector<256x2xf32>
    %32 = arith.mulf %21, %3 : vector<256x2xf32>
    %33 = arith.mulf %21, %31 : vector<256x2xf32>
    %cst_15 = arith.constant 9.99999997E-7 : f32
    %34 = vector.broadcast %cst_15 : f32 to vector<256x2xf32>
    %35 = arith.addf %33, %34 : vector<256x2xf32>
    %36 = tpu.reciprocal %35 {approx = true} : vector<256x2xf32> -> vector<256x2xf32>
    %37 = arith.mulf %32, %36 : vector<256x2xf32>
    %38 = arith.truncf %37 : vector<256x2xf32> to vector<256x2xbf16>
    %cst_16 = arith.constant dense<0.000000e+00> : vector<256x2xf32>
    %39 = tpu.matmul %0, %38, %cst_16 {dimension_numbers = #tpu.dot_dimension_numbers<[1], [0], [0], [1], [0, 0, 1, 1], [], []>} : vector<256x256xbf16>, vector<256x2xbf16>, vector<256x2xf32> -> vector<256x2xf32>
    %40 = arith.mulf %29, %2 : vector<256x2xf32>
    %41 = arith.mulf %29, %39 : vector<256x2xf32>
    %cst_17 = arith.constant 9.99999997E-7 : f32
    %42 = vector.broadcast %cst_17 : f32 to vector<256x2xf32>
    %43 = arith.addf %41, %42 : vector<256x2xf32>
    %44 = tpu.reciprocal %43 {approx = true} : vector<256x2xf32> -> vector<256x2xf32>
    %45 = arith.mulf %40, %44 : vector<256x2xf32>
    %46 = arith.truncf %45 : vector<256x2xf32> to vector<256x2xbf16>
    %cst_18 = arith.constant dense<0.000000e+00> : vector<256x2xf32>
    %47 = tpu.matmul %0, %46, %cst_18 {dimension_numbers = #tpu.dot_dimension_numbers<[1], [0], [0], [1], [0, 0, 1, 1], [], []>} : vector<256x256xbf16>, vector<256x2xbf16>, vector<256x2xf32> -> vector<256x2xf32>
    %48 = arith.mulf %37, %3 : vector<256x2xf32>
    %49 = arith.mulf %37, %47 : vector<256x2xf32>
    %cst_19 = arith.constant 9.99999997E-7 : f32
    %50 = vector.broadcast %cst_19 : f32 to vector<256x2xf32>
    %51 = arith.addf %49, %50 : vector<256x2xf32>
    %52 = tpu.reciprocal %51 {approx = true} : vector<256x2xf32> -> vector<256x2xf32>
    %53 = arith.mulf %48, %52 : vector<256x2xf32>
    %54 = arith.truncf %53 : vector<256x2xf32> to vector<256x2xbf16>
    %cst_20 = arith.constant dense<0.000000e+00> : vector<256x2xf32>
    %55 = tpu.matmul %0, %54, %cst_20 {dimension_numbers = #tpu.dot_dimension_numbers<[1], [0], [0], [1], [0, 0, 1, 1], [], []>} : vector<256x256xbf16>, vector<256x2xbf16>, vector<256x2xf32> -> vector<256x2xf32>
    %56 = arith.mulf %45, %2 : vector<256x2xf32>
    %57 = arith.mulf %45, %55 : vector<256x2xf32>
    %cst_21 = arith.constant 9.99999997E-7 : f32
    %58 = vector.broadcast %cst_21 : f32 to vector<256x2xf32>
    %59 = arith.addf %57, %58 : vector<256x2xf32>
    %60 = tpu.reciprocal %59 {approx = true} : vector<256x2xf32> -> vector<256x2xf32>
    %61 = arith.mulf %56, %60 : vector<256x2xf32>
    %62 = arith.truncf %61 : vector<256x2xf32> to vector<256x2xbf16>
    %cst_22 = arith.constant dense<0.000000e+00> : vector<256x2xf32>
    %63 = tpu.matmul %0, %62, %cst_22 {dimension_numbers = #tpu.dot_dimension_numbers<[1], [0], [0], [1], [0, 0, 1, 1], [], []>} : vector<256x256xbf16>, vector<256x2xbf16>, vector<256x2xf32> -> vector<256x2xf32>
    %64 = arith.mulf %53, %3 : vector<256x2xf32>
    %65 = arith.mulf %53, %63 : vector<256x2xf32>
    %cst_23 = arith.constant 9.99999997E-7 : f32
    %66 = vector.broadcast %cst_23 : f32 to vector<256x2xf32>
    %67 = arith.addf %65, %66 : vector<256x2xf32>
    %68 = tpu.reciprocal %67 {approx = true} : vector<256x2xf32> -> vector<256x2xf32>
    %69 = arith.mulf %64, %68 : vector<256x2xf32>
    %70 = arith.truncf %69 : vector<256x2xf32> to vector<256x2xbf16>
    %cst_24 = arith.constant dense<0.000000e+00> : vector<256x2xf32>
    %71 = tpu.matmul %0, %70, %cst_24 {dimension_numbers = #tpu.dot_dimension_numbers<[1], [0], [0], [1], [0, 0, 1, 1], [], []>} : vector<256x256xbf16>, vector<256x2xbf16>, vector<256x2xf32> -> vector<256x2xf32>
    %72 = arith.mulf %61, %2 : vector<256x2xf32>
    %73 = arith.mulf %61, %71 : vector<256x2xf32>
    %cst_25 = arith.constant 9.99999997E-7 : f32
    %74 = vector.broadcast %cst_25 : f32 to vector<256x2xf32>
    %75 = arith.addf %73, %74 : vector<256x2xf32>
    %76 = tpu.reciprocal %75 {approx = true} : vector<256x2xf32> -> vector<256x2xf32>
    %77 = arith.mulf %72, %76 : vector<256x2xf32>
    %78 = arith.truncf %77 : vector<256x2xf32> to vector<256x2xbf16>
    %cst_26 = arith.constant dense<0.000000e+00> : vector<256x2xf32>
    %79 = tpu.matmul %0, %78, %cst_26 {dimension_numbers = #tpu.dot_dimension_numbers<[1], [0], [0], [1], [0, 0, 1, 1], [], []>} : vector<256x256xbf16>, vector<256x2xbf16>, vector<256x2xf32> -> vector<256x2xf32>
    %80 = arith.mulf %69, %3 : vector<256x2xf32>
    %81 = arith.mulf %69, %79 : vector<256x2xf32>
    %cst_27 = arith.constant 9.99999997E-7 : f32
    %82 = vector.broadcast %cst_27 : f32 to vector<256x2xf32>
    %83 = arith.addf %81, %82 : vector<256x2xf32>
    %84 = tpu.reciprocal %83 {approx = true} : vector<256x2xf32> -> vector<256x2xf32>
    %85 = arith.mulf %80, %84 : vector<256x2xf32>
    %86 = arith.truncf %85 : vector<256x2xf32> to vector<256x2xbf16>
    %cst_28 = arith.constant dense<0.000000e+00> : vector<256x2xf32>
    %87 = tpu.matmul %1, %86, %cst_28 {dimension_numbers = #tpu.dot_dimension_numbers<[1], [0], [0], [1], [0, 0, 1, 1], [], []>} : vector<256x256xbf16>, vector<256x2xbf16>, vector<256x2xf32> -> vector<256x2xf32>
    %88 = arith.mulf %77, %87 : vector<256x2xf32>
    %cst_29 = arith.constant dense<0.000000e+00> : vector<2xf32>
    %89 = vector.multi_reduction <add>, %88, %cst_29 [0] : vector<256x2xf32> to vector<2xf32>
    %90 = vector.shape_cast %89 : vector<2xf32> to vector<1x2xf32>
    %c0_30 = arith.constant 0 : index
    %c0_31 = arith.constant 0 : index
    %91 = vector.load %arg5[%c0_30, %c0_31] : memref<1x2xf32, #tpu.memory_space<vmem>>, vector<1x2xf32>
    tpu.vector_store %arg5[%c0_30, %c0_31], %90 {strides = array<i32>} : memref<1x2xf32, #tpu.memory_space<vmem>>, vector<1x2xf32>,
    return
  }
  func.func @transform_0(%arg0: i32) -> (i32, i32) {
    %c0_i32 = arith.constant 0 : i32
    %c0_i32_0 = arith.constant 0 : i32
    %c0_i32_1 = arith.constant 0 : i32
    return %c0_i32, %c0_i32_0 : i32, i32
  }
  func.func @transform_1(%arg0: i32) -> (i32, i32) {
    %c0_i32 = arith.constant 0 : i32
    %c0_i32_0 = arith.constant 0 : i32
    %c0_i32_1 = arith.constant 0 : i32
    return %c0_i32, %c0_i32_0 : i32, i32
  }
  func.func @transform_2(%arg0: i32) -> (i32, i32) {
    %c0_i32 = arith.constant 0 : i32
    %c0_i32_0 = arith.constant 0 : i32
    return %c0_i32, %arg0 : i32, i32
  }
  func.func @transform_3(%arg0: i32) -> (i32, i32) {
    %c0_i32 = arith.constant 0 : i32
    %c0_i32_0 = arith.constant 0 : i32
    return %c0_i32, %arg0 : i32, i32
  }
  func.func @transform_4(%arg0: i32) -> (i32, i32) {
    %c0_i32 = arith.constant 0 : i32
    %c0_i32_0 = arith.constant 0 : i32
    return %c0_i32, %arg0 : i32, i32
  }
}

</mosaic_0001>

<bundles_post_ra>
// kernel: tpu_custom_call.1
= control target key start
LH: loop header
LB: loop body
LE: loop exit
PB: predicated region body
PF: predicated region fallthrough
CT: control target
= control target key end

     0   :  { %v6382_v1 = vmov 1065369472   ;;  %s10392_s0 = inlined_call_operand.vmem [shape: bf16[256,256], index: 0, kind: input, shape index: {}]   ;;  %s10393_s1 = inlined_call_operand.vmem [shape: bf16[256,256], index: 1, kind: input, shape index: {}]   ;;  %s10394_s2 = inlined_call_operand.vmem [shape: f32[256,2], index: 2, kind: input, shape index: {}]   ;;  %s10395_s3 = inlined_call_operand.vmem [shape: f32[256,2], index: 3, kind: input, shape index: {}]   ;;  %s10396_s4 = inlined_call_operand.hbm [shape: f32[1,2], index: 4, kind: output, shape index: {}]  }
   0x1   :  { %v6412_v0 = vld [vmem:[%s10392_s0 + $0x4] ss:$8 sps:$4 sm:$0xff]   ;;  %3989 = vmatprep.subr.bf16.mxu0 %v6382_v1  ;;  %5221 = vmatprep.subr.bf16.mxu1 %v6382_v1  ;;  %v6424_v3 = vld [vmem:[%s10392_s0] ss:$8 sps:$4 sm:$0xff]   ;;  %v6434_v5 = vld [vmem:[%s10392_s0 + $0x14] ss:$8 sps:$4 sm:$0xff]  }
   0x2   :  { %v6417_v2 = vld [vmem:[%s10392_s0 + $0x84] ss:$8 sps:$4 sm:$0xff]   ;;  %3990 = vmatpush3.bf16.msra.mxu0 %v6382_v1  ;;  %5229 = vmatpush3.bf16.msra.mxu1 %v6382_v1  ;;  %v6429_v4 = vld [vmem:[%s10392_s0 + $0x80] ss:$8 sps:$4 sm:$0xff]   ;;  %v6439_v6 = vld [vmem:[%s10392_s0 + $0x94] ss:$8 sps:$4 sm:$0xff]  }
   0x3   :  { %3991 = vmatprep.subr.bf16.mxu0 %v6382_v1  ;;  %5222 = vmatprep.subr.bf16.mxu1 %v6382_v1 }
   0x4   :  { %340 = vmatprep.mubr.bf16.mxu0 %v6412_v0  ;;  %404 = vmatprep.mubr.bf16.mxu1 %v6417_v2 }
   0x6   :  { %3992 = vmatpush3.bf16.msra.mxu0 %v6382_v1  ;;  %5230 = vmatpush3.bf16.msra.mxu1 %v6382_v1 }
   0x7   :  { %3993 = vmatprep.subr.bf16.mxu0 %v6382_v1  ;;  %5223 = vmatprep.subr.bf16.mxu1 %v6382_v1 }
   0xa   :  { %3994 = vmatpush3.bf16.msra.mxu0 %v6382_v1  ;;  %5231 = vmatpush3.bf16.msra.mxu1 %v6382_v1 }
   0xb   :  { %3995 = vmatprep.subr.bf16.mxu0 %v6382_v1  ;;  %5224 = vmatprep.subr.bf16.mxu1 %v6382_v1 }
   0xe   :  { %3996 = vmatpush3.bf16.msra.mxu0 %v6382_v1  ;;  %5232 = vmatpush3.bf16.msra.mxu1 %v6382_v1 }
   0xf   :  { %3997 = vmatprep.subr.bf16.mxu0 %v6382_v1  ;;  %5225 = vmatprep.subr.bf16.mxu1 %v6382_v1 }
  0x12   :  { %3998 = vmatpush3.bf16.msra.mxu0 %v6382_v1  ;;  %5233 = vmatpush3.bf16.msra.mxu1 %v6382_v1 }
  0x13   :  { %3999 = vmatprep.subr.bf16.mxu0 %v6382_v1  ;;  %5226 = vmatprep.subr.bf16.mxu1 %v6382_v1 }
  0x16   :  { %4000 = vmatpush3.bf16.msra.mxu0 %v6382_v1  ;;  %5234 = vmatpush3.bf16.msra.mxu1 %v6382_v1 }
  0x17   :  { %4001 = vmatprep.subr.bf16.mxu0 %v6382_v1  ;;  %5227 = vmatprep.subr.bf16.mxu1 %v6382_v1 }
  0x1a   :  { %4002 = vmatpush3.bf16.msra.mxu0 %v6382_v1  ;;  %5235 = vmatpush3.bf16.msra.mxu1 %v6382_v1 }
  0x1b   :  { %4003 = vmatprep.subr.bf16.mxu0 %v6382_v1  ;;  %5228 = vmatprep.subr.bf16.mxu1 %v6382_v1 }
  0x1e   :  { %4004 = vmatpush3.bf16.msra.mxu0 %v6382_v1  ;;  %5236 = vmatpush3.bf16.msra.mxu1 %v6382_v1 }
  0x1f   :  { %9 = vsyncpa [#allocation3], 0  ;;  %v6448_v7 = vld [vmem:[%s10392_s0 + $0x10] ss:$8 sps:$4 sm:$0xff]   ;;  %v6458_v9 = vld [vmem:[%s10392_s0 + $0x24] ss:$8 sps:$4 sm:$0xff]  }
  0x20   :  { %v6453_v8 = vld [vmem:[%s10392_s0 + $0x90] ss:$8 sps:$4 sm:$0xff]   ;;  %v6463_v10 = vld [vmem:[%s10392_s0 + $0xa4] ss:$8 sps:$4 sm:$0xff]   ;;  %v6472_v11 = vld [vmem:[%s10392_s0 + $0x20] ss:$8 sps:$4 sm:$0xff]  }
  0x21   :  { %341 = vmatmul.mubr.bf16.vlgmr.msra.gmra.mrb[0].mxu0 %v6424_v3  ;;  %405 = vmatmul.mubr.bf16.vlgmr.msra.gmra.mrb[0].mxu1 %v6429_v4  ;;  %v6477_v12 = vld [vmem:[%s10392_s0 + $0xa0] ss:$8 sps:$4 sm:$0xff]   ;;  %v6482_v13 = vld [vmem:[%s10392_s0 + $0x34] ss:$8 sps:$4 sm:$0xff]   ;;  %v6496_v15 = vld [vmem:[%s10392_s0 + $0x30] ss:$8 sps:$4 sm:$0xff]  }
  0x22   :  { %348 = vmatprep.mubr.bf16.mxu0 %v6434_v5  ;;  %412 = vmatprep.mubr.bf16.mxu1 %v6439_v6  ;;  %v6487_v14 = vld [vmem:[%s10392_s0 + $0xb4] ss:$8 sps:$4 sm:$0xff]   ;;  %v6501_v16 = vld [vmem:[%s10392_s0 + $0xb0] ss:$8 sps:$4 sm:$0xff]   ;;  %v6506_v17 = vld [vmem:[%s10392_s0 + $0x44] ss:$8 sps:$4 sm:$0xff]  }
  0x23   :  { %v6511_v18 = vld [vmem:[%s10392_s0 + $0xc4] ss:$8 sps:$4 sm:$0xff]   ;;  %v6520_v19 = vld [vmem:[%s10392_s0 + $0x40] ss:$8 sps:$4 sm:$0xff]   ;;  %v6530_v21 = vld [vmem:[%s10392_s0 + $0x54] ss:$8 sps:$4 sm:$0xff]  }
  0x24   :  { %v6525_v20 = vld [vmem:[%s10392_s0 + $0xc0] ss:$8 sps:$4 sm:$0xff]   ;;  %v6535_v22 = vld [vmem:[%s10392_s0 + $0xd4] ss:$8 sps:$4 sm:$0xff]   ;;  %v6544_v23 = vld [vmem:[%s10392_s0 + $0x50] ss:$8 sps:$4 sm:$0xff]  }
  0x25   :  { %v6549_v24 = vld [vmem:[%s10392_s0 + $0xd0] ss:$8 sps:$4 sm:$0xff]   ;;  %v6554_v25 = vld [vmem:[%s10392_s0 + $0x64] ss:$8 sps:$4 sm:$0xff]   ;;  %v6568_v27 = vld [vmem:[%s10392_s0 + $0x60] ss:$8 sps:$4 sm:$0xff]  }
  0x26   :  { %v6559_v26 = vld [vmem:[%s10392_s0 + $0xe4] ss:$8 sps:$4 sm:$0xff]   ;;  %v6573_v28 = vld [vmem:[%s10392_s0 + $0xe0] ss:$8 sps:$4 sm:$0xff]   ;;  %v6578_v29 = vld [vmem:[%s10392_s0 + $0x74] ss:$8 sps:$4 sm:$0xff]  }
  0x27   :  { %v6583_v30 = vld [vmem:[%s10392_s0 + $0xf4] ss:$8 sps:$4 sm:$0xff]   ;;  %v6592_v31 = vld [vmem:[%s10392_s0 + $0x70] ss:$8 sps:$4 sm:$0xff]   ;;  %vm3839_vm0 = vcmask 15360   ;;  %vm3909_vm1 = vcmask 8192  }
  0x28   :  { %v6597_v32 = vld [vmem:[%s10392_s0 + $0xf0] ss:$8 sps:$4 sm:$0xff]  }
  0x29   :  { %349 = vmatmul.mubr.bf16.gmra.mrb[4].mxu0 %v6448_v7  ;;  %413 = vmatmul.mubr.bf16.gmra.mrb[4].mxu1 %v6453_v8 }
  0x2a   :  { %356 = vmatprep.mubr.bf16.mxu0 %v6458_v9  ;;  %420 = vmatprep.mubr.bf16.mxu1 %v6463_v10 }
  0x31   :  { %357 = vmatmul.mubr.bf16.gmra.mrb[8].mxu0 %v6472_v11  ;;  %421 = vmatmul.mubr.bf16.gmra.mrb[8].mxu1 %v6477_v12 }
  0x32   :  { %364 = vmatprep.mubr.bf16.mxu0 %v6482_v13  ;;  %428 = vmatprep.mubr.bf16.mxu1 %v6487_v14 }
  0x39   :  { %365 = vmatmul.mubr.bf16.gmra.mrb[12].mxu0 %v6496_v15  ;;  %429 = vmatmul.mubr.bf16.gmra.mrb[12].mxu1 %v6501_v16 }
  0x3a   :  { %372 = vmatprep.mubr.bf16.mxu0 %v6506_v17  ;;  %436 = vmatprep.mubr.bf16.mxu1 %v6511_v18 }
  0x41   :  { %373 = vmatmul.mubr.bf16.gmra.mrb[16].mxu0 %v6520_v19  ;;  %437 = vmatmul.mubr.bf16.gmra.mrb[16].mxu1 %v6525_v20 }
  0x42   :  { %380 = vmatprep.mubr.bf16.mxu0 %v6530_v21  ;;  %444 = vmatprep.mubr.bf16.mxu1 %v6535_v22 }
  0x49   :  { %381 = vmatmul.mubr.bf16.gmra.mrb[20].mxu0 %v6544_v23  ;;  %445 = vmatmul.mubr.bf16.gmra.mrb[20].mxu1 %v6549_v24 }
  0x4a   :  { %388 = vmatprep.mubr.bf16.mxu0 %v6554_v25  ;;  %452 = vmatprep.mubr.bf16.mxu1 %v6559_v26 }
  0x51   :  { %389 = vmatmul.mubr.bf16.gmra.mrb[24].mxu0 %v6568_v27  ;;  %453 = vmatmul.mubr.bf16.gmra.mrb[24].mxu1 %v6573_v28 }
  0x52   :  { %396 = vmatprep.mubr.bf16.mxu0 %v6578_v29  ;;  %460 = vmatprep.mubr.bf16.mxu1 %v6583_v30 }
  0x59   :  { %397 = vmatmul.mubr.bf16.gmra.mrb[28].mxu0 %v6592_v31  ;;  %461 = vmatmul.mubr.bf16.gmra.mrb[28].mxu1 %v6597_v32 }
  0x5a   :  { %581 = vmatprep.mubr.bf16.mxu1 %v6412_v0  ;;  %822 = vmatprep.mubr.bf16.mxu0 %v6412_v0 }
  0xf4   :  { %v4005_v33 = vpop.f32.mrb[0].mxu0  ;;  %v4053_v34 = vpop.f32.mrb[0].mxu1 }
  0xf5   :  { %v4006_v35 = vpop.f32.mrb[1].mxu0  ;;  %v4054_v36 = vpop.f32.mrb[1].mxu1 }
  0xf6   :  { %v4007_v37 = vadd.f32 %v4006_v35, %v4005_v33  ;;  %v4055_v38 = vadd.f32 %v4054_v36, %v4053_v34  ;;  %v4008_v39 = vpop.f32.mrb[2].mxu0  ;;  %v4056_v40 = vpop.f32.mrb[2].mxu1  ;;  %v84_v36 = vld [vmem:[%s10394_s2] sm:$0xff] }
  0xf7   :  { %v4009_v41 = vpop.f32.mrb[3].mxu0  ;;  %v4057_v42 = vpop.f32.mrb[3].mxu1 }
  0xf8   :  { %v343_v43 = vadd.f32 1e-06, %v4007_v37  ;;  %v407_v44 = vadd.f32 1e-06, %v4055_v38  ;;  %v4010_v45 = vadd.f32 %v4009_v41, %v4008_v39  ;;  %v4058_v46 = vadd.f32 %v4057_v42, %v4056_v40  ;;  %v85_v37 = vld [vmem:[%s10394_s2 + $0x8] sm:$0xff] }
  0xfa   :  { %5335 = vrcp.f32 %v343_v43  ;;  %v346_v47 = vadd.f32 1e-06, %v4010_v45  ;;  %v410_v48 = vadd.f32 1e-06, %v4058_v46  ;;  %v100_v46 = vld [vmem:[%s10394_s2 + $0x80] sm:$0xff] }
  0xfb   :  { %5337 = vrcp.f32 %v407_v44 }
  0xfc   :  { %5339 = vrcp.f32 %v346_v47  ;;  %v4011_v49 = vpop.f32.mrb[4].mxu0  ;;  %v4059_v50 = vpop.f32.mrb[4].mxu1  ;;  %v101_v47 = vld [vmem:[%s10394_s2 + $0x88] sm:$0xff] }
  0xfd   :  { %5341 = vrcp.f32 %v410_v48  ;;  %v4012_v51 = vpop.f32.mrb[5].mxu0  ;;  %v4060_v52 = vpop.f32.mrb[5].mxu1 }
  0xfe   :  { %v4013_v53 = vadd.f32 %v4012_v51, %v4011_v49  ;;  %v4061_v54 = vadd.f32 %v4060_v52, %v4059_v50  ;;  %v4014_v55 = vpop.f32.mrb[6].mxu0  ;;  %v4062_v56 = vpop.f32.mrb[6].mxu1 }
  0xff   :  { %v4015_v57 = vpop.f32.mrb[7].mxu0  ;;  %v4063_v58 = vpop.f32.mrb[7].mxu1 }
 0x100   :  { %v351_v59 = vadd.f32 1e-06, %v4013_v53  ;;  %v415_v60 = vadd.f32 1e-06, %v4061_v54  ;;  %v4016_v61 = vadd.f32 %v4015_v57, %v4014_v55  ;;  %v4064_v62 = vadd.f32 %v4063_v58, %v4062_v56 }
 0x102   :  { %5343 = vrcp.f32 %v351_v59  ;;  %v354_v63 = vadd.f32 1e-06, %v4016_v61  ;;  %v418_v1 = vadd.f32 1e-06, %v4064_v62 }
 0x103   :  { %5345 = vrcp.f32 %v415_v60 }
 0x104   :  { %v5336_v33 = vpop.eup %5335  ;;  %5347 = vrcp.f32 %v354_v63  ;;  %v4017_v34 = vpop.f32.mrb[8].mxu0 }
 0x105   :  { %v4065_v35 = vpop.f32.mrb[8].mxu1  ;;  %v5338_v38 = vpop.eup %5337  ;;  %5349 = vrcp.f32 %v418_v1  ;;  %v6615_v51 = vmul.f32 %v5336_v33, %v84_v36 }
 0x106   :  { %v4018_v39 = vpop.f32.mrb[9].mxu0  ;;  %v4066_v40 = vpop.f32.mrb[9].mxu1  ;;  %v6619_v57 = vmul.f32 %v5338_v38, %v100_v46 }
 0x107   :  { %v5340_v41 = vpop.eup %5339  ;;  %v4019_v42 = vadd.f32 %v4018_v39, %v4017_v34  ;;  %v4067_v43 = vadd.f32 %v4066_v40, %v4065_v35  ;;  %v4020_v44 = vpop.f32.mrb[10].mxu0  ;;  %v86_v34 = vld [vmem:[%s10394_s2 + $0x10] sm:$0xff]  ;;  %v87_v35 = vld [vmem:[%s10394_s2 + $0x18] sm:$0xff] }
 0x108   :  { %v4068_v45 = vpop.f32.mrb[10].mxu1  ;;  %v5342_v48 = vpop.eup %5341  ;;  %v6617_v52 = vmul.f32 %v5340_v41, %v85_v37 }
 0x109   :  { %v4021_v49 = vpop.f32.mrb[11].mxu0  ;;  %v4069_v50 = vpop.f32.mrb[11].mxu1  ;;  %v359_v53 = vadd.f32 1e-06, %v4019_v42  ;;  %v423_v54 = vadd.f32 1e-06, %v4067_v43  ;;  %v6621_v58 = vmul.f32 %v5342_v48, %v101_v47 }
 0x10a   :  { %v4022_v55 = vadd.f32 %v4021_v49, %v4020_v44  ;;  %v4070_v56 = vadd.f32 %v4069_v50, %v4068_v45  ;;  %v533_v61 = vpack.c.bf16 %v6617_v52, %v6615_v51  ;;  %v102_v44 = vld [vmem:[%s10394_s2 + $0x90] sm:$0xff]  ;;  %v103_v45 = vld [vmem:[%s10394_s2 + $0x98] sm:$0xff] }
 0x10b   :  { %5351 = vrcp.f32 %v359_v53  ;;  %v541_v62 = vpack.c.bf16 %v6621_v58, %v6619_v57 }
 0x10c   :  { %v362_v59 = vadd.f32 1e-06, %v4022_v55  ;;  %v426_v60 = vadd.f32 1e-06, %v4070_v56  ;;  %5353 = vrcp.f32 %v423_v54  ;;  %v5344_v63 = vpop.eup %5343  ;;  %v4023_v1 = vpop.f32.mrb[12].mxu0 }
 0x10d   :  { %v4071_v33 = vpop.f32.mrb[12].mxu1  ;;  %v5346_v36 = vpop.eup %5345  ;;  %4101 = vmatprep.subr.bf16.mxu1 %v541_v62  ;;  %v6639_v49 = vmul.f32 %v5344_v63, %v86_v34 }
 0x10e   :  { %5355 = vrcp.f32 %v362_v59  ;;  %v4024_v37 = vpop.f32.mrb[13].mxu0  ;;  %v4072_v38 = vpop.f32.mrb[13].mxu1  ;;  %4102 = vmatpush3.bf16.msra.mxu1 %v533_v61  ;;  %v6643_v59 = vmul.f32 %v5346_v36, %v102_v44  ;;  %v88_v36 = vld [vmem:[%s10394_s2 + $0x20] sm:$0xff] }
 0x10f   :  { %5357 = vrcp.f32 %v426_v60  ;;  %v5348_v39 = vpop.eup %5347  ;;  %v4025_v40 = vadd.f32 %v4024_v37, %v4023_v1  ;;  %v4073_v41 = vadd.f32 %v4072_v38, %v4071_v33  ;;  %v4026_v42 = vpop.f32.mrb[14].mxu0  ;;  %v89_v37 = vld [vmem:[%s10394_s2 + $0x28] sm:$0xff] }
 0x110   :  { %v4074_v43 = vpop.f32.mrb[14].mxu1  ;;  %v5350_v46 = vpop.eup %5349  ;;  %v6641_v50 = vmul.f32 %v5348_v39, %v87_v35 }
 0x111   :  { %v4027_v47 = vpop.f32.mrb[15].mxu0  ;;  %v4075_v48 = vpop.f32.mrb[15].mxu1  ;;  %v367_v53 = vadd.f32 1e-06, %v4025_v40  ;;  %v431_v54 = vadd.f32 1e-06, %v4073_v41  ;;  %v6645_v60 = vmul.f32 %v5350_v46, %v103_v45 }
 0x112   :  { %v4028_v55 = vadd.f32 %v4027_v47, %v4026_v42  ;;  %v4076_v56 = vadd.f32 %v4075_v48, %v4074_v43  ;;  %v534_v1 = vpack.c.bf16 %v6641_v50, %v6639_v49  ;;  %v104_v46 = vld [vmem:[%s10394_s2 + $0xa0] sm:$0xff]  ;;  %v105_v47 = vld [vmem:[%s10394_s2 + $0xa8] sm:$0xff] }
 0x113   :  { %10839 = vst [vmem:[#allocation5_spill] sm:$0xff] %v6645_v60  ;;  %5359 = vrcp.f32 %v367_v53  ;;  %v542_v63 = vpack.c.bf16 %v6645_v60, %v6643_v59 }
 0x114   :  { %v370_v61 = vadd.f32 1e-06, %v4028_v55  ;;  %v434_v62 = vadd.f32 1e-06, %v4076_v56  ;;  %5361 = vrcp.f32 %v431_v54  ;;  %v4029_v34 = vpop.f32.mrb[16].mxu0  ;;  %v4077_v35 = vpop.f32.mrb[16].mxu1 }
 0x115   :  { %v5352_v33 = vpop.eup %5351  ;;  %4103 = vmatprep.subr.bf16.mxu1 %v542_v63  ;;  %v4030_v39 = vpop.f32.mrb[17].mxu0 }
 0x116   :  { %5363 = vrcp.f32 %v370_v61  ;;  %v5354_v38 = vpop.eup %5353  ;;  %v4078_v40 = vpop.f32.mrb[17].mxu1  ;;  %4104 = vmatpush3.bf16.msra.mxu1 %v534_v1  ;;  %v4031_v42 = vadd.f32 %v4030_v39, %v4029_v34  ;;  %v6663_v55 = vmul.f32 %v5352_v33, %v88_v36 }
 0x117   :  { %5365 = vrcp.f32 %v434_v62  ;;  %v4079_v43 = vadd.f32 %v4078_v40, %v4077_v35  ;;  %v4032_v44 = vpop.f32.mrb[18].mxu0  ;;  %v4080_v45 = vpop.f32.mrb[18].mxu1  ;;  %v6667_v34 = vmul.f32 %v5354_v38, %v104_v46  ;;  %v90_v38 = vld [vmem:[%s10394_s2 + $0x30] sm:$0xff] }
 0x118   :  { %v5356_v41 = vpop.eup %5355  ;;  %v4033_v53 = vpop.f32.mrb[19].mxu0  ;;  %10840 = vst [vmem:[#allocation6_spill] sm:$0xff] %v6663_v55  ;;  %v375_v61 = vadd.f32 1e-06, %v4031_v42  ;;  %v91_v42 = vld [vmem:[%s10394_s2 + $0x38] sm:$0xff] }
 0x119   :  { %v5358_v48 = vpop.eup %5357  ;;  %v4081_v54 = vpop.f32.mrb[19].mxu1  ;;  %v6665_v56 = vmul.f32 %v5356_v41, %v89_v37  ;;  %v439_v62 = vadd.f32 1e-06, %v4079_v43  ;;  %v4034_v1 = vadd.f32 %v4033_v53, %v4032_v44  ;;  %10842 = vst [vmem:[#allocation8_spill] sm:$0xff] %v6667_v34 }
 0x11a   :  { %v4082_v63 = vadd.f32 %v4081_v54, %v4080_v45  ;;  %v6669_v35 = vmul.f32 %v5358_v48, %v105_v47  ;;  %5367 = vrcp.f32 %v375_v61  ;;  %v106_v61 = vld [vmem:[%s10394_s2 + $0xb0] sm:$0xff] }
 0x11b   :  { %10841 = vst [vmem:[#allocation7_spill] sm:$0xff] %v6665_v56  ;;  %v378_v39 = vadd.f32 1e-06, %v4034_v1  ;;  %v535_v60 = vpack.c.bf16 %v6665_v56, %v6663_v55  ;;  %5369 = vrcp.f32 %v439_v62  ;;  %v107_v62 = vld [vmem:[%s10394_s2 + $0xb8] sm:$0xff] }
 0x11c   :  { %10843 = vst [vmem:[#allocation9_spill] sm:$0xff] %v6669_v35  ;;  %v442_v40 = vadd.f32 1e-06, %v4082_v63  ;;  %v543_v33 = vpack.c.bf16 %v6669_v35, %v6667_v34  ;;  %v4035_v37 = vpop.f32.mrb[20].mxu0  ;;  %v4083_v41 = vpop.f32.mrb[20].mxu1 }
 0x11d   :  { %v5360_v36 = vpop.eup %5359  ;;  %5371 = vrcp.f32 %v378_v39  ;;  %v4036_v44 = vpop.f32.mrb[21].mxu0 }
 0x11e   :  { %v5362_v43 = vpop.eup %5361  ;;  %5373 = vrcp.f32 %v442_v40  ;;  %4105 = vmatprep.subr.bf16.mxu1 %v543_v33  ;;  %v4084_v45 = vpop.f32.mrb[21].mxu1  ;;  %v4037_v47 = vadd.f32 %v4036_v44, %v4035_v37  ;;  %v6687_v40 = vmul.f32 %v5360_v36, %v90_v38 }
 0x11f   :  { %4106 = vmatpush3.bf16.msra.mxu1 %v535_v60  ;;  %v4085_v48 = vadd.f32 %v4084_v45, %v4083_v41  ;;  %v4038_v53 = vpop.f32.mrb[22].mxu0  ;;  %v4086_v54 = vpop.f32.mrb[22].mxu1  ;;  %v6691_v45 = vmul.f32 %v5362_v43, %v106_v61  ;;  %v92_v43 = vld [vmem:[%s10394_s2 + $0x40] sm:$0xff] }
 0x120   :  { %v5364_v46 = vpop.eup %5363  ;;  %v4039_v63 = vpop.f32.mrb[23].mxu0  ;;  %10844 = vst [vmem:[#allocation10_spill] sm:$0xff] %v6687_v40  ;;  %v383_v60 = vadd.f32 1e-06, %v4037_v47  ;;  %v93_v47 = vld [vmem:[%s10394_s2 + $0x48] sm:$0xff] }
 0x121   :  { %v5366_v1 = vpop.eup %5365  ;;  %v4087_v39 = vpop.f32.mrb[23].mxu1  ;;  %v6689_v33 = vmul.f32 %v5364_v46, %v91_v42  ;;  %v447_v37 = vadd.f32 1e-06, %v4085_v48  ;;  %v4040_v41 = vadd.f32 %v4039_v63, %v4038_v53  ;;  %10846 = vst [vmem:[#allocation12_spill] sm:$0xff] %v6691_v45 }
 0x122   :  { %v4088_v44 = vadd.f32 %v4087_v39, %v4086_v54  ;;  %v6693_v35 = vmul.f32 %v5366_v1, %v107_v62  ;;  %5375 = vrcp.f32 %v383_v60  ;;  %v108_v39 = vld [vmem:[%s10394_s2 + $0xc0] sm:$0xff]  ;;  %v109_v60 = vld [vmem:[%s10394_s2 + $0xc8] sm:$0xff] }
 0x123   :  { %10845 = vst [vmem:[#allocation11_spill] sm:$0xff] %v6689_v33  ;;  %v386_v34 = vadd.f32 1e-06, %v4040_v41  ;;  %v536_v56 = vpack.c.bf16 %v6689_v33, %v6687_v40  ;;  %5377 = vrcp.f32 %v447_v37 }
 0x124   :  { %10847 = vst [vmem:[#allocation13_spill] sm:$0xff] %v6693_v35  ;;  %v450_v55 = vadd.f32 1e-06, %v4088_v44  ;;  %v544_v36 = vpack.c.bf16 %v6693_v35, %v6691_v45  ;;  %v5368_v38 = vpop.eup %5367  ;;  %v4041_v42 = vpop.f32.mrb[24].mxu0 }
 0x125   :  { %5379 = vrcp.f32 %v386_v34  ;;  %v4089_v46 = vpop.f32.mrb[24].mxu1  ;;  %v5370_v48 = vpop.eup %5369  ;;  %v6711_v44 = vmul.f32 %v5368_v38, %v92_v43 }
 0x126   :  { %5381 = vrcp.f32 %v450_v55  ;;  %4107 = vmatprep.subr.bf16.mxu1 %v544_v36  ;;  %v4042_v53 = vpop.f32.mrb[25].mxu0  ;;  %v4090_v54 = vpop.f32.mrb[25].mxu1 }
 0x127   :  { %v5372_v61 = vpop.eup %5371  ;;  %4108 = vmatpush3.bf16.msra.mxu1 %v536_v56  ;;  %v4043_v62 = vadd.f32 %v4042_v53, %v4041_v42  ;;  %v4091_v1 = vadd.f32 %v4090_v54, %v4089_v46  ;;  %v4044_v34 = vpop.f32.mrb[26].mxu0  ;;  %10848 = vst [vmem:[#allocation14_spill] sm:$0xff] %v6711_v44  ;;  %v6715_v54 = vmul.f32 %v5370_v48, %v108_v39  ;;  %v94_v48 = vld [vmem:[%s10394_s2 + $0x50] sm:$0xff] }
 0x128   :  { %v4092_v63 = vpop.f32.mrb[26].mxu1  ;;  %v5374_v37 = vpop.eup %5373  ;;  %v6713_v36 = vmul.f32 %v5372_v61, %v93_v47 }
 0x129   :  { %v4045_v41 = vpop.f32.mrb[27].mxu0  ;;  %v4093_v55 = vpop.f32.mrb[27].mxu1  ;;  %v391_v56 = vadd.f32 1e-06, %v4043_v62  ;;  %v455_v42 = vadd.f32 1e-06, %v4091_v1  ;;  %v6717_v35 = vmul.f32 %v5374_v37, %v109_v60 }
 0x12a   :  { %10849 = vst [vmem:[#allocation15_spill] sm:$0xff] %v6713_v36  ;;  %v4046_v46 = vadd.f32 %v4045_v41, %v4044_v34  ;;  %v4094_v53 = vadd.f32 %v4093_v55, %v4092_v63  ;;  %10850 = vst [vmem:[#allocation16_spill] sm:$0xff] %v6715_v54  ;;  %v537_v33 = vpack.c.bf16 %v6713_v36, %v6711_v44  ;;  %v95_v62 = vld [vmem:[%s10394_s2 + $0x58] sm:$0xff]  ;;  %v110_v55 = vld [vmem:[%s10394_s2 + $0xd0] sm:$0xff] }
 0x12b   :  { %10851 = vst [vmem:[#allocation17_spill] sm:$0xff] %v6717_v35  ;;  %5383 = vrcp.f32 %v391_v56  ;;  %v545_v38 = vpack.c.bf16 %v6717_v35, %v6715_v54  ;;  %v111_v56 = vld [vmem:[%s10394_s2 + $0xd8] sm:$0xff] }
 0x12c   :  { %v394_v45 = vadd.f32 1e-06, %v4046_v46  ;;  %v458_v40 = vadd.f32 1e-06, %v4094_v53  ;;  %5385 = vrcp.f32 %v455_v42  ;;  %v5376_v43 = vpop.eup %5375  ;;  %v4047_v47 = vpop.f32.mrb[28].mxu0 }
 0x12d   :  { %v4095_v61 = vpop.f32.mrb[28].mxu1  ;;  %v5378_v1 = vpop.eup %5377  ;;  %4109 = vmatprep.subr.bf16.mxu1 %v545_v38  ;;  %v6735_v53 = vmul.f32 %v5376_v43, %v94_v48 }
 0x12e   :  { %5387 = vrcp.f32 %v394_v45  ;;  %v4048_v34 = vpop.f32.mrb[29].mxu0  ;;  %v4096_v63 = vpop.f32.mrb[29].mxu1  ;;  %4110 = vmatpush3.bf16.msra.mxu1 %v537_v33 }
 0x12f   :  { %5389 = vrcp.f32 %v458_v40  ;;  %v5380_v39 = vpop.eup %5379  ;;  %v4049_v60 = vadd.f32 %v4048_v34, %v4047_v47  ;;  %v4097_v37 = vadd.f32 %v4096_v63, %v4095_v61  ;;  %v4050_v45 = vpop.f32.mrb[30].mxu0  ;;  %v6739_v63 = vmul.f32 %v5378_v1, %v110_v55  ;;  %v97_v1 = vld [vmem:[%s10394_s2 + $0x68] sm:$0xff] }
 0x130   :  { %v4098_v41 = vpop.f32.mrb[30].mxu1  ;;  %v5382_v42 = vpop.eup %5381  ;;  %v6737_v38 = vmul.f32 %v5380_v39, %v95_v62  ;;  %v96_v62 = vld [vmem:[%s10394_s2 + $0x60] sm:$0xff] }
 0x131   :  { %v4051_v46 = vpop.f32.mrb[31].mxu0  ;;  %v4099_v40 = vpop.f32.mrb[31].mxu1  ;;  %v399_v33 = vadd.f32 1e-06, %v4049_v60  ;;  %v463_v47 = vadd.f32 1e-06, %v4097_v37  ;;  %v6741_v35 = vmul.f32 %v5382_v42, %v111_v56 }
 0x132   :  { %v4052_v61 = vadd.f32 %v4051_v46, %v4050_v45  ;;  %v4100_v34 = vadd.f32 %v4099_v40, %v4098_v41  ;;  %v538_v36 = vpack.c.bf16 %v6737_v38, %v6735_v53  ;;  %v112_v60 = vld [vmem:[%s10394_s2 + $0xe0] sm:$0xff]  ;;  %v113_v37 = vld [vmem:[%s10394_s2 + $0xe8] sm:$0xff] }
 0x133   :  { %5391 = vrcp.f32 %v399_v33  ;;  %v546_v43 = vpack.c.bf16 %v6741_v35, %v6739_v63  ;;  %v99_v33 = vld [vmem:[%s10394_s2 + $0x78] sm:$0xff] }
 0x134   :  { %v402_v54 = vadd.f32 1e-06, %v4052_v61  ;;  %v466_v44 = vadd.f32 1e-06, %v4100_v34  ;;  %5393 = vrcp.f32 %v463_v47  ;;  %v114_v61 = vld [vmem:[%s10394_s2 + $0xf0] sm:$0xff]  ;;  %v115_v34 = vld [vmem:[%s10394_s2 + $0xf8] sm:$0xff] }
 0x135   :  { %v5384_v48 = vpop.eup %5383  ;;  %4111 = vmatprep.subr.bf16.mxu1 %v546_v43 }
 0x136   :  { %5395 = vrcp.f32 %v402_v54  ;;  %v5386_v39 = vpop.eup %5385  ;;  %4112 = vmatpush3.bf16.msra.mxu1 %v538_v36  ;;  %v6759_v41 = vmul.f32 %v5384_v48, %v96_v62  ;;  %v98_v36 = vld [vmem:[%s10394_s2 + $0x70] sm:$0xff] }
 0x137   :  { %5397 = vrcp.f32 %v466_v44  ;;  %v6763_v56 = vmul.f32 %v5386_v39, %v112_v60 }
 0x138   :  { %v5388_v54 = vpop.eup %5387 }
 0x139   :  { %v5390_v45 = vpop.eup %5389  ;;  %v6761_v55 = vmul.f32 %v5388_v54, %v97_v1 }
 0x13a   :  { %v6765_v42 = vmul.f32 %v5390_v45, %v113_v37 }
 0x13b   :  { %v539_v44 = vpack.c.bf16 %v6761_v55, %v6759_v41 }
 0x13c   :  { %v547_v46 = vpack.c.bf16 %v6765_v42, %v6763_v56 }
 0x13d   :  { %v5392_v40 = vpop.eup %5391 }
 0x13e   :  { %4113 = vmatprep.subr.bf16.mxu1 %v547_v46  ;;  %v5394_v47 = vpop.eup %5393  ;;  %v6783_v62 = vmul.f32 %v5392_v40, %v98_v36 }
 0x13f   :  { %4114 = vmatpush3.bf16.msra.mxu1 %v539_v44  ;;  %v6787_v39 = vmul.f32 %v5394_v47, %v114_v61 }
 0x140   :  { %v5396_v43 = vpop.eup %5395 }
 0x141   :  { %v5398_v48 = vpop.eup %5397  ;;  %v6785_v1 = vmul.f32 %v5396_v43, %v99_v33 }
 0x142   :  { %v6789_v60 = vmul.f32 %v5398_v48, %v115_v34 }
 0x143   :  { %v540_v37 = vpack.c.bf16 %v6785_v1, %v6783_v62 }
 0x144   :  { %v548_v54 = vpack.c.bf16 %v6789_v60, %v6787_v39 }
 0x146   :  { %4115 = vmatprep.subr.bf16.mxu1 %v548_v54 }
 0x147   :  { %4116 = vmatpush3.bf16.msra.mxu1 %v540_v37 }
 0x14a   :  { %582 = vmatmul.mubr.bf16.vlgmr.msra.gmra.mrb[32].mxu1 %v6424_v3 }
 0x14b   :  { %589 = vmatprep.mubr.bf16.mxu1 %v6434_v5 }
 0x152   :  { %590 = vmatmul.mubr.bf16.gmra.mrb[36].mxu1 %v6448_v7 }
 0x153   :  { %597 = vmatprep.mubr.bf16.mxu1 %v6458_v9 }
 0x15a   :  { %598 = vmatmul.mubr.bf16.gmra.mrb[40].mxu1 %v6472_v11 }
 0x15b   :  { %605 = vmatprep.mubr.bf16.mxu1 %v6482_v13 }
 0x162   :  { %606 = vmatmul.mubr.bf16.gmra.mrb[44].mxu1 %v6496_v15 }
 0x163   :  { %613 = vmatprep.mubr.bf16.mxu1 %v6506_v17 }
 0x16a   :  { %614 = vmatmul.mubr.bf16.gmra.mrb[48].mxu1 %v6520_v19 }
 0x16b   :  { %621 = vmatprep.mubr.bf16.mxu1 %v6530_v21 }
 0x172   :  { %622 = vmatmul.mubr.bf16.gmra.mrb[52].mxu1 %v6544_v23 }
 0x173   :  { %629 = vmatprep.mubr.bf16.mxu1 %v6554_v25 }
 0x17a   :  { %630 = vmatmul.mubr.bf16.gmra.mrb[56].mxu1 %v6568_v27 }
 0x17b   :  { %637 = vmatprep.mubr.bf16.mxu1 %v6578_v29 }
 0x182   :  { %638 = vmatmul.mubr.bf16.gmra.mrb[60].mxu1 %v6592_v31 }
 0x183   :  { %645 = vmatprep.mubr.bf16.mxu1 %v6417_v2 }
 0x18a   :  { %646 = vmatmul.mubr.bf16.gmra.mrb[64].mxu1 %v6429_v4 }
 0x18b   :  { %653 = vmatprep.mubr.bf16.mxu1 %v6439_v6 }
 0x192   :  { %654 = vmatmul.mubr.bf16.gmra.mrb[68].mxu1 %v6453_v8 }
 0x193   :  { %661 = vmatprep.mubr.bf16.mxu1 %v6463_v10 }
 0x19a   :  { %662 = vmatmul.mubr.bf16.gmra.mrb[72].mxu1 %v6477_v12 }
 0x19b   :  { %669 = vmatprep.mubr.bf16.mxu1 %v6487_v14 }
 0x1a2   :  { %670 = vmatmul.mubr.bf16.gmra.mrb[76].mxu1 %v6501_v16 }
 0x1a3   :  { %677 = vmatprep.mubr.bf16.mxu1 %v6511_v18 }
 0x1aa   :  { %678 = vmatmul.mubr.bf16.gmra.mrb[80].mxu1 %v6525_v20 }
 0x1ab   :  { %685 = vmatprep.mubr.bf16.mxu1 %v6535_v22 }
 0x1b2   :  { %686 = vmatmul.mubr.bf16.gmra.mrb[84].mxu1 %v6549_v24 }
 0x1b3   :  { %693 = vmatprep.mubr.bf16.mxu1 %v6559_v26 }
 0x1ba   :  { %694 = vmatmul.mubr.bf16.gmra.mrb[88].mxu1 %v6573_v28 }
 0x1bb   :  { %701 = vmatprep.mubr.bf16.mxu1 %v6583_v30 }
 0x1c2   :  { %702 = vmatmul.mubr.bf16.gmra.mrb[92].mxu1 %v6597_v32 }
 0x1c3   :  { %1159 = vmatprep.mubr.bf16.mxu1 %v6412_v0 }
 0x21d   :  { %v4117_v2 = vpop.f32.mrb[32].mxu1 }
 0x21e   :  { %v4118_v3 = vpop.f32.mrb[33].mxu1 }
 0x21f   :  { %v4119_v4 = vadd.f32 %v4118_v3, %v4117_v2  ;;  %v4120_v5 = vpop.f32.mrb[34].mxu1 }
 0x220   :  { %v4121_v6 = vpop.f32.mrb[35].mxu1 }
 0x221   :  { %v4122_v7 = vadd.f32 %v4121_v6, %v4120_v5 }
 0x225   :  { %v4123_v8 = vpop.f32.mrb[36].mxu1 }
 0x226   :  { %v4124_v9 = vpop.f32.mrb[37].mxu1 }
 0x227   :  { %v4125_v10 = vadd.f32 %v4124_v9, %v4123_v8  ;;  %v4126_v11 = vpop.f32.mrb[38].mxu1  ;;  %v587_v8 = vadd.f32 1e-06, %v4122_v7 }
 0x228   :  { %v4127_v12 = vpop.f32.mrb[39].mxu1 }
 0x229   :  { %v4128_v13 = vadd.f32 %v4127_v12, %v4126_v11  ;;  %5399 = vrcp.f32 %v587_v8 }
 0x22d   :  { %v4129_v14 = vpop.f32.mrb[40].mxu1 }
 0x22e   :  { %v4130_v15 = vpop.f32.mrb[41].mxu1 }
 0x22f   :  { %v6827_v16 = vadd.f32 %v4130_v15, %v4129_v14  ;;  %v4132_v17 = vpop.f32.mrb[42].mxu1  ;;  %v584_v14 = vadd.f32 1e-06, %v4119_v4 }
 0x230   :  { %v4133_v18 = vpop.f32.mrb[43].mxu1 }
 0x231   :  { %v6829_v19 = vadd.f32 %v4133_v18, %v4132_v17  ;;  %v600_v8 = vadd.f32 1e-06, %v6827_v16  ;;  %v119_v16 = vld [vmem:[%s10395_s3 + $0x18] sm:$0xff] }
 0x235   :  { %v4135_v0 = vpop.f32.mrb[44].mxu1 }
 0x236   :  { %v4136_v20 = vpop.f32.mrb[45].mxu1 }
 0x237   :  { %v6831_v21 = vadd.f32 %v4136_v20, %v4135_v0  ;;  %v4138_v22 = vpop.f32.mrb[46].mxu1 }
 0x238   :  { %v4139_v23 = vpop.f32.mrb[47].mxu1 }
 0x239   :  { %v6833_v24 = vadd.f32 %v4139_v23, %v4138_v22  ;;  %v595_v22 = vadd.f32 1e-06, %v4128_v13  ;;  %v132_v13 = vld [vmem:[%s10395_s3 + $0x80] sm:$0xff] }
 0x23d   :  { %v4141_v25 = vpop.f32.mrb[48].mxu1 }
 0x23e   :  { %v4142_v26 = vpop.f32.mrb[49].mxu1 }
 0x23f   :  { %v6835_v27 = vadd.f32 %v4142_v26, %v4141_v25  ;;  %v4144_v28 = vpop.f32.mrb[50].mxu1 }
 0x240   :  { %v4145_v29 = vpop.f32.mrb[51].mxu1 }
 0x241   :  { %v6837_v30 = vadd.f32 %v4145_v29, %v4144_v28  ;;  %v592_v28 = vadd.f32 1e-06, %v4125_v10  ;;  %v133_v10 = vld [vmem:[%s10395_s3 + $0x88] sm:$0xff] }
 0x245   :  { %v4147_v31 = vpop.f32.mrb[52].mxu1 }
 0x246   :  { %v4148_v32 = vpop.f32.mrb[53].mxu1 }
 0x247   :  { %v6839_v45 = vadd.f32 %v4148_v32, %v4147_v31  ;;  %v4150_v44 = vpop.f32.mrb[54].mxu1  ;;  %v5400_v32 = vpop.eup %5399 }
 0x248   :  { %v4151_v46 = vpop.f32.mrb[55].mxu1 }
 0x249   :  { %v6841_v40 = vadd.f32 %v4151_v46, %v4150_v44  ;;  %v117_v44 = vld [vmem:[%s10395_s3 + $0x8] sm:$0xff] }
 0x24d   :  { %v4153_v36 = vpop.f32.mrb[56].mxu1 }
 0x24e   :  { %v4154_v33 = vpop.f32.mrb[57].mxu1 }
 0x24f   :  { %v6843_v47 = vadd.f32 %v4154_v33, %v4153_v36  ;;  %v4156_v61 = vpop.f32.mrb[58].mxu1 }
 0x250   :  { %v4157_v34 = vpop.f32.mrb[59].mxu1 }
 0x251   :  { %v6845_v43 = vadd.f32 %v4157_v34, %v4156_v61  ;;  %v603_v61 = vadd.f32 1e-06, %v6829_v19 }
 0x255   :  { %v4159_v48 = vpop.f32.mrb[60].mxu1 }
 0x256   :  { %v4160_v37 = vpop.f32.mrb[61].mxu1 }
 0x257   :  { %v6847_v54 = vadd.f32 %v4160_v37, %v4159_v48  ;;  %v4162_v2 = vpop.f32.mrb[62].mxu1  ;;  %v116_v48 = vld [vmem:[%s10395_s3] sm:$0xff] }
 0x258   :  { %v4163_v3 = vpop.f32.mrb[63].mxu1 }
 0x259   :  { %v6849_v5 = vadd.f32 %v4163_v3, %v4162_v2 }
 0x25d   :  { %v4165_v6 = vpop.f32.mrb[64].mxu1 }
 0x25e   :  { %v4166_v9 = vpop.f32.mrb[65].mxu1 }
 0x25f   :  { %v4167_v11 = vadd.f32 %v4166_v9, %v4165_v6  ;;  %v4168_v12 = vpop.f32.mrb[66].mxu1  ;;  %v6864_v6 = vmul.f32 %v5400_v32, %v117_v44 }
 0x260   :  { %v4169_v15 = vpop.f32.mrb[67].mxu1 }
 0x261   :  { %v648_v17 = vadd.f32 1e-06, %v4167_v11  ;;  %v4170_v18 = vadd.f32 %v4169_v15, %v4168_v12  ;;  %10852 = vst [vmem:[#allocation18_spill] sm:$0xff] %v6864_v6 }
 0x263   :  { %5401 = vrcp.f32 %v648_v17  ;;  %v651_v0 = vadd.f32 1e-06, %v4170_v18 }
 0x264   :  { %5403 = vrcp.f32 %v584_v14 }
 0x265   :  { %5405 = vrcp.f32 %v651_v0  ;;  %v4171_v20 = vpop.f32.mrb[68].mxu1 }
 0x266   :  { %v4172_v23 = vpop.f32.mrb[69].mxu1  ;;  %5407 = vrcp.f32 %v595_v22 }
 0x267   :  { %v4173_v25 = vadd.f32 %v4172_v23, %v4171_v20  ;;  %v4174_v26 = vpop.f32.mrb[70].mxu1 }
 0x268   :  { %v4175_v29 = vpop.f32.mrb[71].mxu1 }
 0x269   :  { %v656_v7 = vadd.f32 1e-06, %v4173_v25  ;;  %v4176_v31 = vadd.f32 %v4175_v29, %v4174_v26  ;;  %v134_v25 = vld [vmem:[%s10395_s3 + $0x90] sm:$0xff]  ;;  %v135_v26 = vld [vmem:[%s10395_s3 + $0x98] sm:$0xff]  ;;  %v611_v29 = vadd.f32 1e-06, %v6833_v24 }
 0x26b   :  { %5409 = vrcp.f32 %v656_v7  ;;  %v659_v4 = vadd.f32 1e-06, %v4176_v31  ;;  %v118_v31 = vld [vmem:[%s10395_s3 + $0x10] sm:$0xff] }
 0x26c   :  { %5411 = vrcp.f32 %v592_v28 }
 0x26d   :  { %v5402_v46 = vpop.eup %5401  ;;  %5413 = vrcp.f32 %v659_v4  ;;  %v4177_v36 = vpop.f32.mrb[72].mxu1 }
 0x26e   :  { %v5404_v33 = vpop.eup %5403  ;;  %v4178_v34 = vpop.f32.mrb[73].mxu1  ;;  %v6867_v11 = vmul.f32 %v5402_v46, %v132_v13  ;;  %5415 = vrcp.f32 %v603_v61 }
 0x26f   :  { %v5406_v37 = vpop.eup %5405  ;;  %v4179_v2 = vadd.f32 %v4178_v34, %v4177_v36  ;;  %v4180_v3 = vpop.f32.mrb[74].mxu1  ;;  %v6871_v19 = vmul.f32 %v5404_v33, %v116_v48  ;;  %v608_v36 = vadd.f32 1e-06, %v6831_v21  ;;  %v121_v21 = vld [vmem:[%s10395_s3 + $0x28] sm:$0xff] }
 0x270   :  { %v4181_v9 = vpop.f32.mrb[75].mxu1  ;;  %10853 = vst [vmem:[#allocation19_spill] sm:$0xff] %v6867_v11  ;;  %v6869_v12 = vmul.f32 %v5406_v37, %v133_v10  ;;  %v5408_v20 = vpop.eup %5407 }
 0x271   :  { %v664_v14 = vadd.f32 1e-06, %v4179_v2  ;;  %v4182_v15 = vadd.f32 %v4181_v9, %v4180_v3  ;;  %10855 = vst [vmem:[#allocation21_spill] sm:$0xff] %v6871_v19  ;;  %v774_v0 = vpack.c.bf16 %v6864_v6, %v6871_v19  ;;  %v6890_v46 = vmul.f32 %v5408_v20, %v119_v16  ;;  %v120_v20 = vld [vmem:[%s10395_s3 + $0x20] sm:$0xff] }
 0x272   :  { %10854 = vst [vmem:[#allocation20_spill] sm:$0xff] %v6869_v12  ;;  %v782_v17 = vpack.c.bf16 %v6869_v12, %v6867_v11 }
 0x273   :  { %5417 = vrcp.f32 %v664_v14  ;;  %v667_v18 = vadd.f32 1e-06, %v4182_v15  ;;  %10856 = vst [vmem:[#allocation22_spill] sm:$0xff] %v6890_v46  ;;  %v136_v14 = vld [vmem:[%s10395_s3 + $0xa0] sm:$0xff]  ;;  %v137_v15 = vld [vmem:[%s10395_s3 + $0xa8] sm:$0xff] }
 0x274   :  { %5419 = vrcp.f32 %v600_v8  ;;  %4213 = vmatprep.subr.bf16.mxu0 %v782_v17 }
 0x275   :  { %v5410_v22 = vpop.eup %5409  ;;  %5421 = vrcp.f32 %v667_v18  ;;  %v4183_v23 = vpop.f32.mrb[76].mxu1  ;;  %4214 = vmatpush3.bf16.msra.mxu0 %v774_v0  ;;  %v619_v18 = vadd.f32 1e-06, %v6837_v30 }
 0x276   :  { %v5412_v28 = vpop.eup %5411  ;;  %v4184_v7 = vpop.f32.mrb[77].mxu1  ;;  %v6893_v10 = vmul.f32 %v5410_v22, %v134_v25  ;;  %5423 = vrcp.f32 %v611_v29 }
 0x277   :  { %v5414_v4 = vpop.eup %5413  ;;  %v4185_v32 = vadd.f32 %v4184_v7, %v4183_v23  ;;  %v4186_v44 = vpop.f32.mrb[78].mxu1  ;;  %v6897_v24 = vmul.f32 %v5412_v28, %v118_v31 }
 0x278   :  { %v4187_v13 = vpop.f32.mrb[79].mxu1  ;;  %10857 = vst [vmem:[#allocation23_spill] sm:$0xff] %v6893_v10  ;;  %v6895_v33 = vmul.f32 %v5414_v4, %v135_v26  ;;  %v5416_v3 = vpop.eup %5415  ;;  %v616_v26 = vadd.f32 1e-06, %v6835_v27  ;;  %v123_v27 = vld [vmem:[%s10395_s3 + $0x38] sm:$0xff] }
 0x279   :  { %v672_v61 = vadd.f32 1e-06, %v4185_v32  ;;  %v4188_v34 = vadd.f32 %v4187_v13, %v4186_v44  ;;  %10859 = vst [vmem:[#allocation25_spill] sm:$0xff] %v6897_v24  ;;  %v775_v2 = vpack.c.bf16 %v6890_v46, %v6897_v24  ;;  %v6916_v25 = vmul.f32 %v5416_v3, %v121_v21 }
 0x27a   :  { %10858 = vst [vmem:[#allocation24_spill] sm:$0xff] %v6895_v33  ;;  %v783_v48 = vpack.c.bf16 %v6895_v33, %v6893_v10  ;;  %v627_v3 = vadd.f32 1e-06, %v6841_v40 }
 0x27b   :  { %5425 = vrcp.f32 %v672_v61  ;;  %v675_v37 = vadd.f32 1e-06, %v4188_v34  ;;  %10860 = vst [vmem:[#allocation26_spill] sm:$0xff] %v6916_v25 }
 0x27c   :  { %5427 = vrcp.f32 %v608_v36  ;;  %4215 = vmatprep.subr.bf16.mxu0 %v783_v48  ;;  %v138_v48 = vld [vmem:[%s10395_s3 + $0xb0] sm:$0xff] }
 0x27d   :  { %v5418_v8 = vpop.eup %5417  ;;  %5429 = vrcp.f32 %v675_v37  ;;  %v4189_v9 = vpop.f32.mrb[80].mxu1  ;;  %4216 = vmatpush3.bf16.msra.mxu0 %v775_v2  ;;  %v139_v37 = vld [vmem:[%s10395_s3 + $0xb8] sm:$0xff] }
 0x27e   :  { %v5420_v17 = vpop.eup %5419  ;;  %v4190_v0 = vpop.f32.mrb[81].mxu1  ;;  %v6919_v29 = vmul.f32 %v5418_v8, %v136_v14  ;;  %5431 = vrcp.f32 %v619_v18  ;;  %v122_v8 = vld [vmem:[%s10395_s3 + $0x30] sm:$0xff]  ;;  %v624_v18 = vadd.f32 1e-06, %v6839_v45  ;;  %v125_v45 = vld [vmem:[%s10395_s3 + $0x48] sm:$0xff] }
 0x27f   :  { %v5422_v16 = vpop.eup %5421  ;;  %v4191_v22 = vadd.f32 %v4190_v0, %v4189_v9  ;;  %v4192_v23 = vpop.f32.mrb[82].mxu1  ;;  %v6923_v30 = vmul.f32 %v5420_v17, %v120_v20 }
 0x280   :  { %v4193_v28 = vpop.f32.mrb[83].mxu1  ;;  %10861 = vst [vmem:[#allocation27_spill] sm:$0xff] %v6919_v29  ;;  %v6921_v7 = vmul.f32 %v5422_v16, %v137_v15  ;;  %v5424_v13 = vpop.eup %5423 }
 0x281   :  { %v680_v31 = vadd.f32 1e-06, %v4191_v22  ;;  %v4194_v4 = vadd.f32 %v4193_v28, %v4192_v23  ;;  %10863 = vst [vmem:[#allocation29_spill] sm:$0xff] %v6923_v30  ;;  %v776_v36 = vpack.c.bf16 %v6916_v25, %v6923_v30  ;;  %v6942_v17 = vmul.f32 %v5424_v13, %v123_v27  ;;  %v141_v13 = vld [vmem:[%s10395_s3 + $0xc8] sm:$0xff] }
 0x282   :  { %10862 = vst [vmem:[#allocation28_spill] sm:$0xff] %v6921_v7  ;;  %v784_v32 = vpack.c.bf16 %v6921_v7, %v6919_v29 }
 0x283   :  { %5433 = vrcp.f32 %v680_v31  ;;  %v683_v44 = vadd.f32 1e-06, %v4194_v4  ;;  %10864 = vst [vmem:[#allocation30_spill] sm:$0xff] %v6942_v17 }
 0x284   :  { %5435 = vrcp.f32 %v616_v26  ;;  %4217 = vmatprep.subr.bf16.mxu0 %v784_v32 }
 0x285   :  { %v5426_v61 = vpop.eup %5425  ;;  %5437 = vrcp.f32 %v683_v44  ;;  %v4195_v34 = vpop.f32.mrb[84].mxu1  ;;  %4218 = vmatpush3.bf16.msra.mxu0 %v776_v36  ;;  %v140_v36 = vld [vmem:[%s10395_s3 + $0xc0] sm:$0xff] }
 0x286   :  { %v5428_v2 = vpop.eup %5427  ;;  %v4196_v21 = vpop.f32.mrb[85].mxu1  ;;  %v6945_v20 = vmul.f32 %v5426_v61, %v138_v48  ;;  %5439 = vrcp.f32 %v627_v3  ;;  %v635_v61 = vadd.f32 1e-06, %v6845_v43  ;;  %v124_v48 = vld [vmem:[%s10395_s3 + $0x40] sm:$0xff] }
 0x287   :  { %v5430_v9 = vpop.eup %5429  ;;  %v4197_v14 = vadd.f32 %v4196_v21, %v4195_v34  ;;  %v4198_v15 = vpop.f32.mrb[86].mxu1  ;;  %v6949_v40 = vmul.f32 %v5428_v2, %v122_v8  ;;  %v632_v8 = vadd.f32 1e-06, %v6843_v47  ;;  %v127_v47 = vld [vmem:[%s10395_s3 + $0x58] sm:$0xff] }
 0x288   :  { %v4199_v0 = vpop.f32.mrb[87].mxu1  ;;  %10865 = vst [vmem:[#allocation31_spill] sm:$0xff] %v6945_v20  ;;  %v6947_v16 = vmul.f32 %v5430_v9, %v139_v37  ;;  %v5432_v4 = vpop.eup %5431 }
 0x289   :  { %v688_v22 = vadd.f32 1e-06, %v4197_v14  ;;  %v4200_v23 = vadd.f32 %v4199_v0, %v4198_v15  ;;  %10867 = vst [vmem:[#allocation33_spill] sm:$0xff] %v6949_v40  ;;  %v777_v31 = vpack.c.bf16 %v6942_v17, %v6949_v40  ;;  %v6968_v21 = vmul.f32 %v5432_v4, %v125_v45  ;;  %v142_v45 = vld [vmem:[%s10395_s3 + $0xd0] sm:$0xff]  ;;  %v7244_v40 = vld [vmem:[%s10392_s0 + $0x4] ss:$8 sps:$4 sm:$0xff]  }
 0x28a   :  { %10866 = vst [vmem:[#allocation32_spill] sm:$0xff] %v6947_v16  ;;  %v785_v26 = vpack.c.bf16 %v6947_v16, %v6945_v20  ;;  %v7232_v16 = vld [vmem:[%s10392_s0 + $0xf4] ss:$8 sps:$4 sm:$0xff]   ;;  %v7238_v20 = vld [vmem:[%s10392_s0 + $0xf0] ss:$8 sps:$4 sm:$0xff]   ;;  %10905 = vst [vmem:[#allocation71_spill] sm:$0xff] %v7244_v40 }
 0x28b   :  { %5441 = vrcp.f32 %v688_v22  ;;  %v691_v28 = vadd.f32 1e-06, %v4200_v23  ;;  %10868 = vst [vmem:[#allocation34_spill] sm:$0xff] %v6968_v21  ;;  %10903 = vst [vmem:[#allocation69_spill] sm:$0xff] %v7232_v16 }
 0x28c   :  { %5443 = vrcp.f32 %v624_v18  ;;  %4219 = vmatprep.subr.bf16.mxu0 %v785_v26  ;;  %10904 = vst [vmem:[#allocation70_spill] sm:$0xff] %v7238_v20 }
 0x28d   :  { %v5434_v32 = vpop.eup %5433  ;;  %5445 = vrcp.f32 %v691_v28  ;;  %v4201_v44 = vpop.f32.mrb[88].mxu1  ;;  %4220 = vmatpush3.bf16.msra.mxu0 %v777_v31 }
 0x28e   :  { %v5436_v27 = vpop.eup %5435  ;;  %v4202_v34 = vpop.f32.mrb[89].mxu1  ;;  %v6971_v14 = vmul.f32 %v5434_v32, %v140_v36  ;;  %5447 = vrcp.f32 %v635_v61  ;;  %v143_v32 = vld [vmem:[%s10395_s3 + $0xd8] sm:$0xff]  ;;  %v643_v36 = vadd.f32 1e-06, %v6849_v5 }
 0x28f   :  { %v5438_v37 = vpop.eup %5437  ;;  %v4203_v2 = vadd.f32 %v4202_v34, %v4201_v44  ;;  %v4204_v3 = vpop.f32.mrb[90].mxu1  ;;  %v6975_v43 = vmul.f32 %v5436_v27, %v124_v48  ;;  %v126_v27 = vld [vmem:[%s10395_s3 + $0x50] sm:$0xff] }
 0x290   :  { %v4205_v9 = vpop.f32.mrb[91].mxu1  ;;  %10869 = vst [vmem:[#allocation35_spill] sm:$0xff] %v6971_v14  ;;  %v6973_v15 = vmul.f32 %v5438_v37, %v141_v13  ;;  %v5440_v28 = vpop.eup %5439 }
 0x291   :  { %v696_v18 = vadd.f32 1e-06, %v4203_v2  ;;  %v4206_v0 = vadd.f32 %v4205_v9, %v4204_v3  ;;  %10871 = vst [vmem:[#allocation37_spill] sm:$0xff] %v6975_v43  ;;  %v778_v26 = vpack.c.bf16 %v6968_v21, %v6975_v43  ;;  %v6994_v37 = vmul.f32 %v5440_v28, %v127_v47  ;;  %v7220_v43 = vld [vmem:[%s10392_s0 + $0xe4] ss:$8 sps:$4 sm:$0xff]  }
 0x292   :  { %10870 = vst [vmem:[#allocation36_spill] sm:$0xff] %v6973_v15  ;;  %v786_v22 = vpack.c.bf16 %v6973_v15, %v6971_v14  ;;  %v640_v2 = vadd.f32 1e-06, %v6847_v54  ;;  %v129_v54 = vld [vmem:[%s10395_s3 + $0x68] sm:$0xff]  ;;  %v7208_v15 = vld [vmem:[%s10392_s0 + $0xd4] ss:$8 sps:$4 sm:$0xff]  }
 0x293   :  { %5449 = vrcp.f32 %v696_v18  ;;  %v699_v23 = vadd.f32 1e-06, %v4206_v0  ;;  %10872 = vst [vmem:[#allocation38_spill] sm:$0xff] %v6994_v37  ;;  %10899 = vst [vmem:[#allocation65_spill] sm:$0xff] %v7208_v15  ;;  %v7214_v14 = vld [vmem:[%s10392_s0 + $0xd0] ss:$8 sps:$4 sm:$0xff]  }
 0x294   :  { %5451 = vrcp.f32 %v632_v8  ;;  %4221 = vmatprep.subr.bf16.mxu0 %v786_v22  ;;  %10900 = vst [vmem:[#allocation66_spill] sm:$0xff] %v7214_v14  ;;  %10901 = vst [vmem:[#allocation67_spill] sm:$0xff] %v7220_v43  ;;  %v7226_v21 = vld [vmem:[%s10392_s0 + $0xe0] ss:$8 sps:$4 sm:$0xff]  }
 0x295   :  { %v5442_v31 = vpop.eup %5441  ;;  %5453 = vrcp.f32 %v699_v23  ;;  %v4207_v4 = vpop.f32.mrb[92].mxu1  ;;  %4222 = vmatpush3.bf16.msra.mxu0 %v778_v26  ;;  %10902 = vst [vmem:[#allocation68_spill] sm:$0xff] %v7226_v21 }
 0x296   :  { %v5444_v44 = vpop.eup %5443  ;;  %v4208_v13 = vpop.f32.mrb[93].mxu1  ;;  %v6997_v8 = vmul.f32 %v5442_v31, %v142_v45  ;;  %5455 = vrcp.f32 %v643_v36  ;;  %v144_v31 = vld [vmem:[%s10395_s3 + $0xe0] sm:$0xff] }
 0x297   :  { %v5446_v61 = vpop.eup %5445  ;;  %v4209_v34 = vadd.f32 %v4208_v13, %v4207_v4  ;;  %v4210_v48 = vpop.f32.mrb[94].mxu1  ;;  %v7001_v5 = vmul.f32 %v5444_v44, %v126_v27  ;;  %v145_v4 = vld [vmem:[%s10395_s3 + $0xe8] sm:$0xff] }
 0x298   :  { %v4211_v3 = vpop.f32.mrb[95].mxu1  ;;  %10873 = vst [vmem:[#allocation39_spill] sm:$0xff] %v6997_v8  ;;  %v6999_v9 = vmul.f32 %v5446_v61, %v143_v32  ;;  %v5448_v28 = vpop.eup %5447  ;;  %v128_v32 = vld [vmem:[%s10395_s3 + $0x60] sm:$0xff] }
 0x299   :  { %v704_v18 = vadd.f32 1e-06, %v4209_v34  ;;  %v4212_v0 = vadd.f32 %v4211_v3, %v4210_v48  ;;  %10875 = vst [vmem:[#allocation41_spill] sm:$0xff] %v7001_v5  ;;  %v779_v26 = vpack.c.bf16 %v6994_v37, %v7001_v5  ;;  %v7019_v36 = vmul.f32 %v5448_v28, %v129_v54  ;;  %v131_v3 = vld [vmem:[%s10395_s3 + $0x78] sm:$0xff]  ;;  %v7196_v5 = vld [vmem:[%s10392_s0 + $0xc4] ss:$8 sps:$4 sm:$0xff]  }
 0x29a   :  { %10874 = vst [vmem:[#allocation40_spill] sm:$0xff] %v6999_v9  ;;  %v787_v22 = vpack.c.bf16 %v6999_v9, %v6997_v8  ;;  %v7184_v9 = vld [vmem:[%s10392_s0 + $0xb4] ss:$8 sps:$4 sm:$0xff]   ;;  %v7190_v8 = vld [vmem:[%s10392_s0 + $0xb0] ss:$8 sps:$4 sm:$0xff]   ;;  %10897 = vst [vmem:[#allocation63_spill] sm:$0xff] %v7196_v5 }
 0x29b   :  { %5457 = vrcp.f32 %v704_v18  ;;  %v707_v23 = vadd.f32 1e-06, %v4212_v0  ;;  %10876 = vst [vmem:[#allocation42_spill] sm:$0xff] %v7019_v36  ;;  %v146_v0 = vld [vmem:[%s10395_s3 + $0xf0] sm:$0xff]  ;;  %10895 = vst [vmem:[#allocation61_spill] sm:$0xff] %v7184_v9 }
 0x29c   :  { %5459 = vrcp.f32 %v640_v2  ;;  %4223 = vmatprep.subr.bf16.mxu0 %v787_v22  ;;  %v147_v22 = vld [vmem:[%s10395_s3 + $0xf8] sm:$0xff]  ;;  %10896 = vst [vmem:[#allocation62_spill] sm:$0xff] %v7190_v8  ;;  %v7202_v37 = vld [vmem:[%s10392_s0 + $0xc0] ss:$8 sps:$4 sm:$0xff]  }
 0x29d   :  { %v5450_v47 = vpop.eup %5449  ;;  %5461 = vrcp.f32 %v707_v23  ;;  %4224 = vmatpush3.bf16.msra.mxu0 %v779_v26  ;;  %v130_v26 = vld [vmem:[%s10395_s3 + $0x70] sm:$0xff]  ;;  %10898 = vst [vmem:[#allocation64_spill] sm:$0xff] %v7202_v37 }
 0x29e   :  { %v5452_v45 = vpop.eup %5451  ;;  %v7021_v13 = vmul.f32 %v5450_v47, %v144_v31 }
 0x29f   :  { %v5454_v44 = vpop.eup %5453  ;;  %v7025_v61 = vmul.f32 %v5452_v45, %v128_v32 }
 0x2a0   :  { %10877 = vst [vmem:[#allocation43_spill] sm:$0xff] %v7021_v13  ;;  %v7023_v27 = vmul.f32 %v5454_v44, %v145_v4  ;;  %v5456_v2 = vpop.eup %5455  ;;  %v7058_v44 = vld [vmem:[%s10392_s0] ss:$8 sps:$4 sm:$0xff]  }
 0x2a1   :  { %10879 = vst [vmem:[#allocation45_spill] sm:$0xff] %v7025_v61  ;;  %v780_v48 = vpack.c.bf16 %v7019_v36, %v7025_v61  ;;  %v7043_v54 = vmul.f32 %v5456_v2, %v131_v3  ;;  %v7076_v2 = vld [vmem:[%s10392_s0 + $0x24] ss:$8 sps:$4 sm:$0xff]   ;;  %v7082_v3 = vld [vmem:[%s10392_s0 + $0x20] ss:$8 sps:$4 sm:$0xff]  }
 0x2a2   :  { %10878 = vst [vmem:[#allocation44_spill] sm:$0xff] %v7023_v27  ;;  %v788_v34 = vpack.c.bf16 %v7023_v27, %v7021_v13  ;;  %v7160_v27 = vld [vmem:[%s10392_s0 + $0x94] ss:$8 sps:$4 sm:$0xff]   ;;  %v7166_v13 = vld [vmem:[%s10392_s0 + $0x90] ss:$8 sps:$4 sm:$0xff]  }
 0x2a3   :  { %10880 = vst [vmem:[#allocation46_spill] sm:$0xff] %v7043_v54  ;;  %10891 = vst [vmem:[#allocation57_spill] sm:$0xff] %v7160_v27  ;;  %v7172_v61 = vld [vmem:[%s10392_s0 + $0xa4] ss:$8 sps:$4 sm:$0xff]   ;;  %v7178_v36 = vld [vmem:[%s10392_s0 + $0xa0] ss:$8 sps:$4 sm:$0xff]  }
 0x2a4   :  { %4225 = vmatprep.subr.bf16.mxu0 %v788_v34  ;;  %v7064_v34 = vld [vmem:[%s10392_s0 + $0x14] ss:$8 sps:$4 sm:$0xff]   ;;  %10892 = vst [vmem:[#allocation58_spill] sm:$0xff] %v7166_v13  ;;  %10893 = vst [vmem:[#allocation59_spill] sm:$0xff] %v7172_v61 }
 0x2a5   :  { %v5458_v18 = vpop.eup %5457  ;;  %4226 = vmatpush3.bf16.msra.mxu0 %v780_v48  ;;  %v7070_v48 = vld [vmem:[%s10392_s0 + $0x10] ss:$8 sps:$4 sm:$0xff]   ;;  %10894 = vst [vmem:[#allocation60_spill] sm:$0xff] %v7178_v36 }
 0x2a6   :  { %v5460_v23 = vpop.eup %5459  ;;  %v7045_v47 = vmul.f32 %v5458_v18, %v146_v0  ;;  %v7088_v18 = vld [vmem:[%s10392_s0 + $0x34] ss:$8 sps:$4 sm:$0xff]   ;;  %v7094_v0 = vld [vmem:[%s10392_s0 + $0x30] ss:$8 sps:$4 sm:$0xff]  }
 0x2a7   :  { %v5462_v28 = vpop.eup %5461  ;;  %v7049_v4 = vmul.f32 %v5460_v23, %v130_v26  ;;  %v7106_v23 = vld [vmem:[%s10392_s0 + $0x40] ss:$8 sps:$4 sm:$0xff]   ;;  %v7112_v26 = vld [vmem:[%s10392_s0 + $0x54] ss:$8 sps:$4 sm:$0xff]  }
 0x2a8   :  { %10881 = vst [vmem:[#allocation47_spill] sm:$0xff] %v7045_v47  ;;  %v7047_v31 = vmul.f32 %v5462_v28, %v147_v22  ;;  %v7100_v22 = vld [vmem:[%s10392_s0 + $0x44] ss:$8 sps:$4 sm:$0xff]   ;;  %v7118_v28 = vld [vmem:[%s10392_s0 + $0x50] ss:$8 sps:$4 sm:$0xff]  }
 0x2a9   :  { %10883 = vst [vmem:[#allocation49_spill] sm:$0xff] %v7049_v4  ;;  %v781_v32 = vpack.c.bf16 %v7043_v54, %v7049_v4  ;;  %10884 = vst [vmem:[#allocation50_spill] sm:$0xff] %v7118_v28  ;;  %v7148_v4 = vld [vmem:[%s10392_s0 + $0x84] ss:$8 sps:$4 sm:$0xff]   ;;  %v7154_v54 = vld [vmem:[%s10392_s0 + $0x80] ss:$8 sps:$4 sm:$0xff]  }
 0x2aa   :  { %10882 = vst [vmem:[#allocation48_spill] sm:$0xff] %v7047_v31  ;;  %v789_v45 = vpack.c.bf16 %v7047_v31, %v7045_v47  ;;  %v7136_v31 = vld [vmem:[%s10392_s0 + $0x74] ss:$8 sps:$4 sm:$0xff]   ;;  %v7142_v47 = vld [vmem:[%s10392_s0 + $0x70] ss:$8 sps:$4 sm:$0xff]   ;;  %10889 = vst [vmem:[#allocation55_spill] sm:$0xff] %v7148_v4 }
 0x2ab   :  { %10887 = vst [vmem:[#allocation53_spill] sm:$0xff] %v7136_v31  ;;  %10888 = vst [vmem:[#allocation54_spill] sm:$0xff] %v7142_v47 }
 0x2ac   :  { %4227 = vmatprep.subr.bf16.mxu0 %v789_v45  ;;  %v7124_v45 = vld [vmem:[%s10392_s0 + $0x64] ss:$8 sps:$4 sm:$0xff]   ;;  %10890 = vst [vmem:[#allocation56_spill] sm:$0xff] %v7154_v54 }
 0x2ad   :  { %4228 = vmatpush3.bf16.msra.mxu0 %v781_v32  ;;  %10885 = vst [vmem:[#allocation51_spill] sm:$0xff] %v7124_v45  ;;  %v7130_v32 = vld [vmem:[%s10392_s0 + $0x60] ss:$8 sps:$4 sm:$0xff]  }
 0x2ae   :  { %10886 = vst [vmem:[#allocation52_spill] sm:$0xff] %v7130_v32 }
 0x2b0   :  { %823 = vmatmul.mubr.bf16.vlgmr.msra.gmra.mrb[32].mxu0 %v7058_v44 }
 0x2b1   :  { %830 = vmatprep.mubr.bf16.mxu0 %v7064_v34 }
 0x2b8   :  { %831 = vmatmul.mubr.bf16.gmra.mrb[36].mxu0 %v7070_v48 }
 0x2b9   :  { %838 = vmatprep.mubr.bf16.mxu0 %v7076_v2 }
 0x2c0   :  { %839 = vmatmul.mubr.bf16.gmra.mrb[40].mxu0 %v7082_v3 }
 0x2c1   :  { %846 = vmatprep.mubr.bf16.mxu0 %v7088_v18 }
 0x2c8   :  { %847 = vmatmul.mubr.bf16.gmra.mrb[44].mxu0 %v7094_v0 }
 0x2c9   :  { %854 = vmatprep.mubr.bf16.mxu0 %v7100_v22 }
 0x2d0   :  { %855 = vmatmul.mubr.bf16.gmra.mrb[48].mxu0 %v7106_v23 }
 0x2d1   :  { %862 = vmatprep.mubr.bf16.mxu0 %v7112_v26 }
 0x2d8   :  { %863 = vmatmul.mubr.bf16.gmra.mrb[52].mxu0 %v7118_v28  ;;  %v10912_v28 = vld [vmem:[#allocation9_spill] sm:$0xff] }
 0x2d9   :  { %870 = vmatprep.mubr.bf16.mxu0 %v7124_v45 }
 0x2e0   :  { %871 = vmatmul.mubr.bf16.gmra.mrb[56].mxu0 %v7130_v32 }
 0x2e1   :  { %878 = vmatprep.mubr.bf16.mxu0 %v7136_v31 }
 0x2e8   :  { %879 = vmatmul.mubr.bf16.gmra.mrb[60].mxu0 %v7142_v47 }
 0x2e9   :  { %886 = vmatprep.mubr.bf16.mxu0 %v7148_v4 }
 0x2f0   :  { %887 = vmatmul.mubr.bf16.gmra.mrb[64].mxu0 %v7154_v54 }
 0x2f1   :  { %894 = vmatprep.mubr.bf16.mxu0 %v7160_v27 }
 0x2f8   :  { %895 = vmatmul.mubr.bf16.gmra.mrb[68].mxu0 %v7166_v13 }
 0x2f9   :  { %902 = vmatprep.mubr.bf16.mxu0 %v7172_v61 }
 0x300   :  { %903 = vmatmul.mubr.bf16.gmra.mrb[72].mxu0 %v7178_v36 }
 0x301   :  { %910 = vmatprep.mubr.bf16.mxu0 %v7184_v9 }
 0x308   :  { %911 = vmatmul.mubr.bf16.gmra.mrb[76].mxu0 %v7190_v8 }
 0x309   :  { %918 = vmatprep.mubr.bf16.mxu0 %v7196_v5 }
 0x310   :  { %919 = vmatmul.mubr.bf16.gmra.mrb[80].mxu0 %v7202_v37 }
 0x311   :  { %926 = vmatprep.mubr.bf16.mxu0 %v7208_v15 }
 0x318   :  { %927 = vmatmul.mubr.bf16.gmra.mrb[84].mxu0 %v7214_v14 }
 0x319   :  { %934 = vmatprep.mubr.bf16.mxu0 %v7220_v43 }
 0x320   :  { %935 = vmatmul.mubr.bf16.gmra.mrb[88].mxu0 %v7226_v21 }
 0x321   :  { %942 = vmatprep.mubr.bf16.mxu0 %v7232_v16 }
 0x328   :  { %943 = vmatmul.mubr.bf16.gmra.mrb[92].mxu0 %v7238_v20 }
 0x329   :  { %1496 = vmatprep.mubr.bf16.mxu0 %v7244_v40 }
 0x383   :  { %v4229_v17 = vpop.f32.mrb[32].mxu0 }
 0x384   :  { %v4230_v7 = vpop.f32.mrb[33].mxu0 }
 0x385   :  { %v4231_v29 = vadd.f32 %v4230_v7, %v4229_v17  ;;  %v4232_v30 = vpop.f32.mrb[34].mxu0 }
 0x386   :  { %v4233_v25 = vpop.f32.mrb[35].mxu0 }
 0x387   :  { %v4234_v33 = vadd.f32 %v4233_v25, %v4232_v30 }
 0x38b   :  { %v4235_v10 = vpop.f32.mrb[36].mxu0 }
 0x38c   :  { %v4236_v24 = vpop.f32.mrb[37].mxu0 }
 0x38d   :  { %v4237_v46 = vadd.f32 %v4236_v24, %v4235_v10  ;;  %v4238_v12 = vpop.f32.mrb[38].mxu0 }
 0x38e   :  { %v4239_v11 = vpop.f32.mrb[39].mxu0 }
 0x38f   :  { %v4240_v19 = vadd.f32 %v4239_v11, %v4238_v12 }
 0x393   :  { %v4241_v6 = vpop.f32.mrb[40].mxu0 }
 0x394   :  { %v4242_v20 = vpop.f32.mrb[41].mxu0 }
 0x395   :  { %v7247_v16 = vadd.f32 %v4242_v20, %v4241_v6  ;;  %v4244_v21 = vpop.f32.mrb[42].mxu0 }
 0x396   :  { %v4245_v43 = vpop.f32.mrb[43].mxu0 }
 0x397   :  { %v7249_v14 = vadd.f32 %v4245_v43, %v4244_v21 }
 0x39b   :  { %v4247_v40 = vpop.f32.mrb[44].mxu0 }
 0x39c   :  { %v4248_v15 = vpop.f32.mrb[45].mxu0 }
 0x39d   :  { %v7251_v7 = vadd.f32 %v4248_v15, %v4247_v40  ;;  %v4250_v17 = vpop.f32.mrb[46].mxu0 }
 0x39e   :  { %v4251_v25 = vpop.f32.mrb[47].mxu0 }
 0x39f   :  { %v7253_v30 = vadd.f32 %v4251_v25, %v4250_v17 }
 0x3a3   :  { %v4253_v10 = vpop.f32.mrb[48].mxu0 }
 0x3a4   :  { %v4254_v24 = vpop.f32.mrb[49].mxu0 }
 0x3a5   :  { %v7255_v37 = vadd.f32 %v4254_v24, %v4253_v10  ;;  %v4256_v11 = vpop.f32.mrb[50].mxu0 }
 0x3a6   :  { %v4257_v12 = vpop.f32.mrb[51].mxu0 }
 0x3a7   :  { %v7257_v6 = vadd.f32 %v4257_v12, %v4256_v11 }
 0x3ab   :  { %v4259_v20 = vpop.f32.mrb[52].mxu0 }
 0x3ac   :  { %v4260_v5 = vpop.f32.mrb[53].mxu0 }
 0x3ad   :  { %v7259_v21 = vadd.f32 %v4260_v5, %v4259_v20  ;;  %v4262_v43 = vpop.f32.mrb[54].mxu0  ;;  %v984_v20 = vmul.f32 %v4234_v33, %v6617_v52 }
 0x3ae   :  { %v4263_v8 = vpop.f32.mrb[55].mxu0 }
 0x3af   :  { %v7261_v40 = vadd.f32 %v4263_v8, %v4262_v43  ;;  %v983_v43 = vmul.f32 %v4231_v29, %v6615_v51  ;;  %v1016_v54 = vadd.f32 1e-06, %v984_v20  ;;  %v985_v29 = vmul.f32 %v4237_v46, %v6639_v49 }
 0x3b1   :  { %v1015_v47 = vadd.f32 1e-06, %v983_v43  ;;  %5463 = vrcp.f32 %v1016_v54  ;;  %v10906_v54 = vld [vmem:[#allocation5_spill] sm:$0xff] }
 0x3b3   :  { %v4265_v15 = vpop.f32.mrb[56].mxu0 }
 0x3b4   :  { %v4266_v9 = vpop.f32.mrb[57].mxu0 }
 0x3b5   :  { %v7263_v17 = vadd.f32 %v4266_v9, %v4265_v15  ;;  %v4268_v25 = vpop.f32.mrb[58].mxu0 }
 0x3b6   :  { %v4269_v36 = vpop.f32.mrb[59].mxu0 }
 0x3b7   :  { %v7265_v10 = vadd.f32 %v4269_v36, %v4268_v25 }
 0x3bb   :  { %v4271_v24 = vpop.f32.mrb[60].mxu0 }
 0x3bc   :  { %v4272_v61 = vpop.f32.mrb[61].mxu0 }
 0x3bd   :  { %v7267_v11 = vadd.f32 %v4272_v61, %v4271_v24  ;;  %v4274_v12 = vpop.f32.mrb[62].mxu0 }
 0x3be   :  { %v4275_v13 = vpop.f32.mrb[63].mxu0 }
 0x3bf   :  { %v7269_v5 = vadd.f32 %v4275_v13, %v4274_v12  ;;  %v986_v13 = vmul.f32 %v4240_v19, %v6641_v50  ;;  %v10907_v19 = vld [vmem:[#allocation7_spill] sm:$0xff] }
 0x3c1   :  { %v1018_v31 = vadd.f32 1e-06, %v986_v13 }
 0x3c3   :  { %v4277_v8 = vpop.f32.mrb[64].mxu0 }
 0x3c4   :  { %v4278_v27 = vpop.f32.mrb[65].mxu0 }
 0x3c5   :  { %v4279_v9 = vadd.f32 %v4278_v27, %v4277_v8  ;;  %v4280_v15 = vpop.f32.mrb[66].mxu0 }
 0x3c6   :  { %v4281_v4 = vpop.f32.mrb[67].mxu0 }
 0x3c7   :  { %v999_v36 = vmul.f32 %v4279_v9, %v6619_v57  ;;  %v4282_v25 = vadd.f32 %v4281_v4, %v4280_v15  ;;  %v1017_v15 = vadd.f32 1e-06, %v985_v29 }
 0x3c9   :  { %v1031_v61 = vadd.f32 1e-06, %v999_v36  ;;  %v1000_v24 = vmul.f32 %v4282_v25, %v6621_v58 }
 0x3cb   :  { %5465 = vrcp.f32 %v1031_v61  ;;  %v1032_v33 = vadd.f32 1e-06, %v1000_v24  ;;  %v4283_v12 = vpop.f32.mrb[68].mxu0  ;;  %v988_v61 = vmul.f32 %v7249_v14, %v10907_v19  ;;  %v5464_v24 = vpop.eup %5463 }
 0x3cc   :  { %5467 = vrcp.f32 %v1015_v47  ;;  %v4284_v27 = vpop.f32.mrb[69].mxu0 }
 0x3cd   :  { %5469 = vrcp.f32 %v1032_v33  ;;  %v4285_v20 = vadd.f32 %v4284_v27, %v4283_v12  ;;  %v4286_v8 = vpop.f32.mrb[70].mxu0  ;;  %v10908_v33 = vld [vmem:[#allocation6_spill] sm:$0xff] }
 0x3ce   :  { %v4287_v9 = vpop.f32.mrb[71].mxu0  ;;  %5471 = vrcp.f32 %v1018_v31  ;;  %v987_v13 = vmul.f32 %v7247_v16, %v10908_v33  ;;  %v6007_v31 = vld [vmem:[%s10394_s2 + $0x8] sm:$0xff] }
 0x3cf   :  { %v1001_v4 = vmul.f32 %v4285_v20, %v6643_v59  ;;  %v4288_v43 = vadd.f32 %v4287_v9, %v4286_v8  ;;  %v952_v8 = vmul.f32 %v6007_v31, %v6617_v52  ;;  %v1020_v9 = vadd.f32 1e-06, %v988_v61  ;;  %v6010_v52 = vld [vmem:[%s10394_s2] sm:$0xff] }
 0x3d0   :  { %v951_v61 = vmul.f32 %v6010_v52, %v6615_v51  ;;  %v1019_v32 = vadd.f32 1e-06, %v987_v13 }
 0x3d1   :  { %v1033_v36 = vadd.f32 1e-06, %v1001_v4  ;;  %v1002_v25 = vmul.f32 %v4288_v43, %v10906_v54  ;;  %v6008_v43 = vld [vmem:[%s10394_s2 + $0x80] sm:$0xff]  ;;  %v7300_v31 = vmul.f32 %v5464_v24, %v952_v8  ;;  %v10914_v8 = vld [vmem:[#allocation10_spill] sm:$0xff] }
 0x3d2   :  { %v967_v16 = vmul.f32 %v6008_v43, %v6619_v57 }
 0x3d3   :  { %5473 = vrcp.f32 %v1033_v36  ;;  %v1034_v47 = vadd.f32 1e-06, %v1002_v25  ;;  %v4289_v46 = vpop.f32.mrb[72].mxu0 }
 0x3d4   :  { %5475 = vrcp.f32 %v1017_v15  ;;  %v4290_v12 = vpop.f32.mrb[73].mxu0  ;;  %v6009_v15 = vld [vmem:[%s10394_s2 + $0x88] sm:$0xff] }
 0x3d5   :  { %v5466_v27 = vpop.eup %5465  ;;  %5477 = vrcp.f32 %v1034_v47  ;;  %v4291_v20 = vadd.f32 %v4290_v12, %v4289_v46  ;;  %v4292_v29 = vpop.f32.mrb[74].mxu0  ;;  %v968_v36 = vmul.f32 %v6009_v15, %v6621_v58  ;;  %v10909_v47 = vld [vmem:[#allocation8_spill] sm:$0xff] }
 0x3d6   :  { %v5468_v14 = vpop.eup %5467  ;;  %v4293_v4 = vpop.f32.mrb[75].mxu0  ;;  %v7302_v57 = vmul.f32 %v5466_v27, %v967_v16  ;;  %5479 = vrcp.f32 %v1020_v9  ;;  %v989_v16 = vmul.f32 %v7251_v7, %v10914_v8 }
 0x3d7   :  { %v5470_v25 = vpop.eup %5469  ;;  %v1003_v46 = vmul.f32 %v4291_v20, %v10909_v47  ;;  %v4294_v12 = vadd.f32 %v4293_v4, %v4292_v29  ;;  %v7307_v15 = vmul.f32 %v5468_v14, %v951_v61  ;;  %v10913_v20 = vld [vmem:[#allocation11_spill] sm:$0xff] }
 0x3d8   :  { %10910 = vst [vmem:[#allocation5_spill] sm:$0xff] %v7302_v57  ;;  %v7304_v43 = vmul.f32 %v5470_v25, %v968_v36  ;;  %v990_v29 = vmul.f32 %v7253_v30, %v10913_v20  ;;  %v5472_v27 = vpop.eup %5471  ;;  %v6013_v61 = vld [vmem:[%s10394_s2 + $0x98] sm:$0xff] }
 0x3d9   :  { %v1035_v45 = vadd.f32 1e-06, %v1003_v46  ;;  %v1004_v58 = vmul.f32 %v4294_v12, %v10912_v28  ;;  %v1111_v13 = vpack.c.bf16 %v7300_v31, %v7307_v15 }
 0x3da   :  { %10911 = vst [vmem:[#allocation7_spill] sm:$0xff] %v7304_v43  ;;  %v1119_v4 = vpack.c.bf16 %v7304_v43, %v7302_v57  ;;  %v1022_v12 = vadd.f32 1e-06, %v990_v29  ;;  %v10918_v57 = vld [vmem:[#allocation13_spill] sm:$0xff] }
 0x3db   :  { %5481 = vrcp.f32 %v1035_v45  ;;  %v1036_v51 = vadd.f32 1e-06, %v1004_v58  ;;  %v4295_v24 = vpop.f32.mrb[76].mxu0  ;;  %v6011_v45 = vld [vmem:[%s10394_s2 + $0x18] sm:$0xff]  ;;  %v970_v58 = vmul.f32 %v6013_v61, %v10906_v54 }
 0x3dc   :  { %5483 = vrcp.f32 %v1019_v32  ;;  %v4296_v14 = vpop.f32.mrb[77].mxu0  ;;  %4325 = vmatprep.subr.bf16.mxu1 %v1119_v4  ;;  %v954_v25 = vmul.f32 %v6011_v45, %v6641_v50  ;;  %v6012_v32 = vld [vmem:[%s10394_s2 + $0x90] sm:$0xff]  ;;  %v1021_v45 = vadd.f32 1e-06, %v989_v16 }
 0x3dd   :  { %v5474_v9 = vpop.eup %5473  ;;  %5485 = vrcp.f32 %v1036_v51  ;;  %v4297_v36 = vadd.f32 %v4296_v14, %v4295_v24  ;;  %v4298_v30 = vpop.f32.mrb[78].mxu0  ;;  %4326 = vmatpush3.bf16.msra.mxu1 %v1111_v13  ;;  %v969_v7 = vmul.f32 %v6012_v32, %v6643_v59  ;;  %v10915_v51 = vld [vmem:[#allocation12_spill] sm:$0xff]  ;;  %v6014_v50 = vld [vmem:[%s10394_s2 + $0x10] sm:$0xff] }
 0x3de   :  { %v5476_v46 = vpop.eup %5475  ;;  %v4299_v52 = vpop.f32.mrb[79].mxu0  ;;  %v953_v29 = vmul.f32 %v6014_v50, %v6639_v49  ;;  %v7334_v14 = vmul.f32 %v5472_v27, %v954_v25  ;;  %5487 = vrcp.f32 %v1022_v12  ;;  %v10920_v25 = vld [vmem:[#allocation14_spill] sm:$0xff] }
 0x3df   :  { %v5478_v4 = vpop.eup %5477  ;;  %v1005_v24 = vmul.f32 %v4297_v36, %v10915_v51  ;;  %v4300_v13 = vadd.f32 %v4299_v52, %v4298_v30  ;;  %v7336_v59 = vmul.f32 %v5474_v9, %v969_v7  ;;  %v10919_v36 = vld [vmem:[#allocation15_spill] sm:$0xff]  ;;  %v991_v7 = vmul.f32 %v7255_v37, %v10920_v25  ;;  %v6016_v37 = vld [vmem:[%s10394_s2 + $0xa0] sm:$0xff] }
 0x3e0   :  { %v7338_v32 = vmul.f32 %v5478_v4, %v970_v58  ;;  %v7341_v61 = vmul.f32 %v5476_v46, %v953_v29  ;;  %v992_v30 = vmul.f32 %v7257_v6, %v10919_v36  ;;  %v5480_v9 = vpop.eup %5479  ;;  %v971_v29 = vmul.f32 %v6016_v37, %v10909_v47 }
 0x3e1   :  { %10916 = vst [vmem:[#allocation6_spill] sm:$0xff] %v7336_v59  ;;  %v1037_v43 = vadd.f32 1e-06, %v1005_v24  ;;  %v1006_v54 = vmul.f32 %v4300_v13, %v10918_v57 }
 0x3e2   :  { %10917 = vst [vmem:[#allocation8_spill] sm:$0xff] %v7338_v32  ;;  %v1120_v52 = vpack.c.bf16 %v7338_v32, %v7336_v59  ;;  %v1112_v16 = vpack.c.bf16 %v7334_v14, %v7341_v61  ;;  %v1024_v13 = vadd.f32 1e-06, %v992_v30  ;;  %v10922_v59 = vld [vmem:[#allocation17_spill] sm:$0xff] }
 0x3e3   :  { %5489 = vrcp.f32 %v1037_v43  ;;  %v1038_v49 = vadd.f32 1e-06, %v1006_v54  ;;  %v4301_v27 = vpop.f32.mrb[80].mxu0  ;;  %v6015_v43 = vld [vmem:[%s10394_s2 + $0x28] sm:$0xff] }
 0x3e4   :  { %5491 = vrcp.f32 %v1021_v45  ;;  %v4302_v46 = vpop.f32.mrb[81].mxu0  ;;  %4327 = vmatprep.subr.bf16.mxu1 %v1120_v52  ;;  %v956_v4 = vmul.f32 %v6015_v43, %v10907_v19  ;;  %v6017_v45 = vld [vmem:[%s10394_s2 + $0xa8] sm:$0xff]  ;;  %v6018_v19 = vld [vmem:[%s10394_s2 + $0x20] sm:$0xff]  ;;  %v1023_v43 = vadd.f32 1e-06, %v991_v7 }
 0x3e5   :  { %v5482_v12 = vpop.eup %5481  ;;  %5493 = vrcp.f32 %v1038_v49  ;;  %v4303_v58 = vadd.f32 %v4302_v46, %v4301_v27  ;;  %v4304_v6 = vpop.f32.mrb[82].mxu0  ;;  %4328 = vmatpush3.bf16.msra.mxu1 %v1112_v16  ;;  %v972_v54 = vmul.f32 %v6017_v45, %v10912_v28  ;;  %v10921_v49 = vld [vmem:[#allocation16_spill] sm:$0xff]  ;;  %v955_v30 = vmul.f32 %v6018_v19, %v10908_v33 }
 0x3e6   :  { %v5484_v24 = vpop.eup %5483  ;;  %v4305_v50 = vpop.f32.mrb[83].mxu0  ;;  %v7368_v46 = vmul.f32 %v5480_v9, %v956_v4  ;;  %v7370_v47 = vmul.f32 %v5482_v12, %v971_v29  ;;  %5495 = vrcp.f32 %v1024_v13  ;;  %v993_v4 = vmul.f32 %v7259_v21, %v6735_v53  ;;  %v6020_v21 = vld [vmem:[%s10394_s2 + $0xb0] sm:$0xff]  ;;  %v6021_v19 = vld [vmem:[%s10394_s2 + $0xb8] sm:$0xff] }
 0x3e7   :  { %v5486_v52 = vpop.eup %5485  ;;  %v1007_v27 = vmul.f32 %v4303_v58, %v10921_v49  ;;  %v4306_v16 = vadd.f32 %v4305_v50, %v4304_v6  ;;  %v7375_v45 = vmul.f32 %v5484_v24, %v955_v30  ;;  %v994_v58 = vmul.f32 %v7261_v40, %v6737_v38 }
 0x3e8   :  { %v7372_v37 = vmul.f32 %v5486_v52, %v972_v54  ;;  %v5488_v12 = vpop.eup %5487  ;;  %v974_v30 = vmul.f32 %v6021_v19, %v10918_v57 }
 0x3e9   :  { %v1039_v32 = vadd.f32 1e-06, %v1007_v27  ;;  %v1008_v28 = vmul.f32 %v4306_v16, %v10922_v59  ;;  %v1113_v7 = vpack.c.bf16 %v7368_v46, %v7375_v45  ;;  %v1026_v52 = vadd.f32 1e-06, %v994_v58 }
 0x3ea   :  { %v1121_v6 = vpack.c.bf16 %v7372_v37, %v7370_v47  ;;  %v973_v16 = vmul.f32 %v6020_v21, %v10915_v51  ;;  %v6023_v21 = vld [vmem:[%s10394_s2 + $0x48] sm:$0xff] }
 0x3eb   :  { %5497 = vrcp.f32 %v1039_v32  ;;  %v1040_v33 = vadd.f32 1e-06, %v1008_v28  ;;  %v4307_v9 = vpop.f32.mrb[84].mxu0  ;;  %v6019_v32 = vld [vmem:[%s10394_s2 + $0x38] sm:$0xff] }
 0x3ec   :  { %5499 = vrcp.f32 %v1023_v43  ;;  %v4308_v24 = vpop.f32.mrb[85].mxu0  ;;  %4329 = vmatprep.subr.bf16.mxu1 %v1121_v6  ;;  %v958_v29 = vmul.f32 %v6019_v32, %v10913_v20  ;;  %v6022_v20 = vld [vmem:[%s10394_s2 + $0x30] sm:$0xff] }
 0x3ed   :  { %v5490_v13 = vpop.eup %5489  ;;  %5501 = vrcp.f32 %v1040_v33  ;;  %v4309_v50 = vadd.f32 %v4308_v24, %v4307_v9  ;;  %v4310_v40 = vpop.f32.mrb[86].mxu0  ;;  %4330 = vmatpush3.bf16.msra.mxu1 %v1113_v7  ;;  %v957_v58 = vmul.f32 %v6022_v20, %v10914_v8  ;;  %v1025_v9 = vadd.f32 1e-06, %v993_v4 }
 0x3ee   :  { %v5492_v54 = vpop.eup %5491  ;;  %v4311_v27 = vpop.f32.mrb[87].mxu0  ;;  %v7402_v33 = vmul.f32 %v5488_v12, %v958_v29  ;;  %v7404_v51 = vmul.f32 %v5490_v13, %v973_v16  ;;  %5503 = vrcp.f32 %v1026_v52  ;;  %v995_v29 = vmul.f32 %v7263_v17, %v6759_v41  ;;  %v6024_v17 = vld [vmem:[%s10394_s2 + $0xc0] sm:$0xff] }
 0x3ef   :  { %v5494_v43 = vpop.eup %5493  ;;  %v1009_v28 = vmul.f32 %v4309_v50, %v6739_v63  ;;  %v4312_v6 = vadd.f32 %v4311_v27, %v4310_v40  ;;  %v7409_v32 = vmul.f32 %v5492_v54, %v957_v58  ;;  %v996_v50 = vmul.f32 %v7265_v10, %v6761_v55 }
 0x3f0   :  { %v7406_v7 = vmul.f32 %v5494_v43, %v974_v30  ;;  %v5496_v13 = vpop.eup %5495  ;;  %v960_v16 = vmul.f32 %v6023_v21, %v10919_v36  ;;  %v6026_v36 = vld [vmem:[%s10394_s2 + $0x40] sm:$0xff] }
 0x3f1   :  { %v1041_v24 = vadd.f32 1e-06, %v1009_v28  ;;  %v1010_v57 = vmul.f32 %v4312_v6, %v6741_v35  ;;  %v1114_v4 = vpack.c.bf16 %v7402_v33, %v7409_v32  ;;  %v1028_v30 = vadd.f32 1e-06, %v996_v50  ;;  %v6025_v6 = vld [vmem:[%s10394_s2 + $0xc8] sm:$0xff] }
 0x3f2   :  { %v1122_v40 = vpack.c.bf16 %v7406_v7, %v7404_v51  ;;  %v975_v28 = vmul.f32 %v6024_v17, %v10921_v49  ;;  %v976_v20 = vmul.f32 %v6025_v6, %v10922_v59  ;;  %v7436_v50 = vmul.f32 %v5496_v13, %v960_v16 }
 0x3f3   :  { %5505 = vrcp.f32 %v1041_v24  ;;  %v1042_v8 = vadd.f32 1e-06, %v1010_v57  ;;  %v4313_v12 = vpop.f32.mrb[88].mxu0  ;;  %v959_v57 = vmul.f32 %v6026_v36, %v10920_v25 }
 0x3f4   :  { %5507 = vrcp.f32 %v1025_v9  ;;  %v4314_v54 = vpop.f32.mrb[89].mxu0  ;;  %4331 = vmatprep.subr.bf16.mxu1 %v1122_v40  ;;  %v1027_v40 = vadd.f32 1e-06, %v995_v29 }
 0x3f5   :  { %v5498_v52 = vpop.eup %5497  ;;  %5509 = vrcp.f32 %v1042_v8  ;;  %v4315_v27 = vadd.f32 %v4314_v54, %v4313_v12  ;;  %v4316_v10 = vpop.f32.mrb[90].mxu0  ;;  %4332 = vmatpush3.bf16.msra.mxu1 %v1114_v4  ;;  %v998_v54 = vmul.f32 %v7269_v5, %v6785_v1 }
 0x3f6   :  { %v5500_v19 = vpop.eup %5499  ;;  %v4317_v43 = vpop.f32.mrb[91].mxu0  ;;  %v7438_v49 = vmul.f32 %v5498_v52, %v975_v28  ;;  %5511 = vrcp.f32 %v1028_v30  ;;  %v6027_v30 = vld [vmem:[%s10394_s2 + $0x58] sm:$0xff] }
 0x3f7   :  { %v5502_v58 = vpop.eup %5501  ;;  %v1011_v9 = vmul.f32 %v4315_v27, %v6763_v56  ;;  %v4318_v24 = vadd.f32 %v4317_v43, %v4316_v10  ;;  %v7443_v4 = vmul.f32 %v5500_v19, %v959_v57  ;;  %v997_v10 = vmul.f32 %v7267_v11, %v6783_v62  ;;  %v6028_v11 = vld [vmem:[%s10394_s2 + $0xd0] sm:$0xff] }
 0x3f8   :  { %v7440_v8 = vmul.f32 %v5502_v58, %v976_v20  ;;  %v5504_v52 = vpop.eup %5503  ;;  %v962_v43 = vmul.f32 %v6027_v30, %v6737_v38  ;;  %v1030_v28 = vadd.f32 1e-06, %v998_v54  ;;  %v977_v20 = vmul.f32 %v6028_v11, %v6739_v63  ;;  %v6029_v58 = vld [vmem:[%s10394_s2 + $0xd8] sm:$0xff]  ;;  %v6030_v38 = vld [vmem:[%s10394_s2 + $0x50] sm:$0xff] }
 0x3f9   :  { %v1043_v12 = vadd.f32 1e-06, %v1011_v9  ;;  %v1012_v59 = vmul.f32 %v4318_v24, %v6765_v42  ;;  %v1115_v29 = vpack.c.bf16 %v7436_v50, %v7443_v4  ;;  %v978_v9 = vmul.f32 %v6029_v58, %v6741_v35 }
 0x3fa   :  { %v1123_v27 = vpack.c.bf16 %v7440_v8, %v7438_v49 }
 0x3fb   :  { %5513 = vrcp.f32 %v1043_v12  ;;  %v1044_v25 = vadd.f32 1e-06, %v1012_v59  ;;  %v4319_v13 = vpop.f32.mrb[92].mxu0  ;;  %v7470_v12 = vmul.f32 %v5504_v52, %v962_v43  ;;  %v1029_v59 = vadd.f32 1e-06, %v997_v10  ;;  %v6033_v43 = vld [vmem:[%s10394_s2 + $0xe8] sm:$0xff] }
 0x3fc   :  { %5515 = vrcp.f32 %v1027_v40  ;;  %v4320_v21 = vpop.f32.mrb[93].mxu0  ;;  %4333 = vmatprep.subr.bf16.mxu1 %v1123_v27  ;;  %v961_v40 = vmul.f32 %v6030_v38, %v6735_v53 }
 0x3fd   :  { %v5506_v16 = vpop.eup %5505  ;;  %5517 = vrcp.f32 %v1044_v25  ;;  %v4321_v19 = vadd.f32 %v4320_v21, %v4319_v13  ;;  %v4322_v5 = vpop.f32.mrb[94].mxu0  ;;  %4334 = vmatpush3.bf16.msra.mxu1 %v1115_v29  ;;  %v6031_v21 = vld [vmem:[%s10394_s2 + $0x68] sm:$0xff] }
 0x3fe   :  { %v5508_v17 = vpop.eup %5507  ;;  %v4323_v6 = vpop.f32.mrb[95].mxu0  ;;  %v7472_v63 = vmul.f32 %v5506_v16, %v977_v20  ;;  %5519 = vrcp.f32 %v1030_v28  ;;  %v964_v16 = vmul.f32 %v6031_v21, %v6761_v55 }
 0x3ff   :  { %v5510_v24 = vpop.eup %5509  ;;  %v1013_v36 = vmul.f32 %v4321_v19, %v6787_v39  ;;  %v4324_v57 = vadd.f32 %v4323_v6, %v4322_v5  ;;  %v7477_v25 = vmul.f32 %v5508_v17, %v961_v40  ;;  %v6032_v5 = vld [vmem:[%s10394_s2 + $0xe0] sm:$0xff]  ;;  %v980_v17 = vmul.f32 %v6033_v43, %v6765_v42  ;;  %v6036_v40 = vld [vmem:[%s10394_s2 + $0xf0] sm:$0xff] }
 0x400   :  { %v7474_v54 = vmul.f32 %v5510_v24, %v978_v9  ;;  %v5512_v52 = vpop.eup %5511  ;;  %v979_v30 = vmul.f32 %v6032_v5, %v6763_v56  ;;  %v6034_v6 = vld [vmem:[%s10394_s2 + $0x60] sm:$0xff]  ;;  %v10942_v5 = vld [vmem:[#allocation63_spill] sm:$0xff] }
 0x401   :  { %v1045_v27 = vadd.f32 1e-06, %v1013_v36  ;;  %v1014_v35 = vmul.f32 %v4324_v57, %v6789_v60  ;;  %v1116_v53 = vpack.c.bf16 %v7470_v12, %v7477_v25  ;;  %v963_v55 = vmul.f32 %v6034_v6, %v6759_v41  ;;  %v6035_v41 = vld [vmem:[%s10394_s2 + $0x78] sm:$0xff]  ;;  %v10944_v43 = vld [vmem:[#allocation65_spill] sm:$0xff] }
 0x402   :  { %v1124_v13 = vpack.c.bf16 %v7474_v54, %v7472_v63  ;;  %v7499_v11 = vmul.f32 %v5512_v52, %v964_v16  ;;  %v966_v57 = vmul.f32 %v6035_v41, %v6785_v1  ;;  %v10940_v16 = vld [vmem:[#allocation61_spill] sm:$0xff]  ;;  %v10947_v6 = vld [vmem:[#allocation68_spill] sm:$0xff] }
 0x403   :  { %5521 = vrcp.f32 %v1045_v27  ;;  %v1046_v29 = vadd.f32 1e-06, %v1014_v35  ;;  %v6037_v27 = vld [vmem:[%s10394_s2 + $0xf8] sm:$0xff] }
 0x404   :  { %5523 = vrcp.f32 %v1029_v59  ;;  %4335 = vmatprep.subr.bf16.mxu1 %v1124_v13  ;;  %v981_v59 = vmul.f32 %v6036_v40, %v6787_v39  ;;  %v982_v35 = vmul.f32 %v6037_v27, %v6789_v60 }
 0x405   :  { %v5514_v10 = vpop.eup %5513  ;;  %5525 = vrcp.f32 %v1046_v29  ;;  %4336 = vmatpush3.bf16.msra.mxu1 %v1116_v53  ;;  %v6038_v29 = vld [vmem:[%s10394_s2 + $0x70] sm:$0xff] }
 0x406   :  { %v5516_v19 = vpop.eup %5515  ;;  %v7501_v20 = vmul.f32 %v5514_v10, %v979_v30  ;;  %v965_v1 = vmul.f32 %v6038_v29, %v6783_v62  ;;  %v10929_v62 = vld [vmem:[#allocation50_spill] sm:$0xff]  ;;  %v10943_v30 = vld [vmem:[#allocation64_spill] sm:$0xff] }
 0x407   :  { %v5518_v28 = vpop.eup %5517  ;;  %v7505_v56 = vmul.f32 %v5516_v19, %v963_v55  ;;  %v10941_v19 = vld [vmem:[#allocation62_spill] sm:$0xff]  ;;  %v10948_v55 = vld [vmem:[#allocation69_spill] sm:$0xff] }
 0x408   :  { %10923 = vst [vmem:[#allocation9_spill] sm:$0xff] %v7501_v20  ;;  %v7503_v58 = vmul.f32 %v5518_v28, %v980_v17  ;;  %v5520_v24 = vpop.eup %5519  ;;  %v10945_v17 = vld [vmem:[#allocation66_spill] sm:$0xff]  ;;  %v10946_v28 = vld [vmem:[#allocation67_spill] sm:$0xff] }
 0x409   :  { %v1117_v42 = vpack.c.bf16 %v7499_v11, %v7505_v56  ;;  %v7527_v53 = vmul.f32 %v5520_v24, %v966_v57 }
 0x40a   :  { %10924 = vst [vmem:[#allocation11_spill] sm:$0xff] %v7503_v58  ;;  %v1125_v9 = vpack.c.bf16 %v7503_v58, %v7501_v20  ;;  %v10965_v20 = vld [vmem:[#allocation28_spill] sm:$0xff] }
 0x40b   :  { %10925 = vst [vmem:[#allocation10_spill] sm:$0xff] %v7527_v53 }
 0x40c   :  { %4337 = vmatprep.subr.bf16.mxu1 %v1125_v9  ;;  %v10949_v9 = vld [vmem:[#allocation70_spill] sm:$0xff] }
 0x40d   :  { %v5522_v36 = vpop.eup %5521  ;;  %4338 = vmatpush3.bf16.msra.mxu1 %v1117_v42  ;;  %v10950_v42 = vld [vmem:[#allocation71_spill] sm:$0xff] }
 0x40e   :  { %v5524_v38 = vpop.eup %5523  ;;  %v7529_v52 = vmul.f32 %v5522_v36, %v981_v59 }
 0x40f   :  { %v5526_v13 = vpop.eup %5525  ;;  %v7533_v39 = vmul.f32 %v5524_v38, %v965_v1 }
 0x410   :  { %10926 = vst [vmem:[#allocation12_spill] sm:$0xff] %v7529_v52  ;;  %v7531_v10 = vmul.f32 %v5526_v13, %v982_v35 }
 0x411   :  { %10928 = vst [vmem:[#allocation15_spill] sm:$0xff] %v7533_v39  ;;  %v1118_v60 = vpack.c.bf16 %v7527_v53, %v7533_v39 }
 0x412   :  { %10927 = vst [vmem:[#allocation13_spill] sm:$0xff] %v7531_v10  ;;  %v1126_v21 = vpack.c.bf16 %v7531_v10, %v7529_v52 }
 0x414   :  { %4339 = vmatprep.subr.bf16.mxu1 %v1126_v21 }
 0x415   :  { %4340 = vmatpush3.bf16.msra.mxu1 %v1118_v60 }
 0x418   :  { %1160 = vmatmul.mubr.bf16.vlgmr.msra.gmra.mrb[96].mxu1 %v7058_v44  ;;  %v10930_v44 = vld [vmem:[#allocation51_spill] sm:$0xff] }
 0x419   :  { %1167 = vmatprep.mubr.bf16.mxu1 %v7064_v34  ;;  %v10931_v34 = vld [vmem:[#allocation52_spill] sm:$0xff] }
 0x420   :  { %1168 = vmatmul.mubr.bf16.gmra.mrb[100].mxu1 %v7070_v48  ;;  %v10932_v48 = vld [vmem:[#allocation53_spill] sm:$0xff] }
 0x421   :  { %1175 = vmatprep.mubr.bf16.mxu1 %v7076_v2  ;;  %v10933_v2 = vld [vmem:[#allocation54_spill] sm:$0xff] }
 0x428   :  { %1176 = vmatmul.mubr.bf16.gmra.mrb[104].mxu1 %v7082_v3  ;;  %v10934_v3 = vld [vmem:[#allocation55_spill] sm:$0xff] }
 0x429   :  { %1183 = vmatprep.mubr.bf16.mxu1 %v7088_v18  ;;  %v10935_v18 = vld [vmem:[#allocation56_spill] sm:$0xff] }
 0x430   :  { %1184 = vmatmul.mubr.bf16.gmra.mrb[108].mxu1 %v7094_v0  ;;  %v10936_v0 = vld [vmem:[#allocation57_spill] sm:$0xff] }
 0x431   :  { %1191 = vmatprep.mubr.bf16.mxu1 %v7100_v22  ;;  %v10937_v22 = vld [vmem:[#allocation58_spill] sm:$0xff] }
 0x438   :  { %1192 = vmatmul.mubr.bf16.gmra.mrb[112].mxu1 %v7106_v23  ;;  %v10938_v23 = vld [vmem:[#allocation59_spill] sm:$0xff] }
 0x439   :  { %1199 = vmatprep.mubr.bf16.mxu1 %v7112_v26  ;;  %v10939_v26 = vld [vmem:[#allocation60_spill] sm:$0xff] }
 0x440   :  { %1200 = vmatmul.mubr.bf16.gmra.mrb[116].mxu1 %v10929_v62 }
 0x441   :  { %1207 = vmatprep.mubr.bf16.mxu1 %v10930_v44 }
 0x448   :  { %1208 = vmatmul.mubr.bf16.gmra.mrb[120].mxu1 %v10931_v34 }
 0x449   :  { %1215 = vmatprep.mubr.bf16.mxu1 %v10932_v48 }
 0x450   :  { %1216 = vmatmul.mubr.bf16.gmra.mrb[124].mxu1 %v10933_v2 }
 0x451   :  { %1223 = vmatprep.mubr.bf16.mxu1 %v10934_v3 }
 0x458   :  { %1224 = vmatmul.mubr.bf16.gmra.mrb[128].mxu1 %v10935_v18 }
 0x459   :  { %1231 = vmatprep.mubr.bf16.mxu1 %v10936_v0 }
 0x460   :  { %1232 = vmatmul.mubr.bf16.gmra.mrb[132].mxu1 %v10937_v22 }
 0x461   :  { %1239 = vmatprep.mubr.bf16.mxu1 %v10938_v23 }
 0x468   :  { %1240 = vmatmul.mubr.bf16.gmra.mrb[136].mxu1 %v10939_v26 }
 0x469   :  { %1247 = vmatprep.mubr.bf16.mxu1 %v10940_v16 }
 0x470   :  { %1248 = vmatmul.mubr.bf16.gmra.mrb[140].mxu1 %v10941_v19 }
 0x471   :  { %1255 = vmatprep.mubr.bf16.mxu1 %v10942_v5 }
 0x478   :  { %1256 = vmatmul.mubr.bf16.gmra.mrb[144].mxu1 %v10943_v30 }
 0x479   :  { %1263 = vmatprep.mubr.bf16.mxu1 %v10944_v43 }
 0x480   :  { %1264 = vmatmul.mubr.bf16.gmra.mrb[148].mxu1 %v10945_v17 }
 0x481   :  { %1271 = vmatprep.mubr.bf16.mxu1 %v10946_v28 }
 0x488   :  { %1272 = vmatmul.mubr.bf16.gmra.mrb[152].mxu1 %v10947_v6 }
 0x489   :  { %1279 = vmatprep.mubr.bf16.mxu1 %v10948_v55 }
 0x490   :  { %1280 = vmatmul.mubr.bf16.gmra.mrb[156].mxu1 %v10949_v9 }
 0x491   :  { %1833 = vmatprep.mubr.bf16.mxu1 %v10950_v42 }
 0x4eb   :  { %v4341_v24 = vpop.f32.mrb[96].mxu1 }
 0x4ec   :  { %v4342_v36 = vpop.f32.mrb[97].mxu1 }
 0x4ed   :  { %v4343_v41 = vadd.f32 %v4342_v36, %v4341_v24  ;;  %v4344_v57 = vpop.f32.mrb[98].mxu1 }
 0x4ee   :  { %v4345_v38 = vpop.f32.mrb[99].mxu1 }
 0x4ef   :  { %v4346_v40 = vadd.f32 %v4345_v38, %v4344_v57 }
 0x4f3   :  { %v4347_v59 = vpop.f32.mrb[100].mxu1 }
 0x4f4   :  { %v4348_v27 = vpop.f32.mrb[101].mxu1 }
 0x4f5   :  { %v4349_v35 = vadd.f32 %v4348_v27, %v4347_v59  ;;  %v4350_v13 = vpop.f32.mrb[102].mxu1 }
 0x4f6   :  { %v4351_v29 = vpop.f32.mrb[103].mxu1 }
 0x4f7   :  { %v4352_v1 = vadd.f32 %v4351_v29, %v4350_v13 }
 0x4fb   :  { %v4353_v21 = vpop.f32.mrb[104].mxu1 }
 0x4fc   :  { %v4354_v60 = vpop.f32.mrb[105].mxu1 }
 0x4fd   :  { %v7571_v62 = vadd.f32 %v4354_v60, %v4353_v21  ;;  %v4356_v44 = vpop.f32.mrb[106].mxu1 }
 0x4fe   :  { %v4357_v34 = vpop.f32.mrb[107].mxu1 }
 0x4ff   :  { %v7573_v48 = vadd.f32 %v4357_v34, %v4356_v44 }
 0x503   :  { %v4359_v2 = vpop.f32.mrb[108].mxu1 }
 0x504   :  { %v4360_v3 = vpop.f32.mrb[109].mxu1 }
 0x505   :  { %v7575_v18 = vadd.f32 %v4360_v3, %v4359_v2  ;;  %v4362_v0 = vpop.f32.mrb[110].mxu1  ;;  %v10951_v2 = vld [vmem:[#allocation18_spill] sm:$0xff] }
 0x506   :  { %v4363_v22 = vpop.f32.mrb[111].mxu1  ;;  %v1321_v3 = vmul.f32 %v4346_v40, %v10951_v2 }
 0x507   :  { %v7577_v23 = vadd.f32 %v4363_v22, %v4362_v0  ;;  %v10952_v22 = vld [vmem:[#allocation21_spill] sm:$0xff] }
 0x50b   :  { %v4365_v26 = vpop.f32.mrb[112].mxu1 }
 0x50c   :  { %v4366_v16 = vpop.f32.mrb[113].mxu1 }
 0x50d   :  { %v7579_v19 = vadd.f32 %v4366_v16, %v4365_v26  ;;  %v4368_v5 = vpop.f32.mrb[114].mxu1  ;;  %v1320_v26 = vmul.f32 %v4343_v41, %v10952_v22  ;;  %v10956_v41 = vld [vmem:[#allocation25_spill] sm:$0xff] }
 0x50e   :  { %v4369_v30 = vpop.f32.mrb[115].mxu1  ;;  %v1322_v10 = vmul.f32 %v4349_v35, %v10956_v41 }
 0x50f   :  { %v7581_v43 = vadd.f32 %v4369_v30, %v4368_v5 }
 0x513   :  { %v4371_v17 = vpop.f32.mrb[116].mxu1 }
 0x514   :  { %v4372_v28 = vpop.f32.mrb[117].mxu1 }
 0x515   :  { %v7583_v6 = vadd.f32 %v4372_v28, %v4371_v17  ;;  %v4374_v55 = vpop.f32.mrb[118].mxu1  ;;  %v1353_v17 = vadd.f32 1e-06, %v1321_v3 }
 0x516   :  { %v4375_v9 = vpop.f32.mrb[119].mxu1 }
 0x517   :  { %v7585_v42 = vadd.f32 %v4375_v9, %v4374_v55  ;;  %v10953_v55 = vld [vmem:[#allocation19_spill] sm:$0xff]  ;;  %5527 = vrcp.f32 %v1353_v17  ;;  %v10958_v17 = vld [vmem:[#allocation24_spill] sm:$0xff] }
 0x51b   :  { %v4377_v24 = vpop.f32.mrb[120].mxu1 }
 0x51c   :  { %v4378_v36 = vpop.f32.mrb[121].mxu1 }
 0x51d   :  { %v7587_v57 = vadd.f32 %v4378_v36, %v4377_v24  ;;  %v4380_v38 = vpop.f32.mrb[122].mxu1  ;;  %v1352_v36 = vadd.f32 1e-06, %v1320_v26 }
 0x51e   :  { %v4381_v59 = vpop.f32.mrb[123].mxu1 }
 0x51f   :  { %v7589_v27 = vadd.f32 %v4381_v59, %v4380_v38  ;;  %v10954_v59 = vld [vmem:[#allocation20_spill] sm:$0xff] }
 0x523   :  { %v4383_v13 = vpop.f32.mrb[124].mxu1 }
 0x524   :  { %v4384_v29 = vpop.f32.mrb[125].mxu1 }
 0x525   :  { %v7591_v21 = vadd.f32 %v4384_v29, %v4383_v13  ;;  %v4386_v60 = vpop.f32.mrb[126].mxu1  ;;  %v10955_v29 = vld [vmem:[#allocation22_spill] sm:$0xff] }
 0x526   :  { %v4387_v44 = vpop.f32.mrb[127].mxu1 }
 0x527   :  { %v7593_v34 = vadd.f32 %v4387_v44, %v4386_v60  ;;  %v1323_v60 = vmul.f32 %v4352_v1, %v10955_v29  ;;  %v10959_v1 = vld [vmem:[#allocation26_spill] sm:$0xff] }
 0x529   :  { %v1355_v52 = vadd.f32 1e-06, %v1323_v60 }
 0x52b   :  { %v4389_v0 = vpop.f32.mrb[128].mxu1 }
 0x52c   :  { %v4390_v16 = vpop.f32.mrb[129].mxu1 }
 0x52d   :  { %v4391_v5 = vadd.f32 %v4390_v16, %v4389_v0  ;;  %v4392_v30 = vpop.f32.mrb[130].mxu1 }
 0x52e   :  { %v4393_v28 = vpop.f32.mrb[131].mxu1 }
 0x52f   :  { %v1336_v9 = vmul.f32 %v4391_v5, %v10953_v55  ;;  %v4394_v24 = vadd.f32 %v4393_v28, %v4392_v30  ;;  %v10957_v30 = vld [vmem:[#allocation23_spill] sm:$0xff] }
 0x531   :  { %v1368_v38 = vadd.f32 1e-06, %v1336_v9  ;;  %v1337_v13 = vmul.f32 %v4394_v24, %v10954_v59  ;;  %v1354_v9 = vadd.f32 1e-06, %v1322_v10 }
 0x533   :  { %5529 = vrcp.f32 %v1368_v38  ;;  %v1369_v40 = vadd.f32 1e-06, %v1337_v13  ;;  %v4395_v44 = vpop.f32.mrb[132].mxu1  ;;  %v1325_v38 = vmul.f32 %v7573_v48, %v10959_v1  ;;  %v5528_v13 = vpop.eup %5527 }
 0x534   :  { %5531 = vrcp.f32 %v1352_v36  ;;  %v4396_v0 = vpop.f32.mrb[133].mxu1 }
 0x535   :  { %5533 = vrcp.f32 %v1369_v40  ;;  %v4397_v3 = vadd.f32 %v4396_v0, %v4395_v44  ;;  %v4398_v16 = vpop.f32.mrb[134].mxu1  ;;  %v10960_v40 = vld [vmem:[#allocation29_spill] sm:$0xff] }
 0x536   :  { %v4399_v5 = vpop.f32.mrb[135].mxu1  ;;  %5535 = vrcp.f32 %v1355_v52  ;;  %v1324_v60 = vmul.f32 %v7571_v62, %v10960_v40  ;;  %v6039_v52 = vld [vmem:[%s10395_s3 + $0x8] sm:$0xff] }
 0x537   :  { %v1338_v26 = vmul.f32 %v4397_v3, %v10957_v30  ;;  %v4400_v28 = vadd.f32 %v4399_v5, %v4398_v16  ;;  %v1289_v16 = vmul.f32 %v6039_v52, %v10951_v2  ;;  %v1357_v5 = vadd.f32 1e-06, %v1325_v38  ;;  %v6042_v2 = vld [vmem:[%s10395_s3] sm:$0xff] }
 0x538   :  { %v1288_v38 = vmul.f32 %v6042_v2, %v10952_v22  ;;  %v1356_v53 = vadd.f32 1e-06, %v1324_v60 }
 0x539   :  { %v1370_v24 = vadd.f32 1e-06, %v1338_v26  ;;  %v1339_v39 = vmul.f32 %v4400_v28, %v10958_v17  ;;  %v6040_v26 = vld [vmem:[%s10395_s3 + $0x80] sm:$0xff]  ;;  %v6041_v28 = vld [vmem:[%s10395_s3 + $0x88] sm:$0xff]  ;;  %v7624_v52 = vmul.f32 %v5528_v13, %v1289_v16 }
 0x53a   :  { %v1304_v62 = vmul.f32 %v6040_v26, %v10953_v55  ;;  %v10968_v16 = vld [vmem:[#allocation33_spill] sm:$0xff] }
 0x53b   :  { %5537 = vrcp.f32 %v1370_v24  ;;  %v1371_v36 = vadd.f32 1e-06, %v1339_v39  ;;  %v4401_v35 = vpop.f32.mrb[136].mxu1  ;;  %10962 = vst [vmem:[#allocation14_spill] sm:$0xff] %v7624_v52 }
 0x53c   :  { %5539 = vrcp.f32 %v1354_v9  ;;  %v4402_v44 = vpop.f32.mrb[137].mxu1  ;;  %v1305_v9 = vmul.f32 %v6041_v28, %v10954_v59 }
 0x53d   :  { %v5530_v0 = vpop.eup %5529  ;;  %5541 = vrcp.f32 %v1371_v36  ;;  %v4403_v3 = vadd.f32 %v4402_v44, %v4401_v35  ;;  %v4404_v10 = vpop.f32.mrb[138].mxu1  ;;  %v10961_v36 = vld [vmem:[#allocation27_spill] sm:$0xff] }
 0x53e   :  { %v5532_v48 = vpop.eup %5531  ;;  %v4405_v39 = vpop.f32.mrb[139].mxu1  ;;  %v7626_v55 = vmul.f32 %v5530_v0, %v1304_v62  ;;  %5543 = vrcp.f32 %v1357_v5  ;;  %v1326_v62 = vmul.f32 %v7575_v18, %v10968_v16 }
 0x53f   :  { %v5534_v24 = vpop.eup %5533  ;;  %v1340_v35 = vmul.f32 %v4403_v3, %v10961_v36  ;;  %v4406_v44 = vadd.f32 %v4405_v39, %v4404_v10  ;;  %v7631_v28 = vmul.f32 %v5532_v48, %v1288_v38  ;;  %v10967_v3 = vld [vmem:[#allocation30_spill] sm:$0xff]  ;;  %v6045_v38 = vld [vmem:[%s10395_s3 + $0x98] sm:$0xff] }
 0x540   :  { %10963 = vst [vmem:[#allocation16_spill] sm:$0xff] %v7626_v55  ;;  %v7628_v26 = vmul.f32 %v5534_v24, %v1305_v9  ;;  %v1327_v10 = vmul.f32 %v7577_v23, %v10967_v3  ;;  %v5536_v0 = vpop.eup %5535 }
 0x541   :  { %v1372_v58 = vadd.f32 1e-06, %v1340_v35  ;;  %v1341_v59 = vmul.f32 %v4406_v44, %v10965_v20  ;;  %10966 = vst [vmem:[#allocation50_spill] sm:$0xff] %v7631_v28  ;;  %v1448_v60 = vpack.c.bf16 %v7624_v52, %v7631_v28 }
 0x542   :  { %10964 = vst [vmem:[#allocation17_spill] sm:$0xff] %v7628_v26  ;;  %v1456_v39 = vpack.c.bf16 %v7628_v26, %v7626_v55  ;;  %v1359_v44 = vadd.f32 1e-06, %v1327_v10  ;;  %v10973_v55 = vld [vmem:[#allocation32_spill] sm:$0xff] }
 0x543   :  { %5545 = vrcp.f32 %v1372_v58  ;;  %v1373_v22 = vadd.f32 1e-06, %v1341_v59  ;;  %v4407_v13 = vpop.f32.mrb[140].mxu1  ;;  %v6043_v58 = vld [vmem:[%s10395_s3 + $0x18] sm:$0xff]  ;;  %v1307_v59 = vmul.f32 %v6045_v38, %v10958_v17 }
 0x544   :  { %5547 = vrcp.f32 %v1356_v53  ;;  %v4408_v48 = vpop.f32.mrb[141].mxu1  ;;  %4437 = vmatprep.subr.bf16.mxu0 %v1456_v39  ;;  %v1291_v24 = vmul.f32 %v6043_v58, %v10955_v29  ;;  %v6044_v53 = vld [vmem:[%s10395_s3 + $0x90] sm:$0xff]  ;;  %v1358_v58 = vadd.f32 1e-06, %v1326_v62 }
 0x545   :  { %v5538_v5 = vpop.eup %5537  ;;  %5549 = vrcp.f32 %v1373_v22  ;;  %v4409_v9 = vadd.f32 %v4408_v48, %v4407_v13  ;;  %v4410_v23 = vpop.f32.mrb[142].mxu1  ;;  %4438 = vmatpush3.bf16.msra.mxu0 %v1448_v60  ;;  %v1306_v18 = vmul.f32 %v6044_v53, %v10957_v30  ;;  %v10969_v22 = vld [vmem:[#allocation31_spill] sm:$0xff] }
 0x546   :  { %v5540_v35 = vpop.eup %5539  ;;  %v4411_v2 = vpop.f32.mrb[143].mxu1  ;;  %v6046_v29 = vld [vmem:[%s10395_s3 + $0x10] sm:$0xff]  ;;  %v7658_v48 = vmul.f32 %v5536_v0, %v1291_v24  ;;  %5551 = vrcp.f32 %v1359_v44  ;;  %v10976_v24 = vld [vmem:[#allocation37_spill] sm:$0xff] }
 0x547   :  { %v5542_v39 = vpop.eup %5541  ;;  %v1342_v13 = vmul.f32 %v4409_v9, %v10969_v22  ;;  %v4412_v60 = vadd.f32 %v4411_v2, %v4410_v23  ;;  %v1290_v10 = vmul.f32 %v6046_v29, %v10956_v41  ;;  %v7660_v30 = vmul.f32 %v5538_v5, %v1306_v18  ;;  %v10975_v9 = vld [vmem:[#allocation34_spill] sm:$0xff] }
 0x548   :  { %10970 = vst [vmem:[#allocation51_spill] sm:$0xff] %v7658_v48  ;;  %v7662_v53 = vmul.f32 %v5542_v39, %v1307_v59  ;;  %v1329_v23 = vmul.f32 %v7581_v43, %v10975_v9  ;;  %v5544_v5 = vpop.eup %5543  ;;  %v1328_v18 = vmul.f32 %v7579_v19, %v10976_v24  ;;  %v6048_v19 = vld [vmem:[%s10395_s3 + $0xa0] sm:$0xff] }
 0x549   :  { %10971 = vst [vmem:[#allocation52_spill] sm:$0xff] %v7660_v30  ;;  %v1374_v26 = vadd.f32 1e-06, %v1342_v13  ;;  %v1343_v17 = vmul.f32 %v4412_v60, %v10973_v55  ;;  %v7665_v38 = vmul.f32 %v5540_v35, %v1290_v10  ;;  %v1308_v10 = vmul.f32 %v6048_v19, %v10961_v36 }
 0x54a   :  { %10972 = vst [vmem:[#allocation53_spill] sm:$0xff] %v7662_v53  ;;  %v1457_v2 = vpack.c.bf16 %v7662_v53, %v7660_v30  ;;  %v1361_v60 = vadd.f32 1e-06, %v1329_v23  ;;  %v10981_v30 = vld [vmem:[#allocation36_spill] sm:$0xff] }
 0x54b   :  { %10974 = vst [vmem:[#allocation54_spill] sm:$0xff] %v7665_v38  ;;  %5553 = vrcp.f32 %v1374_v26  ;;  %v1375_v41 = vadd.f32 1e-06, %v1343_v17  ;;  %v4413_v0 = vpop.f32.mrb[144].mxu1  ;;  %v1449_v62 = vpack.c.bf16 %v7658_v48, %v7665_v38  ;;  %v6047_v26 = vld [vmem:[%s10395_s3 + $0x28] sm:$0xff] }
 0x54c   :  { %5555 = vrcp.f32 %v1358_v58  ;;  %v4414_v35 = vpop.f32.mrb[145].mxu1  ;;  %4439 = vmatprep.subr.bf16.mxu0 %v1457_v2  ;;  %v1293_v39 = vmul.f32 %v6047_v26, %v10959_v1  ;;  %v6049_v58 = vld [vmem:[%s10395_s3 + $0xa8] sm:$0xff]  ;;  %v6050_v1 = vld [vmem:[%s10395_s3 + $0x20] sm:$0xff]  ;;  %v1360_v26 = vadd.f32 1e-06, %v1328_v18 }
 0x54d   :  { %v5546_v44 = vpop.eup %5545  ;;  %5557 = vrcp.f32 %v1375_v41  ;;  %v4415_v59 = vadd.f32 %v4414_v35, %v4413_v0  ;;  %v4416_v43 = vpop.f32.mrb[146].mxu1  ;;  %4440 = vmatpush3.bf16.msra.mxu0 %v1449_v62  ;;  %v1309_v17 = vmul.f32 %v6049_v58, %v10965_v20  ;;  %v10977_v41 = vld [vmem:[#allocation35_spill] sm:$0xff]  ;;  %v1292_v23 = vmul.f32 %v6050_v1, %v10960_v40 }
 0x54e   :  { %v5548_v13 = vpop.eup %5547  ;;  %v4417_v29 = vpop.f32.mrb[147].mxu1  ;;  %v7692_v35 = vmul.f32 %v5544_v5, %v1293_v39  ;;  %v7694_v36 = vmul.f32 %v5546_v44, %v1308_v10  ;;  %5559 = vrcp.f32 %v1361_v60  ;;  %v10984_v39 = vld [vmem:[#allocation41_spill] sm:$0xff] }
 0x54f   :  { %v5550_v2 = vpop.eup %5549  ;;  %v1344_v0 = vmul.f32 %v4415_v59, %v10977_v41  ;;  %v4418_v62 = vadd.f32 %v4417_v29, %v4416_v43  ;;  %v7699_v58 = vmul.f32 %v5548_v13, %v1292_v23  ;;  %v10983_v59 = vld [vmem:[#allocation38_spill] sm:$0xff]  ;;  %v1330_v10 = vmul.f32 %v7583_v6, %v10984_v39 }
 0x550   :  { %10978 = vst [vmem:[#allocation55_spill] sm:$0xff] %v7692_v35  ;;  %10979 = vst [vmem:[#allocation56_spill] sm:$0xff] %v7694_v36  ;;  %v7696_v19 = vmul.f32 %v5550_v2, %v1309_v17  ;;  %v1331_v43 = vmul.f32 %v7585_v42, %v10983_v59  ;;  %v5552_v44 = vpop.eup %5551  ;;  %v6052_v6 = vld [vmem:[%s10395_s3 + $0xb0] sm:$0xff] }
 0x551   :  { %v1376_v53 = vadd.f32 1e-06, %v1344_v0  ;;  %v1345_v20 = vmul.f32 %v4418_v62, %v10981_v30  ;;  %10982 = vst [vmem:[#allocation58_spill] sm:$0xff] %v7699_v58  ;;  %v1450_v18 = vpack.c.bf16 %v7692_v35, %v7699_v58  ;;  %v1310_v23 = vmul.f32 %v6052_v6, %v10969_v22 }
 0x552   :  { %10980 = vst [vmem:[#allocation57_spill] sm:$0xff] %v7696_v19  ;;  %v1458_v29 = vpack.c.bf16 %v7696_v19, %v7694_v36  ;;  %v1363_v62 = vadd.f32 1e-06, %v1331_v43  ;;  %v10989_v36 = vld [vmem:[#allocation40_spill] sm:$0xff] }
 0x553   :  { %5561 = vrcp.f32 %v1376_v53  ;;  %v1377_v40 = vadd.f32 1e-06, %v1345_v20  ;;  %v4419_v5 = vpop.f32.mrb[148].mxu1  ;;  %v6051_v53 = vld [vmem:[%s10395_s3 + $0x38] sm:$0xff] }
 0x554   :  { %5563 = vrcp.f32 %v1360_v26  ;;  %v4420_v13 = vpop.f32.mrb[149].mxu1  ;;  %4441 = vmatprep.subr.bf16.mxu0 %v1458_v29  ;;  %v1295_v2 = vmul.f32 %v6051_v53, %v10967_v3  ;;  %v6053_v26 = vld [vmem:[%s10395_s3 + $0xb8] sm:$0xff]  ;;  %v6054_v3 = vld [vmem:[%s10395_s3 + $0x30] sm:$0xff]  ;;  %v1362_v53 = vadd.f32 1e-06, %v1330_v10 }
 0x555   :  { %v5554_v60 = vpop.eup %5553  ;;  %5565 = vrcp.f32 %v1377_v40  ;;  %v4421_v17 = vadd.f32 %v4420_v13, %v4419_v5  ;;  %v4422_v42 = vpop.f32.mrb[150].mxu1  ;;  %4442 = vmatpush3.bf16.msra.mxu0 %v1450_v18  ;;  %v1311_v20 = vmul.f32 %v6053_v26, %v10973_v55  ;;  %v10985_v40 = vld [vmem:[#allocation39_spill] sm:$0xff]  ;;  %v1294_v43 = vmul.f32 %v6054_v3, %v10968_v16 }
 0x556   :  { %v5556_v0 = vpop.eup %5555  ;;  %v4423_v1 = vpop.f32.mrb[151].mxu1  ;;  %v7726_v13 = vmul.f32 %v5552_v44, %v1295_v2  ;;  %v7728_v22 = vmul.f32 %v5554_v60, %v1310_v23  ;;  %5567 = vrcp.f32 %v1363_v62  ;;  %v10992_v2 = vld [vmem:[#allocation45_spill] sm:$0xff] }
 0x557   :  { %v5558_v29 = vpop.eup %5557  ;;  %v1346_v5 = vmul.f32 %v4421_v17, %v10985_v40  ;;  %v4424_v18 = vadd.f32 %v4423_v1, %v4422_v42  ;;  %v7733_v26 = vmul.f32 %v5556_v0, %v1294_v43  ;;  %v10991_v17 = vld [vmem:[#allocation42_spill] sm:$0xff]  ;;  %v1332_v23 = vmul.f32 %v7587_v57, %v10992_v2  ;;  %v6056_v57 = vld [vmem:[%s10395_s3 + $0xc0] sm:$0xff] }
 0x558   :  { %10986 = vst [vmem:[#allocation59_spill] sm:$0xff] %v7726_v13  ;;  %10987 = vst [vmem:[#allocation60_spill] sm:$0xff] %v7728_v22  ;;  %v7730_v6 = vmul.f32 %v5558_v29, %v1311_v20  ;;  %v1333_v42 = vmul.f32 %v7589_v27, %v10991_v17  ;;  %v5560_v60 = vpop.eup %5559  ;;  %v1312_v43 = vmul.f32 %v6056_v57, %v10977_v41 }
 0x559   :  { %v1378_v19 = vadd.f32 1e-06, %v1346_v5  ;;  %v1347_v55 = vmul.f32 %v4424_v18, %v10989_v36  ;;  %10990 = vst [vmem:[#allocation62_spill] sm:$0xff] %v7733_v26  ;;  %v1451_v10 = vpack.c.bf16 %v7726_v13, %v7733_v26 }
 0x55a   :  { %10988 = vst [vmem:[#allocation61_spill] sm:$0xff] %v7730_v6  ;;  %v1459_v1 = vpack.c.bf16 %v7730_v6, %v7728_v22  ;;  %v1365_v18 = vadd.f32 1e-06, %v1333_v42  ;;  %v10997_v22 = vld [vmem:[#allocation44_spill] sm:$0xff] }
 0x55b   :  { %5569 = vrcp.f32 %v1378_v19  ;;  %v1379_v16 = vadd.f32 1e-06, %v1347_v55  ;;  %v4425_v44 = vpop.f32.mrb[152].mxu1  ;;  %v6055_v19 = vld [vmem:[%s10395_s3 + $0x48] sm:$0xff] }
 0x55c   :  { %5571 = vrcp.f32 %v1362_v53  ;;  %v4426_v0 = vpop.f32.mrb[153].mxu1  ;;  %4443 = vmatprep.subr.bf16.mxu0 %v1459_v1  ;;  %v1297_v29 = vmul.f32 %v6055_v19, %v10975_v9  ;;  %v6057_v53 = vld [vmem:[%s10395_s3 + $0xc8] sm:$0xff]  ;;  %v6058_v9 = vld [vmem:[%s10395_s3 + $0x40] sm:$0xff]  ;;  %v1364_v19 = vadd.f32 1e-06, %v1332_v23 }
 0x55d   :  { %v5562_v62 = vpop.eup %5561  ;;  %5573 = vrcp.f32 %v1379_v16  ;;  %v4427_v20 = vadd.f32 %v4426_v0, %v4425_v44  ;;  %v4428_v27 = vpop.f32.mrb[154].mxu1  ;;  %4444 = vmatpush3.bf16.msra.mxu0 %v1451_v10  ;;  %v1313_v55 = vmul.f32 %v6057_v53, %v10981_v30  ;;  %v10993_v16 = vld [vmem:[#allocation43_spill] sm:$0xff]  ;;  %v1296_v42 = vmul.f32 %v6058_v9, %v10976_v24 }
 0x55e   :  { %v5564_v5 = vpop.eup %5563  ;;  %v4429_v3 = vpop.f32.mrb[155].mxu1  ;;  %v7760_v0 = vmul.f32 %v5560_v60, %v1297_v29  ;;  %v7762_v41 = vmul.f32 %v5562_v62, %v1312_v43  ;;  %5575 = vrcp.f32 %v1365_v18  ;;  %v11000_v29 = vld [vmem:[#allocation49_spill] sm:$0xff] }
 0x55f   :  { %v5566_v1 = vpop.eup %5565  ;;  %v1348_v44 = vmul.f32 %v4427_v20, %v10993_v16  ;;  %v4430_v10 = vadd.f32 %v4429_v3, %v4428_v27  ;;  %v7767_v53 = vmul.f32 %v5564_v5, %v1296_v42  ;;  %v10999_v20 = vld [vmem:[#allocation46_spill] sm:$0xff]  ;;  %v1334_v43 = vmul.f32 %v7591_v21, %v11000_v29 }
 0x560   :  { %10994 = vst [vmem:[#allocation63_spill] sm:$0xff] %v7760_v0  ;;  %10995 = vst [vmem:[#allocation64_spill] sm:$0xff] %v7762_v41  ;;  %v7764_v57 = vmul.f32 %v5566_v1, %v1313_v55  ;;  %v1335_v27 = vmul.f32 %v7593_v34, %v10999_v20  ;;  %v5568_v62 = vpop.eup %5567  ;;  %v6060_v21 = vld [vmem:[%s10395_s3 + $0xd0] sm:$0xff] }
 0x561   :  { %v1380_v6 = vadd.f32 1e-06, %v1348_v44  ;;  %v1349_v30 = vmul.f32 %v4430_v10, %v10997_v22  ;;  %10998 = vst [vmem:[#allocation66_spill] sm:$0xff] %v7767_v53  ;;  %v1452_v23 = vpack.c.bf16 %v7760_v0, %v7767_v53  ;;  %v1314_v42 = vmul.f32 %v6060_v21, %v10985_v40 }
 0x562   :  { %10996 = vst [vmem:[#allocation65_spill] sm:$0xff] %v7764_v57  ;;  %v1460_v3 = vpack.c.bf16 %v7764_v57, %v7762_v41  ;;  %v1367_v10 = vadd.f32 1e-06, %v1335_v27  ;;  %v11005_v41 = vld [vmem:[#allocation48_spill] sm:$0xff] }
 0x563   :  { %5577 = vrcp.f32 %v1380_v6  ;;  %v1381_v24 = vadd.f32 1e-06, %v1349_v30  ;;  %v4431_v60 = vpop.f32.mrb[156].mxu1  ;;  %v6059_v6 = vld [vmem:[%s10395_s3 + $0x58] sm:$0xff] }
 0x564   :  { %5579 = vrcp.f32 %v1364_v19  ;;  %v4432_v5 = vpop.f32.mrb[157].mxu1  ;;  %4445 = vmatprep.subr.bf16.mxu0 %v1460_v3  ;;  %v1299_v1 = vmul.f32 %v6059_v6, %v10983_v59  ;;  %v6061_v19 = vld [vmem:[%s10395_s3 + $0xd8] sm:$0xff]  ;;  %v6062_v59 = vld [vmem:[%s10395_s3 + $0x50] sm:$0xff]  ;;  %v1366_v6 = vadd.f32 1e-06, %v1334_v43 }
 0x565   :  { %v5570_v18 = vpop.eup %5569  ;;  %5581 = vrcp.f32 %v1381_v24  ;;  %v4433_v55 = vadd.f32 %v4432_v5, %v4431_v60  ;;  %v4434_v34 = vpop.f32.mrb[158].mxu1  ;;  %4446 = vmatpush3.bf16.msra.mxu0 %v1452_v23  ;;  %v1315_v30 = vmul.f32 %v6061_v19, %v10989_v36  ;;  %v11001_v24 = vld [vmem:[#allocation47_spill] sm:$0xff]  ;;  %v1298_v27 = vmul.f32 %v6062_v59, %v10984_v39 }
 0x566   :  { %v5572_v44 = vpop.eup %5571  ;;  %v4435_v9 = vpop.f32.mrb[159].mxu1  ;;  %v7794_v5 = vmul.f32 %v5568_v62, %v1299_v1  ;;  %v7796_v40 = vmul.f32 %v5570_v18, %v1314_v42  ;;  %5583 = vrcp.f32 %v1367_v10  ;;  %v6063_v18 = vld [vmem:[%s10395_s3 + $0x68] sm:$0xff] }
 0x567   :  { %v5574_v3 = vpop.eup %5573  ;;  %v1350_v60 = vmul.f32 %v4433_v55, %v11001_v24  ;;  %v4436_v23 = vadd.f32 %v4435_v9, %v4434_v34  ;;  %v7801_v19 = vmul.f32 %v5572_v44, %v1298_v27  ;;  %v1301_v1 = vmul.f32 %v6063_v18, %v10991_v17  ;;  %v6065_v9 = vld [vmem:[%s10395_s3 + $0xe8] sm:$0xff] }
 0x568   :  { %11002 = vst [vmem:[#allocation67_spill] sm:$0xff] %v7794_v5  ;;  %11003 = vst [vmem:[#allocation68_spill] sm:$0xff] %v7796_v40  ;;  %v7798_v21 = vmul.f32 %v5574_v3, %v1315_v30  ;;  %v5576_v62 = vpop.eup %5575  ;;  %v1317_v42 = vmul.f32 %v6065_v9, %v10997_v22  ;;  %v6066_v3 = vld [vmem:[%s10395_s3 + $0x60] sm:$0xff] }
 0x569   :  { %v1382_v57 = vadd.f32 1e-06, %v1350_v60  ;;  %v1351_v36 = vmul.f32 %v4436_v23, %v11005_v41  ;;  %11006 = vst [vmem:[#allocation70_spill] sm:$0xff] %v7801_v19  ;;  %v1453_v39 = vpack.c.bf16 %v7794_v5, %v7801_v19  ;;  %v1300_v17 = vmul.f32 %v6066_v3, %v10992_v2  ;;  %v6067_v2 = vld [vmem:[%s10395_s3 + $0x78] sm:$0xff]  ;;  %v8052_v5 = vld [vmem:[%s10392_s0 + $0x4] ss:$8 sps:$4 sm:$0xff]  }
 0x56a   :  { %11004 = vst [vmem:[#allocation69_spill] sm:$0xff] %v7798_v21  ;;  %v1461_v55 = vpack.c.bf16 %v7798_v21, %v7796_v40  ;;  %v7823_v60 = vmul.f32 %v5576_v62, %v1301_v1  ;;  %v7878_v3 = vld [vmem:[%s10392_s0 + $0x10] ss:$8 sps:$4 sm:$0xff]   ;;  %v8034_v21 = vld [vmem:[%s10392_s0 + $0xe0] ss:$8 sps:$4 sm:$0xff]   ;;  %11039 = vst [vmem:[#allocation48_spill] sm:$0xff] %v8052_v5 }
 0x56b   :  { %5585 = vrcp.f32 %v1382_v57  ;;  %v1383_v34 = vadd.f32 1e-06, %v1351_v36  ;;  %v6064_v57 = vld [vmem:[%s10395_s3 + $0xe0] sm:$0xff]  ;;  %11036 = vst [vmem:[#allocation46_spill] sm:$0xff] %v8034_v21  ;;  %v8040_v40 = vld [vmem:[%s10392_s0 + $0xf4] ss:$8 sps:$4 sm:$0xff]  }
 0x56c   :  { %5587 = vrcp.f32 %v1366_v6  ;;  %4447 = vmatprep.subr.bf16.mxu0 %v1461_v55  ;;  %v1316_v10 = vmul.f32 %v6064_v57, %v10993_v16  ;;  %11007 = vst [vmem:[#allocation71_spill] sm:$0xff] %v7823_v60  ;;  %v1303_v55 = vmul.f32 %v6067_v2, %v10999_v20  ;;  %v7914_v2 = vld [vmem:[%s10392_s0 + $0x40] ss:$8 sps:$4 sm:$0xff]   ;;  %11037 = vst [vmem:[#allocation49_spill] sm:$0xff] %v8040_v40  ;;  %v8046_v19 = vld [vmem:[%s10392_s0 + $0xf0] ss:$8 sps:$4 sm:$0xff]  }
 0x56d   :  { %v5578_v43 = vpop.eup %5577  ;;  %5589 = vrcp.f32 %v1383_v34  ;;  %4448 = vmatpush3.bf16.msra.mxu0 %v1453_v39  ;;  %v6068_v39 = vld [vmem:[%s10395_s3 + $0xf0] sm:$0xff]  ;;  %11016 = vst [vmem:[#allocation26_spill] sm:$0xff] %v7914_v2  ;;  %11038 = vst [vmem:[#allocation47_spill] sm:$0xff] %v8046_v19 }
 0x56e   :  { %v5580_v44 = vpop.eup %5579  ;;  %v7825_v23 = vmul.f32 %v5578_v43, %v1316_v10  ;;  %v1318_v62 = vmul.f32 %v6068_v39, %v11001_v24  ;;  %v6069_v43 = vld [vmem:[%s10395_s3 + $0xf8] sm:$0xff]  ;;  %v7932_v39 = vld [vmem:[%s10392_s0 + $0x64] ss:$8 sps:$4 sm:$0xff]  }
 0x56f   :  { %v5582_v30 = vpop.eup %5581  ;;  %v7829_v16 = vmul.f32 %v5580_v44, %v1300_v17  ;;  %v1319_v18 = vmul.f32 %v6069_v43, %v11005_v41  ;;  %v6070_v44 = vld [vmem:[%s10395_s3 + $0x70] sm:$0xff]  ;;  %v7884_v17 = vld [vmem:[%s10392_s0 + $0x24] ss:$8 sps:$4 sm:$0xff]   ;;  %11019 = vst [vmem:[#allocation28_spill] sm:$0xff] %v7932_v39 }
 0x570   :  { %11008 = vst [vmem:[#allocation18_spill] sm:$0xff] %v7825_v23  ;;  %v7827_v59 = vmul.f32 %v5582_v30, %v1317_v42  ;;  %v5584_v6 = vpop.eup %5583  ;;  %v1302_v20 = vmul.f32 %v6070_v44, %v11000_v29  ;;  %v7866_v29 = vld [vmem:[%s10392_s0] ss:$8 sps:$4 sm:$0xff]   ;;  %v7872_v30 = vld [vmem:[%s10392_s0 + $0x14] ss:$8 sps:$4 sm:$0xff]  }
 0x571   :  { %11010 = vst [vmem:[#allocation19_spill] sm:$0xff] %v7829_v16  ;;  %v1454_v22 = vpack.c.bf16 %v7823_v60, %v7829_v16  ;;  %v7851_v57 = vmul.f32 %v5584_v6, %v1303_v55  ;;  %v7902_v6 = vld [vmem:[%s10392_s0 + $0x30] ss:$8 sps:$4 sm:$0xff]   ;;  %v7920_v55 = vld [vmem:[%s10392_s0 + $0x54] ss:$8 sps:$4 sm:$0xff]  }
 0x572   :  { %11009 = vst [vmem:[#allocation21_spill] sm:$0xff] %v7827_v59  ;;  %v1462_v27 = vpack.c.bf16 %v7827_v59, %v7825_v23  ;;  %11017 = vst [vmem:[#allocation29_spill] sm:$0xff] %v7920_v55  ;;  %v7944_v43 = vld [vmem:[%s10392_s0 + $0x74] ss:$8 sps:$4 sm:$0xff]   ;;  %v7962_v44 = vld [vmem:[%s10392_s0 + $0x80] ss:$8 sps:$4 sm:$0xff]  }
 0x573   :  { %11011 = vst [vmem:[#allocation20_spill] sm:$0xff] %v7851_v57  ;;  %11021 = vst [vmem:[#allocation33_spill] sm:$0xff] %v7944_v43  ;;  %v8010_v59 = vld [vmem:[%s10392_s0 + $0xc0] ss:$8 sps:$4 sm:$0xff]   ;;  %v8016_v23 = vld [vmem:[%s10392_s0 + $0xd4] ss:$8 sps:$4 sm:$0xff]  }
 0x574   :  { %4449 = vmatprep.subr.bf16.mxu0 %v1462_v27  ;;  %v7890_v27 = vld [vmem:[%s10392_s0 + $0x20] ss:$8 sps:$4 sm:$0xff]   ;;  %11024 = vst [vmem:[#allocation34_spill] sm:$0xff] %v7962_v44  ;;  %11032 = vst [vmem:[#allocation42_spill] sm:$0xff] %v8010_v59  ;;  %v8022_v16 = vld [vmem:[%s10392_s0 + $0xd0] ss:$8 sps:$4 sm:$0xff]  }
 0x575   :  { %v5586_v36 = vpop.eup %5585  ;;  %4450 = vmatpush3.bf16.msra.mxu0 %v1454_v22  ;;  %v7896_v22 = vld [vmem:[%s10392_s0 + $0x34] ss:$8 sps:$4 sm:$0xff]   ;;  %11033 = vst [vmem:[#allocation45_spill] sm:$0xff] %v8016_v23  ;;  %11034 = vst [vmem:[#allocation43_spill] sm:$0xff] %v8022_v16  ;;  %v8028_v60 = vld [vmem:[%s10392_s0 + $0xe4] ss:$8 sps:$4 sm:$0xff]  }
 0x576   :  { %v5588_v34 = vpop.eup %5587  ;;  %v7853_v10 = vmul.f32 %v5586_v36, %v1318_v62  ;;  %v7908_v36 = vld [vmem:[%s10392_s0 + $0x44] ss:$8 sps:$4 sm:$0xff]   ;;  %v7938_v62 = vld [vmem:[%s10392_s0 + $0x60] ss:$8 sps:$4 sm:$0xff]   ;;  %11035 = vst [vmem:[#allocation44_spill] sm:$0xff] %v8028_v60 }
 0x577   :  { %v5590_v1 = vpop.eup %5589  ;;  %v7857_v24 = vmul.f32 %v5588_v34, %v1302_v20  ;;  %11015 = vst [vmem:[#allocation24_spill] sm:$0xff] %v7908_v36  ;;  %v7926_v34 = vld [vmem:[%s10392_s0 + $0x50] ss:$8 sps:$4 sm:$0xff]   ;;  %11020 = vst [vmem:[#allocation30_spill] sm:$0xff] %v7938_v62  ;;  %v7968_v20 = vld [vmem:[%s10392_s0 + $0x94] ss:$8 sps:$4 sm:$0xff]  }
 0x578   :  { %11012 = vst [vmem:[#allocation22_spill] sm:$0xff] %v7853_v10  ;;  %v7855_v9 = vmul.f32 %v5590_v1, %v1319_v18  ;;  %11018 = vst [vmem:[#allocation27_spill] sm:$0xff] %v7926_v34  ;;  %v7950_v18 = vld [vmem:[%s10392_s0 + $0x70] ss:$8 sps:$4 sm:$0xff]   ;;  %v7956_v1 = vld [vmem:[%s10392_s0 + $0x84] ss:$8 sps:$4 sm:$0xff]  }
 0x579   :  { %11014 = vst [vmem:[#allocation23_spill] sm:$0xff] %v7857_v24  ;;  %v1455_v41 = vpack.c.bf16 %v7851_v57, %v7857_v24  ;;  %11022 = vst [vmem:[#allocation31_spill] sm:$0xff] %v7950_v18  ;;  %v7998_v24 = vld [vmem:[%s10392_s0 + $0xb0] ss:$8 sps:$4 sm:$0xff]   ;;  %v8004_v57 = vld [vmem:[%s10392_s0 + $0xc4] ss:$8 sps:$4 sm:$0xff]  }
 0x57a   :  { %11013 = vst [vmem:[#allocation25_spill] sm:$0xff] %v7855_v9  ;;  %v1463_v42 = vpack.c.bf16 %v7855_v9, %v7853_v10  ;;  %11023 = vst [vmem:[#allocation32_spill] sm:$0xff] %v7956_v1  ;;  %v7986_v9 = vld [vmem:[%s10392_s0 + $0xa0] ss:$8 sps:$4 sm:$0xff]   ;;  %v7992_v10 = vld [vmem:[%s10392_s0 + $0xb4] ss:$8 sps:$4 sm:$0xff]  }
 0x57b   :  { %11025 = vst [vmem:[#allocation37_spill] sm:$0xff] %v7968_v20  ;;  %11028 = vst [vmem:[#allocation38_spill] sm:$0xff] %v7986_v9 }
 0x57c   :  { %4451 = vmatprep.subr.bf16.mxu0 %v1463_v42  ;;  %v7974_v42 = vld [vmem:[%s10392_s0 + $0x90] ss:$8 sps:$4 sm:$0xff]   ;;  %11029 = vst [vmem:[#allocation41_spill] sm:$0xff] %v7992_v10  ;;  %11030 = vst [vmem:[#allocation39_spill] sm:$0xff] %v7998_v24 }
 0x57d   :  { %4452 = vmatpush3.bf16.msra.mxu0 %v1455_v41  ;;  %11026 = vst [vmem:[#allocation35_spill] sm:$0xff] %v7974_v42  ;;  %v7980_v41 = vld [vmem:[%s10392_s0 + $0xa4] ss:$8 sps:$4 sm:$0xff]   ;;  %11031 = vst [vmem:[#allocation40_spill] sm:$0xff] %v8004_v57 }
 0x57e   :  { %11027 = vst [vmem:[#allocation36_spill] sm:$0xff] %v7980_v41 }
 0x580   :  { %1497 = vmatmul.mubr.bf16.vlgmr.msra.gmra.mrb[96].mxu0 %v7866_v29 }
 0x581   :  { %1504 = vmatprep.mubr.bf16.mxu0 %v7872_v30 }
 0x588   :  { %1505 = vmatmul.mubr.bf16.gmra.mrb[100].mxu0 %v7878_v3 }
 0x589   :  { %1512 = vmatprep.mubr.bf16.mxu0 %v7884_v17 }
 0x590   :  { %1513 = vmatmul.mubr.bf16.gmra.mrb[104].mxu0 %v7890_v27 }
 0x591   :  { %1520 = vmatprep.mubr.bf16.mxu0 %v7896_v22 }
 0x598   :  { %1521 = vmatmul.mubr.bf16.gmra.mrb[108].mxu0 %v7902_v6 }
 0x599   :  { %1528 = vmatprep.mubr.bf16.mxu0 %v7908_v36 }
 0x5a0   :  { %1529 = vmatmul.mubr.bf16.gmra.mrb[112].mxu0 %v7914_v2 }
 0x5a1   :  { %1536 = vmatprep.mubr.bf16.mxu0 %v7920_v55 }
 0x5a8   :  { %1537 = vmatmul.mubr.bf16.gmra.mrb[116].mxu0 %v7926_v34 }
 0x5a9   :  { %1544 = vmatprep.mubr.bf16.mxu0 %v7932_v39 }
 0x5b0   :  { %1545 = vmatmul.mubr.bf16.gmra.mrb[120].mxu0 %v7938_v62 }
 0x5b1   :  { %1552 = vmatprep.mubr.bf16.mxu0 %v7944_v43 }
 0x5b8   :  { %1553 = vmatmul.mubr.bf16.gmra.mrb[124].mxu0 %v7950_v18 }
 0x5b9   :  { %1560 = vmatprep.mubr.bf16.mxu0 %v7956_v1 }
 0x5c0   :  { %1561 = vmatmul.mubr.bf16.gmra.mrb[128].mxu0 %v7962_v44 }
 0x5c1   :  { %1568 = vmatprep.mubr.bf16.mxu0 %v7968_v20 }
 0x5c8   :  { %1569 = vmatmul.mubr.bf16.gmra.mrb[132].mxu0 %v7974_v42 }
 0x5c9   :  { %1576 = vmatprep.mubr.bf16.mxu0 %v7980_v41 }
 0x5d0   :  { %1577 = vmatmul.mubr.bf16.gmra.mrb[136].mxu0 %v7986_v9 }
 0x5d1   :  { %1584 = vmatprep.mubr.bf16.mxu0 %v7992_v10 }
 0x5d8   :  { %1585 = vmatmul.mubr.bf16.gmra.mrb[140].mxu0 %v7998_v24 }
 0x5d9   :  { %1592 = vmatprep.mubr.bf16.mxu0 %v8004_v57 }
 0x5e0   :  { %1593 = vmatmul.mubr.bf16.gmra.mrb[144].mxu0 %v8010_v59 }
 0x5e1   :  { %1600 = vmatprep.mubr.bf16.mxu0 %v8016_v23 }
 0x5e8   :  { %1601 = vmatmul.mubr.bf16.gmra.mrb[148].mxu0 %v8022_v16 }
 0x5e9   :  { %1608 = vmatprep.mubr.bf16.mxu0 %v8028_v60 }
 0x5f0   :  { %1609 = vmatmul.mubr.bf16.gmra.mrb[152].mxu0 %v8034_v21 }
 0x5f1   :  { %1616 = vmatprep.mubr.bf16.mxu0 %v8040_v40 }
 0x5f8   :  { %1617 = vmatmul.mubr.bf16.gmra.mrb[156].mxu0 %v8046_v19 }
 0x5f9   :  { %2170 = vmatprep.mubr.bf16.mxu0 %v8052_v5 }
 0x653   :  { %v4453_v53 = vpop.f32.mrb[96].mxu0 }
 0x654   :  { %v4454_v0 = vpop.f32.mrb[97].mxu0 }
 0x655   :  { %v4455_v26 = vadd.f32 %v4454_v0, %v4453_v53  ;;  %v4456_v13 = vpop.f32.mrb[98].mxu0 }
 0x656   :  { %v4457_v58 = vpop.f32.mrb[99].mxu0 }
 0x657   :  { %v4458_v35 = vadd.f32 %v4457_v58, %v4456_v13 }
 0x65b   :  { %v4459_v38 = vpop.f32.mrb[100].mxu0 }
 0x65c   :  { %v4460_v48 = vpop.f32.mrb[101].mxu0 }
 0x65d   :  { %v4461_v28 = vadd.f32 %v4460_v48, %v4459_v38  ;;  %v4462_v52 = vpop.f32.mrb[102].mxu0 }
 0x65e   :  { %v4463_v40 = vpop.f32.mrb[103].mxu0 }
 0x65f   :  { %v4464_v21 = vadd.f32 %v4463_v40, %v4462_v52 }
 0x663   :  { %v4465_v19 = vpop.f32.mrb[104].mxu0 }
 0x664   :  { %v4466_v60 = vpop.f32.mrb[105].mxu0 }
 0x665   :  { %v8055_v16 = vadd.f32 %v4466_v60, %v4465_v19  ;;  %v4468_v23 = vpop.f32.mrb[106].mxu0 }
 0x666   :  { %v4469_v59 = vpop.f32.mrb[107].mxu0 }
 0x667   :  { %v8057_v57 = vadd.f32 %v4469_v59, %v4468_v23 }
 0x66b   :  { %v4471_v5 = vpop.f32.mrb[108].mxu0 }
 0x66c   :  { %v4472_v24 = vpop.f32.mrb[109].mxu0 }
 0x66d   :  { %v8059_v0 = vadd.f32 %v4472_v24, %v4471_v5  ;;  %v4474_v53 = vpop.f32.mrb[110].mxu0 }
 0x66e   :  { %v4475_v58 = vpop.f32.mrb[111].mxu0 }
 0x66f   :  { %v8061_v13 = vadd.f32 %v4475_v58, %v4474_v53 }
 0x673   :  { %v4477_v48 = vpop.f32.mrb[112].mxu0 }
 0x674   :  { %v4478_v38 = vpop.f32.mrb[113].mxu0 }
 0x675   :  { %v8063_v10 = vadd.f32 %v4478_v38, %v4477_v48  ;;  %v4480_v52 = vpop.f32.mrb[114].mxu0 }
 0x676   :  { %v4481_v40 = vpop.f32.mrb[115].mxu0 }
 0x677   :  { %v8065_v19 = vadd.f32 %v4481_v40, %v4480_v52 }
 0x67b   :  { %v4483_v60 = vpop.f32.mrb[116].mxu0 }
 0x67c   :  { %v4484_v9 = vpop.f32.mrb[117].mxu0 }
 0x67d   :  { %v8067_v23 = vadd.f32 %v4484_v9, %v4483_v60  ;;  %v4486_v59 = vpop.f32.mrb[118].mxu0  ;;  %v1658_v60 = vmul.f32 %v4458_v35, %v7300_v31 }
 0x67e   :  { %v4487_v41 = vpop.f32.mrb[119].mxu0 }
 0x67f   :  { %v8069_v5 = vadd.f32 %v4487_v41, %v4486_v59  ;;  %v1657_v59 = vmul.f32 %v4455_v26, %v7307_v15  ;;  %v1690_v43 = vadd.f32 1e-06, %v1658_v60  ;;  %v1659_v26 = vmul.f32 %v4461_v28, %v7341_v61 }
 0x681   :  { %v1689_v34 = vadd.f32 1e-06, %v1657_v59  ;;  %5591 = vrcp.f32 %v1690_v43  ;;  %v11043_v43 = vld [vmem:[#allocation8_spill] sm:$0xff] }
 0x683   :  { %v4489_v24 = vpop.f32.mrb[120].mxu0 }
 0x684   :  { %v4490_v42 = vpop.f32.mrb[121].mxu0 }
 0x685   :  { %v8071_v53 = vadd.f32 %v4490_v42, %v4489_v24  ;;  %v4492_v58 = vpop.f32.mrb[122].mxu0 }
 0x686   :  { %v4493_v20 = vpop.f32.mrb[123].mxu0 }
 0x687   :  { %v8073_v48 = vadd.f32 %v4493_v20, %v4492_v58  ;;  %v11040_v20 = vld [vmem:[#allocation5_spill] sm:$0xff] }
 0x68b   :  { %v4495_v38 = vpop.f32.mrb[124].mxu0 }
 0x68c   :  { %v4496_v44 = vpop.f32.mrb[125].mxu0 }
 0x68d   :  { %v8075_v52 = vadd.f32 %v4496_v44, %v4495_v38  ;;  %v4498_v40 = vpop.f32.mrb[126].mxu0  ;;  %v11041_v38 = vld [vmem:[#allocation7_spill] sm:$0xff] }
 0x68e   :  { %v4499_v1 = vpop.f32.mrb[127].mxu0 }
 0x68f   :  { %v8077_v9 = vadd.f32 %v4499_v1, %v4498_v40  ;;  %v1660_v1 = vmul.f32 %v4464_v21, %v7334_v14  ;;  %v1662_v21 = vmul.f32 %v8057_v57, %v7368_v46 }
 0x691   :  { %v1692_v2 = vadd.f32 1e-06, %v1660_v1 }
 0x693   :  { %v4501_v41 = vpop.f32.mrb[128].mxu0 }
 0x694   :  { %v4502_v18 = vpop.f32.mrb[129].mxu0 }
 0x695   :  { %v4503_v42 = vadd.f32 %v4502_v18, %v4501_v41  ;;  %v4504_v24 = vpop.f32.mrb[130].mxu0 }
 0x696   :  { %v4505_v62 = vpop.f32.mrb[131].mxu0 }
 0x697   :  { %v1673_v58 = vmul.f32 %v4503_v42, %v11040_v20  ;;  %v4506_v39 = vadd.f32 %v4505_v62, %v4504_v24  ;;  %v11042_v62 = vld [vmem:[#allocation6_spill] sm:$0xff] }
 0x699   :  { %v1705_v44 = vadd.f32 1e-06, %v1673_v58  ;;  %v1674_v55 = vmul.f32 %v4506_v39, %v11041_v38  ;;  %v1691_v58 = vadd.f32 1e-06, %v1659_v26 }
 0x69b   :  { %5593 = vrcp.f32 %v1705_v44  ;;  %v1706_v35 = vadd.f32 1e-06, %v1674_v55  ;;  %v4507_v40 = vpop.f32.mrb[132].mxu0  ;;  %v1661_v44 = vmul.f32 %v8055_v16, %v7375_v45 }
 0x69c   :  { %5595 = vrcp.f32 %v1689_v34  ;;  %v4508_v18 = vpop.f32.mrb[133].mxu0  ;;  %v5592_v34 = vpop.eup %5591 }
 0x69d   :  { %5597 = vrcp.f32 %v1706_v35  ;;  %v4509_v60 = vadd.f32 %v4508_v18, %v4507_v40  ;;  %v4510_v41 = vpop.f32.mrb[134].mxu0 }
 0x69e   :  { %v4511_v42 = vpop.f32.mrb[135].mxu0  ;;  %5599 = vrcp.f32 %v1692_v2  ;;  %v6103_v2 = vld [vmem:[%s10394_s2 + $0x8] sm:$0xff] }
 0x69f   :  { %v1675_v59 = vmul.f32 %v4509_v60, %v11042_v62  ;;  %v4512_v24 = vadd.f32 %v4511_v42, %v4510_v41  ;;  %v1626_v18 = vmul.f32 %v6103_v2, %v7300_v31  ;;  %v1694_v60 = vadd.f32 1e-06, %v1662_v21  ;;  %v6104_v41 = vld [vmem:[%s10394_s2 + $0x80] sm:$0xff]  ;;  %v6105_v42 = vld [vmem:[%s10394_s2 + $0x88] sm:$0xff] }
 0x6a0   :  { %v1641_v16 = vmul.f32 %v6104_v41, %v11040_v20  ;;  %v6106_v31 = vld [vmem:[%s10394_s2] sm:$0xff] }
 0x6a1   :  { %v1707_v39 = vadd.f32 1e-06, %v1675_v59  ;;  %v1676_v36 = vmul.f32 %v4512_v24, %v11043_v43  ;;  %v1642_v59 = vmul.f32 %v6105_v42, %v11041_v38  ;;  %v1625_v21 = vmul.f32 %v6106_v31, %v7307_v15  ;;  %v6109_v31 = vld [vmem:[%s10394_s2 + $0x98] sm:$0xff] }
 0x6a3   :  { %5601 = vrcp.f32 %v1707_v39  ;;  %v1708_v55 = vadd.f32 1e-06, %v1676_v36  ;;  %v4513_v28 = vpop.f32.mrb[136].mxu0 }
 0x6a4   :  { %5603 = vrcp.f32 %v1691_v58  ;;  %v4514_v1 = vpop.f32.mrb[137].mxu0 }
 0x6a5   :  { %v5594_v35 = vpop.eup %5593  ;;  %5605 = vrcp.f32 %v1708_v55  ;;  %v4515_v40 = vadd.f32 %v4514_v1, %v4513_v28  ;;  %v4516_v26 = vpop.f32.mrb[138].mxu0  ;;  %v8108_v55 = vmul.f32 %v5592_v34, %v1626_v18  ;;  %v1693_v28 = vadd.f32 1e-06, %v1661_v44 }
 0x6a6   :  { %v5596_v57 = vpop.eup %5595  ;;  %v4517_v36 = vpop.f32.mrb[139].mxu0  ;;  %v8110_v20 = vmul.f32 %v5594_v35, %v1641_v16  ;;  %5607 = vrcp.f32 %v1694_v60  ;;  %v1663_v18 = vmul.f32 %v8059_v0, %v7409_v32  ;;  %v6107_v16 = vld [vmem:[%s10394_s2 + $0x18] sm:$0xff]  ;;  %v6108_v0 = vld [vmem:[%s10394_s2 + $0x90] sm:$0xff] }
 0x6a7   :  { %v5598_v24 = vpop.eup %5597  ;;  %v1677_v58 = vmul.f32 %v4515_v40, %v7370_v47  ;;  %v4518_v39 = vadd.f32 %v4517_v36, %v4516_v26  ;;  %v8115_v41 = vmul.f32 %v5596_v57, %v1625_v21  ;;  %v1664_v40 = vmul.f32 %v8061_v13, %v7402_v33 }
 0x6a8   :  { %v8112_v1 = vmul.f32 %v5598_v24, %v1642_v59  ;;  %v5600_v35 = vpop.eup %5599  ;;  %v1628_v42 = vmul.f32 %v6107_v16, %v7334_v14  ;;  %v1644_v21 = vmul.f32 %v6109_v31, %v11043_v43  ;;  %v6110_v14 = vld [vmem:[%s10394_s2 + $0x10] sm:$0xff]  ;;  %v1665_v16 = vmul.f32 %v8063_v10, %v7443_v4  ;;  %v6112_v10 = vld [vmem:[%s10394_s2 + $0xa0] sm:$0xff] }
 0x6a9   :  { %v1709_v2 = vadd.f32 1e-06, %v1677_v58  ;;  %v1678_v38 = vmul.f32 %v4518_v39, %v7372_v37  ;;  %v1785_v44 = vpack.c.bf16 %v8108_v55, %v8115_v41  ;;  %v1696_v24 = vadd.f32 1e-06, %v1664_v40 }
 0x6aa   :  { %v1793_v26 = vpack.c.bf16 %v8112_v1, %v8110_v20  ;;  %v1643_v39 = vmul.f32 %v6108_v0, %v11042_v62  ;;  %v1627_v40 = vmul.f32 %v6110_v14, %v7341_v61 }
 0x6ab   :  { %5609 = vrcp.f32 %v1709_v2  ;;  %v1710_v15 = vadd.f32 1e-06, %v1678_v38  ;;  %v4519_v34 = vpop.f32.mrb[140].mxu0 }
 0x6ac   :  { %5611 = vrcp.f32 %v1693_v28  ;;  %v4520_v57 = vpop.f32.mrb[141].mxu0  ;;  %4549 = vmatprep.subr.bf16.mxu1 %v1793_v26  ;;  %v8142_v26 = vmul.f32 %v5600_v35, %v1628_v42 }
 0x6ad   :  { %v5602_v60 = vpop.eup %5601  ;;  %5613 = vrcp.f32 %v1710_v15  ;;  %v4521_v36 = vadd.f32 %v4520_v57, %v4519_v34  ;;  %v4522_v13 = vpop.f32.mrb[142].mxu0  ;;  %4550 = vmatpush3.bf16.msra.mxu1 %v1785_v44  ;;  %v1695_v15 = vadd.f32 1e-06, %v1663_v18 }
 0x6ae   :  { %v5604_v59 = vpop.eup %5603  ;;  %v4523_v58 = vpop.f32.mrb[143].mxu0  ;;  %v8144_v62 = vmul.f32 %v5602_v60, %v1643_v39  ;;  %5615 = vrcp.f32 %v1696_v24 }
 0x6af   :  { %v5606_v28 = vpop.eup %5605  ;;  %v1679_v2 = vmul.f32 %v4521_v36, %v7404_v51  ;;  %v4524_v38 = vadd.f32 %v4523_v58, %v4522_v13  ;;  %v8149_v57 = vmul.f32 %v5604_v59, %v1627_v40  ;;  %v1666_v36 = vmul.f32 %v8065_v19, %v7436_v50  ;;  %v6111_v58 = vld [vmem:[%s10394_s2 + $0x28] sm:$0xff] }
 0x6b0   :  { %v8146_v34 = vmul.f32 %v5606_v28, %v1644_v21  ;;  %v5608_v60 = vpop.eup %5607  ;;  %v1630_v0 = vmul.f32 %v6111_v58, %v7368_v46  ;;  %v1645_v28 = vmul.f32 %v6112_v10, %v7370_v47  ;;  %v6114_v46 = vld [vmem:[%s10394_s2 + $0x20] sm:$0xff] }
 0x6b1   :  { %v1711_v44 = vadd.f32 1e-06, %v1679_v2  ;;  %v1680_v43 = vmul.f32 %v4524_v38, %v7406_v7  ;;  %v1786_v18 = vpack.c.bf16 %v8142_v26, %v8149_v57  ;;  %v1698_v31 = vadd.f32 1e-06, %v1666_v36  ;;  %v6113_v2 = vld [vmem:[%s10394_s2 + $0xa8] sm:$0xff] }
 0x6b2   :  { %v1794_v13 = vpack.c.bf16 %v8146_v34, %v8144_v62  ;;  %v1646_v38 = vmul.f32 %v6113_v2, %v7372_v37  ;;  %v1697_v36 = vadd.f32 1e-06, %v1665_v16 }
 0x6b3   :  { %5617 = vrcp.f32 %v1711_v44  ;;  %v1712_v61 = vadd.f32 1e-06, %v1680_v43  ;;  %v4525_v35 = vpop.f32.mrb[144].mxu0  ;;  %v1629_v44 = vmul.f32 %v6114_v46, %v7375_v45  ;;  %v8176_v43 = vmul.f32 %v5608_v60, %v1630_v0 }
 0x6b4   :  { %5619 = vrcp.f32 %v1695_v15  ;;  %v4526_v42 = vpop.f32.mrb[145].mxu0  ;;  %4551 = vmatprep.subr.bf16.mxu1 %v1794_v13 }
 0x6b5   :  { %v5610_v59 = vpop.eup %5609  ;;  %5621 = vrcp.f32 %v1712_v61  ;;  %v4527_v24 = vadd.f32 %v4526_v42, %v4525_v35  ;;  %v4528_v19 = vpop.f32.mrb[146].mxu0  ;;  %4552 = vmatpush3.bf16.msra.mxu1 %v1786_v18  ;;  %v1668_v18 = vmul.f32 %v8069_v5, %v7470_v12 }
 0x6b6   :  { %v5612_v39 = vpop.eup %5611  ;;  %v4529_v21 = vpop.f32.mrb[147].mxu0  ;;  %v8178_v47 = vmul.f32 %v5610_v59, %v1645_v28  ;;  %5623 = vrcp.f32 %v1698_v31 }
 0x6b7   :  { %v5614_v14 = vpop.eup %5613  ;;  %v1681_v40 = vmul.f32 %v4527_v24, %v7438_v49  ;;  %v4530_v15 = vadd.f32 %v4529_v21, %v4528_v19  ;;  %v8183_v35 = vmul.f32 %v5612_v39, %v1629_v44  ;;  %v1667_v24 = vmul.f32 %v8067_v23, %v7477_v25  ;;  %v6115_v39 = vld [vmem:[%s10394_s2 + $0x38] sm:$0xff]  ;;  %v6116_v23 = vld [vmem:[%s10394_s2 + $0xb0] sm:$0xff] }
 0x6b8   :  { %v8180_v13 = vmul.f32 %v5614_v14, %v1646_v38  ;;  %v5616_v59 = vpop.eup %5615  ;;  %v1632_v31 = vmul.f32 %v6115_v39, %v7402_v33  ;;  %v1700_v10 = vadd.f32 1e-06, %v1668_v18  ;;  %v1647_v2 = vmul.f32 %v6116_v23, %v7404_v51  ;;  %v6117_v38 = vld [vmem:[%s10394_s2 + $0xb8] sm:$0xff]  ;;  %v6118_v33 = vld [vmem:[%s10394_s2 + $0x30] sm:$0xff]  ;;  %v6119_v39 = vld [vmem:[%s10394_s2 + $0x48] sm:$0xff] }
 0x6b9   :  { %v1713_v61 = vadd.f32 1e-06, %v1681_v40  ;;  %v1682_v37 = vmul.f32 %v4530_v15, %v7440_v8  ;;  %v1787_v16 = vpack.c.bf16 %v8176_v43, %v8183_v35  ;;  %v1648_v14 = vmul.f32 %v6117_v38, %v7406_v7 }
 0x6ba   :  { %v1795_v42 = vpack.c.bf16 %v8180_v13, %v8178_v47  ;;  %v1631_v44 = vmul.f32 %v6118_v33, %v7409_v32 }
 0x6bb   :  { %5625 = vrcp.f32 %v1713_v61  ;;  %v1714_v45 = vadd.f32 1e-06, %v1682_v37  ;;  %v4531_v60 = vpop.f32.mrb[148].mxu0  ;;  %v1699_v61 = vadd.f32 1e-06, %v1667_v24 }
 0x6bc   :  { %5627 = vrcp.f32 %v1697_v36  ;;  %v4532_v19 = vpop.f32.mrb[149].mxu0  ;;  %4553 = vmatprep.subr.bf16.mxu1 %v1795_v42  ;;  %v8210_v36 = vmul.f32 %v5616_v59, %v1632_v31  ;;  %v1634_v31 = vmul.f32 %v6119_v39, %v7436_v50  ;;  %v6122_v50 = vld [vmem:[%s10394_s2 + $0x40] sm:$0xff] }
 0x6bd   :  { %v5618_v58 = vpop.eup %5617  ;;  %5629 = vrcp.f32 %v1714_v45  ;;  %v4533_v0 = vadd.f32 %v4532_v19, %v4531_v60  ;;  %v4534_v5 = vpop.f32.mrb[150].mxu0  ;;  %4554 = vmatpush3.bf16.msra.mxu1 %v1787_v16  ;;  %v1670_v45 = vmul.f32 %v8073_v48, %v7499_v11  ;;  %v1669_v19 = vmul.f32 %v8071_v53, %v7505_v56  ;;  %v6120_v53 = vld [vmem:[%s10394_s2 + $0xc0] sm:$0xff] }
 0x6be   :  { %v5620_v21 = vpop.eup %5619  ;;  %v4535_v28 = vpop.f32.mrb[151].mxu0  ;;  %v8212_v51 = vmul.f32 %v5618_v58, %v1647_v2  ;;  %5631 = vrcp.f32 %v1700_v10  ;;  %v1649_v23 = vmul.f32 %v6120_v53, %v7438_v49  ;;  %v6121_v2 = vld [vmem:[%s10394_s2 + $0xc8] sm:$0xff]  ;;  %v1633_v33 = vmul.f32 %v6122_v50, %v7443_v4 }
 0x6bf   :  { %v5622_v40 = vpop.eup %5621  ;;  %v1683_v15 = vmul.f32 %v4533_v0, %v7472_v63  ;;  %v4536_v46 = vadd.f32 %v4535_v28, %v4534_v5  ;;  %v8217_v42 = vmul.f32 %v5620_v21, %v1631_v44  ;;  %v1702_v10 = vadd.f32 1e-06, %v1670_v45  ;;  %v11045_v45 = vld [vmem:[#allocation11_spill] sm:$0xff] }
 0x6c0   :  { %v8214_v37 = vmul.f32 %v5622_v40, %v1648_v14  ;;  %v5624_v24 = vpop.eup %5623  ;;  %v1650_v38 = vmul.f32 %v6121_v2, %v7440_v8  ;;  %v11044_v40 = vld [vmem:[#allocation9_spill] sm:$0xff] }
 0x6c1   :  { %v1715_v18 = vadd.f32 1e-06, %v1683_v15  ;;  %v1684_v7 = vmul.f32 %v4536_v46, %v7474_v54  ;;  %v1788_v59 = vpack.c.bf16 %v8210_v36, %v8217_v42  ;;  %v8244_v44 = vmul.f32 %v5624_v24, %v1634_v31 }
 0x6c2   :  { %v1796_v60 = vpack.c.bf16 %v8214_v37, %v8212_v51 }
 0x6c3   :  { %5633 = vrcp.f32 %v1715_v18  ;;  %v1716_v32 = vadd.f32 1e-06, %v1684_v7  ;;  %v4537_v16 = vpop.f32.mrb[152].mxu0 }
 0x6c4   :  { %5635 = vrcp.f32 %v1699_v61  ;;  %v4538_v58 = vpop.f32.mrb[153].mxu0  ;;  %4555 = vmatprep.subr.bf16.mxu1 %v1796_v60  ;;  %v1701_v61 = vadd.f32 1e-06, %v1669_v19 }
 0x6c5   :  { %v5626_v0 = vpop.eup %5625  ;;  %5637 = vrcp.f32 %v1716_v32  ;;  %v4539_v5 = vadd.f32 %v4538_v58, %v4537_v16  ;;  %v4540_v48 = vpop.f32.mrb[154].mxu0  ;;  %4556 = vmatpush3.bf16.msra.mxu1 %v1788_v59  ;;  %v11046_v32 = vld [vmem:[#allocation10_spill] sm:$0xff] }
 0x6c6   :  { %v5628_v21 = vpop.eup %5627  ;;  %v4541_v28 = vpop.f32.mrb[155].mxu0  ;;  %v8246_v49 = vmul.f32 %v5626_v0, %v1649_v23  ;;  %5639 = vrcp.f32 %v1702_v10  ;;  %v1672_v16 = vmul.f32 %v8077_v9, %v11046_v32  ;;  %v11047_v0 = vld [vmem:[#allocation15_spill] sm:$0xff] }
 0x6c7   :  { %v5630_v14 = vpop.eup %5629  ;;  %v1685_v15 = vmul.f32 %v4539_v5, %v11044_v40  ;;  %v4542_v46 = vadd.f32 %v4541_v28, %v4540_v48  ;;  %v8251_v60 = vmul.f32 %v5628_v21, %v1633_v33  ;;  %v1671_v5 = vmul.f32 %v8075_v52, %v11047_v0  ;;  %v6123_v21 = vld [vmem:[%s10394_s2 + $0x58] sm:$0xff]  ;;  %v6124_v52 = vld [vmem:[%s10394_s2 + $0xd0] sm:$0xff] }
 0x6c8   :  { %v8248_v18 = vmul.f32 %v5630_v14, %v1650_v38  ;;  %v5632_v58 = vpop.eup %5631  ;;  %v1636_v10 = vmul.f32 %v6123_v21, %v7470_v12  ;;  %v1704_v53 = vadd.f32 1e-06, %v1672_v16  ;;  %v1651_v2 = vmul.f32 %v6124_v52, %v7472_v63  ;;  %v6125_v38 = vld [vmem:[%s10394_s2 + $0xd8] sm:$0xff]  ;;  %v6126_v12 = vld [vmem:[%s10394_s2 + $0x50] sm:$0xff]  ;;  %v6128_v21 = vld [vmem:[%s10394_s2 + $0xe0] sm:$0xff] }
 0x6c9   :  { %v1717_v7 = vadd.f32 1e-06, %v1685_v15  ;;  %v1686_v8 = vmul.f32 %v4542_v46, %v11045_v45  ;;  %v1789_v19 = vpack.c.bf16 %v8244_v44, %v8251_v60  ;;  %v1652_v14 = vmul.f32 %v6125_v38, %v7474_v54  ;;  %v11048_v46 = vld [vmem:[#allocation12_spill] sm:$0xff] }
 0x6ca   :  { %v1797_v59 = vpack.c.bf16 %v8248_v18, %v8246_v49  ;;  %v6130_v52 = vld [vmem:[%s10394_s2 + $0x60] sm:$0xff] }
 0x6cb   :  { %5641 = vrcp.f32 %v1717_v7  ;;  %v1718_v4 = vadd.f32 1e-06, %v1686_v8  ;;  %v4543_v24 = vpop.f32.mrb[156].mxu0  ;;  %v8278_v7 = vmul.f32 %v5632_v58, %v1636_v10  ;;  %v1703_v8 = vadd.f32 1e-06, %v1671_v5 }
 0x6cc   :  { %5643 = vrcp.f32 %v1701_v61  ;;  %v4544_v48 = vpop.f32.mrb[157].mxu0  ;;  %4557 = vmatprep.subr.bf16.mxu1 %v1797_v59  ;;  %v1635_v61 = vmul.f32 %v6126_v12, %v7477_v25  ;;  %v1653_v10 = vmul.f32 %v6128_v21, %v11044_v40  ;;  %v11062_v21 = vld [vmem:[#allocation29_spill] sm:$0xff] }
 0x6cd   :  { %v5634_v39 = vpop.eup %5633  ;;  %5645 = vrcp.f32 %v1718_v4  ;;  %v4545_v31 = vadd.f32 %v4544_v48, %v4543_v24  ;;  %v4546_v9 = vpop.f32.mrb[158].mxu0  ;;  %4558 = vmatpush3.bf16.msra.mxu1 %v1789_v19  ;;  %v11051_v4 = vld [vmem:[#allocation13_spill] sm:$0xff] }
 0x6ce   :  { %v5636_v28 = vpop.eup %5635  ;;  %v4547_v23 = vpop.f32.mrb[159].mxu0  ;;  %v8280_v63 = vmul.f32 %v5634_v39, %v1651_v2  ;;  %5647 = vrcp.f32 %v1704_v53  ;;  %v6127_v39 = vld [vmem:[%s10394_s2 + $0x68] sm:$0xff] }
 0x6cf   :  { %v5638_v15 = vpop.eup %5637  ;;  %v1687_v50 = vmul.f32 %v4545_v31, %v11048_v46  ;;  %v4548_v33 = vadd.f32 %v4547_v23, %v4546_v9  ;;  %v8285_v24 = vmul.f32 %v5636_v28, %v1635_v61  ;;  %v1638_v31 = vmul.f32 %v6127_v39, %v7499_v11  ;;  %v6129_v28 = vld [vmem:[%s10394_s2 + $0xe8] sm:$0xff] }
 0x6d0   :  { %11049 = vst [vmem:[#allocation5_spill] sm:$0xff] %v8280_v63  ;;  %v8282_v16 = vmul.f32 %v5638_v15, %v1652_v14  ;;  %v5640_v58 = vpop.eup %5639  ;;  %v1654_v53 = vmul.f32 %v6129_v28, %v11045_v45  ;;  %v1637_v11 = vmul.f32 %v6130_v52, %v7505_v56  ;;  %v6131_v56 = vld [vmem:[%s10394_s2 + $0x78] sm:$0xff]  ;;  %v11074_v52 = vld [vmem:[#allocation41_spill] sm:$0xff] }
 0x6d1   :  { %v1719_v59 = vadd.f32 1e-06, %v1687_v50  ;;  %v1688_v54 = vmul.f32 %v4548_v33, %v11051_v4  ;;  %v1790_v25 = vpack.c.bf16 %v8278_v7, %v8285_v24  ;;  %v8307_v2 = vmul.f32 %v5640_v58, %v1638_v31  ;;  %v11071_v28 = vld [vmem:[#allocation35_spill] sm:$0xff] }
 0x6d2   :  { %11050 = vst [vmem:[#allocation7_spill] sm:$0xff] %v8282_v16  ;;  %v1798_v19 = vpack.c.bf16 %v8282_v16, %v8280_v63  ;;  %v1640_v12 = vmul.f32 %v6131_v56, %v11046_v32  ;;  %v11080_v56 = vld [vmem:[#allocation44_spill] sm:$0xff]  ;;  %v11099_v63 = vld [vmem:[#allocation57_spill] sm:$0xff] }
 0x6d3   :  { %5649 = vrcp.f32 %v1719_v59  ;;  %v1720_v48 = vadd.f32 1e-06, %v1688_v54  ;;  %11052 = vst [vmem:[#allocation6_spill] sm:$0xff] %v8307_v2  ;;  %v6133_v54 = vld [vmem:[%s10394_s2 + $0xf8] sm:$0xff] }
 0x6d4   :  { %5651 = vrcp.f32 %v1703_v8  ;;  %4559 = vmatprep.subr.bf16.mxu1 %v1798_v19  ;;  %v6132_v8 = vld [vmem:[%s10394_s2 + $0xf0] sm:$0xff]  ;;  %v1656_v19 = vmul.f32 %v6133_v54, %v11051_v4 }
 0x6d5   :  { %v5642_v5 = vpop.eup %5641  ;;  %5653 = vrcp.f32 %v1720_v48  ;;  %4560 = vmatpush3.bf16.msra.mxu1 %v1790_v25  ;;  %v1655_v59 = vmul.f32 %v6132_v8, %v11048_v46  ;;  %v6134_v25 = vld [vmem:[%s10394_s2 + $0x70] sm:$0xff] }
 0x6d6   :  { %v5644_v9 = vpop.eup %5643  ;;  %v8309_v38 = vmul.f32 %v5642_v5, %v1653_v10  ;;  %v1639_v32 = vmul.f32 %v6134_v25, %v11047_v0  ;;  %v11060_v0 = vld [vmem:[#allocation24_spill] sm:$0xff]  ;;  %v11063_v10 = vld [vmem:[#allocation27_spill] sm:$0xff] }
 0x6d7   :  { %v5646_v23 = vpop.eup %5645  ;;  %v8313_v40 = vmul.f32 %v5644_v9, %v1637_v11  ;;  %v11061_v9 = vld [vmem:[#allocation26_spill] sm:$0xff]  ;;  %v11075_v11 = vld [vmem:[#allocation39_spill] sm:$0xff] }
 0x6d8   :  { %11053 = vst [vmem:[#allocation8_spill] sm:$0xff] %v8309_v38  ;;  %v8311_v14 = vmul.f32 %v5646_v23, %v1654_v53  ;;  %v5648_v50 = vpop.eup %5647  ;;  %v11072_v53 = vld [vmem:[#allocation36_spill] sm:$0xff]  ;;  %v11073_v23 = vld [vmem:[#allocation38_spill] sm:$0xff]  ;;  %v11083_v8 = vld [vmem:[#allocation47_spill] sm:$0xff] }
 0x6d9   :  { %11055 = vst [vmem:[#allocation11_spill] sm:$0xff] %v8313_v40  ;;  %v1791_v45 = vpack.c.bf16 %v8307_v2, %v8313_v40  ;;  %v8335_v58 = vmul.f32 %v5648_v50, %v1640_v12  ;;  %v11078_v50 = vld [vmem:[#allocation45_spill] sm:$0xff]  ;;  %v11081_v12 = vld [vmem:[#allocation46_spill] sm:$0xff] }
 0x6da   :  { %11054 = vst [vmem:[#allocation9_spill] sm:$0xff] %v8311_v14  ;;  %v1799_v15 = vpack.c.bf16 %v8311_v14, %v8309_v38 }
 0x6db   :  { %11056 = vst [vmem:[#allocation10_spill] sm:$0xff] %v8335_v58 }
 0x6dc   :  { %4561 = vmatprep.subr.bf16.mxu1 %v1799_v15  ;;  %v11076_v15 = vld [vmem:[#allocation40_spill] sm:$0xff] }
 0x6dd   :  { %v5650_v33 = vpop.eup %5649  ;;  %4562 = vmatpush3.bf16.msra.mxu1 %v1791_v45  ;;  %v11077_v45 = vld [vmem:[#allocation42_spill] sm:$0xff] }
 0x6de   :  { %v5652_v61 = vpop.eup %5651  ;;  %v8337_v5 = vmul.f32 %v5650_v33, %v1655_v59  ;;  %v11079_v33 = vld [vmem:[#allocation43_spill] sm:$0xff]  ;;  %v11084_v59 = vld [vmem:[#allocation48_spill] sm:$0xff] }
 0x6df   :  { %v5654_v48 = vpop.eup %5653  ;;  %v8341_v46 = vmul.f32 %v5652_v61, %v1639_v32  ;;  %v11082_v61 = vld [vmem:[#allocation49_spill] sm:$0xff] }
 0x6e0   :  { %11057 = vst [vmem:[#allocation15_spill] sm:$0xff] %v8337_v5  ;;  %v8339_v39 = vmul.f32 %v5654_v48, %v1656_v19 }
 0x6e1   :  { %11059 = vst [vmem:[#allocation13_spill] sm:$0xff] %v8341_v46  ;;  %v1792_v4 = vpack.c.bf16 %v8335_v58, %v8341_v46 }
 0x6e2   :  { %11058 = vst [vmem:[#allocation12_spill] sm:$0xff] %v8339_v39  ;;  %v1800_v31 = vpack.c.bf16 %v8339_v39, %v8337_v5 }
 0x6e4   :  { %4563 = vmatprep.subr.bf16.mxu1 %v1800_v31 }
 0x6e5   :  { %4564 = vmatpush3.bf16.msra.mxu1 %v1792_v4 }
 0x6e8   :  { %1834 = vmatmul.mubr.bf16.vlgmr.msra.gmra.mrb[160].mxu1 %v7866_v29  ;;  %v11064_v29 = vld [vmem:[#allocation28_spill] sm:$0xff] }
 0x6e9   :  { %1841 = vmatprep.mubr.bf16.mxu1 %v7872_v30  ;;  %v11065_v30 = vld [vmem:[#allocation30_spill] sm:$0xff] }
 0x6f0   :  { %1842 = vmatmul.mubr.bf16.gmra.mrb[164].mxu1 %v7878_v3  ;;  %v11066_v3 = vld [vmem:[#allocation33_spill] sm:$0xff] }
 0x6f1   :  { %1849 = vmatprep.mubr.bf16.mxu1 %v7884_v17  ;;  %v11067_v17 = vld [vmem:[#allocation31_spill] sm:$0xff] }
 0x6f8   :  { %1850 = vmatmul.mubr.bf16.gmra.mrb[168].mxu1 %v7890_v27  ;;  %v11068_v27 = vld [vmem:[#allocation32_spill] sm:$0xff] }
 0x6f9   :  { %1857 = vmatprep.mubr.bf16.mxu1 %v7896_v22  ;;  %v11069_v22 = vld [vmem:[#allocation34_spill] sm:$0xff] }
 0x700   :  { %1858 = vmatmul.mubr.bf16.gmra.mrb[172].mxu1 %v7902_v6  ;;  %v11070_v6 = vld [vmem:[#allocation37_spill] sm:$0xff] }
 0x701   :  { %1865 = vmatprep.mubr.bf16.mxu1 %v11060_v0 }
 0x708   :  { %1866 = vmatmul.mubr.bf16.gmra.mrb[176].mxu1 %v11061_v9 }
 0x709   :  { %1873 = vmatprep.mubr.bf16.mxu1 %v11062_v21 }
 0x710   :  { %1874 = vmatmul.mubr.bf16.gmra.mrb[180].mxu1 %v11063_v10 }
 0x711   :  { %1881 = vmatprep.mubr.bf16.mxu1 %v11064_v29 }
 0x718   :  { %1882 = vmatmul.mubr.bf16.gmra.mrb[184].mxu1 %v11065_v30 }
 0x719   :  { %1889 = vmatprep.mubr.bf16.mxu1 %v11066_v3 }
 0x720   :  { %1890 = vmatmul.mubr.bf16.gmra.mrb[188].mxu1 %v11067_v17 }
 0x721   :  { %1897 = vmatprep.mubr.bf16.mxu1 %v11068_v27 }
 0x728   :  { %1898 = vmatmul.mubr.bf16.gmra.mrb[192].mxu1 %v11069_v22 }
 0x729   :  { %1905 = vmatprep.mubr.bf16.mxu1 %v11070_v6 }
 0x730   :  { %1906 = vmatmul.mubr.bf16.gmra.mrb[196].mxu1 %v11071_v28 }
 0x731   :  { %1913 = vmatprep.mubr.bf16.mxu1 %v11072_v53 }
 0x738   :  { %1914 = vmatmul.mubr.bf16.gmra.mrb[200].mxu1 %v11073_v23 }
 0x739   :  { %1921 = vmatprep.mubr.bf16.mxu1 %v11074_v52 }
 0x740   :  { %1922 = vmatmul.mubr.bf16.gmra.mrb[204].mxu1 %v11075_v11 }
 0x741   :  { %1929 = vmatprep.mubr.bf16.mxu1 %v11076_v15 }
 0x748   :  { %1930 = vmatmul.mubr.bf16.gmra.mrb[208].mxu1 %v11077_v45 }
 0x749   :  { %1937 = vmatprep.mubr.bf16.mxu1 %v11078_v50 }
 0x750   :  { %1938 = vmatmul.mubr.bf16.gmra.mrb[212].mxu1 %v11079_v33 }
 0x751   :  { %1945 = vmatprep.mubr.bf16.mxu1 %v11080_v56 }
 0x758   :  { %1946 = vmatmul.mubr.bf16.gmra.mrb[216].mxu1 %v11081_v12 }
 0x759   :  { %1953 = vmatprep.mubr.bf16.mxu1 %v11082_v61 }
 0x760   :  { %1954 = vmatmul.mubr.bf16.gmra.mrb[220].mxu1 %v11083_v8 }
 0x761   :  { %2507 = vmatprep.mubr.bf16.mxu1 %v11084_v59 }
 0x7bb   :  { %v4565_v54 = vpop.f32.mrb[160].mxu1 }
 0x7bc   :  { %v4566_v19 = vpop.f32.mrb[161].mxu1 }
 0x7bd   :  { %v4567_v48 = vadd.f32 %v4566_v19, %v4565_v54  ;;  %v4568_v25 = vpop.f32.mrb[162].mxu1 }
 0x7be   :  { %v4569_v32 = vpop.f32.mrb[163].mxu1 }
 0x7bf   :  { %v4570_v31 = vadd.f32 %v4569_v32, %v4568_v25 }
 0x7c3   :  { %v4571_v4 = vpop.f32.mrb[164].mxu1 }
 0x7c4   :  { %v4572_v0 = vpop.f32.mrb[165].mxu1 }
 0x7c5   :  { %v4573_v9 = vadd.f32 %v4572_v0, %v4571_v4  ;;  %v4574_v21 = vpop.f32.mrb[166].mxu1 }
 0x7c6   :  { %v4575_v10 = vpop.f32.mrb[167].mxu1 }
 0x7c7   :  { %v4576_v29 = vadd.f32 %v4575_v10, %v4574_v21 }
 0x7cb   :  { %v4577_v30 = vpop.f32.mrb[168].mxu1 }
 0x7cc   :  { %v4578_v3 = vpop.f32.mrb[169].mxu1 }
 0x7cd   :  { %v8379_v17 = vadd.f32 %v4578_v3, %v4577_v30  ;;  %v4580_v27 = vpop.f32.mrb[170].mxu1 }
 0x7ce   :  { %v4581_v22 = vpop.f32.mrb[171].mxu1 }
 0x7cf   :  { %v8381_v6 = vadd.f32 %v4581_v22, %v4580_v27 }
 0x7d3   :  { %v4583_v28 = vpop.f32.mrb[172].mxu1 }
 0x7d4   :  { %v4584_v53 = vpop.f32.mrb[173].mxu1 }
 0x7d5   :  { %v8383_v23 = vadd.f32 %v4584_v53, %v4583_v28  ;;  %v4586_v52 = vpop.f32.mrb[174].mxu1 }
 0x7d6   :  { %v4587_v11 = vpop.f32.mrb[175].mxu1 }
 0x7d7   :  { %v8385_v15 = vadd.f32 %v4587_v11, %v4586_v52 }
 0x7db   :  { %v4589_v45 = vpop.f32.mrb[176].mxu1 }
 0x7dc   :  { %v4590_v50 = vpop.f32.mrb[177].mxu1 }
 0x7dd   :  { %v8387_v33 = vadd.f32 %v4590_v50, %v4589_v45  ;;  %v4592_v56 = vpop.f32.mrb[178].mxu1  ;;  %v11085_v45 = vld [vmem:[#allocation14_spill] sm:$0xff] }
 0x7de   :  { %v4593_v12 = vpop.f32.mrb[179].mxu1  ;;  %v1995_v50 = vmul.f32 %v4570_v31, %v11085_v45 }
 0x7df   :  { %v8389_v61 = vadd.f32 %v4593_v12, %v4592_v56  ;;  %v11086_v12 = vld [vmem:[#allocation50_spill] sm:$0xff] }
 0x7e3   :  { %v4595_v8 = vpop.f32.mrb[180].mxu1 }
 0x7e4   :  { %v4596_v59 = vpop.f32.mrb[181].mxu1 }
 0x7e5   :  { %v8391_v54 = vadd.f32 %v4596_v59, %v4595_v8  ;;  %v4598_v19 = vpop.f32.mrb[182].mxu1  ;;  %v1994_v8 = vmul.f32 %v4567_v48, %v11086_v12  ;;  %v11090_v48 = vld [vmem:[#allocation54_spill] sm:$0xff] }
 0x7e6   :  { %v4599_v25 = vpop.f32.mrb[183].mxu1  ;;  %v1996_v14 = vmul.f32 %v4573_v9, %v11090_v48 }
 0x7e7   :  { %v8393_v32 = vadd.f32 %v4599_v25, %v4598_v19  ;;  %v2026_v5 = vadd.f32 1e-06, %v1994_v8 }
 0x7eb   :  { %v4601_v4 = vpop.f32.mrb[184].mxu1 }
 0x7ec   :  { %v4602_v0 = vpop.f32.mrb[185].mxu1 }
 0x7ed   :  { %v8395_v21 = vadd.f32 %v4602_v0, %v4601_v4  ;;  %v4604_v10 = vpop.f32.mrb[186].mxu1  ;;  %v2027_v4 = vadd.f32 1e-06, %v1995_v50 }
 0x7ee   :  { %v4605_v30 = vpop.f32.mrb[187].mxu1 }
 0x7ef   :  { %v8397_v3 = vadd.f32 %v4605_v30, %v4604_v10  ;;  %v11087_v10 = vld [vmem:[#allocation16_spill] sm:$0xff]  ;;  %5655 = vrcp.f32 %v2027_v4  ;;  %v11092_v4 = vld [vmem:[#allocation53_spill] sm:$0xff] }
 0x7f3   :  { %v4607_v27 = vpop.f32.mrb[188].mxu1 }
 0x7f4   :  { %v4608_v22 = vpop.f32.mrb[189].mxu1 }
 0x7f5   :  { %v8399_v28 = vadd.f32 %v4608_v22, %v4607_v27  ;;  %v4610_v53 = vpop.f32.mrb[190].mxu1  ;;  %v11088_v22 = vld [vmem:[#allocation17_spill] sm:$0xff] }
 0x7f6   :  { %v4611_v52 = vpop.f32.mrb[191].mxu1 }
 0x7f7   :  { %v8401_v11 = vadd.f32 %v4611_v52, %v4610_v53  ;;  %v11089_v53 = vld [vmem:[#allocation51_spill] sm:$0xff] }
 0x7f8   :  { %v1997_v52 = vmul.f32 %v4576_v29, %v11089_v53  ;;  %v11093_v29 = vld [vmem:[#allocation55_spill] sm:$0xff] }
 0x7fa   :  { %v2029_v38 = vadd.f32 1e-06, %v1997_v52 }
 0x7fb   :  { %v4613_v56 = vpop.f32.mrb[192].mxu1 }
 0x7fc   :  { %v4614_v59 = vpop.f32.mrb[193].mxu1 }
 0x7fd   :  { %v4615_v19 = vadd.f32 %v4614_v59, %v4613_v56  ;;  %v4616_v25 = vpop.f32.mrb[194].mxu1 }
 0x7fe   :  { %v4617_v0 = vpop.f32.mrb[195].mxu1 }
 0x7ff   :  { %v2010_v30 = vmul.f32 %v4615_v19, %v11087_v10  ;;  %v4618_v39 = vadd.f32 %v4617_v0, %v4616_v25  ;;  %v11091_v25 = vld [vmem:[#allocation52_spill] sm:$0xff] }
 0x801   :  { %v2042_v27 = vadd.f32 1e-06, %v2010_v30  ;;  %v2011_v46 = vmul.f32 %v4618_v39, %v11088_v22  ;;  %v2028_v30 = vadd.f32 1e-06, %v1996_v14 }
 0x803   :  { %5657 = vrcp.f32 %v2042_v27  ;;  %v2043_v31 = vadd.f32 1e-06, %v2011_v46  ;;  %v4619_v58 = vpop.f32.mrb[196].mxu1  ;;  %v1999_v46 = vmul.f32 %v8381_v6, %v11093_v29  ;;  %v5656_v27 = vpop.eup %5655 }
 0x804   :  { %5659 = vrcp.f32 %v2026_v5  ;;  %v4620_v56 = vpop.f32.mrb[197].mxu1 }
 0x805   :  { %5661 = vrcp.f32 %v2043_v31  ;;  %v4621_v50 = vadd.f32 %v4620_v56, %v4619_v58  ;;  %v4622_v59 = vpop.f32.mrb[198].mxu1  ;;  %v11094_v58 = vld [vmem:[#allocation58_spill] sm:$0xff] }
 0x806   :  { %v4623_v19 = vpop.f32.mrb[199].mxu1  ;;  %5663 = vrcp.f32 %v2029_v38  ;;  %v1998_v52 = vmul.f32 %v8379_v17, %v11094_v58  ;;  %v6135_v38 = vld [vmem:[%s10395_s3 + $0x8] sm:$0xff] }
 0x807   :  { %v2012_v8 = vmul.f32 %v4621_v50, %v11091_v25  ;;  %v4624_v0 = vadd.f32 %v4623_v19, %v4622_v59  ;;  %v1963_v59 = vmul.f32 %v6135_v38, %v11085_v45  ;;  %v2031_v19 = vadd.f32 1e-06, %v1999_v46  ;;  %v6138_v45 = vld [vmem:[%s10395_s3] sm:$0xff] }
 0x808   :  { %v1962_v46 = vmul.f32 %v6138_v45, %v11086_v12  ;;  %v2030_v2 = vadd.f32 1e-06, %v1998_v52 }
 0x809   :  { %v2044_v39 = vadd.f32 1e-06, %v2012_v8  ;;  %v2013_v40 = vmul.f32 %v4624_v0, %v11092_v4  ;;  %v6136_v8 = vld [vmem:[%s10395_s3 + $0x80] sm:$0xff]  ;;  %v6137_v0 = vld [vmem:[%s10395_s3 + $0x88] sm:$0xff]  ;;  %v8432_v38 = vmul.f32 %v5656_v27, %v1963_v59 }
 0x80a   :  { %v1978_v17 = vmul.f32 %v6136_v8, %v11087_v10  ;;  %v11102_v59 = vld [vmem:[#allocation62_spill] sm:$0xff] }
 0x80b   :  { %5665 = vrcp.f32 %v2044_v39  ;;  %v2045_v5 = vadd.f32 1e-06, %v2013_v40  ;;  %v4625_v9 = vpop.f32.mrb[200].mxu1  ;;  %11096 = vst [vmem:[#allocation24_spill] sm:$0xff] %v8432_v38 }
 0x80c   :  { %5667 = vrcp.f32 %v2028_v30  ;;  %v4626_v31 = vpop.f32.mrb[201].mxu1  ;;  %v1979_v30 = vmul.f32 %v6137_v0, %v11088_v22 }
 0x80d   :  { %v5658_v56 = vpop.eup %5657  ;;  %5669 = vrcp.f32 %v2045_v5  ;;  %v4627_v50 = vadd.f32 %v4626_v31, %v4625_v9  ;;  %v4628_v14 = vpop.f32.mrb[202].mxu1  ;;  %v11095_v5 = vld [vmem:[#allocation56_spill] sm:$0xff] }
 0x80e   :  { %v5660_v6 = vpop.eup %5659  ;;  %v4629_v40 = vpop.f32.mrb[203].mxu1  ;;  %v8434_v10 = vmul.f32 %v5658_v56, %v1978_v17  ;;  %5671 = vrcp.f32 %v2031_v19  ;;  %v2000_v17 = vmul.f32 %v8383_v23, %v11102_v59 }
 0x80f   :  { %v5662_v39 = vpop.eup %5661  ;;  %v2014_v9 = vmul.f32 %v4627_v50, %v11095_v5  ;;  %v4630_v31 = vadd.f32 %v4629_v40, %v4628_v14  ;;  %v8439_v0 = vmul.f32 %v5660_v6, %v1962_v46  ;;  %v11101_v50 = vld [vmem:[#allocation59_spill] sm:$0xff] }
 0x810   :  { %11097 = vst [vmem:[#allocation26_spill] sm:$0xff] %v8434_v10  ;;  %v8436_v8 = vmul.f32 %v5662_v39, %v1979_v30  ;;  %v2001_v14 = vmul.f32 %v8385_v15, %v11101_v50  ;;  %v5664_v56 = vpop.eup %5663  ;;  %v6141_v46 = vld [vmem:[%s10395_s3 + $0x98] sm:$0xff] }
 0x811   :  { %v2046_v16 = vadd.f32 1e-06, %v2014_v9  ;;  %v2015_v22 = vmul.f32 %v4630_v31, %v11099_v63  ;;  %11100 = vst [vmem:[#allocation27_spill] sm:$0xff] %v8439_v0  ;;  %v2122_v52 = vpack.c.bf16 %v8432_v38, %v8439_v0 }
 0x812   :  { %11098 = vst [vmem:[#allocation29_spill] sm:$0xff] %v8436_v8  ;;  %v2130_v40 = vpack.c.bf16 %v8436_v8, %v8434_v10  ;;  %v2033_v31 = vadd.f32 1e-06, %v2001_v14  ;;  %v11107_v10 = vld [vmem:[#allocation61_spill] sm:$0xff] }
 0x813   :  { %5673 = vrcp.f32 %v2046_v16  ;;  %v2047_v12 = vadd.f32 1e-06, %v2015_v22  ;;  %v4631_v27 = vpop.f32.mrb[204].mxu1  ;;  %v6139_v16 = vld [vmem:[%s10395_s3 + $0x18] sm:$0xff]  ;;  %v1981_v22 = vmul.f32 %v6141_v46, %v11092_v4 }
 0x814   :  { %5675 = vrcp.f32 %v2030_v2  ;;  %v4632_v6 = vpop.f32.mrb[205].mxu1  ;;  %4661 = vmatprep.subr.bf16.mxu0 %v2130_v40  ;;  %v1965_v39 = vmul.f32 %v6139_v16, %v11089_v53  ;;  %v6140_v2 = vld [vmem:[%s10395_s3 + $0x90] sm:$0xff]  ;;  %v2032_v16 = vadd.f32 1e-06, %v2000_v17 }
 0x815   :  { %v5666_v19 = vpop.eup %5665  ;;  %5677 = vrcp.f32 %v2047_v12  ;;  %v4633_v30 = vadd.f32 %v4632_v6, %v4631_v27  ;;  %v4634_v15 = vpop.f32.mrb[206].mxu1  ;;  %4662 = vmatpush3.bf16.msra.mxu0 %v2122_v52  ;;  %v1980_v23 = vmul.f32 %v6140_v2, %v11091_v25  ;;  %v11103_v12 = vld [vmem:[#allocation60_spill] sm:$0xff]  ;;  %v6142_v53 = vld [vmem:[%s10395_s3 + $0x10] sm:$0xff] }
 0x816   :  { %v5668_v9 = vpop.eup %5667  ;;  %v4635_v45 = vpop.f32.mrb[207].mxu1  ;;  %v1964_v14 = vmul.f32 %v6142_v53, %v11090_v48  ;;  %v8466_v6 = vmul.f32 %v5664_v56, %v1965_v39  ;;  %5679 = vrcp.f32 %v2033_v31  ;;  %v11110_v39 = vld [vmem:[#allocation66_spill] sm:$0xff] }
 0x817   :  { %v5670_v40 = vpop.eup %5669  ;;  %v2016_v27 = vmul.f32 %v4633_v30, %v11103_v12  ;;  %v4636_v52 = vadd.f32 %v4635_v45, %v4634_v15  ;;  %v8468_v25 = vmul.f32 %v5666_v19, %v1980_v23  ;;  %v11109_v30 = vld [vmem:[#allocation63_spill] sm:$0xff]  ;;  %v2002_v23 = vmul.f32 %v8387_v33, %v11110_v39  ;;  %v6144_v33 = vld [vmem:[%s10395_s3 + $0xa0] sm:$0xff] }
 0x818   :  { %11104 = vst [vmem:[#allocation28_spill] sm:$0xff] %v8466_v6  ;;  %v8470_v2 = vmul.f32 %v5670_v40, %v1981_v22  ;;  %v8473_v46 = vmul.f32 %v5668_v9, %v1964_v14  ;;  %v2003_v15 = vmul.f32 %v8389_v61, %v11109_v30  ;;  %v5672_v19 = vpop.eup %5671  ;;  %v1982_v14 = vmul.f32 %v6144_v33, %v11095_v5 }
 0x819   :  { %11105 = vst [vmem:[#allocation30_spill] sm:$0xff] %v8468_v25  ;;  %v2048_v8 = vadd.f32 1e-06, %v2016_v27  ;;  %v2017_v4 = vmul.f32 %v4636_v52, %v11107_v10 }
 0x81a   :  { %11106 = vst [vmem:[#allocation33_spill] sm:$0xff] %v8470_v2  ;;  %11108 = vst [vmem:[#allocation31_spill] sm:$0xff] %v8473_v46  ;;  %v2131_v45 = vpack.c.bf16 %v8470_v2, %v8468_v25  ;;  %v2123_v17 = vpack.c.bf16 %v8466_v6, %v8473_v46  ;;  %v2035_v52 = vadd.f32 1e-06, %v2003_v15  ;;  %v11115_v25 = vld [vmem:[#allocation65_spill] sm:$0xff] }
 0x81b   :  { %5681 = vrcp.f32 %v2048_v8  ;;  %v2049_v48 = vadd.f32 1e-06, %v2017_v4  ;;  %v4637_v56 = vpop.f32.mrb[208].mxu1  ;;  %v6143_v8 = vld [vmem:[%s10395_s3 + $0x28] sm:$0xff] }
 0x81c   :  { %5683 = vrcp.f32 %v2032_v16  ;;  %v4638_v9 = vpop.f32.mrb[209].mxu1  ;;  %4663 = vmatprep.subr.bf16.mxu0 %v2131_v45  ;;  %v1967_v40 = vmul.f32 %v6143_v8, %v11093_v29  ;;  %v6145_v16 = vld [vmem:[%s10395_s3 + $0xa8] sm:$0xff]  ;;  %v6146_v29 = vld [vmem:[%s10395_s3 + $0x20] sm:$0xff]  ;;  %v2034_v8 = vadd.f32 1e-06, %v2002_v23 }
 0x81d   :  { %v5674_v31 = vpop.eup %5673  ;;  %5685 = vrcp.f32 %v2049_v48  ;;  %v4639_v22 = vadd.f32 %v4638_v9, %v4637_v56  ;;  %v4640_v61 = vpop.f32.mrb[210].mxu1  ;;  %4664 = vmatpush3.bf16.msra.mxu0 %v2123_v17  ;;  %v1983_v4 = vmul.f32 %v6145_v16, %v11099_v63  ;;  %v11111_v48 = vld [vmem:[#allocation64_spill] sm:$0xff]  ;;  %v1966_v15 = vmul.f32 %v6146_v29, %v11094_v58 }
 0x81e   :  { %v5676_v27 = vpop.eup %5675  ;;  %v4641_v53 = vpop.f32.mrb[211].mxu1  ;;  %v8500_v9 = vmul.f32 %v5672_v19, %v1967_v40  ;;  %v8502_v5 = vmul.f32 %v5674_v31, %v1982_v14  ;;  %5687 = vrcp.f32 %v2035_v52  ;;  %v11118_v40 = vld [vmem:[#allocation70_spill] sm:$0xff] }
 0x81f   :  { %v5678_v45 = vpop.eup %5677  ;;  %v2018_v56 = vmul.f32 %v4639_v22, %v11111_v48  ;;  %v4642_v17 = vadd.f32 %v4641_v53, %v4640_v61  ;;  %v8507_v16 = vmul.f32 %v5676_v27, %v1966_v15  ;;  %v11117_v22 = vld [vmem:[#allocation67_spill] sm:$0xff]  ;;  %v2004_v14 = vmul.f32 %v8391_v54, %v11118_v40 }
 0x820   :  { %11112 = vst [vmem:[#allocation32_spill] sm:$0xff] %v8500_v9  ;;  %11113 = vst [vmem:[#allocation34_spill] sm:$0xff] %v8502_v5  ;;  %v8504_v33 = vmul.f32 %v5678_v45, %v1983_v4  ;;  %v2005_v61 = vmul.f32 %v8393_v32, %v11117_v22  ;;  %v5680_v31 = vpop.eup %5679  ;;  %v6148_v54 = vld [vmem:[%s10395_s3 + $0xb0] sm:$0xff] }
 0x821   :  { %v2050_v2 = vadd.f32 1e-06, %v2018_v56  ;;  %v2019_v63 = vmul.f32 %v4642_v17, %v11115_v25  ;;  %11116 = vst [vmem:[#allocation35_spill] sm:$0xff] %v8507_v16  ;;  %v2124_v23 = vpack.c.bf16 %v8500_v9, %v8507_v16  ;;  %v1984_v15 = vmul.f32 %v6148_v54, %v11103_v12 }
 0x822   :  { %11114 = vst [vmem:[#allocation37_spill] sm:$0xff] %v8504_v33  ;;  %v2132_v53 = vpack.c.bf16 %v8504_v33, %v8502_v5  ;;  %v2037_v17 = vadd.f32 1e-06, %v2005_v61  ;;  %v11123_v5 = vld [vmem:[#allocation69_spill] sm:$0xff] }
 0x823   :  { %5689 = vrcp.f32 %v2050_v2  ;;  %v2051_v58 = vadd.f32 1e-06, %v2019_v63  ;;  %v4643_v19 = vpop.f32.mrb[212].mxu1  ;;  %v6147_v2 = vld [vmem:[%s10395_s3 + $0x38] sm:$0xff] }
 0x824   :  { %5691 = vrcp.f32 %v2034_v8  ;;  %v4644_v27 = vpop.f32.mrb[213].mxu1  ;;  %4665 = vmatprep.subr.bf16.mxu0 %v2132_v53  ;;  %v1969_v45 = vmul.f32 %v6147_v2, %v11101_v50  ;;  %v6149_v8 = vld [vmem:[%s10395_s3 + $0xb8] sm:$0xff]  ;;  %v6150_v50 = vld [vmem:[%s10395_s3 + $0x30] sm:$0xff]  ;;  %v2036_v2 = vadd.f32 1e-06, %v2004_v14 }
 0x825   :  { %v5682_v52 = vpop.eup %5681  ;;  %5693 = vrcp.f32 %v2051_v58  ;;  %v4645_v4 = vadd.f32 %v4644_v27, %v4643_v19  ;;  %v4646_v32 = vpop.f32.mrb[214].mxu1  ;;  %4666 = vmatpush3.bf16.msra.mxu0 %v2124_v23  ;;  %v1985_v63 = vmul.f32 %v6149_v8, %v11107_v10  ;;  %v11119_v58 = vld [vmem:[#allocation68_spill] sm:$0xff]  ;;  %v1968_v61 = vmul.f32 %v6150_v50, %v11102_v59 }
 0x826   :  { %v5684_v56 = vpop.eup %5683  ;;  %v4647_v29 = vpop.f32.mrb[215].mxu1  ;;  %v8534_v27 = vmul.f32 %v5680_v31, %v1969_v45  ;;  %v8536_v12 = vmul.f32 %v5682_v52, %v1984_v15  ;;  %5695 = vrcp.f32 %v2037_v17  ;;  %v11126_v45 = vld [vmem:[#allocation19_spill] sm:$0xff] }
 0x827   :  { %v5686_v53 = vpop.eup %5685  ;;  %v2020_v19 = vmul.f32 %v4645_v4, %v11119_v58  ;;  %v4648_v23 = vadd.f32 %v4647_v29, %v4646_v32  ;;  %v8541_v8 = vmul.f32 %v5684_v56, %v1968_v61  ;;  %v11125_v4 = vld [vmem:[#allocation71_spill] sm:$0xff]  ;;  %v2006_v15 = vmul.f32 %v8395_v21, %v11126_v45  ;;  %v6152_v21 = vld [vmem:[%s10395_s3 + $0xc0] sm:$0xff] }
 0x828   :  { %11120 = vst [vmem:[#allocation36_spill] sm:$0xff] %v8534_v27  ;;  %11121 = vst [vmem:[#allocation38_spill] sm:$0xff] %v8536_v12  ;;  %v8538_v54 = vmul.f32 %v5686_v53, %v1985_v63  ;;  %v2007_v32 = vmul.f32 %v8397_v3, %v11125_v4  ;;  %v5688_v52 = vpop.eup %5687  ;;  %v1986_v61 = vmul.f32 %v6152_v21, %v11111_v48 }
 0x829   :  { %v2052_v33 = vadd.f32 1e-06, %v2020_v19  ;;  %v2021_v10 = vmul.f32 %v4648_v23, %v11123_v5  ;;  %11124 = vst [vmem:[#allocation39_spill] sm:$0xff] %v8541_v8  ;;  %v2125_v14 = vpack.c.bf16 %v8534_v27, %v8541_v8 }
 0x82a   :  { %11122 = vst [vmem:[#allocation41_spill] sm:$0xff] %v8538_v54  ;;  %v2133_v29 = vpack.c.bf16 %v8538_v54, %v8536_v12  ;;  %v2039_v23 = vadd.f32 1e-06, %v2007_v32  ;;  %v11131_v12 = vld [vmem:[#allocation21_spill] sm:$0xff] }
 0x82b   :  { %5697 = vrcp.f32 %v2052_v33  ;;  %v2053_v59 = vadd.f32 1e-06, %v2021_v10  ;;  %v4649_v31 = vpop.f32.mrb[216].mxu1  ;;  %v6151_v33 = vld [vmem:[%s10395_s3 + $0x48] sm:$0xff] }
 0x82c   :  { %5699 = vrcp.f32 %v2036_v2  ;;  %v4650_v56 = vpop.f32.mrb[217].mxu1  ;;  %4667 = vmatprep.subr.bf16.mxu0 %v2133_v29  ;;  %v1971_v53 = vmul.f32 %v6151_v33, %v11109_v30  ;;  %v6153_v2 = vld [vmem:[%s10395_s3 + $0xc8] sm:$0xff]  ;;  %v6154_v30 = vld [vmem:[%s10395_s3 + $0x40] sm:$0xff]  ;;  %v2038_v33 = vadd.f32 1e-06, %v2006_v15 }
 0x82d   :  { %v5690_v17 = vpop.eup %5689  ;;  %5701 = vrcp.f32 %v2053_v59  ;;  %v4651_v63 = vadd.f32 %v4650_v56, %v4649_v31  ;;  %v4652_v3 = vpop.f32.mrb[218].mxu1  ;;  %4668 = vmatpush3.bf16.msra.mxu0 %v2125_v14  ;;  %v1987_v10 = vmul.f32 %v6153_v2, %v11115_v25  ;;  %v11127_v59 = vld [vmem:[#allocation18_spill] sm:$0xff]  ;;  %v1970_v32 = vmul.f32 %v6154_v30, %v11110_v39 }
 0x82e   :  { %v5692_v19 = vpop.eup %5691  ;;  %v4653_v50 = vpop.f32.mrb[219].mxu1  ;;  %v8568_v56 = vmul.f32 %v5688_v52, %v1971_v53  ;;  %v8570_v48 = vmul.f32 %v5690_v17, %v1986_v61  ;;  %5703 = vrcp.f32 %v2039_v23  ;;  %v11134_v53 = vld [vmem:[#allocation23_spill] sm:$0xff] }
 0x82f   :  { %v5694_v29 = vpop.eup %5693  ;;  %v2022_v31 = vmul.f32 %v4651_v63, %v11127_v59  ;;  %v4654_v14 = vadd.f32 %v4653_v50, %v4652_v3  ;;  %v8575_v2 = vmul.f32 %v5692_v19, %v1970_v32  ;;  %v11133_v63 = vld [vmem:[#allocation20_spill] sm:$0xff]  ;;  %v2008_v61 = vmul.f32 %v8399_v28, %v11134_v53  ;;  %v6156_v28 = vld [vmem:[%s10395_s3 + $0xd0] sm:$0xff] }
 0x830   :  { %11128 = vst [vmem:[#allocation40_spill] sm:$0xff] %v8568_v56  ;;  %11129 = vst [vmem:[#allocation42_spill] sm:$0xff] %v8570_v48  ;;  %v8572_v21 = vmul.f32 %v5694_v29, %v1987_v10  ;;  %v2009_v3 = vmul.f32 %v8401_v11, %v11133_v63  ;;  %v5696_v17 = vpop.eup %5695  ;;  %v1988_v32 = vmul.f32 %v6156_v28, %v11119_v58 }
 0x831   :  { %v2054_v54 = vadd.f32 1e-06, %v2022_v31  ;;  %v2023_v25 = vmul.f32 %v4654_v14, %v11131_v12  ;;  %11132 = vst [vmem:[#allocation43_spill] sm:$0xff] %v8575_v2  ;;  %v2126_v15 = vpack.c.bf16 %v8568_v56, %v8575_v2 }
 0x832   :  { %11130 = vst [vmem:[#allocation45_spill] sm:$0xff] %v8572_v21  ;;  %v2134_v50 = vpack.c.bf16 %v8572_v21, %v8570_v48  ;;  %v2041_v14 = vadd.f32 1e-06, %v2009_v3  ;;  %v11139_v48 = vld [vmem:[#allocation25_spill] sm:$0xff] }
 0x833   :  { %5705 = vrcp.f32 %v2054_v54  ;;  %v2055_v39 = vadd.f32 1e-06, %v2023_v25  ;;  %v4655_v52 = vpop.f32.mrb[220].mxu1  ;;  %v6155_v54 = vld [vmem:[%s10395_s3 + $0x58] sm:$0xff] }
 0x834   :  { %5707 = vrcp.f32 %v2038_v33  ;;  %v4656_v19 = vpop.f32.mrb[221].mxu1  ;;  %4669 = vmatprep.subr.bf16.mxu0 %v2134_v50  ;;  %v1973_v29 = vmul.f32 %v6155_v54, %v11117_v22  ;;  %v6157_v33 = vld [vmem:[%s10395_s3 + $0xd8] sm:$0xff]  ;;  %v6158_v22 = vld [vmem:[%s10395_s3 + $0x50] sm:$0xff]  ;;  %v2040_v54 = vadd.f32 1e-06, %v2008_v61 }
 0x835   :  { %v5698_v23 = vpop.eup %5697  ;;  %5709 = vrcp.f32 %v2055_v39  ;;  %v4657_v10 = vadd.f32 %v4656_v19, %v4655_v52  ;;  %v4658_v11 = vpop.f32.mrb[222].mxu1  ;;  %4670 = vmatpush3.bf16.msra.mxu0 %v2126_v15  ;;  %v1989_v25 = vmul.f32 %v6157_v33, %v11123_v5  ;;  %v11135_v39 = vld [vmem:[#allocation22_spill] sm:$0xff]  ;;  %v1972_v3 = vmul.f32 %v6158_v22, %v11118_v40 }
 0x836   :  { %v5700_v31 = vpop.eup %5699  ;;  %v4659_v30 = vpop.f32.mrb[223].mxu1  ;;  %v8602_v19 = vmul.f32 %v5696_v17, %v1973_v29  ;;  %v8604_v58 = vmul.f32 %v5698_v23, %v1988_v32  ;;  %5711 = vrcp.f32 %v2041_v14  ;;  %v6159_v23 = vld [vmem:[%s10395_s3 + $0x68] sm:$0xff] }
 0x837   :  { %v5702_v50 = vpop.eup %5701  ;;  %v2024_v52 = vmul.f32 %v4657_v10, %v11135_v39  ;;  %v4660_v15 = vadd.f32 %v4659_v30, %v4658_v11  ;;  %v8609_v33 = vmul.f32 %v5700_v31, %v1972_v3  ;;  %v1975_v29 = vmul.f32 %v6159_v23, %v11125_v4  ;;  %v6161_v30 = vld [vmem:[%s10395_s3 + $0xe8] sm:$0xff] }
 0x838   :  { %11136 = vst [vmem:[#allocation44_spill] sm:$0xff] %v8602_v19  ;;  %11137 = vst [vmem:[#allocation46_spill] sm:$0xff] %v8604_v58  ;;  %v8606_v28 = vmul.f32 %v5702_v50, %v1989_v25  ;;  %v5704_v17 = vpop.eup %5703  ;;  %v1991_v32 = vmul.f32 %v6161_v30, %v11131_v12  ;;  %v6162_v50 = vld [vmem:[%s10395_s3 + $0x60] sm:$0xff] }
 0x839   :  { %v2056_v21 = vadd.f32 1e-06, %v2024_v52  ;;  %v2025_v5 = vmul.f32 %v4660_v15, %v11139_v48  ;;  %11140 = vst [vmem:[#allocation47_spill] sm:$0xff] %v8609_v33  ;;  %v2127_v40 = vpack.c.bf16 %v8602_v19, %v8609_v33  ;;  %v1974_v4 = vmul.f32 %v6162_v50, %v11126_v45  ;;  %v6163_v45 = vld [vmem:[%s10395_s3 + $0x78] sm:$0xff]  ;;  %v8860_v19 = vld [vmem:[%s10392_s0 + $0x4] ss:$8 sps:$4 sm:$0xff]  }
 0x83a   :  { %11138 = vst [vmem:[#allocation49_spill] sm:$0xff] %v8606_v28  ;;  %v2135_v10 = vpack.c.bf16 %v8606_v28, %v8604_v58  ;;  %v8631_v52 = vmul.f32 %v5704_v17, %v1975_v29  ;;  %v8686_v50 = vld [vmem:[%s10392_s0 + $0x10] ss:$8 sps:$4 sm:$0xff]   ;;  %v8842_v28 = vld [vmem:[%s10392_s0 + $0xe0] ss:$8 sps:$4 sm:$0xff]   ;;  %11170 = vst [vmem:[#allocation20_spill] sm:$0xff] %v8860_v19 }
 0x83b   :  { %5713 = vrcp.f32 %v2056_v21  ;;  %v2057_v11 = vadd.f32 1e-06, %v2025_v5  ;;  %v6160_v21 = vld [vmem:[%s10395_s3 + $0xe0] sm:$0xff]  ;;  %11167 = vst [vmem:[#allocation19_spill] sm:$0xff] %v8842_v28  ;;  %v8848_v58 = vld [vmem:[%s10392_s0 + $0xf4] ss:$8 sps:$4 sm:$0xff]  }
 0x83c   :  { %5715 = vrcp.f32 %v2040_v54  ;;  %4671 = vmatprep.subr.bf16.mxu0 %v2135_v10  ;;  %v1990_v14 = vmul.f32 %v6160_v21, %v11127_v59  ;;  %11141 = vst [vmem:[#allocation48_spill] sm:$0xff] %v8631_v52  ;;  %v1977_v10 = vmul.f32 %v6163_v45, %v11133_v63  ;;  %v8722_v45 = vld [vmem:[%s10392_s0 + $0x40] ss:$8 sps:$4 sm:$0xff]   ;;  %11168 = vst [vmem:[#allocation18_spill] sm:$0xff] %v8848_v58  ;;  %v8854_v33 = vld [vmem:[%s10392_s0 + $0xf0] ss:$8 sps:$4 sm:$0xff]  }
 0x83d   :  { %v5706_v61 = vpop.eup %5705  ;;  %5717 = vrcp.f32 %v2057_v11  ;;  %4672 = vmatpush3.bf16.msra.mxu0 %v2127_v40  ;;  %v6164_v40 = vld [vmem:[%s10395_s3 + $0xf0] sm:$0xff]  ;;  %11169 = vst [vmem:[#allocation21_spill] sm:$0xff] %v8854_v33 }
 0x83e   :  { %v5708_v31 = vpop.eup %5707  ;;  %v8633_v15 = vmul.f32 %v5706_v61, %v1990_v14  ;;  %v1992_v17 = vmul.f32 %v6164_v40, %v11135_v39  ;;  %v6165_v61 = vld [vmem:[%s10395_s3 + $0xf8] sm:$0xff]  ;;  %v8740_v40 = vld [vmem:[%s10392_s0 + $0x64] ss:$8 sps:$4 sm:$0xff]  }
 0x83f   :  { %v5710_v25 = vpop.eup %5709  ;;  %v8637_v59 = vmul.f32 %v5708_v31, %v1974_v4  ;;  %v1993_v23 = vmul.f32 %v6165_v61, %v11139_v48  ;;  %v6166_v31 = vld [vmem:[%s10395_s3 + $0x70] sm:$0xff]  ;;  %v8692_v4 = vld [vmem:[%s10392_s0 + $0x24] ss:$8 sps:$4 sm:$0xff]   ;;  %11150 = vst [vmem:[#allocation55_spill] sm:$0xff] %v8740_v40 }
 0x840   :  { %11142 = vst [vmem:[#allocation14_spill] sm:$0xff] %v8633_v15  ;;  %v8635_v22 = vmul.f32 %v5710_v25, %v1991_v32  ;;  %v5712_v54 = vpop.eup %5711  ;;  %v1976_v63 = vmul.f32 %v6166_v31, %v11134_v53  ;;  %v8674_v53 = vld [vmem:[%s10392_s0] ss:$8 sps:$4 sm:$0xff]   ;;  %v8680_v25 = vld [vmem:[%s10392_s0 + $0x14] ss:$8 sps:$4 sm:$0xff]  }
 0x841   :  { %11144 = vst [vmem:[#allocation16_spill] sm:$0xff] %v8637_v59  ;;  %v2128_v12 = vpack.c.bf16 %v8631_v52, %v8637_v59  ;;  %v8659_v21 = vmul.f32 %v5712_v54, %v1977_v10  ;;  %v8710_v54 = vld [vmem:[%s10392_s0 + $0x30] ss:$8 sps:$4 sm:$0xff]   ;;  %v8728_v10 = vld [vmem:[%s10392_s0 + $0x54] ss:$8 sps:$4 sm:$0xff]  }
 0x842   :  { %11143 = vst [vmem:[#allocation50_spill] sm:$0xff] %v8635_v22  ;;  %v2136_v3 = vpack.c.bf16 %v8635_v22, %v8633_v15  ;;  %v8752_v61 = vld [vmem:[%s10392_s0 + $0x74] ss:$8 sps:$4 sm:$0xff]   ;;  %v8770_v31 = vld [vmem:[%s10392_s0 + $0x80] ss:$8 sps:$4 sm:$0xff]  }
 0x843   :  { %11145 = vst [vmem:[#allocation17_spill] sm:$0xff] %v8659_v21  ;;  %11152 = vst [vmem:[#allocation56_spill] sm:$0xff] %v8752_v61  ;;  %v8818_v22 = vld [vmem:[%s10392_s0 + $0xc0] ss:$8 sps:$4 sm:$0xff]   ;;  %v8824_v15 = vld [vmem:[%s10392_s0 + $0xd4] ss:$8 sps:$4 sm:$0xff]  }
 0x844   :  { %4673 = vmatprep.subr.bf16.mxu0 %v2136_v3  ;;  %v8698_v3 = vld [vmem:[%s10392_s0 + $0x20] ss:$8 sps:$4 sm:$0xff]   ;;  %11155 = vst [vmem:[#allocation62_spill] sm:$0xff] %v8770_v31  ;;  %11163 = vst [vmem:[#allocation70_spill] sm:$0xff] %v8818_v22  ;;  %v8830_v59 = vld [vmem:[%s10392_s0 + $0xd0] ss:$8 sps:$4 sm:$0xff]  }
 0x845   :  { %v5714_v5 = vpop.eup %5713  ;;  %4674 = vmatpush3.bf16.msra.mxu0 %v2128_v12  ;;  %v8704_v12 = vld [vmem:[%s10392_s0 + $0x34] ss:$8 sps:$4 sm:$0xff]   ;;  %11164 = vst [vmem:[#allocation68_spill] sm:$0xff] %v8824_v15  ;;  %11165 = vst [vmem:[#allocation69_spill] sm:$0xff] %v8830_v59  ;;  %v8836_v52 = vld [vmem:[%s10392_s0 + $0xe4] ss:$8 sps:$4 sm:$0xff]  }
 0x846   :  { %v5716_v11 = vpop.eup %5715  ;;  %v8661_v14 = vmul.f32 %v5714_v5, %v1992_v17  ;;  %v8716_v5 = vld [vmem:[%s10392_s0 + $0x44] ss:$8 sps:$4 sm:$0xff]   ;;  %v8746_v17 = vld [vmem:[%s10392_s0 + $0x60] ss:$8 sps:$4 sm:$0xff]   ;;  %11166 = vst [vmem:[#allocation71_spill] sm:$0xff] %v8836_v52 }
 0x847   :  { %v5718_v29 = vpop.eup %5717  ;;  %v8665_v39 = vmul.f32 %v5716_v11, %v1976_v63  ;;  %v8734_v11 = vld [vmem:[%s10392_s0 + $0x50] ss:$8 sps:$4 sm:$0xff]   ;;  %11151 = vst [vmem:[#allocation58_spill] sm:$0xff] %v8746_v17  ;;  %v8776_v63 = vld [vmem:[%s10392_s0 + $0x94] ss:$8 sps:$4 sm:$0xff]  }
 0x848   :  { %11146 = vst [vmem:[#allocation51_spill] sm:$0xff] %v8661_v14  ;;  %v8663_v30 = vmul.f32 %v5718_v29, %v1993_v23  ;;  %11149 = vst [vmem:[#allocation53_spill] sm:$0xff] %v8734_v11  ;;  %v8758_v23 = vld [vmem:[%s10392_s0 + $0x70] ss:$8 sps:$4 sm:$0xff]   ;;  %v8764_v29 = vld [vmem:[%s10392_s0 + $0x84] ss:$8 sps:$4 sm:$0xff]  }
 0x849   :  { %11148 = vst [vmem:[#allocation52_spill] sm:$0xff] %v8665_v39  ;;  %v2129_v48 = vpack.c.bf16 %v8659_v21, %v8665_v39  ;;  %11153 = vst [vmem:[#allocation57_spill] sm:$0xff] %v8758_v23  ;;  %v8806_v39 = vld [vmem:[%s10392_s0 + $0xb0] ss:$8 sps:$4 sm:$0xff]   ;;  %v8812_v21 = vld [vmem:[%s10392_s0 + $0xc4] ss:$8 sps:$4 sm:$0xff]  }
 0x84a   :  { %11147 = vst [vmem:[#allocation54_spill] sm:$0xff] %v8663_v30  ;;  %v2137_v32 = vpack.c.bf16 %v8663_v30, %v8661_v14  ;;  %11154 = vst [vmem:[#allocation59_spill] sm:$0xff] %v8764_v29  ;;  %v8794_v30 = vld [vmem:[%s10392_s0 + $0xa0] ss:$8 sps:$4 sm:$0xff]   ;;  %v8800_v14 = vld [vmem:[%s10392_s0 + $0xb4] ss:$8 sps:$4 sm:$0xff]  }
 0x84b   :  { %11156 = vst [vmem:[#allocation60_spill] sm:$0xff] %v8776_v63  ;;  %11159 = vst [vmem:[#allocation66_spill] sm:$0xff] %v8794_v30 }
 0x84c   :  { %4675 = vmatprep.subr.bf16.mxu0 %v2137_v32  ;;  %v8782_v32 = vld [vmem:[%s10392_s0 + $0x90] ss:$8 sps:$4 sm:$0xff]   ;;  %11160 = vst [vmem:[#allocation64_spill] sm:$0xff] %v8800_v14  ;;  %11161 = vst [vmem:[#allocation65_spill] sm:$0xff] %v8806_v39 }
 0x84d   :  { %4676 = vmatpush3.bf16.msra.mxu0 %v2129_v48  ;;  %11157 = vst [vmem:[#allocation61_spill] sm:$0xff] %v8782_v32  ;;  %v8788_v48 = vld [vmem:[%s10392_s0 + $0xa4] ss:$8 sps:$4 sm:$0xff]   ;;  %11162 = vst [vmem:[#allocation67_spill] sm:$0xff] %v8812_v21 }
 0x84e   :  { %11158 = vst [vmem:[#allocation63_spill] sm:$0xff] %v8788_v48 }
 0x850   :  { %2171 = vmatmul.mubr.bf16.vlgmr.msra.gmra.mrb[160].mxu0 %v8674_v53 }
 0x851   :  { %2178 = vmatprep.mubr.bf16.mxu0 %v8680_v25 }
 0x858   :  { %2179 = vmatmul.mubr.bf16.gmra.mrb[164].mxu0 %v8686_v50 }
 0x859   :  { %2186 = vmatprep.mubr.bf16.mxu0 %v8692_v4 }
 0x860   :  { %2187 = vmatmul.mubr.bf16.gmra.mrb[168].mxu0 %v8698_v3 }
 0x861   :  { %2194 = vmatprep.mubr.bf16.mxu0 %v8704_v12 }
 0x868   :  { %2195 = vmatmul.mubr.bf16.gmra.mrb[172].mxu0 %v8710_v54 }
 0x869   :  { %2202 = vmatprep.mubr.bf16.mxu0 %v8716_v5 }
 0x870   :  { %2203 = vmatmul.mubr.bf16.gmra.mrb[176].mxu0 %v8722_v45 }
 0x871   :  { %2210 = vmatprep.mubr.bf16.mxu0 %v8728_v10 }
 0x878   :  { %2211 = vmatmul.mubr.bf16.gmra.mrb[180].mxu0 %v8734_v11 }
 0x879   :  { %2218 = vmatprep.mubr.bf16.mxu0 %v8740_v40 }
 0x880   :  { %2219 = vmatmul.mubr.bf16.gmra.mrb[184].mxu0 %v8746_v17 }
 0x881   :  { %2226 = vmatprep.mubr.bf16.mxu0 %v8752_v61 }
 0x888   :  { %2227 = vmatmul.mubr.bf16.gmra.mrb[188].mxu0 %v8758_v23 }
 0x889   :  { %2234 = vmatprep.mubr.bf16.mxu0 %v8764_v29 }
 0x890   :  { %2235 = vmatmul.mubr.bf16.gmra.mrb[192].mxu0 %v8770_v31 }
 0x891   :  { %2242 = vmatprep.mubr.bf16.mxu0 %v8776_v63 }
 0x898   :  { %2243 = vmatmul.mubr.bf16.gmra.mrb[196].mxu0 %v8782_v32 }
 0x899   :  { %2250 = vmatprep.mubr.bf16.mxu0 %v8788_v48 }
 0x8a0   :  { %2251 = vmatmul.mubr.bf16.gmra.mrb[200].mxu0 %v8794_v30 }
 0x8a1   :  { %2258 = vmatprep.mubr.bf16.mxu0 %v8800_v14 }
 0x8a8   :  { %2259 = vmatmul.mubr.bf16.gmra.mrb[204].mxu0 %v8806_v39 }
 0x8a9   :  { %2266 = vmatprep.mubr.bf16.mxu0 %v8812_v21 }
 0x8b0   :  { %2267 = vmatmul.mubr.bf16.gmra.mrb[208].mxu0 %v8818_v22 }
 0x8b1   :  { %2274 = vmatprep.mubr.bf16.mxu0 %v8824_v15 }
 0x8b8   :  { %2275 = vmatmul.mubr.bf16.gmra.mrb[212].mxu0 %v8830_v59 }
 0x8b9   :  { %2282 = vmatprep.mubr.bf16.mxu0 %v8836_v52 }
 0x8c0   :  { %2283 = vmatmul.mubr.bf16.gmra.mrb[216].mxu0 %v8842_v28 }
 0x8c1   :  { %2290 = vmatprep.mubr.bf16.mxu0 %v8848_v58 }
 0x8c8   :  { %2291 = vmatmul.mubr.bf16.gmra.mrb[220].mxu0 %v8854_v33 }
 0x8c9   :  { %2844 = vmatprep.mubr.bf16.mxu0 %v8860_v19 }
 0x923   :  { %v4677_v2 = vpop.f32.mrb[160].mxu0 }
 0x924   :  { %v4678_v56 = vpop.f32.mrb[161].mxu0 }
 0x925   :  { %v4679_v8 = vadd.f32 %v4678_v56, %v4677_v2  ;;  %v4680_v27 = vpop.f32.mrb[162].mxu0 }
 0x926   :  { %v4681_v16 = vpop.f32.mrb[163].mxu0 }
 0x927   :  { %v4682_v9 = vadd.f32 %v4681_v16, %v4680_v27 }
 0x92b   :  { %v4683_v46 = vpop.f32.mrb[164].mxu0 }
 0x92c   :  { %v4684_v6 = vpop.f32.mrb[165].mxu0 }
 0x92d   :  { %v4685_v0 = vadd.f32 %v4684_v6, %v4683_v46  ;;  %v4686_v38 = vpop.f32.mrb[166].mxu0 }
 0x92e   :  { %v4687_v58 = vpop.f32.mrb[167].mxu0 }
 0x92f   :  { %v4688_v28 = vadd.f32 %v4687_v58, %v4686_v38 }
 0x933   :  { %v4689_v33 = vpop.f32.mrb[168].mxu0 }
 0x934   :  { %v4690_v52 = vpop.f32.mrb[169].mxu0 }
 0x935   :  { %v8863_v59 = vadd.f32 %v4690_v52, %v4689_v33  ;;  %v4692_v15 = vpop.f32.mrb[170].mxu0 }
 0x936   :  { %v4693_v22 = vpop.f32.mrb[171].mxu0 }
 0x937   :  { %v8865_v21 = vadd.f32 %v4693_v22, %v4692_v15 }
 0x93b   :  { %v4695_v19 = vpop.f32.mrb[172].mxu0 }
 0x93c   :  { %v4696_v39 = vpop.f32.mrb[173].mxu0 }
 0x93d   :  { %v8867_v56 = vadd.f32 %v4696_v39, %v4695_v19  ;;  %v4698_v2 = vpop.f32.mrb[174].mxu0 }
 0x93e   :  { %v4699_v16 = vpop.f32.mrb[175].mxu0 }
 0x93f   :  { %v8869_v27 = vadd.f32 %v4699_v16, %v4698_v2 }
 0x943   :  { %v4701_v6 = vpop.f32.mrb[176].mxu0 }
 0x944   :  { %v4702_v46 = vpop.f32.mrb[177].mxu0 }
 0x945   :  { %v8871_v14 = vadd.f32 %v4702_v46, %v4701_v6  ;;  %v4704_v38 = vpop.f32.mrb[178].mxu0 }
 0x946   :  { %v4705_v58 = vpop.f32.mrb[179].mxu0 }
 0x947   :  { %v8873_v33 = vadd.f32 %v4705_v58, %v4704_v38 }
 0x94b   :  { %v4707_v52 = vpop.f32.mrb[180].mxu0 }
 0x94c   :  { %v4708_v30 = vpop.f32.mrb[181].mxu0 }
 0x94d   :  { %v8875_v15 = vadd.f32 %v4708_v30, %v4707_v52  ;;  %v4710_v22 = vpop.f32.mrb[182].mxu0  ;;  %v2332_v52 = vmul.f32 %v4682_v9, %v8108_v55 }
 0x94e   :  { %v4711_v48 = vpop.f32.mrb[183].mxu0 }
 0x94f   :  { %v8877_v19 = vadd.f32 %v4711_v48, %v4710_v22  ;;  %v2331_v22 = vmul.f32 %v4679_v8, %v8115_v41  ;;  %v2364_v61 = vadd.f32 1e-06, %v2332_v52  ;;  %v2333_v8 = vmul.f32 %v4685_v0, %v8149_v57 }
 0x951   :  { %v2363_v40 = vadd.f32 1e-06, %v2331_v22  ;;  %5719 = vrcp.f32 %v2364_v61 }
 0x953   :  { %v4713_v39 = vpop.f32.mrb[184].mxu0 }
 0x954   :  { %v4714_v32 = vpop.f32.mrb[185].mxu0 }
 0x955   :  { %v8879_v2 = vadd.f32 %v4714_v32, %v4713_v39  ;;  %v4716_v16 = vpop.f32.mrb[186].mxu0 }
 0x956   :  { %v4717_v63 = vpop.f32.mrb[187].mxu0 }
 0x957   :  { %v8881_v6 = vadd.f32 %v4717_v63, %v4716_v16 }
 0x95b   :  { %v4719_v46 = vpop.f32.mrb[188].mxu0 }
 0x95c   :  { %v4720_v31 = vpop.f32.mrb[189].mxu0 }
 0x95d   :  { %v8883_v38 = vadd.f32 %v4720_v31, %v4719_v46  ;;  %v4722_v58 = vpop.f32.mrb[190].mxu0 }
 0x95e   :  { %v4723_v29 = vpop.f32.mrb[191].mxu0 }
 0x95f   :  { %v8885_v30 = vadd.f32 %v4723_v29, %v4722_v58  ;;  %v2334_v29 = vmul.f32 %v4688_v28, %v8142_v26  ;;  %v2336_v28 = vmul.f32 %v8865_v21, %v8176_v43 }
 0x961   :  { %v2366_v11 = vadd.f32 1e-06, %v2334_v29 }
 0x963   :  { %v4725_v48 = vpop.f32.mrb[192].mxu0 }
 0x964   :  { %v4726_v23 = vpop.f32.mrb[193].mxu0 }
 0x965   :  { %v4727_v32 = vadd.f32 %v4726_v23, %v4725_v48  ;;  %v4728_v39 = vpop.f32.mrb[194].mxu0 }
 0x966   :  { %v4729_v17 = vpop.f32.mrb[195].mxu0 }
 0x967   :  { %v2347_v63 = vmul.f32 %v4727_v32, %v8110_v20  ;;  %v4730_v16 = vadd.f32 %v4729_v17, %v4728_v39  ;;  %v2365_v39 = vadd.f32 1e-06, %v2333_v8 }
 0x969   :  { %v2379_v31 = vadd.f32 1e-06, %v2347_v63  ;;  %v2348_v46 = vmul.f32 %v4730_v16, %v8112_v1  ;;  %v5720_v16 = vpop.eup %5719 }
 0x96b   :  { %5721 = vrcp.f32 %v2379_v31  ;;  %v2380_v9 = vadd.f32 1e-06, %v2348_v46  ;;  %v4731_v58 = vpop.f32.mrb[196].mxu0  ;;  %v2335_v31 = vmul.f32 %v8863_v59, %v8183_v35 }
 0x96c   :  { %5723 = vrcp.f32 %v2363_v40  ;;  %v4732_v23 = vpop.f32.mrb[197].mxu0 }
 0x96d   :  { %5725 = vrcp.f32 %v2380_v9  ;;  %v4733_v52 = vadd.f32 %v4732_v23, %v4731_v58  ;;  %v4734_v48 = vpop.f32.mrb[198].mxu0  ;;  %v2368_v23 = vadd.f32 1e-06, %v2336_v28 }
 0x96e   :  { %v4735_v32 = vpop.f32.mrb[199].mxu0  ;;  %5727 = vrcp.f32 %v2366_v11  ;;  %v6199_v11 = vld [vmem:[%s10394_s2 + $0x8] sm:$0xff] }
 0x96f   :  { %v2349_v17 = vmul.f32 %v4733_v52, %v8144_v62  ;;  %v4736_v22 = vadd.f32 %v4735_v32, %v4734_v48  ;;  %v2300_v8 = vmul.f32 %v6199_v11, %v8108_v55  ;;  %v6200_v48 = vld [vmem:[%s10394_s2 + $0x80] sm:$0xff]  ;;  %v6201_v32 = vld [vmem:[%s10394_s2 + $0x88] sm:$0xff] }
 0x970   :  { %v2315_v59 = vmul.f32 %v6200_v48, %v8110_v20  ;;  %v6202_v55 = vld [vmem:[%s10394_s2] sm:$0xff]  ;;  %v6203_v48 = vld [vmem:[%s10394_s2 + $0x18] sm:$0xff] }
 0x971   :  { %v2381_v63 = vadd.f32 1e-06, %v2349_v17  ;;  %v2350_v61 = vmul.f32 %v4736_v22, %v8146_v34  ;;  %v2316_v17 = vmul.f32 %v6201_v32, %v8112_v1  ;;  %v8916_v28 = vmul.f32 %v5720_v16, %v2300_v8 }
 0x972   :  { %v2337_v8 = vmul.f32 %v8867_v56, %v8217_v42  ;;  %v6204_v56 = vld [vmem:[%s10394_s2 + $0x90] sm:$0xff] }
 0x973   :  { %5729 = vrcp.f32 %v2381_v63  ;;  %v2382_v40 = vadd.f32 1e-06, %v2350_v61  ;;  %v4737_v0 = vpop.f32.mrb[200].mxu0  ;;  %v2299_v61 = vmul.f32 %v6202_v55, %v8115_v41 }
 0x974   :  { %5731 = vrcp.f32 %v2365_v39  ;;  %v4738_v46 = vpop.f32.mrb[201].mxu0 }
 0x975   :  { %v5722_v29 = vpop.eup %5721  ;;  %5733 = vrcp.f32 %v2382_v40  ;;  %v4739_v9 = vadd.f32 %v4738_v46, %v4737_v0  ;;  %v4740_v58 = vpop.f32.mrb[202].mxu0  ;;  %v2367_v40 = vadd.f32 1e-06, %v2335_v31 }
 0x976   :  { %v5724_v21 = vpop.eup %5723  ;;  %v4741_v52 = vpop.f32.mrb[203].mxu0  ;;  %v8918_v20 = vmul.f32 %v5722_v29, %v2315_v59  ;;  %5735 = vrcp.f32 %v2368_v23  ;;  %v2302_v59 = vmul.f32 %v6203_v48, %v8142_v26  ;;  %v6206_v26 = vld [vmem:[%s10394_s2 + $0x10] sm:$0xff] }
 0x977   :  { %v5726_v22 = vpop.eup %5725  ;;  %v2351_v39 = vmul.f32 %v4739_v9, %v8178_v47  ;;  %v4742_v63 = vadd.f32 %v4741_v52, %v4740_v58  ;;  %v8923_v11 = vmul.f32 %v5724_v21, %v2299_v61  ;;  %v2338_v9 = vmul.f32 %v8869_v27, %v8210_v36 }
 0x978   :  { %v8920_v0 = vmul.f32 %v5726_v22, %v2316_v17  ;;  %v5728_v29 = vpop.eup %5727 }
 0x979   :  { %v2383_v46 = vadd.f32 1e-06, %v2351_v39  ;;  %v2352_v1 = vmul.f32 %v4742_v63, %v8180_v13  ;;  %v2459_v31 = vpack.c.bf16 %v8916_v28, %v8923_v11  ;;  %v2370_v17 = vadd.f32 1e-06, %v2338_v9  ;;  %v6205_v63 = vld [vmem:[%s10394_s2 + $0x98] sm:$0xff] }
 0x97a   :  { %v2467_v58 = vpack.c.bf16 %v8920_v0, %v8918_v20  ;;  %v2317_v39 = vmul.f32 %v6204_v56, %v8144_v62  ;;  %v2318_v55 = vmul.f32 %v6205_v63, %v8146_v34  ;;  %v8950_v9 = vmul.f32 %v5728_v29, %v2302_v59 }
 0x97b   :  { %5737 = vrcp.f32 %v2383_v46  ;;  %v2384_v41 = vadd.f32 1e-06, %v2352_v1  ;;  %v4743_v16 = vpop.f32.mrb[204].mxu0  ;;  %v2301_v1 = vmul.f32 %v6206_v26, %v8149_v57 }
 0x97c   :  { %5739 = vrcp.f32 %v2367_v40  ;;  %v4744_v21 = vpop.f32.mrb[205].mxu0  ;;  %4773 = vmatprep.subr.bf16.mxu1 %v2467_v58  ;;  %v2369_v58 = vadd.f32 1e-06, %v2337_v8 }
 0x97d   :  { %v5730_v23 = vpop.eup %5729  ;;  %5741 = vrcp.f32 %v2384_v41  ;;  %v4745_v52 = vadd.f32 %v4744_v21, %v4743_v16  ;;  %v4746_v27 = vpop.f32.mrb[206].mxu0  ;;  %4774 = vmatpush3.bf16.msra.mxu1 %v2459_v31  ;;  %v2340_v21 = vmul.f32 %v8873_v33, %v8244_v44 }
 0x97e   :  { %v5732_v32 = vpop.eup %5731  ;;  %v4747_v22 = vpop.f32.mrb[207].mxu0  ;;  %v8952_v62 = vmul.f32 %v5730_v23, %v2317_v39  ;;  %5743 = vrcp.f32 %v2370_v17  ;;  %v6207_v17 = vld [vmem:[%s10394_s2 + $0x28] sm:$0xff] }
 0x97f   :  { %v5734_v61 = vpop.eup %5733  ;;  %v2353_v40 = vmul.f32 %v4745_v52, %v8212_v51  ;;  %v4748_v46 = vadd.f32 %v4747_v22, %v4746_v27  ;;  %v8957_v31 = vmul.f32 %v5732_v32, %v2301_v1  ;;  %v2339_v27 = vmul.f32 %v8871_v14, %v8251_v60  ;;  %v6208_v14 = vld [vmem:[%s10394_s2 + $0xa0] sm:$0xff] }
 0x980   :  { %v8954_v41 = vmul.f32 %v5734_v61, %v2318_v55  ;;  %v5736_v23 = vpop.eup %5735  ;;  %v2304_v22 = vmul.f32 %v6207_v17, %v8176_v43  ;;  %v2372_v39 = vadd.f32 1e-06, %v2340_v21  ;;  %v2319_v55 = vmul.f32 %v6208_v14, %v8178_v47  ;;  %v6209_v61 = vld [vmem:[%s10394_s2 + $0xa8] sm:$0xff]  ;;  %v6210_v43 = vld [vmem:[%s10394_s2 + $0x20] sm:$0xff] }
 0x981   :  { %v2385_v16 = vadd.f32 1e-06, %v2353_v40  ;;  %v2354_v34 = vmul.f32 %v4748_v46, %v8214_v37  ;;  %v2460_v8 = vpack.c.bf16 %v8950_v9, %v8957_v31  ;;  %v2320_v40 = vmul.f32 %v6209_v61, %v8180_v13  ;;  %v6213_v61 = vld [vmem:[%s10394_s2 + $0xb8] sm:$0xff] }
 0x982   :  { %v2468_v52 = vpack.c.bf16 %v8954_v41, %v8952_v62 }
 0x983   :  { %5745 = vrcp.f32 %v2385_v16  ;;  %v2386_v57 = vadd.f32 1e-06, %v2354_v34  ;;  %v4749_v29 = vpop.f32.mrb[208].mxu0  ;;  %v8984_v16 = vmul.f32 %v5736_v23, %v2304_v22  ;;  %v2371_v34 = vadd.f32 1e-06, %v2339_v27  ;;  %v6211_v22 = vld [vmem:[%s10394_s2 + $0x38] sm:$0xff] }
 0x984   :  { %5747 = vrcp.f32 %v2369_v58  ;;  %v4750_v48 = vpop.f32.mrb[209].mxu0  ;;  %4775 = vmatprep.subr.bf16.mxu1 %v2468_v52  ;;  %v2303_v58 = vmul.f32 %v6210_v43, %v8183_v35 }
 0x985   :  { %v5738_v59 = vpop.eup %5737  ;;  %5749 = vrcp.f32 %v2386_v57  ;;  %v4751_v32 = vadd.f32 %v4750_v48, %v4749_v29  ;;  %v4752_v33 = vpop.f32.mrb[210].mxu0  ;;  %4776 = vmatpush3.bf16.msra.mxu1 %v2460_v8  ;;  %v2342_v29 = vmul.f32 %v8877_v19, %v8278_v7 }
 0x986   :  { %v5740_v56 = vpop.eup %5739  ;;  %v4753_v63 = vpop.f32.mrb[211].mxu0  ;;  %v8986_v47 = vmul.f32 %v5738_v59, %v2319_v55  ;;  %5751 = vrcp.f32 %v2372_v39  ;;  %v2341_v59 = vmul.f32 %v8875_v15, %v8285_v24  ;;  %v6212_v15 = vld [vmem:[%s10394_s2 + $0xb0] sm:$0xff] }
 0x987   :  { %v5742_v46 = vpop.eup %5741  ;;  %v2355_v26 = vmul.f32 %v4751_v32, %v8246_v49  ;;  %v4754_v1 = vadd.f32 %v4753_v63, %v4752_v33  ;;  %v8991_v57 = vmul.f32 %v5740_v56, %v2303_v58  ;;  %v2306_v56 = vmul.f32 %v6211_v22, %v8210_v36  ;;  %v6214_v36 = vld [vmem:[%s10394_s2 + $0x30] sm:$0xff] }
 0x988   :  { %v8988_v21 = vmul.f32 %v5742_v46, %v2320_v40  ;;  %v5744_v48 = vpop.eup %5743  ;;  %v2374_v63 = vadd.f32 1e-06, %v2342_v29  ;;  %v2321_v55 = vmul.f32 %v6212_v15, %v8212_v51  ;;  %v2322_v40 = vmul.f32 %v6213_v61, %v8214_v37 }
 0x989   :  { %v2387_v52 = vadd.f32 1e-06, %v2355_v26  ;;  %v2356_v13 = vmul.f32 %v4754_v1, %v8248_v18  ;;  %v2461_v27 = vpack.c.bf16 %v8984_v16, %v8991_v57  ;;  %v11171_v26 = vld [vmem:[#allocation5_spill] sm:$0xff]  ;;  %v2305_v58 = vmul.f32 %v6214_v36, %v8217_v42  ;;  %v11175_v36 = vld [vmem:[#allocation8_spill] sm:$0xff] }
 0x98a   :  { %v2469_v8 = vpack.c.bf16 %v8988_v21, %v8986_v47 }
 0x98b   :  { %5753 = vrcp.f32 %v2387_v52  ;;  %v2388_v35 = vadd.f32 1e-06, %v2356_v13  ;;  %v4755_v23 = vpop.f32.mrb[212].mxu0  ;;  %v2373_v52 = vadd.f32 1e-06, %v2341_v59 }
 0x98c   :  { %5755 = vrcp.f32 %v2371_v34  ;;  %v4756_v32 = vpop.f32.mrb[213].mxu0  ;;  %4777 = vmatprep.subr.bf16.mxu1 %v2469_v8  ;;  %v9018_v34 = vmul.f32 %v5744_v48, %v2306_v56  ;;  %v11172_v8 = vld [vmem:[#allocation7_spill] sm:$0xff] }
 0x98d   :  { %v5746_v33 = vpop.eup %5745  ;;  %5757 = vrcp.f32 %v2388_v35  ;;  %v4757_v17 = vadd.f32 %v4756_v32, %v4755_v23  ;;  %v4758_v19 = vpop.f32.mrb[214].mxu0  ;;  %4778 = vmatpush3.bf16.msra.mxu1 %v2461_v27  ;;  %v11173_v23 = vld [vmem:[#allocation6_spill] sm:$0xff] }
 0x98e   :  { %v5748_v39 = vpop.eup %5747  ;;  %v4759_v14 = vpop.f32.mrb[215].mxu0  ;;  %v9020_v51 = vmul.f32 %v5746_v33, %v2321_v55  ;;  %5759 = vrcp.f32 %v2374_v63  ;;  %v2344_v27 = vmul.f32 %v8881_v6, %v11173_v23  ;;  %v6215_v63 = vld [vmem:[%s10394_s2 + $0x48] sm:$0xff] }
 0x98f   :  { %v5750_v46 = vpop.eup %5749  ;;  %v2357_v1 = vmul.f32 %v4757_v17, %v11171_v26  ;;  %v4760_v43 = vadd.f32 %v4759_v14, %v4758_v19  ;;  %v9025_v35 = vmul.f32 %v5748_v39, %v2305_v58  ;;  %v11174_v17 = vld [vmem:[#allocation11_spill] sm:$0xff]  ;;  %v2308_v14 = vmul.f32 %v6215_v63, %v8244_v44  ;;  %v6218_v44 = vld [vmem:[%s10394_s2 + $0x40] sm:$0xff] }
 0x990   :  { %v9022_v13 = vmul.f32 %v5750_v46, %v2322_v40  ;;  %v5752_v33 = vpop.eup %5751  ;;  %v2343_v19 = vmul.f32 %v8879_v2, %v11174_v17  ;;  %v2376_v55 = vadd.f32 1e-06, %v2344_v27  ;;  %v6216_v2 = vld [vmem:[%s10394_s2 + $0xc0] sm:$0xff]  ;;  %v6217_v46 = vld [vmem:[%s10394_s2 + $0xc8] sm:$0xff] }
 0x991   :  { %v2389_v29 = vadd.f32 1e-06, %v2357_v1  ;;  %v2358_v37 = vmul.f32 %v4760_v43, %v11172_v8  ;;  %v2462_v59 = vpack.c.bf16 %v9018_v34, %v9025_v35  ;;  %v2323_v40 = vmul.f32 %v6216_v2, %v8246_v49  ;;  %v11178_v63 = vld [vmem:[#allocation13_spill] sm:$0xff]  ;;  %v6219_v2 = vld [vmem:[%s10394_s2 + $0x58] sm:$0xff] }
 0x992   :  { %v2470_v32 = vpack.c.bf16 %v9022_v13, %v9020_v51  ;;  %v2324_v1 = vmul.f32 %v6217_v46, %v8248_v18  ;;  %v2375_v27 = vadd.f32 1e-06, %v2343_v19 }
 0x993   :  { %5761 = vrcp.f32 %v2389_v29  ;;  %v2390_v42 = vadd.f32 1e-06, %v2358_v37  ;;  %v4761_v48 = vpop.f32.mrb[216].mxu0  ;;  %v2307_v29 = vmul.f32 %v6218_v44, %v8251_v60  ;;  %v9052_v37 = vmul.f32 %v5752_v33, %v2308_v14 }
 0x994   :  { %5763 = vrcp.f32 %v2373_v52  ;;  %v4762_v22 = vpop.f32.mrb[217].mxu0  ;;  %4779 = vmatprep.subr.bf16.mxu1 %v2470_v32  ;;  %v2345_v14 = vmul.f32 %v8883_v38, %v11178_v63  ;;  %v6220_v38 = vld [vmem:[%s10394_s2 + $0xd0] sm:$0xff] }
 0x995   :  { %v5754_v56 = vpop.eup %5753  ;;  %5765 = vrcp.f32 %v2390_v42  ;;  %v4763_v39 = vadd.f32 %v4762_v22, %v4761_v48  ;;  %v4764_v6 = vpop.f32.mrb[218].mxu0  ;;  %4780 = vmatpush3.bf16.msra.mxu1 %v2462_v59  ;;  %v11176_v48 = vld [vmem:[#allocation9_spill] sm:$0xff]  ;;  %v11177_v22 = vld [vmem:[#allocation10_spill] sm:$0xff] }
 0x996   :  { %v5756_v15 = vpop.eup %5755  ;;  %v4765_v61 = vpop.f32.mrb[219].mxu0  ;;  %v9054_v49 = vmul.f32 %v5754_v56, %v2323_v40  ;;  %5767 = vrcp.f32 %v2376_v55  ;;  %v2310_v40 = vmul.f32 %v6219_v2, %v8278_v7  ;;  %v6222_v7 = vld [vmem:[%s10394_s2 + $0x50] sm:$0xff] }
 0x997   :  { %v5758_v43 = vpop.eup %5757  ;;  %v2359_v58 = vmul.f32 %v4763_v39, %v11175_v36  ;;  %v4766_v52 = vadd.f32 %v4765_v61, %v4764_v6  ;;  %v9059_v59 = vmul.f32 %v5756_v15, %v2307_v29  ;;  %v2346_v39 = vmul.f32 %v8885_v30, %v11177_v22 }
 0x998   :  { %v9056_v32 = vmul.f32 %v5758_v43, %v2324_v1  ;;  %v5760_v56 = vpop.eup %5759 }
 0x999   :  { %v2391_v42 = vadd.f32 1e-06, %v2359_v58  ;;  %v2360_v18 = vmul.f32 %v4766_v52, %v11176_v48  ;;  %v2463_v19 = vpack.c.bf16 %v9052_v37, %v9059_v59  ;;  %v2378_v1 = vadd.f32 1e-06, %v2346_v39  ;;  %v6221_v52 = vld [vmem:[%s10394_s2 + $0xd8] sm:$0xff] }
 0x99a   :  { %v2471_v6 = vpack.c.bf16 %v9056_v32, %v9054_v49  ;;  %v2325_v58 = vmul.f32 %v6220_v38, %v11171_v26  ;;  %v2326_v44 = vmul.f32 %v6221_v52, %v11172_v8  ;;  %v2309_v39 = vmul.f32 %v6222_v7, %v8285_v24  ;;  %v6225_v38 = vld [vmem:[%s10394_s2 + $0xe8] sm:$0xff] }
 0x99b   :  { %5769 = vrcp.f32 %v2391_v42  ;;  %v2392_v60 = vadd.f32 1e-06, %v2360_v18  ;;  %v4767_v33 = vpop.f32.mrb[220].mxu0 }
 0x99c   :  { %5771 = vrcp.f32 %v2375_v27  ;;  %v4768_v15 = vpop.f32.mrb[221].mxu0  ;;  %4781 = vmatprep.subr.bf16.mxu1 %v2471_v6  ;;  %v11179_v27 = vld [vmem:[#allocation15_spill] sm:$0xff]  ;;  %v9086_v6 = vmul.f32 %v5760_v56, %v2310_v40 }
 0x99d   :  { %v5762_v55 = vpop.eup %5761  ;;  %5773 = vrcp.f32 %v2392_v60  ;;  %v4769_v61 = vadd.f32 %v4768_v15, %v4767_v33  ;;  %v4770_v30 = vpop.f32.mrb[222].mxu0  ;;  %4782 = vmatpush3.bf16.msra.mxu1 %v2463_v19  ;;  %v2377_v60 = vadd.f32 1e-06, %v2345_v14  ;;  %v11182_v15 = vld [vmem:[#allocation12_spill] sm:$0xff] }
 0x99e   :  { %v5764_v46 = vpop.eup %5763  ;;  %v4771_v43 = vpop.f32.mrb[223].mxu0  ;;  %v9088_v26 = vmul.f32 %v5762_v55, %v2325_v58  ;;  %5775 = vrcp.f32 %v2378_v1  ;;  %v6223_v55 = vld [vmem:[%s10394_s2 + $0x68] sm:$0xff]  ;;  %v6224_v1 = vld [vmem:[%s10394_s2 + $0xe0] sm:$0xff]  ;;  %v2328_v58 = vmul.f32 %v6225_v38, %v11176_v48 }
 0x99f   :  { %v5766_v29 = vpop.eup %5765  ;;  %v2361_v42 = vmul.f32 %v4769_v61, %v11179_v27  ;;  %v4772_v18 = vadd.f32 %v4771_v43, %v4770_v30  ;;  %v9093_v2 = vmul.f32 %v5764_v46, %v2309_v39  ;;  %v2312_v40 = vmul.f32 %v6223_v55, %v11173_v23  ;;  %v6230_v55 = vld [vmem:[%s10394_s2 + $0x70] sm:$0xff]  ;;  %v11202_v38 = vld [vmem:[#allocation64_spill] sm:$0xff] }
 0x9a0   :  { %11180 = vst [vmem:[#allocation23_spill] sm:$0xff] %v9088_v26  ;;  %v9090_v33 = vmul.f32 %v5766_v29, %v2326_v44  ;;  %v5768_v56 = vpop.eup %5767  ;;  %v2327_v43 = vmul.f32 %v6224_v1, %v11175_v36  ;;  %v6226_v44 = vld [vmem:[%s10394_s2 + $0x60] sm:$0xff] }
 0x9a1   :  { %v2393_v19 = vadd.f32 1e-06, %v2361_v42  ;;  %v2362_v8 = vmul.f32 %v4772_v18, %v11182_v15  ;;  %v2464_v24 = vpack.c.bf16 %v9086_v6, %v9093_v2  ;;  %v2311_v23 = vmul.f32 %v6226_v44, %v11174_v17  ;;  %v6227_v17 = vld [vmem:[%s10394_s2 + $0x78] sm:$0xff]  ;;  %v11205_v44 = vld [vmem:[#allocation70_spill] sm:$0xff] }
 0x9a2   :  { %11181 = vst [vmem:[#allocation22_spill] sm:$0xff] %v9090_v33  ;;  %v2472_v61 = vpack.c.bf16 %v9090_v33, %v9088_v26  ;;  %v9115_v29 = vmul.f32 %v5768_v56, %v2312_v40  ;;  %v11227_v26 = vld [vmem:[#allocation37_spill] sm:$0xff] }
 0x9a3   :  { %5777 = vrcp.f32 %v2393_v19  ;;  %v2394_v30 = vadd.f32 1e-06, %v2362_v8  ;;  %v2314_v19 = vmul.f32 %v6227_v17, %v11177_v22  ;;  %v2313_v22 = vmul.f32 %v6230_v55, %v11178_v63  ;;  %v11191_v63 = vld [vmem:[#allocation53_spill] sm:$0xff] }
 0x9a4   :  { %5779 = vrcp.f32 %v2377_v60  ;;  %4783 = vmatprep.subr.bf16.mxu1 %v2472_v61  ;;  %11183 = vst [vmem:[#allocation25_spill] sm:$0xff] %v9115_v29  ;;  %v6228_v61 = vld [vmem:[%s10394_s2 + $0xf0] sm:$0xff]  ;;  %v11211_v17 = vld [vmem:[#allocation21_spill] sm:$0xff] }
 0x9a5   :  { %v5770_v14 = vpop.eup %5769  ;;  %5781 = vrcp.f32 %v2394_v30  ;;  %4784 = vmatpush3.bf16.msra.mxu1 %v2464_v24  ;;  %v2329_v30 = vmul.f32 %v6228_v61, %v11179_v27  ;;  %v6229_v24 = vld [vmem:[%s10394_s2 + $0xf8] sm:$0xff] }
 0x9a6   :  { %v5772_v46 = vpop.eup %5771  ;;  %v9117_v42 = vmul.f32 %v5770_v14, %v2327_v43  ;;  %v2330_v56 = vmul.f32 %v6229_v24, %v11182_v15 }
 0x9a7   :  { %v5774_v52 = vpop.eup %5773  ;;  %v9121_v36 = vmul.f32 %v5772_v46, %v2311_v23  ;;  %v11206_v23 = vld [vmem:[#allocation68_spill] sm:$0xff] }
 0x9a8   :  { %11184 = vst [vmem:[#allocation5_spill] sm:$0xff] %v9117_v42  ;;  %v9119_v18 = vmul.f32 %v5774_v52, %v2328_v58  ;;  %v5776_v39 = vpop.eup %5775  ;;  %v11203_v58 = vld [vmem:[#allocation65_spill] sm:$0xff]  ;;  %v11204_v52 = vld [vmem:[#allocation67_spill] sm:$0xff] }
 0x9a9   :  { %11186 = vst [vmem:[#allocation6_spill] sm:$0xff] %v9121_v36  ;;  %v2465_v48 = vpack.c.bf16 %v9115_v29, %v9121_v36  ;;  %v9143_v40 = vmul.f32 %v5776_v39, %v2314_v19  ;;  %v11209_v39 = vld [vmem:[#allocation19_spill] sm:$0xff]  ;;  %v11212_v19 = vld [vmem:[#allocation20_spill] sm:$0xff] }
 0x9aa   :  { %11185 = vst [vmem:[#allocation7_spill] sm:$0xff] %v9119_v18  ;;  %v2473_v7 = vpack.c.bf16 %v9119_v18, %v9117_v42 }
 0x9ab   :  { %11187 = vst [vmem:[#allocation11_spill] sm:$0xff] %v9143_v40 }
 0x9ac   :  { %4785 = vmatprep.subr.bf16.mxu1 %v2473_v7  ;;  %v11207_v7 = vld [vmem:[#allocation69_spill] sm:$0xff] }
 0x9ad   :  { %v5778_v60 = vpop.eup %5777  ;;  %4786 = vmatpush3.bf16.msra.mxu1 %v2465_v48  ;;  %v11208_v48 = vld [vmem:[#allocation71_spill] sm:$0xff] }
 0x9ae   :  { %v5780_v8 = vpop.eup %5779  ;;  %v9145_v46 = vmul.f32 %v5778_v60, %v2329_v30  ;;  %v11210_v60 = vld [vmem:[#allocation18_spill] sm:$0xff] }
 0x9af   :  { %v5782_v14 = vpop.eup %5781  ;;  %v9149_v27 = vmul.f32 %v5780_v8, %v2313_v22 }
 0x9b0   :  { %11188 = vst [vmem:[#allocation8_spill] sm:$0xff] %v9145_v46  ;;  %v9147_v1 = vmul.f32 %v5782_v14, %v2330_v56 }
 0x9b1   :  { %11190 = vst [vmem:[#allocation10_spill] sm:$0xff] %v9149_v27  ;;  %v2466_v15 = vpack.c.bf16 %v9143_v40, %v9149_v27 }
 0x9b2   :  { %11189 = vst [vmem:[#allocation9_spill] sm:$0xff] %v9147_v1  ;;  %v2474_v43 = vpack.c.bf16 %v9147_v1, %v9145_v46 }
 0x9b4   :  { %4787 = vmatprep.subr.bf16.mxu1 %v2474_v43 }
 0x9b5   :  { %4788 = vmatpush3.bf16.msra.mxu1 %v2466_v15 }
 0x9b8   :  { %2508 = vmatmul.mubr.bf16.vlgmr.msra.gmra.mrb[224].mxu1 %v8674_v53  ;;  %v11192_v53 = vld [vmem:[#allocation55_spill] sm:$0xff] }
 0x9b9   :  { %2515 = vmatprep.mubr.bf16.mxu1 %v8680_v25  ;;  %v11193_v25 = vld [vmem:[#allocation58_spill] sm:$0xff] }
 0x9c0   :  { %2516 = vmatmul.mubr.bf16.gmra.mrb[228].mxu1 %v8686_v50  ;;  %v11194_v50 = vld [vmem:[#allocation56_spill] sm:$0xff] }
 0x9c1   :  { %2523 = vmatprep.mubr.bf16.mxu1 %v8692_v4  ;;  %v11195_v4 = vld [vmem:[#allocation57_spill] sm:$0xff] }
 0x9c8   :  { %2524 = vmatmul.mubr.bf16.gmra.mrb[232].mxu1 %v8698_v3  ;;  %v11196_v3 = vld [vmem:[#allocation59_spill] sm:$0xff] }
 0x9c9   :  { %2531 = vmatprep.mubr.bf16.mxu1 %v8704_v12  ;;  %v11197_v12 = vld [vmem:[#allocation62_spill] sm:$0xff] }
 0x9d0   :  { %2532 = vmatmul.mubr.bf16.gmra.mrb[236].mxu1 %v8710_v54  ;;  %v11198_v54 = vld [vmem:[#allocation60_spill] sm:$0xff] }
 0x9d1   :  { %2539 = vmatprep.mubr.bf16.mxu1 %v8716_v5  ;;  %v11199_v5 = vld [vmem:[#allocation61_spill] sm:$0xff] }
 0x9d8   :  { %2540 = vmatmul.mubr.bf16.gmra.mrb[240].mxu1 %v8722_v45  ;;  %v11200_v45 = vld [vmem:[#allocation63_spill] sm:$0xff] }
 0x9d9   :  { %2547 = vmatprep.mubr.bf16.mxu1 %v8728_v10  ;;  %v11201_v10 = vld [vmem:[#allocation66_spill] sm:$0xff] }
 0x9e0   :  { %2548 = vmatmul.mubr.bf16.gmra.mrb[244].mxu1 %v11191_v63 }
 0x9e1   :  { %2555 = vmatprep.mubr.bf16.mxu1 %v11192_v53 }
 0x9e8   :  { %2556 = vmatmul.mubr.bf16.gmra.mrb[248].mxu1 %v11193_v25 }
 0x9e9   :  { %2563 = vmatprep.mubr.bf16.mxu1 %v11194_v50 }
 0x9f0   :  { %2564 = vmatmul.mubr.bf16.gmra.mrb[252].mxu1 %v11195_v4 }
 0x9f1   :  { %2571 = vmatprep.mubr.bf16.mxu1 %v11196_v3 }
 0x9f8   :  { %2572 = vmatmul.mubr.bf16.gmra.mrb[0].mxu1 %v11197_v12 }
 0x9f9   :  { %2579 = vmatprep.mubr.bf16.mxu1 %v11198_v54 }
 0xa00   :  { %2580 = vmatmul.mubr.bf16.gmra.mrb[4].mxu1 %v11199_v5 }
 0xa01   :  { %2587 = vmatprep.mubr.bf16.mxu1 %v11200_v45 }
 0xa08   :  { %2588 = vmatmul.mubr.bf16.gmra.mrb[8].mxu1 %v11201_v10 }
 0xa09   :  { %2595 = vmatprep.mubr.bf16.mxu1 %v11202_v38 }
 0xa10   :  { %2596 = vmatmul.mubr.bf16.gmra.mrb[12].mxu1 %v11203_v58 }
 0xa11   :  { %2603 = vmatprep.mubr.bf16.mxu1 %v11204_v52 }
 0xa18   :  { %2604 = vmatmul.mubr.bf16.gmra.mrb[16].mxu1 %v11205_v44 }
 0xa19   :  { %2611 = vmatprep.mubr.bf16.mxu1 %v11206_v23 }
 0xa20   :  { %2612 = vmatmul.mubr.bf16.gmra.mrb[20].mxu1 %v11207_v7 }
 0xa21   :  { %2619 = vmatprep.mubr.bf16.mxu1 %v11208_v48 }
 0xa28   :  { %2620 = vmatmul.mubr.bf16.gmra.mrb[24].mxu1 %v11209_v39 }
 0xa29   :  { %2627 = vmatprep.mubr.bf16.mxu1 %v11210_v60 }
 0xa30   :  { %2628 = vmatmul.mubr.bf16.gmra.mrb[28].mxu1 %v11211_v17 }
 0xa31   :  { %3181 = vmatprep.mubr.bf16.mxu1 %v11212_v19 }
 0xa8b   :  { %v4789_v8 = vpop.f32.mrb[224].mxu1 }
 0xa8c   :  { %v4790_v61 = vpop.f32.mrb[225].mxu1 }
 0xa8d   :  { %v4791_v30 = vadd.f32 %v4790_v61, %v4789_v8  ;;  %v4792_v24 = vpop.f32.mrb[226].mxu1 }
 0xa8e   :  { %v4793_v56 = vpop.f32.mrb[227].mxu1 }
 0xa8f   :  { %v4794_v14 = vadd.f32 %v4793_v56, %v4792_v24 }
 0xa93   :  { %v4795_v55 = vpop.f32.mrb[228].mxu1 }
 0xa94   :  { %v4796_v22 = vpop.f32.mrb[229].mxu1 }
 0xa95   :  { %v4797_v43 = vadd.f32 %v4796_v22, %v4795_v55  ;;  %v4798_v15 = vpop.f32.mrb[230].mxu1 }
 0xa96   :  { %v4799_v63 = vpop.f32.mrb[231].mxu1 }
 0xa97   :  { %v4800_v53 = vadd.f32 %v4799_v63, %v4798_v15 }
 0xa9b   :  { %v4801_v25 = vpop.f32.mrb[232].mxu1 }
 0xa9c   :  { %v4802_v50 = vpop.f32.mrb[233].mxu1 }
 0xa9d   :  { %v9187_v4 = vadd.f32 %v4802_v50, %v4801_v25  ;;  %v4804_v3 = vpop.f32.mrb[234].mxu1 }
 0xa9e   :  { %v4805_v12 = vpop.f32.mrb[235].mxu1 }
 0xa9f   :  { %v9189_v54 = vadd.f32 %v4805_v12, %v4804_v3 }
 0xaa3   :  { %v4807_v5 = vpop.f32.mrb[236].mxu1 }
 0xaa4   :  { %v4808_v45 = vpop.f32.mrb[237].mxu1 }
 0xaa5   :  { %v9191_v10 = vadd.f32 %v4808_v45, %v4807_v5  ;;  %v4810_v38 = vpop.f32.mrb[238].mxu1 }
 0xaa6   :  { %v4811_v58 = vpop.f32.mrb[239].mxu1 }
 0xaa7   :  { %v9193_v52 = vadd.f32 %v4811_v58, %v4810_v38 }
 0xaab   :  { %v4813_v44 = vpop.f32.mrb[240].mxu1 }
 0xaac   :  { %v4814_v23 = vpop.f32.mrb[241].mxu1 }
 0xaad   :  { %v9195_v7 = vadd.f32 %v4814_v23, %v4813_v44  ;;  %v4816_v48 = vpop.f32.mrb[242].mxu1  ;;  %v11213_v44 = vld [vmem:[#allocation24_spill] sm:$0xff] }
 0xaae   :  { %v4817_v39 = vpop.f32.mrb[243].mxu1  ;;  %v2669_v23 = vmul.f32 %v4794_v14, %v11213_v44 }
 0xaaf   :  { %v9197_v60 = vadd.f32 %v4817_v39, %v4816_v48  ;;  %v11214_v39 = vld [vmem:[#allocation27_spill] sm:$0xff] }
 0xab3   :  { %v4819_v17 = vpop.f32.mrb[244].mxu1 }
 0xab4   :  { %v4820_v19 = vpop.f32.mrb[245].mxu1 }
 0xab5   :  { %v9199_v8 = vadd.f32 %v4820_v19, %v4819_v17  ;;  %v4822_v61 = vpop.f32.mrb[246].mxu1  ;;  %v2668_v17 = vmul.f32 %v4791_v30, %v11214_v39  ;;  %v11218_v30 = vld [vmem:[#allocation31_spill] sm:$0xff] }
 0xab6   :  { %v4823_v24 = vpop.f32.mrb[247].mxu1  ;;  %v2670_v18 = vmul.f32 %v4797_v43, %v11218_v30 }
 0xab7   :  { %v9201_v56 = vadd.f32 %v4823_v24, %v4822_v61  ;;  %v2700_v46 = vadd.f32 1e-06, %v2668_v17 }
 0xabb   :  { %v4825_v55 = vpop.f32.mrb[248].mxu1 }
 0xabc   :  { %v4826_v22 = vpop.f32.mrb[249].mxu1 }
 0xabd   :  { %v9203_v15 = vadd.f32 %v4826_v22, %v4825_v55  ;;  %v4828_v63 = vpop.f32.mrb[250].mxu1  ;;  %v2701_v55 = vadd.f32 1e-06, %v2669_v23 }
 0xabe   :  { %v4829_v25 = vpop.f32.mrb[251].mxu1 }
 0xabf   :  { %v9205_v50 = vadd.f32 %v4829_v25, %v4828_v63  ;;  %v11215_v63 = vld [vmem:[#allocation26_spill] sm:$0xff]  ;;  %5783 = vrcp.f32 %v2701_v55  ;;  %v11220_v55 = vld [vmem:[#allocation33_spill] sm:$0xff] }
 0xac3   :  { %v4831_v3 = vpop.f32.mrb[252].mxu1 }
 0xac4   :  { %v4832_v12 = vpop.f32.mrb[253].mxu1 }
 0xac5   :  { %v9207_v5 = vadd.f32 %v4832_v12, %v4831_v3  ;;  %v4834_v45 = vpop.f32.mrb[254].mxu1  ;;  %v11216_v12 = vld [vmem:[#allocation29_spill] sm:$0xff] }
 0xac6   :  { %v4835_v38 = vpop.f32.mrb[255].mxu1 }
 0xac7   :  { %v9209_v58 = vadd.f32 %v4835_v38, %v4834_v45  ;;  %v11217_v45 = vld [vmem:[#allocation28_spill] sm:$0xff] }
 0xac8   :  { %v2671_v38 = vmul.f32 %v4800_v53, %v11217_v45  ;;  %v11221_v53 = vld [vmem:[#allocation32_spill] sm:$0xff] }
 0xaca   :  { %v2703_v42 = vadd.f32 1e-06, %v2671_v38 }
 0xacb   :  { %v4837_v48 = vpop.f32.mrb[0].mxu1 }
 0xacc   :  { %v4838_v19 = vpop.f32.mrb[1].mxu1 }
 0xacd   :  { %v4839_v61 = vadd.f32 %v4838_v19, %v4837_v48  ;;  %v4840_v24 = vpop.f32.mrb[2].mxu1 }
 0xace   :  { %v4841_v22 = vpop.f32.mrb[3].mxu1 }
 0xacf   :  { %v2684_v25 = vmul.f32 %v4839_v61, %v11215_v63  ;;  %v4842_v1 = vadd.f32 %v4841_v22, %v4840_v24  ;;  %v11219_v24 = vld [vmem:[#allocation30_spill] sm:$0xff] }
 0xad1   :  { %v2716_v3 = vadd.f32 1e-06, %v2684_v25  ;;  %v2685_v27 = vmul.f32 %v4842_v1, %v11216_v12  ;;  %v2702_v25 = vadd.f32 1e-06, %v2670_v18 }
 0xad3   :  { %5785 = vrcp.f32 %v2716_v3  ;;  %v2717_v14 = vadd.f32 1e-06, %v2685_v27  ;;  %v4843_v40 = vpop.f32.mrb[4].mxu1  ;;  %v2673_v27 = vmul.f32 %v9189_v54, %v11221_v53  ;;  %v5784_v3 = vpop.eup %5783 }
 0xad4   :  { %5787 = vrcp.f32 %v2700_v46  ;;  %v4844_v48 = vpop.f32.mrb[5].mxu1 }
 0xad5   :  { %5789 = vrcp.f32 %v2717_v14  ;;  %v4845_v23 = vadd.f32 %v4844_v48, %v4843_v40  ;;  %v4846_v19 = vpop.f32.mrb[6].mxu1  ;;  %v11222_v40 = vld [vmem:[#allocation35_spill] sm:$0xff] }
 0xad6   :  { %v4847_v61 = vpop.f32.mrb[7].mxu1  ;;  %5791 = vrcp.f32 %v2703_v42  ;;  %v2672_v38 = vmul.f32 %v9187_v4, %v11222_v40  ;;  %v6231_v42 = vld [vmem:[%s10395_s3 + $0x8] sm:$0xff] }
 0xad7   :  { %v2686_v17 = vmul.f32 %v4845_v23, %v11219_v24  ;;  %v4848_v22 = vadd.f32 %v4847_v61, %v4846_v19  ;;  %v2637_v19 = vmul.f32 %v6231_v42, %v11213_v44  ;;  %v2705_v61 = vadd.f32 1e-06, %v2673_v27  ;;  %v6234_v44 = vld [vmem:[%s10395_s3] sm:$0xff] }
 0xad8   :  { %v2636_v27 = vmul.f32 %v6234_v44, %v11214_v39  ;;  %v2704_v29 = vadd.f32 1e-06, %v2672_v38 }
 0xad9   :  { %v2718_v1 = vadd.f32 1e-06, %v2686_v17  ;;  %v2687_v36 = vmul.f32 %v4848_v22, %v11220_v55  ;;  %v6232_v17 = vld [vmem:[%s10395_s3 + $0x80] sm:$0xff]  ;;  %v6233_v22 = vld [vmem:[%s10395_s3 + $0x88] sm:$0xff]  ;;  %v9240_v42 = vmul.f32 %v5784_v3, %v2637_v19  ;;  %v11230_v19 = vld [vmem:[#allocation39_spill] sm:$0xff] }
 0xada   :  { %v2652_v4 = vmul.f32 %v6232_v17, %v11215_v63 }
 0xadb   :  { %5793 = vrcp.f32 %v2718_v1  ;;  %v2719_v46 = vadd.f32 1e-06, %v2687_v36  ;;  %v4849_v43 = vpop.f32.mrb[8].mxu1  ;;  %11224 = vst [vmem:[#allocation13_spill] sm:$0xff] %v9240_v42 }
 0xadc   :  { %5795 = vrcp.f32 %v2702_v25  ;;  %v4850_v14 = vpop.f32.mrb[9].mxu1  ;;  %v2653_v25 = vmul.f32 %v6233_v22, %v11216_v12 }
 0xadd   :  { %v5786_v48 = vpop.eup %5785  ;;  %5797 = vrcp.f32 %v2719_v46  ;;  %v4851_v23 = vadd.f32 %v4850_v14, %v4849_v43  ;;  %v4852_v18 = vpop.f32.mrb[10].mxu1  ;;  %v11223_v46 = vld [vmem:[#allocation34_spill] sm:$0xff] }
 0xade   :  { %v5788_v54 = vpop.eup %5787  ;;  %v4853_v36 = vpop.f32.mrb[11].mxu1  ;;  %v9242_v63 = vmul.f32 %v5786_v48, %v2652_v4  ;;  %5799 = vrcp.f32 %v2705_v61  ;;  %v2674_v4 = vmul.f32 %v9191_v10, %v11230_v19 }
 0xadf   :  { %v5790_v1 = vpop.eup %5789  ;;  %v2688_v43 = vmul.f32 %v4851_v23, %v11223_v46  ;;  %v4854_v14 = vadd.f32 %v4853_v36, %v4852_v18  ;;  %v9247_v22 = vmul.f32 %v5788_v54, %v2636_v27  ;;  %v11229_v23 = vld [vmem:[#allocation36_spill] sm:$0xff] }
 0xae0   :  { %11225 = vst [vmem:[#allocation15_spill] sm:$0xff] %v9242_v63  ;;  %v9244_v17 = vmul.f32 %v5790_v1, %v2653_v25  ;;  %v2675_v18 = vmul.f32 %v9193_v52, %v11229_v23  ;;  %v5792_v48 = vpop.eup %5791  ;;  %v6237_v27 = vld [vmem:[%s10395_s3 + $0x98] sm:$0xff] }
 0xae1   :  { %v2720_v33 = vadd.f32 1e-06, %v2688_v43  ;;  %v2689_v12 = vmul.f32 %v4854_v14, %v11227_v26  ;;  %11228 = vst [vmem:[#allocation53_spill] sm:$0xff] %v9247_v22  ;;  %v2796_v38 = vpack.c.bf16 %v9240_v42, %v9247_v22 }
 0xae2   :  { %11226 = vst [vmem:[#allocation12_spill] sm:$0xff] %v9244_v17  ;;  %v2804_v36 = vpack.c.bf16 %v9244_v17, %v9242_v63  ;;  %v2707_v14 = vadd.f32 1e-06, %v2675_v18  ;;  %v11235_v63 = vld [vmem:[#allocation41_spill] sm:$0xff] }
 0xae3   :  { %5801 = vrcp.f32 %v2720_v33  ;;  %v2721_v39 = vadd.f32 1e-06, %v2689_v12  ;;  %v4855_v3 = vpop.f32.mrb[12].mxu1  ;;  %v6235_v33 = vld [vmem:[%s10395_s3 + $0x18] sm:$0xff]  ;;  %v2655_v12 = vmul.f32 %v6237_v27, %v11220_v55 }
 0xae4   :  { %5803 = vrcp.f32 %v2704_v29  ;;  %v4856_v54 = vpop.f32.mrb[13].mxu1  ;;  %4885 = vmatprep.subr.bf16.mxu0 %v2804_v36  ;;  %v2639_v1 = vmul.f32 %v6235_v33, %v11217_v45  ;;  %v6236_v29 = vld [vmem:[%s10395_s3 + $0x90] sm:$0xff]  ;;  %v2706_v33 = vadd.f32 1e-06, %v2674_v4 }
 0xae5   :  { %v5794_v61 = vpop.eup %5793  ;;  %5805 = vrcp.f32 %v2721_v39  ;;  %v4857_v25 = vadd.f32 %v4856_v54, %v4855_v3  ;;  %v4858_v52 = vpop.f32.mrb[14].mxu1  ;;  %4886 = vmatpush3.bf16.msra.mxu0 %v2796_v38  ;;  %v2654_v10 = vmul.f32 %v6236_v29, %v11219_v24  ;;  %v11231_v39 = vld [vmem:[#allocation38_spill] sm:$0xff] }
 0xae6   :  { %v5796_v43 = vpop.eup %5795  ;;  %v4859_v44 = vpop.f32.mrb[15].mxu1  ;;  %v6238_v45 = vld [vmem:[%s10395_s3 + $0x10] sm:$0xff]  ;;  %v9274_v54 = vmul.f32 %v5792_v48, %v2639_v1  ;;  %5807 = vrcp.f32 %v2707_v14 }
 0xae7   :  { %v5798_v36 = vpop.eup %5797  ;;  %v2690_v3 = vmul.f32 %v4857_v25, %v11231_v39  ;;  %v4860_v38 = vadd.f32 %v4859_v44, %v4858_v52  ;;  %v2638_v18 = vmul.f32 %v6238_v45, %v11218_v30  ;;  %v9276_v24 = vmul.f32 %v5794_v61, %v2654_v10  ;;  %v11237_v25 = vld [vmem:[#allocation40_spill] sm:$0xff]  ;;  %v11238_v1 = vld [vmem:[#allocation43_spill] sm:$0xff] }
 0xae8   :  { %11232 = vst [vmem:[#allocation55_spill] sm:$0xff] %v9274_v54  ;;  %v9278_v29 = vmul.f32 %v5798_v36, %v2655_v12  ;;  %v2677_v52 = vmul.f32 %v9197_v60, %v11237_v25  ;;  %v5800_v61 = vpop.eup %5799  ;;  %v2676_v10 = vmul.f32 %v9195_v7, %v11238_v1  ;;  %v6240_v7 = vld [vmem:[%s10395_s3 + $0xa0] sm:$0xff] }
 0xae9   :  { %11233 = vst [vmem:[#allocation58_spill] sm:$0xff] %v9276_v24  ;;  %v2722_v17 = vadd.f32 1e-06, %v2690_v3  ;;  %v2691_v55 = vmul.f32 %v4860_v38, %v11235_v63  ;;  %v9281_v27 = vmul.f32 %v5796_v43, %v2638_v18  ;;  %v2656_v18 = vmul.f32 %v6240_v7, %v11223_v46 }
 0xaea   :  { %11234 = vst [vmem:[#allocation56_spill] sm:$0xff] %v9278_v29  ;;  %v2805_v44 = vpack.c.bf16 %v9278_v29, %v9276_v24  ;;  %v2709_v38 = vadd.f32 1e-06, %v2677_v52  ;;  %v11243_v24 = vld [vmem:[#allocation45_spill] sm:$0xff] }
 0xaeb   :  { %11236 = vst [vmem:[#allocation57_spill] sm:$0xff] %v9281_v27  ;;  %5809 = vrcp.f32 %v2722_v17  ;;  %v2723_v30 = vadd.f32 1e-06, %v2691_v55  ;;  %v4861_v48 = vpop.f32.mrb[16].mxu1  ;;  %v2797_v4 = vpack.c.bf16 %v9274_v54, %v9281_v27  ;;  %v6239_v17 = vld [vmem:[%s10395_s3 + $0x28] sm:$0xff] }
 0xaec   :  { %5811 = vrcp.f32 %v2706_v33  ;;  %v4862_v43 = vpop.f32.mrb[17].mxu1  ;;  %4887 = vmatprep.subr.bf16.mxu0 %v2805_v44  ;;  %v2641_v36 = vmul.f32 %v6239_v17, %v11221_v53  ;;  %v6241_v33 = vld [vmem:[%s10395_s3 + $0xa8] sm:$0xff]  ;;  %v6242_v53 = vld [vmem:[%s10395_s3 + $0x20] sm:$0xff]  ;;  %v2708_v17 = vadd.f32 1e-06, %v2676_v10 }
 0xaed   :  { %v5802_v14 = vpop.eup %5801  ;;  %5813 = vrcp.f32 %v2723_v30  ;;  %v4863_v12 = vadd.f32 %v4862_v43, %v4861_v48  ;;  %v4864_v60 = vpop.f32.mrb[18].mxu1  ;;  %4888 = vmatpush3.bf16.msra.mxu0 %v2797_v4  ;;  %v2657_v55 = vmul.f32 %v6241_v33, %v11227_v26  ;;  %v11239_v30 = vld [vmem:[#allocation42_spill] sm:$0xff]  ;;  %v2640_v52 = vmul.f32 %v6242_v53, %v11222_v40 }
 0xaee   :  { %v5804_v3 = vpop.eup %5803  ;;  %v4865_v45 = vpop.f32.mrb[19].mxu1  ;;  %v9308_v43 = vmul.f32 %v5800_v61, %v2641_v36  ;;  %v9310_v46 = vmul.f32 %v5802_v14, %v2656_v18  ;;  %5815 = vrcp.f32 %v2709_v38  ;;  %v11246_v36 = vld [vmem:[#allocation47_spill] sm:$0xff] }
 0xaef   :  { %v5806_v44 = vpop.eup %5805  ;;  %v2692_v48 = vmul.f32 %v4863_v12, %v11239_v30  ;;  %v4866_v4 = vadd.f32 %v4865_v45, %v4864_v60  ;;  %v9315_v33 = vmul.f32 %v5804_v3, %v2640_v52  ;;  %v11245_v12 = vld [vmem:[#allocation44_spill] sm:$0xff]  ;;  %v2678_v18 = vmul.f32 %v9199_v8, %v11246_v36  ;;  %v6244_v8 = vld [vmem:[%s10395_s3 + $0xb0] sm:$0xff] }
 0xaf0   :  { %11240 = vst [vmem:[#allocation59_spill] sm:$0xff] %v9308_v43  ;;  %11241 = vst [vmem:[#allocation62_spill] sm:$0xff] %v9310_v46  ;;  %v9312_v7 = vmul.f32 %v5806_v44, %v2657_v55  ;;  %v2679_v60 = vmul.f32 %v9201_v56, %v11245_v12  ;;  %v5808_v14 = vpop.eup %5807  ;;  %v2658_v52 = vmul.f32 %v6244_v8, %v11231_v39 }
 0xaf1   :  { %v2724_v29 = vadd.f32 1e-06, %v2692_v48  ;;  %v2693_v26 = vmul.f32 %v4866_v4, %v11243_v24  ;;  %11244 = vst [vmem:[#allocation61_spill] sm:$0xff] %v9315_v33  ;;  %v2798_v10 = vpack.c.bf16 %v9308_v43, %v9315_v33 }
 0xaf2   :  { %11242 = vst [vmem:[#allocation60_spill] sm:$0xff] %v9312_v7  ;;  %v2806_v45 = vpack.c.bf16 %v9312_v7, %v9310_v46  ;;  %v2711_v4 = vadd.f32 1e-06, %v2679_v60  ;;  %v11251_v46 = vld [vmem:[#allocation49_spill] sm:$0xff] }
 0xaf3   :  { %5817 = vrcp.f32 %v2724_v29  ;;  %v2725_v40 = vadd.f32 1e-06, %v2693_v26  ;;  %v4867_v61 = vpop.f32.mrb[20].mxu1  ;;  %v6243_v29 = vld [vmem:[%s10395_s3 + $0x38] sm:$0xff] }
 0xaf4   :  { %5819 = vrcp.f32 %v2708_v17  ;;  %v4868_v3 = vpop.f32.mrb[21].mxu1  ;;  %4889 = vmatprep.subr.bf16.mxu0 %v2806_v45  ;;  %v2643_v44 = vmul.f32 %v6243_v29, %v11229_v23  ;;  %v6245_v17 = vld [vmem:[%s10395_s3 + $0xb8] sm:$0xff]  ;;  %v6246_v23 = vld [vmem:[%s10395_s3 + $0x30] sm:$0xff]  ;;  %v2710_v29 = vadd.f32 1e-06, %v2678_v18 }
 0xaf5   :  { %v5810_v38 = vpop.eup %5809  ;;  %5821 = vrcp.f32 %v2725_v40  ;;  %v4869_v55 = vadd.f32 %v4868_v3, %v4867_v61  ;;  %v4870_v56 = vpop.f32.mrb[22].mxu1  ;;  %4890 = vmatpush3.bf16.msra.mxu0 %v2798_v10  ;;  %v2659_v26 = vmul.f32 %v6245_v17, %v11235_v63  ;;  %v11247_v40 = vld [vmem:[#allocation46_spill] sm:$0xff]  ;;  %v2642_v60 = vmul.f32 %v6246_v23, %v11230_v19 }
 0xaf6   :  { %v5812_v48 = vpop.eup %5811  ;;  %v4871_v53 = vpop.f32.mrb[23].mxu1  ;;  %v9342_v3 = vmul.f32 %v5808_v14, %v2643_v44  ;;  %v9344_v39 = vmul.f32 %v5810_v38, %v2658_v52  ;;  %5823 = vrcp.f32 %v2711_v4  ;;  %v11254_v44 = vld [vmem:[#allocation16_spill] sm:$0xff] }
 0xaf7   :  { %v5814_v45 = vpop.eup %5813  ;;  %v2694_v61 = vmul.f32 %v4869_v55, %v11247_v40  ;;  %v4872_v10 = vadd.f32 %v4871_v53, %v4870_v56  ;;  %v9349_v17 = vmul.f32 %v5812_v48, %v2642_v60  ;;  %v11253_v55 = vld [vmem:[#allocation48_spill] sm:$0xff]  ;;  %v2680_v52 = vmul.f32 %v9203_v15, %v11254_v44 }
 0xaf8   :  { %11248 = vst [vmem:[#allocation63_spill] sm:$0xff] %v9342_v3  ;;  %11249 = vst [vmem:[#allocation66_spill] sm:$0xff] %v9344_v39  ;;  %v9346_v8 = vmul.f32 %v5814_v45, %v2659_v26  ;;  %v2681_v56 = vmul.f32 %v9205_v50, %v11253_v55  ;;  %v5816_v38 = vpop.eup %5815  ;;  %v6248_v15 = vld [vmem:[%s10395_s3 + $0xc0] sm:$0xff] }
 0xaf9   :  { %v2726_v7 = vadd.f32 1e-06, %v2694_v61  ;;  %v2695_v63 = vmul.f32 %v4872_v10, %v11251_v46  ;;  %11252 = vst [vmem:[#allocation65_spill] sm:$0xff] %v9349_v17  ;;  %v2799_v18 = vpack.c.bf16 %v9342_v3, %v9349_v17  ;;  %v2660_v60 = vmul.f32 %v6248_v15, %v11239_v30 }
 0xafa   :  { %11250 = vst [vmem:[#allocation64_spill] sm:$0xff] %v9346_v8  ;;  %v2807_v53 = vpack.c.bf16 %v9346_v8, %v9344_v39  ;;  %v2713_v10 = vadd.f32 1e-06, %v2681_v56  ;;  %v11259_v39 = vld [vmem:[#allocation50_spill] sm:$0xff] }
 0xafb   :  { %5825 = vrcp.f32 %v2726_v7  ;;  %v2727_v19 = vadd.f32 1e-06, %v2695_v63  ;;  %v4873_v14 = vpop.f32.mrb[24].mxu1  ;;  %v6247_v7 = vld [vmem:[%s10395_s3 + $0x48] sm:$0xff] }
 0xafc   :  { %5827 = vrcp.f32 %v2710_v29  ;;  %v4874_v48 = vpop.f32.mrb[25].mxu1  ;;  %4891 = vmatprep.subr.bf16.mxu0 %v2807_v53  ;;  %v2645_v45 = vmul.f32 %v6247_v7, %v11237_v25  ;;  %v6249_v29 = vld [vmem:[%s10395_s3 + $0xc8] sm:$0xff]  ;;  %v6250_v25 = vld [vmem:[%s10395_s3 + $0x40] sm:$0xff]  ;;  %v2712_v7 = vadd.f32 1e-06, %v2680_v52 }
 0xafd   :  { %v5818_v4 = vpop.eup %5817  ;;  %5829 = vrcp.f32 %v2727_v19  ;;  %v4875_v26 = vadd.f32 %v4874_v48, %v4873_v14  ;;  %v4876_v50 = vpop.f32.mrb[26].mxu1  ;;  %4892 = vmatpush3.bf16.msra.mxu0 %v2799_v18  ;;  %v2661_v63 = vmul.f32 %v6249_v29, %v11243_v24  ;;  %v11255_v19 = vld [vmem:[#allocation14_spill] sm:$0xff]  ;;  %v2644_v56 = vmul.f32 %v6250_v25, %v11238_v1 }
 0xafe   :  { %v5820_v61 = vpop.eup %5819  ;;  %v4877_v23 = vpop.f32.mrb[27].mxu1  ;;  %v9376_v48 = vmul.f32 %v5816_v38, %v2645_v45  ;;  %v9378_v30 = vmul.f32 %v5818_v4, %v2660_v60  ;;  %5831 = vrcp.f32 %v2713_v10  ;;  %v11262_v45 = vld [vmem:[#allocation52_spill] sm:$0xff] }
 0xaff   :  { %v5822_v53 = vpop.eup %5821  ;;  %v2696_v14 = vmul.f32 %v4875_v26, %v11255_v19  ;;  %v4878_v18 = vadd.f32 %v4877_v23, %v4876_v50  ;;  %v9383_v29 = vmul.f32 %v5820_v61, %v2644_v56  ;;  %v11261_v26 = vld [vmem:[#allocation17_spill] sm:$0xff]  ;;  %v2682_v60 = vmul.f32 %v9207_v5, %v11262_v45  ;;  %v6252_v5 = vld [vmem:[%s10395_s3 + $0xd0] sm:$0xff] }
 0xb00   :  { %11256 = vst [vmem:[#allocation67_spill] sm:$0xff] %v9376_v48  ;;  %11257 = vst [vmem:[#allocation70_spill] sm:$0xff] %v9378_v30  ;;  %v9380_v15 = vmul.f32 %v5822_v53, %v2661_v63  ;;  %v2683_v50 = vmul.f32 %v9209_v58, %v11261_v26  ;;  %v5824_v4 = vpop.eup %5823  ;;  %v2662_v56 = vmul.f32 %v6252_v5, %v11247_v40 }
 0xb01   :  { %v2728_v8 = vadd.f32 1e-06, %v2696_v14  ;;  %v2697_v24 = vmul.f32 %v4878_v18, %v11259_v39  ;;  %11260 = vst [vmem:[#allocation69_spill] sm:$0xff] %v9383_v29  ;;  %v2800_v52 = vpack.c.bf16 %v9376_v48, %v9383_v29 }
 0xb02   :  { %11258 = vst [vmem:[#allocation68_spill] sm:$0xff] %v9380_v15  ;;  %v2808_v23 = vpack.c.bf16 %v9380_v15, %v9378_v30  ;;  %v2715_v18 = vadd.f32 1e-06, %v2683_v50  ;;  %v11267_v30 = vld [vmem:[#allocation54_spill] sm:$0xff] }
 0xb03   :  { %5833 = vrcp.f32 %v2728_v8  ;;  %v2729_v1 = vadd.f32 1e-06, %v2697_v24  ;;  %v4879_v38 = vpop.f32.mrb[28].mxu1  ;;  %v6251_v8 = vld [vmem:[%s10395_s3 + $0x58] sm:$0xff] }
 0xb04   :  { %5835 = vrcp.f32 %v2712_v7  ;;  %v4880_v61 = vpop.f32.mrb[29].mxu1  ;;  %4893 = vmatprep.subr.bf16.mxu0 %v2808_v23  ;;  %v2647_v53 = vmul.f32 %v6251_v8, %v11245_v12  ;;  %v6253_v7 = vld [vmem:[%s10395_s3 + $0xd8] sm:$0xff]  ;;  %v6254_v12 = vld [vmem:[%s10395_s3 + $0x50] sm:$0xff]  ;;  %v2714_v8 = vadd.f32 1e-06, %v2682_v60 }
 0xb05   :  { %v5826_v10 = vpop.eup %5825  ;;  %5837 = vrcp.f32 %v2729_v1  ;;  %v4881_v63 = vadd.f32 %v4880_v61, %v4879_v38  ;;  %v4882_v58 = vpop.f32.mrb[30].mxu1  ;;  %4894 = vmatpush3.bf16.msra.mxu0 %v2800_v52  ;;  %v2663_v24 = vmul.f32 %v6253_v7, %v11251_v46  ;;  %v11263_v1 = vld [vmem:[#allocation51_spill] sm:$0xff]  ;;  %v2646_v50 = vmul.f32 %v6254_v12, %v11246_v36 }
 0xb06   :  { %v5828_v14 = vpop.eup %5827  ;;  %v4883_v25 = vpop.f32.mrb[31].mxu1  ;;  %v9410_v61 = vmul.f32 %v5824_v4, %v2647_v53  ;;  %v9412_v40 = vmul.f32 %v5826_v10, %v2662_v56  ;;  %5839 = vrcp.f32 %v2715_v18  ;;  %v6255_v10 = vld [vmem:[%s10395_s3 + $0x68] sm:$0xff] }
 0xb07   :  { %v5830_v23 = vpop.eup %5829  ;;  %v2698_v38 = vmul.f32 %v4881_v63, %v11263_v1  ;;  %v4884_v52 = vadd.f32 %v4883_v25, %v4882_v58  ;;  %v9417_v7 = vmul.f32 %v5828_v14, %v2646_v50  ;;  %v2649_v53 = vmul.f32 %v6255_v10, %v11253_v55  ;;  %v6257_v25 = vld [vmem:[%s10395_s3 + $0xe8] sm:$0xff] }
 0xb08   :  { %11264 = vst [vmem:[#allocation71_spill] sm:$0xff] %v9410_v61  ;;  %11265 = vst [vmem:[#allocation19_spill] sm:$0xff] %v9412_v40  ;;  %v9414_v5 = vmul.f32 %v5830_v23, %v2663_v24  ;;  %v5832_v4 = vpop.eup %5831  ;;  %v2665_v56 = vmul.f32 %v6257_v25, %v11259_v39  ;;  %v6258_v23 = vld [vmem:[%s10395_s3 + $0x60] sm:$0xff] }
 0xb09   :  { %v2730_v15 = vadd.f32 1e-06, %v2698_v38  ;;  %v2699_v46 = vmul.f32 %v4884_v52, %v11267_v30  ;;  %11268 = vst [vmem:[#allocation21_spill] sm:$0xff] %v9417_v7  ;;  %v2801_v36 = vpack.c.bf16 %v9410_v61, %v9417_v7  ;;  %v2648_v55 = vmul.f32 %v6258_v23, %v11254_v44  ;;  %v6259_v44 = vld [vmem:[%s10395_s3 + $0x78] sm:$0xff] }
 0xb0a   :  { %11266 = vst [vmem:[#allocation18_spill] sm:$0xff] %v9414_v5  ;;  %v2809_v63 = vpack.c.bf16 %v9414_v5, %v9412_v40  ;;  %v9439_v38 = vmul.f32 %v5832_v4, %v2649_v53  ;;  %v9494_v23 = vld [vmem:[%s10392_s0 + $0x10] ss:$8 sps:$4 sm:$0xff]   ;;  %v9626_v5 = vld [vmem:[%s10392_s0 + $0xc0] ss:$8 sps:$4 sm:$0xff]  }
 0xb0b   :  { %5841 = vrcp.f32 %v2730_v15  ;;  %v2731_v58 = vadd.f32 1e-06, %v2699_v46  ;;  %v6256_v15 = vld [vmem:[%s10395_s3 + $0xe0] sm:$0xff]  ;;  %11291 = vst [vmem:[#allocation47_spill] sm:$0xff] %v9626_v5  ;;  %v9632_v40 = vld [vmem:[%s10392_s0 + $0xd4] ss:$8 sps:$4 sm:$0xff]  }
 0xb0c   :  { %5843 = vrcp.f32 %v2714_v8  ;;  %4895 = vmatprep.subr.bf16.mxu0 %v2809_v63  ;;  %v2664_v18 = vmul.f32 %v6256_v15, %v11255_v19  ;;  %11269 = vst [vmem:[#allocation20_spill] sm:$0xff] %v9439_v38  ;;  %v2651_v63 = vmul.f32 %v6259_v44, %v11261_v26  ;;  %v9530_v44 = vld [vmem:[%s10392_s0 + $0x40] ss:$8 sps:$4 sm:$0xff]   ;;  %11292 = vst [vmem:[#allocation46_spill] sm:$0xff] %v9632_v40  ;;  %v9662_v61 = vld [vmem:[%s10392_s0 + $0xf0] ss:$8 sps:$4 sm:$0xff]  }
 0xb0d   :  { %v5834_v60 = vpop.eup %5833  ;;  %5845 = vrcp.f32 %v2731_v58  ;;  %4896 = vmatpush3.bf16.msra.mxu0 %v2801_v36  ;;  %v6260_v36 = vld [vmem:[%s10395_s3 + $0xf0] sm:$0xff]  ;;  %11297 = vst [vmem:[#allocation50_spill] sm:$0xff] %v9662_v61 }
 0xb0e   :  { %v5836_v14 = vpop.eup %5835  ;;  %v9441_v52 = vmul.f32 %v5834_v60, %v2664_v18  ;;  %v2666_v4 = vmul.f32 %v6260_v36, %v11263_v1  ;;  %v6261_v60 = vld [vmem:[%s10395_s3 + $0xf8] sm:$0xff]  ;;  %v9548_v36 = vld [vmem:[%s10392_s0 + $0x64] ss:$8 sps:$4 sm:$0xff]  }
 0xb0f   :  { %v5838_v24 = vpop.eup %5837  ;;  %v9445_v19 = vmul.f32 %v5836_v14, %v2648_v55  ;;  %v2667_v10 = vmul.f32 %v6261_v60, %v11267_v30  ;;  %v6262_v14 = vld [vmem:[%s10395_s3 + $0x70] sm:$0xff]  ;;  %v9500_v55 = vld [vmem:[%s10392_s0 + $0x24] ss:$8 sps:$4 sm:$0xff]   ;;  %11278 = vst [vmem:[#allocation32_spill] sm:$0xff] %v9548_v36 }
 0xb10   :  { %11270 = vst [vmem:[#allocation24_spill] sm:$0xff] %v9441_v52  ;;  %v9443_v12 = vmul.f32 %v5838_v24, %v2665_v56  ;;  %v5840_v8 = vpop.eup %5839  ;;  %v2650_v26 = vmul.f32 %v6262_v14, %v11262_v45  ;;  %v9482_v45 = vld [vmem:[%s10392_s0] ss:$8 sps:$4 sm:$0xff]   ;;  %v9488_v24 = vld [vmem:[%s10392_s0 + $0x14] ss:$8 sps:$4 sm:$0xff]  }
 0xb11   :  { %11272 = vst [vmem:[#allocation26_spill] sm:$0xff] %v9445_v19  ;;  %v2802_v39 = vpack.c.bf16 %v9439_v38, %v9445_v19  ;;  %v9467_v15 = vmul.f32 %v5840_v8, %v2651_v63  ;;  %v9518_v8 = vld [vmem:[%s10392_s0 + $0x30] ss:$8 sps:$4 sm:$0xff]   ;;  %v9536_v63 = vld [vmem:[%s10392_s0 + $0x54] ss:$8 sps:$4 sm:$0xff]  }
 0xb12   :  { %11271 = vst [vmem:[#allocation27_spill] sm:$0xff] %v9443_v12  ;;  %v2810_v50 = vpack.c.bf16 %v9443_v12, %v9441_v52  ;;  %v9560_v60 = vld [vmem:[%s10392_s0 + $0x74] ss:$8 sps:$4 sm:$0xff]   ;;  %v9578_v14 = vld [vmem:[%s10392_s0 + $0x80] ss:$8 sps:$4 sm:$0xff]  }
 0xb13   :  { %11273 = vst [vmem:[#allocation29_spill] sm:$0xff] %v9467_v15  ;;  %11280 = vst [vmem:[#allocation34_spill] sm:$0xff] %v9560_v60  ;;  %v9614_v12 = vld [vmem:[%s10392_s0 + $0xb0] ss:$8 sps:$4 sm:$0xff]   ;;  %v9620_v52 = vld [vmem:[%s10392_s0 + $0xc4] ss:$8 sps:$4 sm:$0xff]  }
 0xb14   :  { %4897 = vmatprep.subr.bf16.mxu0 %v2810_v50  ;;  %v9506_v50 = vld [vmem:[%s10392_s0 + $0x20] ss:$8 sps:$4 sm:$0xff]   ;;  %11283 = vst [vmem:[#allocation39_spill] sm:$0xff] %v9578_v14  ;;  %11289 = vst [vmem:[#allocation45_spill] sm:$0xff] %v9614_v12  ;;  %v9656_v19 = vld [vmem:[%s10392_s0 + $0xf4] ss:$8 sps:$4 sm:$0xff]  }
 0xb15   :  { %v5842_v46 = vpop.eup %5841  ;;  %4898 = vmatpush3.bf16.msra.mxu0 %v2802_v39  ;;  %v9512_v39 = vld [vmem:[%s10392_s0 + $0x34] ss:$8 sps:$4 sm:$0xff]   ;;  %11290 = vst [vmem:[#allocation44_spill] sm:$0xff] %v9620_v52  ;;  %v9650_v38 = vld [vmem:[%s10392_s0 + $0xe0] ss:$8 sps:$4 sm:$0xff]   ;;  %11296 = vst [vmem:[#allocation14_spill] sm:$0xff] %v9656_v19 }
 0xb16   :  { %v5844_v58 = vpop.eup %5843  ;;  %v9469_v18 = vmul.f32 %v5842_v46, %v2666_v4  ;;  %v9524_v46 = vld [vmem:[%s10392_s0 + $0x44] ss:$8 sps:$4 sm:$0xff]   ;;  %v9554_v4 = vld [vmem:[%s10392_s0 + $0x60] ss:$8 sps:$4 sm:$0xff]   ;;  %11295 = vst [vmem:[#allocation16_spill] sm:$0xff] %v9650_v38 }
 0xb17   :  { %v5846_v53 = vpop.eup %5845  ;;  %v9473_v1 = vmul.f32 %v5844_v58, %v2650_v26  ;;  %v9542_v58 = vld [vmem:[%s10392_s0 + $0x50] ss:$8 sps:$4 sm:$0xff]   ;;  %11279 = vst [vmem:[#allocation35_spill] sm:$0xff] %v9554_v4  ;;  %v9584_v26 = vld [vmem:[%s10392_s0 + $0x94] ss:$8 sps:$4 sm:$0xff]  }
 0xb18   :  { %11274 = vst [vmem:[#allocation28_spill] sm:$0xff] %v9469_v18  ;;  %v9471_v25 = vmul.f32 %v5846_v53, %v2667_v10  ;;  %11277 = vst [vmem:[#allocation33_spill] sm:$0xff] %v9542_v58  ;;  %v9566_v10 = vld [vmem:[%s10392_s0 + $0x70] ss:$8 sps:$4 sm:$0xff]   ;;  %v9572_v53 = vld [vmem:[%s10392_s0 + $0x84] ss:$8 sps:$4 sm:$0xff]  }
 0xb19   :  { %11276 = vst [vmem:[#allocation30_spill] sm:$0xff] %v9473_v1  ;;  %v2803_v30 = vpack.c.bf16 %v9467_v15, %v9473_v1  ;;  %11281 = vst [vmem:[#allocation37_spill] sm:$0xff] %v9566_v10  ;;  %v9638_v15 = vld [vmem:[%s10392_s0 + $0xd0] ss:$8 sps:$4 sm:$0xff]   ;;  %v9644_v1 = vld [vmem:[%s10392_s0 + $0xe4] ss:$8 sps:$4 sm:$0xff]  }
 0xb1a   :  { %11275 = vst [vmem:[#allocation31_spill] sm:$0xff] %v9471_v25  ;;  %v2811_v56 = vpack.c.bf16 %v9471_v25, %v9469_v18  ;;  %11282 = vst [vmem:[#allocation36_spill] sm:$0xff] %v9572_v53  ;;  %v9602_v25 = vld [vmem:[%s10392_s0 + $0xa0] ss:$8 sps:$4 sm:$0xff]   ;;  %v9608_v18 = vld [vmem:[%s10392_s0 + $0xb4] ss:$8 sps:$4 sm:$0xff]  }
 0xb1b   :  { %11284 = vst [vmem:[#allocation38_spill] sm:$0xff] %v9584_v26  ;;  %11287 = vst [vmem:[#allocation43_spill] sm:$0xff] %v9602_v25 }
 0xb1c   :  { %4899 = vmatprep.subr.bf16.mxu0 %v2811_v56  ;;  %v9590_v56 = vld [vmem:[%s10392_s0 + $0x90] ss:$8 sps:$4 sm:$0xff]   ;;  %11288 = vst [vmem:[#allocation42_spill] sm:$0xff] %v9608_v18  ;;  %11293 = vst [vmem:[#allocation49_spill] sm:$0xff] %v9638_v15 }
 0xb1d   :  { %4900 = vmatpush3.bf16.msra.mxu0 %v2803_v30  ;;  %11285 = vst [vmem:[#allocation41_spill] sm:$0xff] %v9590_v56  ;;  %v9596_v30 = vld [vmem:[%s10392_s0 + $0xa4] ss:$8 sps:$4 sm:$0xff]   ;;  %11294 = vst [vmem:[#allocation48_spill] sm:$0xff] %v9644_v1 }
 0xb1e   :  { %11286 = vst [vmem:[#allocation40_spill] sm:$0xff] %v9596_v30 }
 0xb20   :  { %2845 = vmatmul.mubr.bf16.vlgmr.msra.gmra.mrb[224].mxu0 %v9482_v45 }
 0xb21   :  { %2852 = vmatprep.mubr.bf16.mxu0 %v9488_v24 }
 0xb28   :  { %2853 = vmatmul.mubr.bf16.gmra.mrb[228].mxu0 %v9494_v23 }
 0xb29   :  { %2860 = vmatprep.mubr.bf16.mxu0 %v9500_v55 }
 0xb30   :  { %2861 = vmatmul.mubr.bf16.gmra.mrb[232].mxu0 %v9506_v50 }
 0xb31   :  { %2868 = vmatprep.mubr.bf16.mxu0 %v9512_v39 }
 0xb38   :  { %2869 = vmatmul.mubr.bf16.gmra.mrb[236].mxu0 %v9518_v8 }
 0xb39   :  { %2876 = vmatprep.mubr.bf16.mxu0 %v9524_v46 }
 0xb40   :  { %2877 = vmatmul.mubr.bf16.gmra.mrb[240].mxu0 %v9530_v44 }
 0xb41   :  { %2884 = vmatprep.mubr.bf16.mxu0 %v9536_v63 }
 0xb48   :  { %2885 = vmatmul.mubr.bf16.gmra.mrb[244].mxu0 %v9542_v58 }
 0xb49   :  { %2892 = vmatprep.mubr.bf16.mxu0 %v9548_v36 }
 0xb50   :  { %2893 = vmatmul.mubr.bf16.gmra.mrb[248].mxu0 %v9554_v4 }
 0xb51   :  { %2900 = vmatprep.mubr.bf16.mxu0 %v9560_v60 }
 0xb58   :  { %2901 = vmatmul.mubr.bf16.gmra.mrb[252].mxu0 %v9566_v10 }
 0xb59   :  { %2908 = vmatprep.mubr.bf16.mxu0 %v9572_v53 }
 0xb60   :  { %2909 = vmatmul.mubr.bf16.gmra.mrb[0].mxu0 %v9578_v14 }
 0xb61   :  { %2916 = vmatprep.mubr.bf16.mxu0 %v9584_v26 }
 0xb68   :  { %2917 = vmatmul.mubr.bf16.gmra.mrb[4].mxu0 %v9590_v56 }
 0xb69   :  { %2924 = vmatprep.mubr.bf16.mxu0 %v9596_v30 }
 0xb70   :  { %2925 = vmatmul.mubr.bf16.gmra.mrb[8].mxu0 %v9602_v25 }
 0xb71   :  { %2932 = vmatprep.mubr.bf16.mxu0 %v9608_v18 }
 0xb78   :  { %2933 = vmatmul.mubr.bf16.gmra.mrb[12].mxu0 %v9614_v12 }
 0xb79   :  { %2940 = vmatprep.mubr.bf16.mxu0 %v9620_v52 }
 0xb80   :  { %2941 = vmatmul.mubr.bf16.gmra.mrb[16].mxu0 %v9626_v5 }
 0xb81   :  { %2948 = vmatprep.mubr.bf16.mxu0 %v9632_v40 }
 0xb88   :  { %2949 = vmatmul.mubr.bf16.gmra.mrb[20].mxu0 %v9638_v15 }
 0xb89   :  { %2956 = vmatprep.mubr.bf16.mxu0 %v9644_v1 }
 0xb90   :  { %2957 = vmatmul.mubr.bf16.gmra.mrb[24].mxu0 %v9650_v38 }
 0xb91   :  { %2964 = vmatprep.mubr.bf16.mxu0 %v9656_v19 }
 0xb98   :  { %2965 = vmatmul.mubr.bf16.gmra.mrb[28].mxu0 %v9662_v61 }
 0xbf3   :  { %v4901_v7 = vpop.f32.mrb[224].mxu0 }
 0xbf4   :  { %v4902_v48 = vpop.f32.mrb[225].mxu0 }
 0xbf5   :  { %v4903_v29 = vadd.f32 %v4902_v48, %v4901_v7  ;;  %v4904_v3 = vpop.f32.mrb[226].mxu0 }
 0xbf6   :  { %v4905_v17 = vpop.f32.mrb[227].mxu0 }
 0xbf7   :  { %v4906_v43 = vadd.f32 %v4905_v17, %v4904_v3 }
 0xbfb   :  { %v4907_v33 = vpop.f32.mrb[228].mxu0 }
 0xbfc   :  { %v4908_v54 = vpop.f32.mrb[229].mxu0 }
 0xbfd   :  { %v4909_v27 = vadd.f32 %v4908_v54, %v4907_v33  ;;  %v4910_v42 = vpop.f32.mrb[230].mxu0 }
 0xbfe   :  { %v4911_v22 = vpop.f32.mrb[231].mxu0 }
 0xbff   :  { %v4912_v38 = vadd.f32 %v4911_v22, %v4910_v42 }
 0xc03   :  { %v4913_v19 = vpop.f32.mrb[232].mxu0 }
 0xc04   :  { %v4914_v1 = vpop.f32.mrb[233].mxu0 }
 0xc05   :  { %v9665_v15 = vadd.f32 %v4914_v1, %v4913_v19  ;;  %v4916_v40 = vpop.f32.mrb[234].mxu0 }
 0xc06   :  { %v4917_v5 = vpop.f32.mrb[235].mxu0 }
 0xc07   :  { %v9667_v52 = vadd.f32 %v4917_v5, %v4916_v40 }
 0xc0b   :  { %v4919_v61 = vpop.f32.mrb[236].mxu0 }
 0xc0c   :  { %v4920_v12 = vpop.f32.mrb[237].mxu0 }
 0xc0d   :  { %v9669_v48 = vadd.f32 %v4920_v12, %v4919_v61  ;;  %v4922_v7 = vpop.f32.mrb[238].mxu0 }
 0xc0e   :  { %v4923_v3 = vpop.f32.mrb[239].mxu0 }
 0xc0f   :  { %v9671_v17 = vadd.f32 %v4923_v3, %v4922_v7 }
 0xc13   :  { %v4925_v54 = vpop.f32.mrb[240].mxu0 }
 0xc14   :  { %v4926_v33 = vpop.f32.mrb[241].mxu0 }
 0xc15   :  { %v9673_v18 = vadd.f32 %v4926_v33, %v4925_v54  ;;  %v4928_v42 = vpop.f32.mrb[242].mxu0 }
 0xc16   :  { %v4929_v22 = vpop.f32.mrb[243].mxu0 }
 0xc17   :  { %v9675_v19 = vadd.f32 %v4929_v22, %v4928_v42 }
 0xc1b   :  { %v4931_v1 = vpop.f32.mrb[244].mxu0 }
 0xc1c   :  { %v4932_v25 = vpop.f32.mrb[245].mxu0 }
 0xc1d   :  { %v9677_v40 = vadd.f32 %v4932_v25, %v4931_v1  ;;  %v4934_v5 = vpop.f32.mrb[246].mxu0  ;;  %v3006_v1 = vmul.f32 %v4906_v43, %v8916_v28 }
 0xc1e   :  { %v4935_v30 = vpop.f32.mrb[247].mxu0 }
 0xc1f   :  { %v9679_v61 = vadd.f32 %v4935_v30, %v4934_v5  ;;  %v3005_v5 = vmul.f32 %v4903_v29, %v8923_v11  ;;  %v3038_v60 = vadd.f32 1e-06, %v3006_v1  ;;  %v3007_v29 = vmul.f32 %v4909_v27, %v8957_v31 }
 0xc21   :  { %v3037_v36 = vadd.f32 1e-06, %v3005_v5  ;;  %5847 = vrcp.f32 %v3038_v60 }
 0xc23   :  { %v4937_v12 = vpop.f32.mrb[248].mxu0 }
 0xc24   :  { %v4938_v56 = vpop.f32.mrb[249].mxu0 }
 0xc25   :  { %v9681_v7 = vadd.f32 %v4938_v56, %v4937_v12  ;;  %v4940_v3 = vpop.f32.mrb[250].mxu0 }
 0xc26   :  { %v4941_v26 = vpop.f32.mrb[251].mxu0 }
 0xc27   :  { %v9683_v54 = vadd.f32 %v4941_v26, %v4940_v3 }
 0xc2b   :  { %v4943_v33 = vpop.f32.mrb[252].mxu0 }
 0xc2c   :  { %v4944_v14 = vpop.f32.mrb[253].mxu0 }
 0xc2d   :  { %v9685_v42 = vadd.f32 %v4944_v14, %v4943_v33  ;;  %v4946_v22 = vpop.f32.mrb[254].mxu0 }
 0xc2e   :  { %v4947_v53 = vpop.f32.mrb[255].mxu0 }
 0xc2f   :  { %v9687_v25 = vadd.f32 %v4947_v53, %v4946_v22  ;;  %v3008_v53 = vmul.f32 %v4912_v38, %v8950_v9  ;;  %v3010_v38 = vmul.f32 %v9667_v52, %v8984_v16 }
 0xc31   :  { %v3040_v58 = vadd.f32 1e-06, %v3008_v53 }
 0xc33   :  { %v4949_v30 = vpop.f32.mrb[0].mxu0 }
 0xc34   :  { %v4950_v10 = vpop.f32.mrb[1].mxu0 }
 0xc35   :  { %v4951_v56 = vadd.f32 %v4950_v10, %v4949_v30  ;;  %v4952_v12 = vpop.f32.mrb[2].mxu0 }
 0xc36   :  { %v4953_v4 = vpop.f32.mrb[3].mxu0 }
 0xc37   :  { %v3021_v26 = vmul.f32 %v4951_v56, %v8918_v20  ;;  %v4954_v3 = vadd.f32 %v4953_v4, %v4952_v12  ;;  %v3039_v12 = vadd.f32 1e-06, %v3007_v29 }
 0xc39   :  { %v3053_v14 = vadd.f32 1e-06, %v3021_v26  ;;  %v3022_v33 = vmul.f32 %v4954_v3, %v8920_v0  ;;  %v5848_v3 = vpop.eup %5847 }
 0xc3b   :  { %5849 = vrcp.f32 %v3053_v14  ;;  %v3054_v43 = vadd.f32 1e-06, %v3022_v33  ;;  %v4955_v22 = vpop.f32.mrb[4].mxu0  ;;  %v3009_v14 = vmul.f32 %v9665_v15, %v8991_v57 }
 0xc3c   :  { %5851 = vrcp.f32 %v3037_v36  ;;  %v4956_v10 = vpop.f32.mrb[5].mxu0 }
 0xc3d   :  { %5853 = vrcp.f32 %v3054_v43  ;;  %v4957_v1 = vadd.f32 %v4956_v10, %v4955_v22  ;;  %v4958_v30 = vpop.f32.mrb[6].mxu0  ;;  %v3042_v10 = vadd.f32 1e-06, %v3010_v38 }
 0xc3e   :  { %v4959_v56 = vpop.f32.mrb[7].mxu0  ;;  %5855 = vrcp.f32 %v3040_v58  ;;  %v6294_v58 = vld [vmem:[%s10394_s2 + $0x8] sm:$0xff] }
 0xc3f   :  { %v3023_v4 = vmul.f32 %v4957_v1, %v8952_v62  ;;  %v4960_v5 = vadd.f32 %v4959_v56, %v4958_v30  ;;  %v2974_v29 = vmul.f32 %v6294_v58, %v8916_v28  ;;  %v6295_v30 = vld [vmem:[%s10394_s2 + $0x80] sm:$0xff]  ;;  %v6296_v56 = vld [vmem:[%s10394_s2 + $0x88] sm:$0xff] }
 0xc40   :  { %v2989_v15 = vmul.f32 %v6295_v30, %v8918_v20  ;;  %v6297_v28 = vld [vmem:[%s10394_s2] sm:$0xff]  ;;  %v6298_v30 = vld [vmem:[%s10394_s2 + $0x18] sm:$0xff] }
 0xc41   :  { %v3055_v26 = vadd.f32 1e-06, %v3023_v4  ;;  %v3024_v60 = vmul.f32 %v4960_v5, %v8954_v41  ;;  %v2990_v4 = vmul.f32 %v6296_v56, %v8920_v0  ;;  %v9718_v38 = vmul.f32 %v5848_v3, %v2974_v29 }
 0xc42   :  { %v3011_v29 = vmul.f32 %v9669_v48, %v9025_v35  ;;  %v6299_v48 = vld [vmem:[%s10394_s2 + $0x90] sm:$0xff] }
 0xc43   :  { %5857 = vrcp.f32 %v3055_v26  ;;  %v3056_v36 = vadd.f32 1e-06, %v3024_v60  ;;  %v4961_v27 = vpop.f32.mrb[8].mxu0  ;;  %v2973_v60 = vmul.f32 %v6297_v28, %v8923_v11 }
 0xc44   :  { %5859 = vrcp.f32 %v3039_v12  ;;  %v4962_v33 = vpop.f32.mrb[9].mxu0 }
 0xc45   :  { %v5850_v53 = vpop.eup %5849  ;;  %5861 = vrcp.f32 %v3056_v36  ;;  %v4963_v43 = vadd.f32 %v4962_v33, %v4961_v27  ;;  %v4964_v22 = vpop.f32.mrb[10].mxu0  ;;  %v3041_v36 = vadd.f32 1e-06, %v3009_v14 }
 0xc46   :  { %v5852_v52 = vpop.eup %5851  ;;  %v4965_v1 = vpop.f32.mrb[11].mxu0  ;;  %v9720_v20 = vmul.f32 %v5850_v53, %v2989_v15  ;;  %5863 = vrcp.f32 %v3042_v10  ;;  %v2976_v15 = vmul.f32 %v6298_v30, %v8950_v9  ;;  %v6301_v9 = vld [vmem:[%s10394_s2 + $0x10] sm:$0xff] }
 0xc47   :  { %v5854_v5 = vpop.eup %5853  ;;  %v3025_v12 = vmul.f32 %v4963_v43, %v8986_v47  ;;  %v4966_v26 = vadd.f32 %v4965_v1, %v4964_v22  ;;  %v9725_v58 = vmul.f32 %v5852_v52, %v2973_v60  ;;  %v3012_v43 = vmul.f32 %v9671_v17, %v9018_v34 }
 0xc48   :  { %v9722_v27 = vmul.f32 %v5854_v5, %v2990_v4  ;;  %v5856_v53 = vpop.eup %5855 }
 0xc49   :  { %v3057_v33 = vadd.f32 1e-06, %v3025_v12  ;;  %v3026_v0 = vmul.f32 %v4966_v26, %v8988_v21  ;;  %v3133_v14 = vpack.c.bf16 %v9718_v38, %v9725_v58  ;;  %v3044_v4 = vadd.f32 1e-06, %v3012_v43  ;;  %v6300_v26 = vld [vmem:[%s10394_s2 + $0x98] sm:$0xff] }
 0xc4a   :  { %v3141_v22 = vpack.c.bf16 %v9722_v27, %v9720_v20  ;;  %v2991_v12 = vmul.f32 %v6299_v48, %v8952_v62  ;;  %v2992_v28 = vmul.f32 %v6300_v26, %v8954_v41  ;;  %v9752_v43 = vmul.f32 %v5856_v53, %v2976_v15 }
 0xc4b   :  { %5865 = vrcp.f32 %v3057_v33  ;;  %v3058_v11 = vadd.f32 1e-06, %v3026_v0  ;;  %v4967_v3 = vpop.f32.mrb[12].mxu0  ;;  %v2975_v0 = vmul.f32 %v6301_v9, %v8957_v31 }
 0xc4c   :  { %5867 = vrcp.f32 %v3041_v36  ;;  %v4968_v52 = vpop.f32.mrb[13].mxu0  ;;  %4997 = vmatprep.subr.bf16.mxu1 %v3141_v22  ;;  %v3043_v22 = vadd.f32 1e-06, %v3011_v29 }
 0xc4d   :  { %v5858_v10 = vpop.eup %5857  ;;  %5869 = vrcp.f32 %v3058_v11  ;;  %v4969_v1 = vadd.f32 %v4968_v52, %v4967_v3  ;;  %v4970_v17 = vpop.f32.mrb[14].mxu0  ;;  %4998 = vmatpush3.bf16.msra.mxu1 %v3133_v14  ;;  %v3014_v52 = vmul.f32 %v9675_v19, %v9052_v37 }
 0xc4e   :  { %v5860_v56 = vpop.eup %5859  ;;  %v4971_v5 = vpop.f32.mrb[15].mxu0  ;;  %v9754_v62 = vmul.f32 %v5858_v10, %v2991_v12  ;;  %5871 = vrcp.f32 %v3044_v4  ;;  %v6302_v4 = vld [vmem:[%s10394_s2 + $0x28] sm:$0xff] }
 0xc4f   :  { %v5862_v60 = vpop.eup %5861  ;;  %v3027_v36 = vmul.f32 %v4969_v1, %v9020_v51  ;;  %v4972_v33 = vadd.f32 %v4971_v5, %v4970_v17  ;;  %v9759_v14 = vmul.f32 %v5860_v56, %v2975_v0  ;;  %v3013_v17 = vmul.f32 %v9673_v18, %v9059_v59  ;;  %v6303_v18 = vld [vmem:[%s10394_s2 + $0xa0] sm:$0xff] }
 0xc50   :  { %v9756_v11 = vmul.f32 %v5862_v60, %v2992_v28  ;;  %v5864_v10 = vpop.eup %5863  ;;  %v2978_v5 = vmul.f32 %v6302_v4, %v8984_v16  ;;  %v3046_v12 = vadd.f32 1e-06, %v3014_v52  ;;  %v2993_v28 = vmul.f32 %v6303_v18, %v8986_v47  ;;  %v6304_v60 = vld [vmem:[%s10394_s2 + $0xa8] sm:$0xff]  ;;  %v6305_v16 = vld [vmem:[%s10394_s2 + $0x20] sm:$0xff] }
 0xc51   :  { %v3059_v3 = vadd.f32 1e-06, %v3027_v36  ;;  %v3028_v41 = vmul.f32 %v4972_v33, %v9022_v13  ;;  %v3134_v29 = vpack.c.bf16 %v9752_v43, %v9759_v14  ;;  %v2994_v36 = vmul.f32 %v6304_v60, %v8988_v21  ;;  %v6308_v60 = vld [vmem:[%s10394_s2 + $0xb8] sm:$0xff] }
 0xc52   :  { %v3142_v1 = vpack.c.bf16 %v9756_v11, %v9754_v62 }
 0xc53   :  { %5873 = vrcp.f32 %v3059_v3  ;;  %v3060_v31 = vadd.f32 1e-06, %v3028_v41  ;;  %v4973_v53 = vpop.f32.mrb[16].mxu0  ;;  %v9786_v3 = vmul.f32 %v5864_v10, %v2978_v5  ;;  %v3045_v41 = vadd.f32 1e-06, %v3013_v17  ;;  %v6306_v5 = vld [vmem:[%s10394_s2 + $0x38] sm:$0xff] }
 0xc54   :  { %5875 = vrcp.f32 %v3043_v22  ;;  %v4974_v30 = vpop.f32.mrb[17].mxu0  ;;  %4999 = vmatprep.subr.bf16.mxu1 %v3142_v1  ;;  %v2977_v22 = vmul.f32 %v6305_v16, %v8991_v57 }
 0xc55   :  { %v5866_v15 = vpop.eup %5865  ;;  %5877 = vrcp.f32 %v3060_v31  ;;  %v4975_v56 = vadd.f32 %v4974_v30, %v4973_v53  ;;  %v4976_v19 = vpop.f32.mrb[18].mxu0  ;;  %5000 = vmatpush3.bf16.msra.mxu1 %v3134_v29  ;;  %v3016_v53 = vmul.f32 %v9679_v61, %v9086_v6 }
 0xc56   :  { %v5868_v48 = vpop.eup %5867  ;;  %v4977_v26 = vpop.f32.mrb[19].mxu0  ;;  %v9788_v47 = vmul.f32 %v5866_v15, %v2993_v28  ;;  %5879 = vrcp.f32 %v3046_v12  ;;  %v3015_v15 = vmul.f32 %v9677_v40, %v9093_v2  ;;  %v6307_v40 = vld [vmem:[%s10394_s2 + $0xb0] sm:$0xff] }
 0xc57   :  { %v5870_v33 = vpop.eup %5869  ;;  %v3029_v9 = vmul.f32 %v4975_v56, %v9054_v49  ;;  %v4978_v0 = vadd.f32 %v4977_v26, %v4976_v19  ;;  %v9793_v31 = vmul.f32 %v5868_v48, %v2977_v22  ;;  %v2980_v48 = vmul.f32 %v6306_v5, %v9018_v34  ;;  %v6309_v34 = vld [vmem:[%s10394_s2 + $0x30] sm:$0xff] }
 0xc58   :  { %v9790_v52 = vmul.f32 %v5870_v33, %v2994_v36  ;;  %v5872_v30 = vpop.eup %5871  ;;  %v3048_v26 = vadd.f32 1e-06, %v3016_v53  ;;  %v2995_v28 = vmul.f32 %v6307_v40, %v9020_v51  ;;  %v2996_v36 = vmul.f32 %v6308_v60, %v9022_v13 }
 0xc59   :  { %v3061_v1 = vadd.f32 1e-06, %v3029_v9  ;;  %v3030_v21 = vmul.f32 %v4978_v0, %v9056_v32  ;;  %v3135_v17 = vpack.c.bf16 %v9786_v3, %v9793_v31  ;;  %v11298_v9 = vld [vmem:[#allocation23_spill] sm:$0xff]  ;;  %v2979_v22 = vmul.f32 %v6309_v34, %v9025_v35  ;;  %v11304_v34 = vld [vmem:[#allocation5_spill] sm:$0xff] }
 0xc5a   :  { %v3143_v29 = vpack.c.bf16 %v9790_v52, %v9788_v47 }
 0xc5b   :  { %5881 = vrcp.f32 %v3061_v1  ;;  %v3062_v57 = vadd.f32 1e-06, %v3030_v21  ;;  %v4979_v10 = vpop.f32.mrb[20].mxu0  ;;  %v3047_v1 = vadd.f32 1e-06, %v3015_v15 }
 0xc5c   :  { %5883 = vrcp.f32 %v3045_v41  ;;  %v4980_v56 = vpop.f32.mrb[21].mxu0  ;;  %5001 = vmatprep.subr.bf16.mxu1 %v3143_v29  ;;  %v9820_v41 = vmul.f32 %v5872_v30, %v2980_v48  ;;  %v11301_v29 = vld [vmem:[#allocation22_spill] sm:$0xff] }
 0xc5d   :  { %v5874_v19 = vpop.eup %5873  ;;  %5885 = vrcp.f32 %v3062_v57  ;;  %v4981_v4 = vadd.f32 %v4980_v56, %v4979_v10  ;;  %v4982_v61 = vpop.f32.mrb[22].mxu0  ;;  %5002 = vmatpush3.bf16.msra.mxu1 %v3135_v17  ;;  %v11302_v10 = vld [vmem:[#allocation25_spill] sm:$0xff] }
 0xc5e   :  { %v5876_v12 = vpop.eup %5875  ;;  %v4983_v18 = vpop.f32.mrb[23].mxu0  ;;  %v9822_v51 = vmul.f32 %v5874_v19, %v2995_v28  ;;  %5887 = vrcp.f32 %v3048_v26  ;;  %v3018_v17 = vmul.f32 %v9683_v54, %v11302_v10  ;;  %v6310_v26 = vld [vmem:[%s10394_s2 + $0x48] sm:$0xff] }
 0xc5f   :  { %v5878_v33 = vpop.eup %5877  ;;  %v3031_v0 = vmul.f32 %v4981_v4, %v11298_v9  ;;  %v4984_v16 = vadd.f32 %v4983_v18, %v4982_v61  ;;  %v9827_v57 = vmul.f32 %v5876_v12, %v2979_v22  ;;  %v11303_v4 = vld [vmem:[#allocation6_spill] sm:$0xff]  ;;  %v2982_v18 = vmul.f32 %v6310_v26, %v9052_v37  ;;  %v6313_v37 = vld [vmem:[%s10394_s2 + $0x40] sm:$0xff] }
 0xc60   :  { %11299 = vst [vmem:[#allocation17_spill] sm:$0xff] %v9822_v51  ;;  %v9824_v21 = vmul.f32 %v5878_v33, %v2996_v36  ;;  %v5880_v19 = vpop.eup %5879  ;;  %v3017_v61 = vmul.f32 %v9681_v7, %v11303_v4  ;;  %v3050_v28 = vadd.f32 1e-06, %v3018_v17  ;;  %v6311_v7 = vld [vmem:[%s10394_s2 + $0xc0] sm:$0xff]  ;;  %v6312_v33 = vld [vmem:[%s10394_s2 + $0xc8] sm:$0xff] }
 0xc61   :  { %v3063_v53 = vadd.f32 1e-06, %v3031_v0  ;;  %v3032_v13 = vmul.f32 %v4984_v16, %v11301_v29  ;;  %v3136_v15 = vpack.c.bf16 %v9820_v41, %v9827_v57  ;;  %v2997_v36 = vmul.f32 %v6311_v7, %v9054_v49  ;;  %v11309_v26 = vld [vmem:[#allocation10_spill] sm:$0xff]  ;;  %v6314_v7 = vld [vmem:[%s10394_s2 + $0x58] sm:$0xff] }
 0xc62   :  { %11300 = vst [vmem:[#allocation52_spill] sm:$0xff] %v9824_v21  ;;  %v3144_v56 = vpack.c.bf16 %v9824_v21, %v9822_v51  ;;  %v2998_v0 = vmul.f32 %v6312_v33, %v9056_v32  ;;  %v3049_v17 = vadd.f32 1e-06, %v3017_v61 }
 0xc63   :  { %5889 = vrcp.f32 %v3063_v53  ;;  %v3064_v35 = vadd.f32 1e-06, %v3032_v13  ;;  %v4985_v30 = vpop.f32.mrb[24].mxu0  ;;  %v2981_v53 = vmul.f32 %v6313_v37, %v9059_v59  ;;  %v9854_v13 = vmul.f32 %v5880_v19, %v2982_v18 }
 0xc64   :  { %5891 = vrcp.f32 %v3047_v1  ;;  %v4986_v5 = vpop.f32.mrb[25].mxu0  ;;  %5003 = vmatprep.subr.bf16.mxu1 %v3144_v56  ;;  %v3019_v18 = vmul.f32 %v9685_v42, %v11309_v26  ;;  %v6315_v42 = vld [vmem:[%s10394_s2 + $0xd0] sm:$0xff] }
 0xc65   :  { %v5882_v48 = vpop.eup %5881  ;;  %5893 = vrcp.f32 %v3064_v35  ;;  %v4987_v12 = vadd.f32 %v4986_v5, %v4985_v30  ;;  %v4988_v54 = vpop.f32.mrb[26].mxu0  ;;  %5004 = vmatpush3.bf16.msra.mxu1 %v3136_v15  ;;  %v11307_v30 = vld [vmem:[#allocation7_spill] sm:$0xff] }
 0xc66   :  { %v5884_v40 = vpop.eup %5883  ;;  %v4989_v60 = vpop.f32.mrb[27].mxu0  ;;  %v9856_v49 = vmul.f32 %v5882_v48, %v2997_v36  ;;  %5895 = vrcp.f32 %v3050_v28  ;;  %v11308_v5 = vld [vmem:[#allocation11_spill] sm:$0xff]  ;;  %v2984_v36 = vmul.f32 %v6314_v7, %v9086_v6 }
 0xc67   :  { %v5886_v16 = vpop.eup %5885  ;;  %v3033_v22 = vmul.f32 %v4987_v12, %v11304_v34  ;;  %v4990_v1 = vadd.f32 %v4989_v60, %v4988_v54  ;;  %v9861_v15 = vmul.f32 %v5884_v40, %v2981_v53  ;;  %v3020_v12 = vmul.f32 %v9687_v25, %v11308_v5  ;;  %v6317_v6 = vld [vmem:[%s10394_s2 + $0x50] sm:$0xff] }
 0xc68   :  { %11305 = vst [vmem:[#allocation51_spill] sm:$0xff] %v9856_v49  ;;  %v9858_v56 = vmul.f32 %v5886_v16, %v2998_v0  ;;  %v5888_v48 = vpop.eup %5887 }
 0xc69   :  { %v3065_v35 = vadd.f32 1e-06, %v3033_v22  ;;  %v3034_v32 = vmul.f32 %v4990_v1, %v11307_v30  ;;  %v3137_v61 = vpack.c.bf16 %v9854_v13, %v9861_v15  ;;  %v3052_v0 = vadd.f32 1e-06, %v3020_v12  ;;  %v6316_v1 = vld [vmem:[%s10394_s2 + $0xd8] sm:$0xff] }
 0xc6a   :  { %11306 = vst [vmem:[#allocation54_spill] sm:$0xff] %v9858_v56  ;;  %v3145_v54 = vpack.c.bf16 %v9858_v56, %v9856_v49  ;;  %v2999_v22 = vmul.f32 %v6315_v42, %v11298_v9  ;;  %v3000_v37 = vmul.f32 %v6316_v1, %v11301_v29  ;;  %v2983_v12 = vmul.f32 %v6317_v6, %v9093_v2  ;;  %v6320_v42 = vld [vmem:[%s10394_s2 + $0xe8] sm:$0xff] }
 0xc6b   :  { %5897 = vrcp.f32 %v3065_v35  ;;  %v3066_v59 = vadd.f32 1e-06, %v3034_v32  ;;  %v4991_v19 = vpop.f32.mrb[28].mxu0 }
 0xc6c   :  { %5899 = vrcp.f32 %v3049_v17  ;;  %v4992_v40 = vpop.f32.mrb[29].mxu0  ;;  %5005 = vmatprep.subr.bf16.mxu1 %v3145_v54  ;;  %v11310_v17 = vld [vmem:[#allocation8_spill] sm:$0xff]  ;;  %v9888_v54 = vmul.f32 %v5888_v48, %v2984_v36 }
 0xc6d   :  { %v5890_v28 = vpop.eup %5889  ;;  %5901 = vrcp.f32 %v3066_v59  ;;  %v4993_v60 = vadd.f32 %v4992_v40, %v4991_v19  ;;  %v4994_v25 = vpop.f32.mrb[30].mxu0  ;;  %5006 = vmatpush3.bf16.msra.mxu1 %v3137_v61  ;;  %v3051_v59 = vadd.f32 1e-06, %v3019_v18  ;;  %v11313_v40 = vld [vmem:[#allocation9_spill] sm:$0xff] }
 0xc6e   :  { %v5892_v33 = vpop.eup %5891  ;;  %v4995_v16 = vpop.f32.mrb[31].mxu0  ;;  %v9890_v9 = vmul.f32 %v5890_v28, %v2999_v22  ;;  %5903 = vrcp.f32 %v3052_v0  ;;  %v6318_v28 = vld [vmem:[%s10394_s2 + $0x68] sm:$0xff]  ;;  %v6319_v0 = vld [vmem:[%s10394_s2 + $0xe0] sm:$0xff]  ;;  %v3002_v22 = vmul.f32 %v6320_v42, %v11307_v30 }
 0xc6f   :  { %v5894_v53 = vpop.eup %5893  ;;  %v3035_v35 = vmul.f32 %v4993_v60, %v11310_v17  ;;  %v4996_v32 = vadd.f32 %v4995_v16, %v4994_v25  ;;  %v9895_v7 = vmul.f32 %v5892_v33, %v2983_v12  ;;  %v2986_v36 = vmul.f32 %v6318_v28, %v11302_v10  ;;  %v6325_v28 = vld [vmem:[%s10394_s2 + $0x70] sm:$0xff] }
 0xc70   :  { %11311 = vst [vmem:[#allocation23_spill] sm:$0xff] %v9890_v9  ;;  %v9892_v19 = vmul.f32 %v5894_v53, %v3000_v37  ;;  %v5896_v48 = vpop.eup %5895  ;;  %v3001_v16 = vmul.f32 %v6319_v0, %v11304_v34  ;;  %v6321_v37 = vld [vmem:[%s10394_s2 + $0x60] sm:$0xff]  ;;  %v11329_v42 = vld [vmem:[#allocation42_spill] sm:$0xff] }
 0xc71   :  { %v3067_v61 = vadd.f32 1e-06, %v3035_v35  ;;  %v3036_v29 = vmul.f32 %v4996_v32, %v11313_v40  ;;  %v3138_v2 = vpack.c.bf16 %v9888_v54, %v9895_v7  ;;  %v2985_v10 = vmul.f32 %v6321_v37, %v11303_v4  ;;  %v6322_v4 = vld [vmem:[%s10394_s2 + $0x78] sm:$0xff] }
 0xc72   :  { %11312 = vst [vmem:[#allocation22_spill] sm:$0xff] %v9892_v19  ;;  %v3146_v60 = vpack.c.bf16 %v9892_v19, %v9890_v9  ;;  %v9917_v53 = vmul.f32 %v5896_v48, %v2986_v36  ;;  %v11332_v37 = vld [vmem:[#allocation47_spill] sm:$0xff] }
 0xc73   :  { %5905 = vrcp.f32 %v3067_v61  ;;  %v3068_v25 = vadd.f32 1e-06, %v3036_v29  ;;  %v2988_v61 = vmul.f32 %v6322_v4, %v11308_v5  ;;  %v2987_v5 = vmul.f32 %v6325_v28, %v11309_v26  ;;  %v11318_v26 = vld [vmem:[#allocation33_spill] sm:$0xff]  ;;  %v11338_v4 = vld [vmem:[#allocation50_spill] sm:$0xff] }
 0xc74   :  { %5907 = vrcp.f32 %v3051_v59  ;;  %5007 = vmatprep.subr.bf16.mxu1 %v3146_v60  ;;  %v6323_v60 = vld [vmem:[%s10394_s2 + $0xf0] sm:$0xff] }
 0xc75   :  { %v5898_v18 = vpop.eup %5897  ;;  %5909 = vrcp.f32 %v3068_v25  ;;  %5008 = vmatpush3.bf16.msra.mxu1 %v3138_v2  ;;  %v3003_v25 = vmul.f32 %v6323_v60, %v11310_v17  ;;  %v6324_v2 = vld [vmem:[%s10394_s2 + $0xf8] sm:$0xff] }
 0xc76   :  { %v5900_v33 = vpop.eup %5899  ;;  %v9919_v35 = vmul.f32 %v5898_v18, %v3001_v16  ;;  %v3004_v48 = vmul.f32 %v6324_v2, %v11313_v40 }
 0xc77   :  { %v5902_v1 = vpop.eup %5901  ;;  %v9923_v34 = vmul.f32 %v5900_v33, %v2985_v10  ;;  %v11333_v10 = vld [vmem:[#allocation46_spill] sm:$0xff] }
 0xc78   :  { %11314 = vst [vmem:[#allocation25_spill] sm:$0xff] %v9919_v35  ;;  %v9921_v32 = vmul.f32 %v5902_v1, %v3002_v22  ;;  %v5904_v12 = vpop.eup %5903  ;;  %v11330_v22 = vld [vmem:[#allocation45_spill] sm:$0xff]  ;;  %v11331_v1 = vld [vmem:[#allocation44_spill] sm:$0xff] }
 0xc79   :  { %v3139_v30 = vpack.c.bf16 %v9917_v53, %v9923_v34  ;;  %v9945_v36 = vmul.f32 %v5904_v12, %v2988_v61  ;;  %v11336_v12 = vld [vmem:[#allocation16_spill] sm:$0xff] }
 0xc7a   :  { %11315 = vst [vmem:[#allocation6_spill] sm:$0xff] %v9921_v32  ;;  %v3147_v6 = vpack.c.bf16 %v9921_v32, %v9919_v35 }
 0xc7c   :  { %5009 = vmatprep.subr.bf16.mxu1 %v3147_v6  ;;  %v11334_v6 = vld [vmem:[#allocation49_spill] sm:$0xff] }
 0xc7d   :  { %v5906_v59 = vpop.eup %5905  ;;  %5010 = vmatpush3.bf16.msra.mxu1 %v3139_v30  ;;  %v11335_v30 = vld [vmem:[#allocation48_spill] sm:$0xff] }
 0xc7e   :  { %v5908_v29 = vpop.eup %5907  ;;  %v9947_v33 = vmul.f32 %v5906_v59, %v3003_v25  ;;  %v11337_v59 = vld [vmem:[#allocation14_spill] sm:$0xff] }
 0xc7f   :  { %v5910_v18 = vpop.eup %5909  ;;  %v9951_v17 = vmul.f32 %v5908_v29, %v2987_v5 }
 0xc80   :  { %11316 = vst [vmem:[#allocation5_spill] sm:$0xff] %v9947_v33  ;;  %v9949_v0 = vmul.f32 %v5910_v18, %v3004_v48  ;;  %v11339_v48 = vld [vmem:[#allocation53_spill] sm:$0xff] }
 0xc81   :  { %v3140_v40 = vpack.c.bf16 %v9945_v36, %v9951_v17 }
 0xc82   :  { %11317 = vst [vmem:[#allocation7_spill] sm:$0xff] %v9949_v0  ;;  %v3148_v16 = vpack.c.bf16 %v9949_v0, %v9947_v33 }
 0xc84   :  { %5011 = vmatprep.subr.bf16.mxu1 %v3148_v16  ;;  %v11340_v16 = vld [vmem:[#allocation13_spill] sm:$0xff] }
 0xc85   :  { %5012 = vmatpush3.bf16.msra.mxu1 %v3140_v40 }
 0xc88   :  { %3182 = vmatmul.mubr.bf16.vlgmr.msra.gmra.mrb[32].mxu1 %v9482_v45  ;;  %v11319_v45 = vld [vmem:[#allocation32_spill] sm:$0xff] }
 0xc89   :  { %3189 = vmatprep.mubr.bf16.mxu1 %v9488_v24  ;;  %v11320_v24 = vld [vmem:[#allocation35_spill] sm:$0xff] }
 0xc90   :  { %3190 = vmatmul.mubr.bf16.gmra.mrb[36].mxu1 %v9494_v23  ;;  %v11321_v23 = vld [vmem:[#allocation34_spill] sm:$0xff] }
 0xc91   :  { %3197 = vmatprep.mubr.bf16.mxu1 %v9500_v55  ;;  %v11322_v55 = vld [vmem:[#allocation37_spill] sm:$0xff] }
 0xc98   :  { %3198 = vmatmul.mubr.bf16.gmra.mrb[40].mxu1 %v9506_v50  ;;  %v11323_v50 = vld [vmem:[#allocation36_spill] sm:$0xff] }
 0xc99   :  { %3205 = vmatprep.mubr.bf16.mxu1 %v9512_v39  ;;  %v11324_v39 = vld [vmem:[#allocation39_spill] sm:$0xff] }
 0xca0   :  { %3206 = vmatmul.mubr.bf16.gmra.mrb[44].mxu1 %v9518_v8  ;;  %v11325_v8 = vld [vmem:[#allocation38_spill] sm:$0xff] }
 0xca1   :  { %3213 = vmatprep.mubr.bf16.mxu1 %v9524_v46  ;;  %v11326_v46 = vld [vmem:[#allocation41_spill] sm:$0xff] }
 0xca8   :  { %3214 = vmatmul.mubr.bf16.gmra.mrb[48].mxu1 %v9530_v44  ;;  %v11327_v44 = vld [vmem:[#allocation40_spill] sm:$0xff] }
 0xca9   :  { %3221 = vmatprep.mubr.bf16.mxu1 %v9536_v63  ;;  %v11328_v63 = vld [vmem:[#allocation43_spill] sm:$0xff] }
 0xcb0   :  { %3222 = vmatmul.mubr.bf16.gmra.mrb[52].mxu1 %v11318_v26 }
 0xcb1   :  { %3229 = vmatprep.mubr.bf16.mxu1 %v11319_v45 }
 0xcb8   :  { %3230 = vmatmul.mubr.bf16.gmra.mrb[56].mxu1 %v11320_v24 }
 0xcb9   :  { %3237 = vmatprep.mubr.bf16.mxu1 %v11321_v23 }
 0xcc0   :  { %3238 = vmatmul.mubr.bf16.gmra.mrb[60].mxu1 %v11322_v55 }
 0xcc1   :  { %3245 = vmatprep.mubr.bf16.mxu1 %v11323_v50 }
 0xcc8   :  { %3246 = vmatmul.mubr.bf16.gmra.mrb[64].mxu1 %v11324_v39  ;;  %v11341_v39 = vld [vmem:[#allocation57_spill] sm:$0xff] }
 0xcc9   :  { %3253 = vmatprep.mubr.bf16.mxu1 %v11325_v8 }
 0xcd0   :  { %3254 = vmatmul.mubr.bf16.gmra.mrb[68].mxu1 %v11326_v46 }
 0xcd1   :  { %3261 = vmatprep.mubr.bf16.mxu1 %v11327_v44 }
 0xcd8   :  { %3262 = vmatmul.mubr.bf16.gmra.mrb[72].mxu1 %v11328_v63  ;;  %v11342_v63 = vld [vmem:[#allocation55_spill] sm:$0xff] }
 0xcd9   :  { %3269 = vmatprep.mubr.bf16.mxu1 %v11329_v42 }
 0xce0   :  { %3270 = vmatmul.mubr.bf16.gmra.mrb[76].mxu1 %v11330_v22 }
 0xce1   :  { %3277 = vmatprep.mubr.bf16.mxu1 %v11331_v1 }
 0xce8   :  { %3278 = vmatmul.mubr.bf16.gmra.mrb[80].mxu1 %v11332_v37 }
 0xce9   :  { %3285 = vmatprep.mubr.bf16.mxu1 %v11333_v10 }
 0xcf0   :  { %3286 = vmatmul.mubr.bf16.gmra.mrb[84].mxu1 %v11334_v6 }
 0xcf1   :  { %3293 = vmatprep.mubr.bf16.mxu1 %v11335_v30 }
 0xcf8   :  { %3294 = vmatmul.mubr.bf16.gmra.mrb[88].mxu1 %v11336_v12  ;;  %v5289_v12 = vld [vmem:[%s10393_s1 + $0x4] ss:$8 sps:$4 sm:$0xff]  }
 0xcf9   :  { %3301 = vmatprep.mubr.bf16.mxu1 %v11337_v59  ;;  %3678 = vmatprep.mubr.bf16.mxu0 %v5289_v12 }
 0xd00   :  { %3302 = vmatmul.mubr.bf16.gmra.mrb[92].mxu1 %v11338_v4  ;;  %v6326_v4 = vld [vmem:[%s10395_s3] sm:$0xff] }
 0xd5b   :  { %v5013_v61 = vpop.f32.mrb[32].mxu1 }
 0xd5c   :  { %v5014_v29 = vpop.f32.mrb[33].mxu1 }
 0xd5d   :  { %v5015_v60 = vadd.f32 %v5014_v29, %v5013_v61  ;;  %v5016_v25 = vpop.f32.mrb[34].mxu1  ;;  %v3310_v61 = vmul.f32 %v6326_v4, %v11339_v48  ;;  %v6327_v29 = vld [vmem:[%s10395_s3 + $0x8] sm:$0xff] }
 0xd5e   :  { %v5017_v2 = vpop.f32.mrb[35].mxu1 }
 0xd5f   :  { %v3342_v18 = vmul.f32 %v5015_v60, %v11339_v48  ;;  %v5018_v28 = vadd.f32 %v5017_v2, %v5016_v25  ;;  %v3311_v60 = vmul.f32 %v6327_v29, %v11340_v16  ;;  %v11343_v2 = vld [vmem:[#allocation61_spill] sm:$0xff]  ;;  %v11346_v29 = vld [vmem:[#allocation63_spill] sm:$0xff] }
 0xd61   :  { %v3374_v5 = vadd.f32 1e-06, %v3342_v18  ;;  %v3343_v40 = vmul.f32 %v5018_v28, %v11340_v16 }
 0xd63   :  { %5911 = vrcp.f32 %v3374_v5  ;;  %v3375_v26 = vadd.f32 1e-06, %v3343_v40  ;;  %v5019_v45 = vpop.f32.mrb[36].mxu1 }
 0xd64   :  { %v5020_v24 = vpop.f32.mrb[37].mxu1 }
 0xd65   :  { %5913 = vrcp.f32 %v3375_v26  ;;  %v5021_v23 = vadd.f32 %v5020_v24, %v5019_v45  ;;  %v5022_v55 = vpop.f32.mrb[38].mxu1  ;;  %v11344_v45 = vld [vmem:[#allocation59_spill] sm:$0xff] }
 0xd66   :  { %v5023_v50 = vpop.f32.mrb[39].mxu1 }
 0xd67   :  { %v3344_v8 = vmul.f32 %v5021_v23, %v11341_v39  ;;  %v5024_v46 = vadd.f32 %v5023_v50, %v5022_v55 }
 0xd69   :  { %v3376_v44 = vadd.f32 1e-06, %v3344_v8  ;;  %v3345_v42 = vmul.f32 %v5024_v46, %v11342_v63 }
 0xd6b   :  { %5915 = vrcp.f32 %v3376_v44  ;;  %v3377_v22 = vadd.f32 1e-06, %v3345_v42  ;;  %v5025_v1 = vpop.f32.mrb[40].mxu1  ;;  %v6328_v42 = vld [vmem:[%s10395_s3 + $0x10] sm:$0xff] }
 0xd6c   :  { %v5026_v37 = vpop.f32.mrb[41].mxu1 }
 0xd6d   :  { %v5912_v10 = vpop.eup %5911  ;;  %5917 = vrcp.f32 %v3377_v22  ;;  %v5027_v6 = vadd.f32 %v5026_v37, %v5025_v1  ;;  %v5028_v30 = vpop.f32.mrb[42].mxu1  ;;  %v3312_v22 = vmul.f32 %v6328_v42, %v11341_v39  ;;  %v6329_v1 = vld [vmem:[%s10395_s3 + $0x18] sm:$0xff] }
 0xd6e   :  { %v5029_v59 = vpop.f32.mrb[43].mxu1  ;;  %v10004_v5 = vmul.f32 %v5912_v10, %v3310_v61  ;;  %v3313_v37 = vmul.f32 %v6329_v1, %v11342_v63 }
 0xd6f   :  { %v5914_v25 = vpop.eup %5913  ;;  %v3346_v18 = vmul.f32 %v5027_v6, %v11343_v2  ;;  %v5030_v28 = vadd.f32 %v5029_v59, %v5028_v30  ;;  %v11345_v6 = vld [vmem:[#allocation65_spill] sm:$0xff] }
 0xd70   :  { %v10006_v40 = vmul.f32 %v5914_v25, %v3311_v60 }
 0xd71   :  { %v3378_v26 = vadd.f32 1e-06, %v3346_v18  ;;  %v3347_v24 = vmul.f32 %v5030_v28, %v11344_v45 }
 0xd73   :  { %5919 = vrcp.f32 %v3378_v26  ;;  %v3379_v23 = vadd.f32 1e-06, %v3347_v24  ;;  %v5031_v55 = vpop.f32.mrb[44].mxu1 }
 0xd74   :  { %v5032_v50 = vpop.f32.mrb[45].mxu1 }
 0xd75   :  { %v5916_v16 = vpop.eup %5915  ;;  %5921 = vrcp.f32 %v3379_v23  ;;  %v5033_v8 = vadd.f32 %v5032_v50, %v5031_v55  ;;  %v5034_v46 = vpop.f32.mrb[46].mxu1  ;;  %v6330_v55 = vld [vmem:[%s10395_s3 + $0x20] sm:$0xff] }
 0xd76   :  { %v5035_v44 = vpop.f32.mrb[47].mxu1  ;;  %v10020_v59 = vmul.f32 %v5916_v16, %v3312_v22  ;;  %v3314_v50 = vmul.f32 %v6330_v55, %v11343_v2  ;;  %v6331_v16 = vld [vmem:[%s10395_s3 + $0x28] sm:$0xff] }
 0xd77   :  { %v5918_v10 = vpop.eup %5917  ;;  %v3348_v30 = vmul.f32 %v5033_v8, %v11345_v6  ;;  %v5036_v12 = vadd.f32 %v5035_v44, %v5034_v46  ;;  %v3315_v8 = vmul.f32 %v6331_v16, %v11344_v45  ;;  %v11347_v44 = vld [vmem:[#allocation69_spill] sm:$0xff] }
 0xd78   :  { %v10022_v4 = vmul.f32 %v5918_v10, %v3313_v37  ;;  %v11349_v16 = vld [vmem:[#allocation21_spill] sm:$0xff] }
 0xd79   :  { %v3380_v61 = vadd.f32 1e-06, %v3348_v30  ;;  %v3349_v60 = vmul.f32 %v5036_v12, %v11346_v29  ;;  %v11348_v30 = vld [vmem:[#allocation67_spill] sm:$0xff] }
 0xd7b   :  { %5923 = vrcp.f32 %v3380_v61  ;;  %v3381_v25 = vadd.f32 1e-06, %v3349_v60  ;;  %v5037_v18 = vpop.f32.mrb[48].mxu1 }
 0xd7c   :  { %v5038_v28 = vpop.f32.mrb[49].mxu1 }
 0xd7d   :  { %v5920_v26 = vpop.eup %5919  ;;  %5925 = vrcp.f32 %v3381_v25  ;;  %v5039_v63 = vadd.f32 %v5038_v28, %v5037_v18  ;;  %v5040_v24 = vpop.f32.mrb[50].mxu1 }
 0xd7e   :  { %v5041_v23 = vpop.f32.mrb[51].mxu1  ;;  %v10036_v1 = vmul.f32 %v5920_v26, %v3314_v50  ;;  %v6332_v26 = vld [vmem:[%s10395_s3 + $0x30] sm:$0xff] }
 0xd7f   :  { %v5922_v46 = vpop.eup %5921  ;;  %v3350_v42 = vmul.f32 %v5039_v63, %v11347_v44  ;;  %v5042_v22 = vadd.f32 %v5041_v23, %v5040_v24  ;;  %v3316_v24 = vmul.f32 %v6332_v26, %v11345_v6  ;;  %v6333_v23 = vld [vmem:[%s10395_s3 + $0x38] sm:$0xff] }
 0xd80   :  { %v10038_v37 = vmul.f32 %v5922_v46, %v3315_v8  ;;  %v3317_v55 = vmul.f32 %v6333_v23, %v11346_v29 }
 0xd81   :  { %v3382_v10 = vadd.f32 1e-06, %v3350_v42  ;;  %v3351_v12 = vmul.f32 %v5042_v22, %v11348_v30 }
 0xd83   :  { %5927 = vrcp.f32 %v3382_v10  ;;  %v3383_v61 = vadd.f32 1e-06, %v3351_v12  ;;  %v5043_v60 = vpop.f32.mrb[52].mxu1  ;;  %v11350_v12 = vld [vmem:[#allocation71_spill] sm:$0xff] }
 0xd84   :  { %v5044_v25 = vpop.f32.mrb[53].mxu1 }
 0xd85   :  { %v5924_v18 = vpop.eup %5923  ;;  %5929 = vrcp.f32 %v3383_v61  ;;  %v5045_v45 = vadd.f32 %v5044_v25, %v5043_v60  ;;  %v5046_v28 = vpop.f32.mrb[54].mxu1 }
 0xd86   :  { %v5047_v63 = vpop.f32.mrb[55].mxu1  ;;  %v10052_v42 = vmul.f32 %v5924_v18, %v3316_v24  ;;  %v6334_v18 = vld [vmem:[%s10395_s3 + $0x40] sm:$0xff] }
 0xd87   :  { %v5926_v50 = vpop.eup %5925  ;;  %v3352_v8 = vmul.f32 %v5045_v45, %v11349_v16  ;;  %v5048_v46 = vadd.f32 %v5047_v63, %v5046_v28  ;;  %v3318_v28 = vmul.f32 %v6334_v18, %v11347_v44  ;;  %v6335_v63 = vld [vmem:[%s10395_s3 + $0x48] sm:$0xff] }
 0xd88   :  { %v10054_v22 = vmul.f32 %v5926_v50, %v3317_v55  ;;  %v3319_v24 = vmul.f32 %v6335_v63, %v11348_v30  ;;  %v11351_v50 = vld [vmem:[#allocation26_spill] sm:$0xff] }
 0xd89   :  { %v3384_v10 = vadd.f32 1e-06, %v3352_v8  ;;  %v3353_v61 = vmul.f32 %v5048_v46, %v11350_v12 }
 0xd8b   :  { %5931 = vrcp.f32 %v3384_v10  ;;  %v3385_v60 = vadd.f32 1e-06, %v3353_v61  ;;  %v5049_v25 = vpop.f32.mrb[56].mxu1 }
 0xd8c   :  { %v5050_v26 = vpop.f32.mrb[57].mxu1 }
 0xd8d   :  { %v5928_v2 = vpop.eup %5927  ;;  %5933 = vrcp.f32 %v3385_v60  ;;  %v5051_v29 = vadd.f32 %v5050_v26, %v5049_v25  ;;  %v5052_v23 = vpop.f32.mrb[58].mxu1  ;;  %v11352_v25 = vld [vmem:[#allocation20_spill] sm:$0xff] }
 0xd8e   :  { %v5053_v45 = vpop.f32.mrb[59].mxu1  ;;  %v10068_v10 = vmul.f32 %v5928_v2, %v3318_v28  ;;  %v6336_v2 = vld [vmem:[%s10395_s3 + $0x50] sm:$0xff] }
 0xd8f   :  { %v5930_v55 = vpop.eup %5929  ;;  %v3354_v8 = vmul.f32 %v5051_v29, %v11351_v50  ;;  %v5054_v46 = vadd.f32 %v5053_v45, %v5052_v23  ;;  %v3320_v23 = vmul.f32 %v6336_v2, %v11349_v16  ;;  %v6337_v45 = vld [vmem:[%s10395_s3 + $0x58] sm:$0xff] }
 0xd90   :  { %v10070_v61 = vmul.f32 %v5930_v55, %v3319_v24  ;;  %v3321_v28 = vmul.f32 %v6337_v45, %v11350_v12  ;;  %v11353_v55 = vld [vmem:[#allocation30_spill] sm:$0xff] }
 0xd91   :  { %v3386_v60 = vadd.f32 1e-06, %v3354_v8  ;;  %v3355_v26 = vmul.f32 %v5054_v46, %v11352_v25 }
 0xd93   :  { %5935 = vrcp.f32 %v3386_v60  ;;  %v3387_v18 = vadd.f32 1e-06, %v3355_v26  ;;  %v5055_v6 = vpop.f32.mrb[60].mxu1  ;;  %v11354_v26 = vld [vmem:[#allocation29_spill] sm:$0xff] }
 0xd94   :  { %v5056_v39 = vpop.f32.mrb[61].mxu1 }
 0xd95   :  { %v5932_v48 = vpop.eup %5931  ;;  %5937 = vrcp.f32 %v3387_v18  ;;  %v5057_v30 = vadd.f32 %v5056_v39, %v5055_v6  ;;  %v5058_v63 = vpop.f32.mrb[62].mxu1 }
 0xd96   :  { %v5059_v29 = vpop.f32.mrb[63].mxu1  ;;  %v10084_v60 = vmul.f32 %v5932_v48, %v3320_v23  ;;  %v6338_v48 = vld [vmem:[%s10395_s3 + $0x60] sm:$0xff] }
 0xd97   :  { %v5934_v24 = vpop.eup %5933  ;;  %v3356_v8 = vmul.f32 %v5057_v30, %v11353_v55  ;;  %v5060_v46 = vadd.f32 %v5059_v29, %v5058_v63  ;;  %v3322_v63 = vmul.f32 %v6338_v48, %v11351_v50  ;;  %v6339_v29 = vld [vmem:[%s10395_s3 + $0x68] sm:$0xff] }
 0xd98   :  { %v10086_v39 = vmul.f32 %v5934_v24, %v3321_v28  ;;  %v3323_v23 = vmul.f32 %v6339_v29, %v11352_v25  ;;  %v11355_v24 = vld [vmem:[#allocation15_spill] sm:$0xff] }
 0xd99   :  { %v3388_v6 = vadd.f32 1e-06, %v3356_v8  ;;  %v3357_v18 = vmul.f32 %v5060_v46, %v11354_v26 }
 0xd9b   :  { %5939 = vrcp.f32 %v3388_v6  ;;  %v3389_v2 = vadd.f32 1e-06, %v3357_v18  ;;  %v5061_v44 = vpop.f32.mrb[64].mxu1  ;;  %v11356_v18 = vld [vmem:[#allocation12_spill] sm:$0xff] }
 0xd9c   :  { %v5062_v0 = vpop.f32.mrb[65].mxu1 }
 0xd9d   :  { %v5936_v33 = vpop.eup %5935  ;;  %5941 = vrcp.f32 %v3389_v2  ;;  %v5063_v12 = vadd.f32 %v5062_v0, %v5061_v44  ;;  %v5064_v45 = vpop.f32.mrb[66].mxu1 }
 0xd9e   :  { %v5065_v30 = vpop.f32.mrb[67].mxu1  ;;  %v10100_v6 = vmul.f32 %v5936_v33, %v3322_v63  ;;  %v6340_v33 = vld [vmem:[%s10395_s3 + $0x70] sm:$0xff] }
 0xd9f   :  { %v5938_v28 = vpop.eup %5937  ;;  %v3358_v8 = vmul.f32 %v5063_v12, %v11355_v24  ;;  %v5066_v46 = vadd.f32 %v5065_v30, %v5064_v45  ;;  %v3324_v45 = vmul.f32 %v6340_v33, %v11353_v55  ;;  %v6341_v30 = vld [vmem:[%s10395_s3 + $0x78] sm:$0xff] }
 0xda0   :  { %v10102_v0 = vmul.f32 %v5938_v28, %v3323_v23  ;;  %v3325_v63 = vmul.f32 %v6341_v30, %v11354_v26  ;;  %v11357_v28 = vld [vmem:[#allocation58_spill] sm:$0xff] }
 0xda1   :  { %v3390_v44 = vadd.f32 1e-06, %v3358_v8  ;;  %v3359_v2 = vmul.f32 %v5066_v46, %v11356_v18 }
 0xda3   :  { %5943 = vrcp.f32 %v3390_v44  ;;  %v3391_v48 = vadd.f32 1e-06, %v3359_v2  ;;  %v5067_v16 = vpop.f32.mrb[68].mxu1  ;;  %v11358_v2 = vld [vmem:[#allocation56_spill] sm:$0xff] }
 0xda4   :  { %v5068_v32 = vpop.f32.mrb[69].mxu1 }
 0xda5   :  { %v5940_v35 = vpop.eup %5939  ;;  %5945 = vrcp.f32 %v3391_v48  ;;  %v5069_v25 = vadd.f32 %v5068_v32, %v5067_v16  ;;  %v5070_v29 = vpop.f32.mrb[70].mxu1 }
 0xda6   :  { %v5071_v12 = vpop.f32.mrb[71].mxu1  ;;  %v10116_v44 = vmul.f32 %v5940_v35, %v3324_v45  ;;  %v6342_v35 = vld [vmem:[%s10395_s3 + $0x80] sm:$0xff] }
 0xda7   :  { %v5942_v23 = vpop.eup %5941  ;;  %v3360_v8 = vmul.f32 %v5069_v25, %v11357_v28  ;;  %v5072_v46 = vadd.f32 %v5071_v12, %v5070_v29  ;;  %v3326_v29 = vmul.f32 %v6342_v35, %v11355_v24  ;;  %v6343_v12 = vld [vmem:[%s10395_s3 + $0x88] sm:$0xff] }
 0xda8   :  { %v10118_v32 = vmul.f32 %v5942_v23, %v3325_v63  ;;  %v3327_v45 = vmul.f32 %v6343_v12, %v11356_v18  ;;  %v11359_v23 = vld [vmem:[#allocation62_spill] sm:$0xff]  ;;  %v11361_v18 = vpack.c.bf16 %v10006_v40, %v10004_v5 }
 0xda9   :  { %v3392_v16 = vadd.f32 1e-06, %v3360_v8  ;;  %v3361_v48 = vmul.f32 %v5072_v46, %v11358_v2 }
 0xdab   :  { %5947 = vrcp.f32 %v3392_v16  ;;  %v3393_v33 = vadd.f32 1e-06, %v3361_v48  ;;  %v5073_v50 = vpop.f32.mrb[72].mxu1  ;;  %v11360_v48 = vld [vmem:[#allocation60_spill] sm:$0xff] }
 0xdac   :  { %v5074_v19 = vpop.f32.mrb[73].mxu1 }
 0xdad   :  { %v5944_v9 = vpop.eup %5943  ;;  %5949 = vrcp.f32 %v3393_v33  ;;  %v5075_v26 = vadd.f32 %v5074_v19, %v5073_v50  ;;  %v5076_v30 = vpop.f32.mrb[74].mxu1 }
 0xdae   :  { %v5077_v25 = vpop.f32.mrb[75].mxu1  ;;  %v3454_v16 = vmul.f32 %v5944_v9, %v3326_v29  ;;  %v6344_v9 = vld [vmem:[%s10395_s3 + $0x90] sm:$0xff] }
 0xdaf   :  { %v5946_v63 = vpop.eup %5945  ;;  %v3362_v8 = vmul.f32 %v5075_v26, %v11359_v23  ;;  %v5078_v46 = vadd.f32 %v5077_v25, %v5076_v30  ;;  %v3328_v30 = vmul.f32 %v6344_v9, %v11357_v28  ;;  %v6345_v25 = vld [vmem:[%s10395_s3 + $0x98] sm:$0xff] }
 0xdb0   :  { %v3455_v19 = vmul.f32 %v5946_v63, %v3327_v45  ;;  %v11363_v63 = vld [vmem:[#allocation64_spill] sm:$0xff] }
 0xdb1   :  { %v3394_v50 = vadd.f32 1e-06, %v3362_v8  ;;  %v3363_v33 = vmul.f32 %v5078_v46, %v11360_v48 }
 0xdb2   :  { %v3478_v55 = vpack.c.bf16 %v3455_v19, %v3454_v16 }
 0xdb3   :  { %5951 = vrcp.f32 %v3394_v50  ;;  %v3395_v56 = vadd.f32 1e-06, %v3363_v33  ;;  %v5079_v49 = vpop.f32.mrb[76].mxu1 }
 0xdb4   :  { %v5080_v24 = vpop.f32.mrb[77].mxu1  ;;  %5109 = vmatprep.subr.bf16.mxu0 %v3478_v55  ;;  %v3329_v55 = vmul.f32 %v6345_v25, %v11358_v2  ;;  %v11364_v2 = vpack.c.bf16 %v10022_v4, %v10020_v59 }
 0xdb5   :  { %v5948_v35 = vpop.eup %5947  ;;  %5953 = vrcp.f32 %v3395_v56  ;;  %v5081_v21 = vadd.f32 %v5080_v24, %v5079_v49  ;;  %v5082_v51 = vpop.f32.mrb[78].mxu1  ;;  %5110 = vmatpush3.bf16.msra.mxu0 %v11361_v18  ;;  %v11362_v49 = vld [vmem:[#allocation66_spill] sm:$0xff] }
 0xdb6   :  { %v5083_v26 = vpop.f32.mrb[79].mxu1  ;;  %v3456_v45 = vmul.f32 %v5948_v35, %v3328_v30  ;;  %v6347_v18 = vld [vmem:[%s10395_s3 + $0xa8] sm:$0xff] }
 0xdb7   :  { %v5950_v56 = vpop.eup %5949  ;;  %v3364_v29 = vmul.f32 %v5081_v21, %v11362_v49  ;;  %v5084_v12 = vadd.f32 %v5083_v26, %v5082_v51  ;;  %v6346_v21 = vld [vmem:[%s10395_s3 + $0xa0] sm:$0xff]  ;;  %v3331_v26 = vmul.f32 %v6347_v18, %v11360_v48  ;;  %v11365_v30 = vld [vmem:[#allocation70_spill] sm:$0xff]  ;;  %v11367_v48 = vpack.c.bf16 %v10038_v37, %v10036_v1 }
 0xdb8   :  { %v3457_v5 = vmul.f32 %v5950_v56, %v3329_v55  ;;  %v3330_v35 = vmul.f32 %v6346_v21, %v11359_v23 }
 0xdb9   :  { %v3396_v40 = vadd.f32 1e-06, %v3364_v29  ;;  %v3365_v8 = vmul.f32 %v5084_v12, %v11363_v63  ;;  %v11366_v29 = vld [vmem:[#allocation68_spill] sm:$0xff] }
 0xdba   :  { %v3479_v46 = vpack.c.bf16 %v3457_v5, %v3456_v45 }
 0xdbb   :  { %5955 = vrcp.f32 %v3396_v40  ;;  %v3397_v16 = vadd.f32 1e-06, %v3365_v8  ;;  %v5085_v19 = vpop.f32.mrb[80].mxu1 }
 0xdbc   :  { %v5086_v28 = vpop.f32.mrb[81].mxu1  ;;  %5111 = vmatprep.subr.bf16.mxu0 %v3479_v46 }
 0xdbd   :  { %v5952_v50 = vpop.eup %5951  ;;  %5957 = vrcp.f32 %v3397_v16  ;;  %v5087_v33 = vadd.f32 %v5086_v28, %v5085_v19  ;;  %v5088_v24 = vpop.f32.mrb[82].mxu1  ;;  %5112 = vmatpush3.bf16.msra.mxu0 %v11364_v2  ;;  %v6348_v28 = vld [vmem:[%s10395_s3 + $0xb0] sm:$0xff] }
 0xdbe   :  { %v5089_v51 = vpop.f32.mrb[83].mxu1  ;;  %v3458_v56 = vmul.f32 %v5952_v50, %v3330_v35  ;;  %v3332_v50 = vmul.f32 %v6348_v28, %v11362_v49 }
 0xdbf   :  { %v5954_v9 = vpop.eup %5953  ;;  %v3366_v25 = vmul.f32 %v5087_v33, %v11365_v30  ;;  %v5090_v55 = vadd.f32 %v5089_v51, %v5088_v24  ;;  %v6349_v33 = vld [vmem:[%s10395_s3 + $0xb8] sm:$0xff] }
 0xdc0   :  { %v3459_v59 = vmul.f32 %v5954_v9, %v3331_v26  ;;  %v3333_v24 = vmul.f32 %v6349_v33, %v11363_v63  ;;  %v11368_v51 = vld [vmem:[#allocation19_spill] sm:$0xff]  ;;  %v11369_v26 = vld [vmem:[#allocation18_spill] sm:$0xff]  ;;  %v11370_v63 = vpack.c.bf16 %v10054_v22, %v10052_v42 }
 0xdc1   :  { %v3398_v4 = vadd.f32 1e-06, %v3366_v25  ;;  %v3367_v12 = vmul.f32 %v5090_v55, %v11366_v29 }
 0xdc2   :  { %v3480_v45 = vpack.c.bf16 %v3459_v59, %v3458_v56 }
 0xdc3   :  { %5959 = vrcp.f32 %v3398_v4  ;;  %v3399_v5 = vadd.f32 1e-06, %v3367_v12  ;;  %v5091_v40 = vpop.f32.mrb[84].mxu1 }
 0xdc4   :  { %v5092_v23 = vpop.f32.mrb[85].mxu1  ;;  %5113 = vmatprep.subr.bf16.mxu0 %v3480_v45 }
 0xdc5   :  { %v5956_v8 = vpop.eup %5955  ;;  %5961 = vrcp.f32 %v3399_v5  ;;  %v5093_v46 = vadd.f32 %v5092_v23, %v5091_v40  ;;  %v5094_v16 = vpop.f32.mrb[86].mxu1  ;;  %5114 = vmatpush3.bf16.msra.mxu0 %v11367_v48  ;;  %v6350_v5 = vld [vmem:[%s10395_s3 + $0xc0] sm:$0xff]  ;;  %v6351_v23 = vld [vmem:[%s10395_s3 + $0xc8] sm:$0xff] }
 0xdc6   :  { %v5095_v19 = vpop.f32.mrb[87].mxu1  ;;  %v3460_v18 = vmul.f32 %v5956_v8, %v3332_v50  ;;  %v3334_v40 = vmul.f32 %v6350_v5, %v11365_v30  ;;  %v3335_v8 = vmul.f32 %v6351_v23, %v11366_v29  ;;  %v11372_v50 = vld [vmem:[#allocation27_spill] sm:$0xff]  ;;  %v11373_v29 = vpack.c.bf16 %v10070_v61, %v10068_v10 }
 0xdc7   :  { %v5958_v2 = vpop.eup %5957  ;;  %v3368_v21 = vmul.f32 %v5093_v46, %v11368_v51  ;;  %v5096_v35 = vadd.f32 %v5095_v19, %v5094_v16  ;;  %v11371_v16 = vld [vmem:[#allocation24_spill] sm:$0xff] }
 0xdc8   :  { %v3461_v1 = vmul.f32 %v5958_v2, %v3333_v24 }
 0xdc9   :  { %v3400_v37 = vadd.f32 1e-06, %v3368_v21  ;;  %v3369_v9 = vmul.f32 %v5096_v35, %v11369_v26 }
 0xdca   :  { %v3481_v25 = vpack.c.bf16 %v3461_v1, %v3460_v18 }
 0xdcb   :  { %5963 = vrcp.f32 %v3400_v37  ;;  %v3401_v55 = vadd.f32 1e-06, %v3369_v9  ;;  %v5097_v56 = vpop.f32.mrb[88].mxu1  ;;  %v6352_v9 = vld [vmem:[%s10395_s3 + $0xd0] sm:$0xff] }
 0xdcc   :  { %v5098_v49 = vpop.f32.mrb[89].mxu1  ;;  %5115 = vmatprep.subr.bf16.mxu0 %v3481_v25  ;;  %v3336_v25 = vmul.f32 %v6352_v9, %v11368_v51  ;;  %v5296_v9 = vld [vmem:[%s10393_s1 + $0x30] ss:$8 sps:$4 sm:$0xff]  }
 0xdcd   :  { %v5960_v59 = vpop.eup %5959  ;;  %5965 = vrcp.f32 %v3401_v55  ;;  %v5099_v4 = vadd.f32 %v5098_v49, %v5097_v56  ;;  %v5100_v12 = vpop.f32.mrb[90].mxu1  ;;  %5116 = vmatpush3.bf16.msra.mxu0 %v11370_v63  ;;  %v6353_v55 = vld [vmem:[%s10395_s3 + $0xd8] sm:$0xff] }
 0xdce   :  { %v5101_v45 = vpop.f32.mrb[91].mxu1  ;;  %v3462_v28 = vmul.f32 %v5960_v59, %v3334_v40  ;;  %v3337_v56 = vmul.f32 %v6353_v55, %v11369_v26  ;;  %v11374_v59 = vld [vmem:[#allocation28_spill] sm:$0xff] }
 0xdcf   :  { %v5962_v46 = vpop.eup %5961  ;;  %v3370_v48 = vmul.f32 %v5099_v4, %v11371_v16  ;;  %v5102_v19 = vadd.f32 %v5101_v45, %v5100_v12  ;;  %v11375_v45 = vld [vmem:[#allocation31_spill] sm:$0xff]  ;;  %v6354_v26 = vld [vmem:[%s10395_s3 + $0xe0] sm:$0xff] }
 0xdd0   :  { %v3463_v42 = vmul.f32 %v5962_v46, %v3335_v8  ;;  %v11376_v8 = vpack.c.bf16 %v10086_v39, %v10084_v60  ;;  %v3338_v46 = vmul.f32 %v6354_v26, %v11371_v16  ;;  %v11377_v60 = vpack.c.bf16 %v10102_v0, %v10100_v6  ;;  %v6356_v39 = vld [vmem:[%s10395_s3 + $0xf0] sm:$0xff]  ;;  %v5287_v6 = vld [vmem:[%s10393_s1] ss:$8 sps:$4 sm:$0xff]   ;;  %v5325_v26 = vld [vmem:[%s10393_s1 + $0xc4] ss:$8 sps:$4 sm:$0xff]  }
 0xdd1   :  { %v3402_v22 = vadd.f32 1e-06, %v3370_v48  ;;  %v3371_v33 = vmul.f32 %v5102_v19, %v11372_v50  ;;  %v6355_v48 = vld [vmem:[%s10395_s3 + $0xe8] sm:$0xff]  ;;  %v3340_v16 = vmul.f32 %v6356_v39, %v11374_v59  ;;  %v11378_v0 = vpack.c.bf16 %v10118_v32, %v10116_v44  ;;  %v5298_v32 = vld [vmem:[%s10393_s1 + $0x34] ss:$8 sps:$4 sm:$0xff]  }
 0xdd2   :  { %v3482_v24 = vpack.c.bf16 %v3463_v42, %v3462_v28  ;;  %v3339_v19 = vmul.f32 %v6355_v48, %v11372_v50  ;;  %v6357_v50 = vld [vmem:[%s10395_s3 + $0xf8] sm:$0xff]  ;;  %v5293_v44 = vld [vmem:[%s10393_s1 + $0x20] ss:$8 sps:$4 sm:$0xff]  }
 0xdd3   :  { %5967 = vrcp.f32 %v3402_v22  ;;  %v3403_v2 = vadd.f32 1e-06, %v3371_v33  ;;  %v5103_v21 = vpop.f32.mrb[92].mxu1  ;;  %v5299_v55 = vld [vmem:[%s10393_s1 + $0x40] ss:$8 sps:$4 sm:$0xff]  }
 0xdd4   :  { %v5104_v30 = vpop.f32.mrb[93].mxu1  ;;  %5117 = vmatprep.subr.bf16.mxu0 %v3482_v24  ;;  %v5328_v48 = vld [vmem:[%s10393_s1 + $0xd4] ss:$8 sps:$4 sm:$0xff]  }
 0xdd5   :  { %v5964_v35 = vpop.eup %5963  ;;  %5969 = vrcp.f32 %v3403_v2  ;;  %v5105_v18 = vadd.f32 %v5104_v30, %v5103_v21  ;;  %v5106_v1 = vpop.f32.mrb[94].mxu1  ;;  %5118 = vmatpush3.bf16.msra.mxu0 %v11373_v29  ;;  %v3341_v2 = vmul.f32 %v6357_v50, %v11375_v45  ;;  %v5290_v29 = vld [vmem:[%s10393_s1 + $0x10] ss:$8 sps:$4 sm:$0xff]  }
 0xdd6   :  { %v5107_v37 = vpop.f32.mrb[95].mxu1  ;;  %v3464_v63 = vmul.f32 %v5964_v35, %v3336_v25  ;;  %v5301_v25 = vld [vmem:[%s10393_s1 + $0x44] ss:$8 sps:$4 sm:$0xff]  }
 0xdd7   :  { %v5966_v49 = vpop.eup %5965  ;;  %v3372_v4 = vmul.f32 %v5105_v18, %v11374_v59  ;;  %v5108_v12 = vadd.f32 %v5107_v37, %v5106_v1  ;;  %v5292_v1 = vld [vmem:[%s10393_s1 + $0x14] ss:$8 sps:$4 sm:$0xff]   ;;  %v5295_v37 = vld [vmem:[%s10393_s1 + $0x24] ss:$8 sps:$4 sm:$0xff]  }
 0xdd8   :  { %v3465_v10 = vmul.f32 %v5966_v49, %v3337_v56  ;;  %v5304_v56 = vld [vmem:[%s10393_s1 + $0x54] ss:$8 sps:$4 sm:$0xff]   ;;  %v5302_v49 = vld [vmem:[%s10393_s1 + $0x50] ss:$8 sps:$4 sm:$0xff]   ;;  %v5307_v59 = vld [vmem:[%s10393_s1 + $0x64] ss:$8 sps:$4 sm:$0xff]  }
 0xdd9   :  { %v3404_v61 = vadd.f32 1e-06, %v3372_v4  ;;  %v3373_v5 = vmul.f32 %v5108_v12, %v11375_v45  ;;  %v5305_v4 = vld [vmem:[%s10393_s1 + $0x60] ss:$8 sps:$4 sm:$0xff]   ;;  %v5310_v12 = vld [vmem:[%s10393_s1 + $0x74] ss:$8 sps:$4 sm:$0xff]  }
 0xdda   :  { %v3483_v40 = vpack.c.bf16 %v3465_v10, %v3464_v63  ;;  %v5308_v63 = vld [vmem:[%s10393_s1 + $0x70] ss:$8 sps:$4 sm:$0xff]   ;;  %v5313_v10 = vld [vmem:[%s10393_s1 + $0x84] ss:$8 sps:$4 sm:$0xff]   ;;  %v5316_v45 = vld [vmem:[%s10393_s1 + $0x94] ss:$8 sps:$4 sm:$0xff]  }
 0xddb   :  { %5971 = vrcp.f32 %v3404_v61  ;;  %v3405_v23 = vadd.f32 1e-06, %v3373_v5  ;;  %v5311_v61 = vld [vmem:[%s10393_s1 + $0x80] ss:$8 sps:$4 sm:$0xff]   ;;  %v5314_v5 = vld [vmem:[%s10393_s1 + $0x90] ss:$8 sps:$4 sm:$0xff]  }
 0xddc   :  { %5119 = vmatprep.subr.bf16.mxu0 %v3483_v40  ;;  %v5319_v40 = vld [vmem:[%s10393_s1 + $0xa4] ss:$8 sps:$4 sm:$0xff]  }
 0xddd   :  { %v5968_v51 = vpop.eup %5967  ;;  %5973 = vrcp.f32 %v3405_v23  ;;  %5120 = vmatpush3.bf16.msra.mxu0 %v11376_v8  ;;  %v5317_v23 = vld [vmem:[%s10393_s1 + $0xa0] ss:$8 sps:$4 sm:$0xff]   ;;  %v5320_v8 = vld [vmem:[%s10393_s1 + $0xb0] ss:$8 sps:$4 sm:$0xff]  }
 0xdde   :  { %v3466_v42 = vmul.f32 %v5968_v51, %v3338_v46  ;;  %v5322_v51 = vld [vmem:[%s10393_s1 + $0xb4] ss:$8 sps:$4 sm:$0xff]   ;;  %v5323_v46 = vld [vmem:[%s10393_s1 + $0xc0] ss:$8 sps:$4 sm:$0xff]  }
 0xddf   :  { %v5970_v28 = vpop.eup %5969 }
 0xde0   :  { %v3467_v22 = vmul.f32 %v5970_v28, %v3339_v19  ;;  %v5326_v19 = vld [vmem:[%s10393_s1 + $0xd0] ss:$8 sps:$4 sm:$0xff]   ;;  %v5331_v28 = vld [vmem:[%s10393_s1 + $0xe4] ss:$8 sps:$4 sm:$0xff]  }
 0xde2   :  { %v3484_v33 = vpack.c.bf16 %v3467_v22, %v3466_v42  ;;  %v5329_v42 = vld [vmem:[%s10393_s1 + $0xe0] ss:$8 sps:$4 sm:$0xff]   ;;  %v5334_v22 = vld [vmem:[%s10393_s1 + $0xf4] ss:$8 sps:$4 sm:$0xff]  }
 0xde4   :  { %5121 = vmatprep.subr.bf16.mxu0 %v3484_v33  ;;  %v5332_v33 = vld [vmem:[%s10393_s1 + $0xf0] ss:$8 sps:$4 sm:$0xff]   ;;  %s6383_s1 = smov [#allocation2]  }
 0xde5   :  { %v5972_v24 = vpop.eup %5971  ;;  %5122 = vmatpush3.bf16.msra.mxu0 %v11377_v60  ;;  %s3917_s3 = sshll.u32 %s6383_s1, 4  ;;  %s3918_s3 = int_to_ptr.vmem [resolvable:$true] %s3917_s3 }
 0xde6   :  { %v3468_v30 = vmul.f32 %v5972_v24, %v3340_v16  ;;  %s6358_s9 = scalar_lea.vmem %s3918_s3, 16  ;;  %s6362_s10 = scalar_lea.vmem %s3918_s3, 32 }
 0xde7   :  { %v5974_v21 = vpop.eup %5973  ;;  %p6359_p0 = scmp.ne.s32.totalorder %s3918_s3, %s6358_s9  ;;  %p6363_p1 = scmp.lt.s32.totalorder %s3918_s3, %s3918_s3 }
 0xde8   :  { %v3469_v35 = vmul.f32 %v5974_v21, %v3341_v2  ;;  %p6364_p2 = scmp.lt.s32.totalorder %s6362_s10, %s6358_s9 }
 0xdea   :  { %v3485_v18 = vpack.c.bf16 %v3469_v35, %v3468_v30  ;;  %p6365_p3 = por %p6364_p2, %p6363_p1 }
 0xdec   :  { %5123 = vmatprep.subr.bf16.mxu0 %v3485_v18  ;;  %p6366_p4 = pnand %p6365_p3, %p6359_p0 }
 0xded   :  { %5124 = vmatpush3.bf16.msra.mxu0 %v11378_v0 }
 0xdf0   :  { %3679 = vmatmul.mubr.bf16.vlgmr.msra.gmra.mrb[32].mxu0 %v5287_v6 }
 0xdf1   :  { %3686 = vmatprep.mubr.bf16.mxu0 %v5292_v1 }
 0xdf8   :  { %3687 = vmatmul.mubr.bf16.gmra.mrb[36].mxu0 %v5290_v29 }
 0xdf9   :  { %3694 = vmatprep.mubr.bf16.mxu0 %v5295_v37 }
 0xe00   :  { %3695 = vmatmul.mubr.bf16.gmra.mrb[40].mxu0 %v5293_v44 }
 0xe01   :  { %3702 = vmatprep.mubr.bf16.mxu0 %v5298_v32 }
 0xe08   :  { %3703 = vmatmul.mubr.bf16.gmra.mrb[44].mxu0 %v5296_v9 }
 0xe09   :  { %3710 = vmatprep.mubr.bf16.mxu0 %v5301_v25 }
 0xe10   :  { %3711 = vmatmul.mubr.bf16.gmra.mrb[48].mxu0 %v5299_v55 }
 0xe11   :  { %3718 = vmatprep.mubr.bf16.mxu0 %v5304_v56 }
 0xe18   :  { %3719 = vmatmul.mubr.bf16.gmra.mrb[52].mxu0 %v5302_v49 }
 0xe19   :  { %3726 = vmatprep.mubr.bf16.mxu0 %v5307_v59 }
 0xe20   :  { %3727 = vmatmul.mubr.bf16.gmra.mrb[56].mxu0 %v5305_v4 }
 0xe21   :  { %3734 = vmatprep.mubr.bf16.mxu0 %v5310_v12 }
 0xe28   :  { %3735 = vmatmul.mubr.bf16.gmra.mrb[60].mxu0 %v5308_v63 }
 0xe29   :  { %3742 = vmatprep.mubr.bf16.mxu0 %v5313_v10 }
 0xe30   :  { %3743 = vmatmul.mubr.bf16.gmra.mrb[64].mxu0 %v5311_v61 }
 0xe31   :  { %3750 = vmatprep.mubr.bf16.mxu0 %v5316_v45 }
 0xe38   :  { %3751 = vmatmul.mubr.bf16.gmra.mrb[68].mxu0 %v5314_v5 }
 0xe39   :  { %3758 = vmatprep.mubr.bf16.mxu0 %v5319_v40 }
 0xe40   :  { %3759 = vmatmul.mubr.bf16.gmra.mrb[72].mxu0 %v5317_v23 }
 0xe41   :  { %3766 = vmatprep.mubr.bf16.mxu0 %v5322_v51 }
 0xe48   :  { %3767 = vmatmul.mubr.bf16.gmra.mrb[76].mxu0 %v5320_v8 }
 0xe49   :  { %3774 = vmatprep.mubr.bf16.mxu0 %v5325_v26 }
 0xe50   :  { %3775 = vmatmul.mubr.bf16.gmra.mrb[80].mxu0 %v5323_v46 }
 0xe51   :  { %3782 = vmatprep.mubr.bf16.mxu0 %v5328_v48 }
 0xe58   :  { %3783 = vmatmul.mubr.bf16.gmra.mrb[84].mxu0 %v5326_v19 }
 0xe59   :  { %3790 = vmatprep.mubr.bf16.mxu0 %v5331_v28 }
 0xe60   :  { %3791 = vmatmul.mubr.bf16.gmra.mrb[88].mxu0 %v5329_v42 }
 0xe61   :  { %3798 = vmatprep.mubr.bf16.mxu0 %v5334_v22 }
 0xe68   :  { %3799 = vmatmul.mubr.bf16.gmra.mrb[92].mxu0 %v5332_v33 }
 0xec3   :  { %v5125_v24 = vpop.f32.mrb[32].mxu0 }
 0xec4   :  { %v5126_v60 = vpop.f32.mrb[33].mxu0 }
 0xec5   :  { %v5127_v39 = vadd.f32 %v5126_v60, %v5125_v24  ;;  %v5128_v16 = vpop.f32.mrb[34].mxu0 }
 0xec6   :  { %v5129_v50 = vpop.f32.mrb[35].mxu0 }
 0xec7   :  { %v3807_v2 = vmul.f32 %v5127_v39, %v9725_v58  ;;  %v5130_v21 = vadd.f32 %v5129_v50, %v5128_v16 }
 0xec9   :  { %v3808_v30 = vmul.f32 %v5130_v21, %v9718_v38  ;;  %v3840_v35 = vsel %vm3839_vm0, %v3807_v2, 0.0 }
 0xecb   :  { %v3841_v18 = vsel %vm3839_vm0, %v3808_v30, 0.0  ;;  %v5131_v6 = vpop.f32.mrb[36].mxu0 }
 0xecc   :  { %v3842_v0 = vadd.f32 %v3841_v18, %v3840_v35  ;;  %v5132_v1 = vpop.f32.mrb[37].mxu0 }
 0xecd   :  { %v5133_v29 = vadd.f32 %v5132_v1, %v5131_v6  ;;  %v5134_v37 = vpop.f32.mrb[38].mxu0 }
 0xece   :  { %v5135_v44 = vpop.f32.mrb[39].mxu0 }
 0xecf   :  { %v3809_v32 = vmul.f32 %v5133_v29, %v9759_v14  ;;  %v5136_v9 = vadd.f32 %v5135_v44, %v5134_v37 }
 0xed1   :  { %v3843_v25 = vsel %vm3839_vm0, %v3809_v32, 0.0  ;;  %v3810_v58 = vmul.f32 %v5136_v9, %v9752_v43 }
 0xed2   :  { %v3844_v55 = vadd.f32 %v3843_v25, %v3842_v0 }
 0xed3   :  { %v3845_v38 = vsel %vm3839_vm0, %v3810_v58, 0.0  ;;  %v5137_v56 = vpop.f32.mrb[40].mxu0 }
 0xed4   :  { %v3846_v49 = vadd.f32 %v3845_v38, %v3844_v55  ;;  %v5138_v59 = vpop.f32.mrb[41].mxu0 }
 0xed5   :  { %v5139_v4 = vadd.f32 %v5138_v59, %v5137_v56  ;;  %v5140_v12 = vpop.f32.mrb[42].mxu0 }
 0xed6   :  { %v5141_v63 = vpop.f32.mrb[43].mxu0 }
 0xed7   :  { %v3811_v10 = vmul.f32 %v5139_v4, %v9793_v31  ;;  %v5142_v61 = vadd.f32 %v5141_v63, %v5140_v12 }
 0xed9   :  { %v3847_v45 = vsel %vm3839_vm0, %v3811_v10, 0.0  ;;  %v3812_v14 = vmul.f32 %v5142_v61, %v9786_v3 }
 0xeda   :  { %v3848_v5 = vadd.f32 %v3847_v45, %v3846_v49 }
 0xedb   :  { %v3849_v40 = vsel %vm3839_vm0, %v3812_v14, 0.0  ;;  %v5143_v43 = vpop.f32.mrb[44].mxu0 }
 0xedc   :  { %v3850_v23 = vadd.f32 %v3849_v40, %v3848_v5  ;;  %v5144_v51 = vpop.f32.mrb[45].mxu0 }
 0xedd   :  { %v5145_v8 = vadd.f32 %v5144_v51, %v5143_v43  ;;  %v5146_v26 = vpop.f32.mrb[46].mxu0 }
 0xede   :  { %v5147_v46 = vpop.f32.mrb[47].mxu0 }
 0xedf   :  { %v3813_v48 = vmul.f32 %v5145_v8, %v9827_v57  ;;  %v5148_v19 = vadd.f32 %v5147_v46, %v5146_v26 }
 0xee1   :  { %v3851_v28 = vsel %vm3839_vm0, %v3813_v48, 0.0  ;;  %v3814_v31 = vmul.f32 %v5148_v19, %v9820_v41 }
 0xee2   :  { %v3852_v42 = vadd.f32 %v3851_v28, %v3850_v23 }
 0xee3   :  { %v3853_v22 = vsel %vm3839_vm0, %v3814_v31, 0.0  ;;  %v5149_v3 = vpop.f32.mrb[48].mxu0 }
 0xee4   :  { %v3854_v33 = vadd.f32 %v3853_v22, %v3852_v42  ;;  %v5150_v24 = vpop.f32.mrb[49].mxu0 }
 0xee5   :  { %v5151_v60 = vadd.f32 %v5150_v24, %v5149_v3  ;;  %v5152_v39 = vpop.f32.mrb[50].mxu0 }
 0xee6   :  { %v5153_v16 = vpop.f32.mrb[51].mxu0 }
 0xee7   :  { %v3815_v50 = vmul.f32 %v5151_v60, %v9861_v15  ;;  %v5154_v2 = vadd.f32 %v5153_v16, %v5152_v39 }
 0xee9   :  { %v3855_v21 = vsel %vm3839_vm0, %v3815_v50, 0.0  ;;  %v3816_v57 = vmul.f32 %v5154_v2, %v9854_v13 }
 0xeea   :  { %v3856_v30 = vadd.f32 %v3855_v21, %v3854_v33 }
 0xeeb   :  { %v3857_v35 = vsel %vm3839_vm0, %v3816_v57, 0.0  ;;  %v5155_v41 = vpop.f32.mrb[52].mxu0 }
 0xeec   :  { %v3858_v18 = vadd.f32 %v3857_v35, %v3856_v30  ;;  %v5156_v6 = vpop.f32.mrb[53].mxu0 }
 0xeed   :  { %v5157_v0 = vadd.f32 %v5156_v6, %v5155_v41  ;;  %v5158_v1 = vpop.f32.mrb[54].mxu0 }
 0xeee   :  { %v5159_v29 = vpop.f32.mrb[55].mxu0 }
 0xeef   :  { %v3817_v37 = vmul.f32 %v5157_v0, %v9895_v7  ;;  %v5160_v44 = vadd.f32 %v5159_v29, %v5158_v1 }
 0xef1   :  { %v3859_v32 = vsel %vm3839_vm0, %v3817_v37, 0.0  ;;  %v3818_v15 = vmul.f32 %v5160_v44, %v9888_v54 }
 0xef2   :  { %v3860_v9 = vadd.f32 %v3859_v32, %v3858_v18 }
 0xef3   :  { %v3861_v25 = vsel %vm3839_vm0, %v3818_v15, 0.0  ;;  %v5161_v13 = vpop.f32.mrb[56].mxu0 }
 0xef4   :  { %v3862_v58 = vadd.f32 %v3861_v25, %v3860_v9  ;;  %v5162_v55 = vpop.f32.mrb[57].mxu0 }
 0xef5   :  { %v5163_v38 = vadd.f32 %v5162_v55, %v5161_v13  ;;  %v5164_v56 = vpop.f32.mrb[58].mxu0 }
 0xef6   :  { %v5165_v49 = vpop.f32.mrb[59].mxu0 }
 0xef7   :  { %v3819_v59 = vmul.f32 %v5163_v38, %v9923_v34  ;;  %v5166_v4 = vadd.f32 %v5165_v49, %v5164_v56  ;;  %v11379_v56 = vld [vmem:[#allocation17_spill] sm:$0xff] }
 0xef9   :  { %v3863_v12 = vsel %vm3839_vm0, %v3819_v59, 0.0  ;;  %v3820_v7 = vmul.f32 %v5166_v4, %v9917_v53 }
 0xefa   :  { %v3864_v63 = vadd.f32 %v3863_v12, %v3862_v58 }
 0xefb   :  { %v3865_v10 = vsel %vm3839_vm0, %v3820_v7, 0.0  ;;  %v5167_v54 = vpop.f32.mrb[60].mxu0 }
 0xefc   :  { %v3866_v61 = vadd.f32 %v3865_v10, %v3864_v63  ;;  %v5168_v45 = vpop.f32.mrb[61].mxu0 }
 0xefd   :  { %v5169_v14 = vadd.f32 %v5168_v45, %v5167_v54  ;;  %v5170_v5 = vpop.f32.mrb[62].mxu0 }
 0xefe   :  { %v5171_v40 = vpop.f32.mrb[63].mxu0 }
 0xeff   :  { %v3821_v43 = vmul.f32 %v5169_v14, %v9951_v17  ;;  %v5172_v23 = vadd.f32 %v5171_v40, %v5170_v5  ;;  %v11381_v5 = vld [vmem:[#allocation51_spill] sm:$0xff] }
 0xf01   :  { %v3867_v51 = vsel %vm3839_vm0, %v3821_v43, 0.0  ;;  %v3822_v34 = vmul.f32 %v5172_v23, %v9945_v36 }
 0xf02   :  { %v3868_v8 = vadd.f32 %v3867_v51, %v3866_v61  ;;  %v11382_v51 = vld [vmem:[#allocation54_spill] sm:$0xff] }
 0xf03   :  { %v3869_v26 = vsel %vm3839_vm0, %v3822_v34, 0.0  ;;  %v5173_v53 = vpop.f32.mrb[64].mxu0 }
 0xf04   :  { %v3870_v46 = vadd.f32 %v3869_v26, %v3868_v8  ;;  %v5174_v48 = vpop.f32.mrb[65].mxu0 }
 0xf05   :  { %v5175_v19 = vadd.f32 %v5174_v48, %v5173_v53  ;;  %v5176_v28 = vpop.f32.mrb[66].mxu0 }
 0xf06   :  { %v5177_v31 = vpop.f32.mrb[67].mxu0 }
 0xf07   :  { %v3823_v42 = vmul.f32 %v5175_v19, %v9720_v20  ;;  %v5178_v22 = vadd.f32 %v5177_v31, %v5176_v28 }
 0xf09   :  { %v3871_v3 = vsel %vm3839_vm0, %v3823_v42, 0.0  ;;  %v3824_v17 = vmul.f32 %v5178_v22, %v9722_v27  ;;  %v11383_v42 = vld [vmem:[#allocation23_spill] sm:$0xff] }
 0xf0a   :  { %v3872_v33 = vadd.f32 %v3871_v3, %v3870_v46 }
 0xf0b   :  { %v3873_v24 = vsel %vm3839_vm0, %v3824_v17, 0.0  ;;  %v5179_v36 = vpop.f32.mrb[68].mxu0 }
 0xf0c   :  { %v3874_v60 = vadd.f32 %v3873_v24, %v3872_v33  ;;  %v5180_v39 = vpop.f32.mrb[69].mxu0  ;;  %v11384_v33 = vld [vmem:[#allocation22_spill] sm:$0xff] }
 0xf0d   :  { %v5181_v16 = vadd.f32 %v5180_v39, %v5179_v36  ;;  %v5182_v50 = vpop.f32.mrb[70].mxu0 }
 0xf0e   :  { %v5183_v2 = vpop.f32.mrb[71].mxu0 }
 0xf0f   :  { %v3825_v21 = vmul.f32 %v5181_v16, %v9754_v62  ;;  %v5184_v57 = vadd.f32 %v5183_v2, %v5182_v50 }
 0xf11   :  { %v3875_v30 = vsel %vm3839_vm0, %v3825_v21, 0.0  ;;  %v3826_v20 = vmul.f32 %v5184_v57, %v9756_v11 }
 0xf12   :  { %v3876_v35 = vadd.f32 %v3875_v30, %v3874_v60  ;;  %v11385_v30 = vld [vmem:[#allocation25_spill] sm:$0xff] }
 0xf13   :  { %v3877_v41 = vsel %vm3839_vm0, %v3826_v20, 0.0  ;;  %v5185_v27 = vpop.f32.mrb[72].mxu0 }
 0xf14   :  { %v3878_v18 = vadd.f32 %v3877_v41, %v3876_v35  ;;  %v5186_v6 = vpop.f32.mrb[73].mxu0 }
 0xf15   :  { %v5187_v0 = vadd.f32 %v5186_v6, %v5185_v27  ;;  %v5188_v1 = vpop.f32.mrb[74].mxu0  ;;  %v11386_v27 = vld [vmem:[#allocation6_spill] sm:$0xff] }
 0xf16   :  { %v5189_v29 = vpop.f32.mrb[75].mxu0 }
 0xf17   :  { %v3827_v37 = vmul.f32 %v5187_v0, %v9788_v47  ;;  %v5190_v44 = vadd.f32 %v5189_v29, %v5188_v1  ;;  %v11380_v47 = vld [vmem:[#allocation52_spill] sm:$0xff] }
 0xf19   :  { %v3879_v32 = vsel %vm3839_vm0, %v3827_v37, 0.0  ;;  %v3828_v62 = vmul.f32 %v5190_v44, %v9790_v52 }
 0xf1a   :  { %v3880_v15 = vadd.f32 %v3879_v32, %v3878_v18 }
 0xf1b   :  { %v3881_v9 = vsel %vm3839_vm0, %v3828_v62, 0.0  ;;  %v5191_v11 = vpop.f32.mrb[76].mxu0 }
 0xf1c   :  { %v3882_v25 = vadd.f32 %v3881_v9, %v3880_v15  ;;  %v5192_v13 = vpop.f32.mrb[77].mxu0  ;;  %v11387_v15 = vld [vmem:[#allocation5_spill] sm:$0xff] }
 0xf1d   :  { %v5193_v58 = vadd.f32 %v5192_v13, %v5191_v11  ;;  %v5194_v55 = vpop.f32.mrb[78].mxu0  ;;  %v11388_v13 = vld [vmem:[#allocation7_spill] sm:$0xff] }
 0xf1e   :  { %v5195_v38 = vpop.f32.mrb[79].mxu0 }
 0xf1f   :  { %v3829_v49 = vmul.f32 %v5193_v58, %v11379_v56  ;;  %v5196_v59 = vadd.f32 %v5195_v38, %v5194_v55 }
 0xf21   :  { %v3883_v4 = vsel %vm3839_vm0, %v3829_v49, 0.0  ;;  %v3830_v12 = vmul.f32 %v5196_v59, %v11380_v47 }
 0xf22   :  { %v3884_v7 = vadd.f32 %v3883_v4, %v3882_v25 }
 0xf23   :  { %v3885_v63 = vsel %vm3839_vm0, %v3830_v12, 0.0  ;;  %v5197_v52 = vpop.f32.mrb[80].mxu0 }
 0xf24   :  { %v3886_v10 = vadd.f32 %v3885_v63, %v3884_v7  ;;  %v5198_v54 = vpop.f32.mrb[81].mxu0 }
 0xf25   :  { %v5199_v61 = vadd.f32 %v5198_v54, %v5197_v52  ;;  %v5200_v45 = vpop.f32.mrb[82].mxu0 }
 0xf26   :  { %v5201_v14 = vpop.f32.mrb[83].mxu0 }
 0xf27   :  { %v3831_v40 = vmul.f32 %v5199_v61, %v11381_v5  ;;  %v5202_v43 = vadd.f32 %v5201_v14, %v5200_v45 }
 0xf29   :  { %v3887_v23 = vsel %vm3839_vm0, %v3831_v40, 0.0  ;;  %v3832_v34 = vmul.f32 %v5202_v43, %v11382_v51 }
 0xf2a   :  { %v3888_v8 = vadd.f32 %v3887_v23, %v3886_v10 }
 0xf2b   :  { %v3889_v26 = vsel %vm3839_vm0, %v3832_v34, 0.0  ;;  %v5203_v53 = vpop.f32.mrb[84].mxu0 }
 0xf2c   :  { %v3890_v46 = vadd.f32 %v3889_v26, %v3888_v8  ;;  %v5204_v48 = vpop.f32.mrb[85].mxu0 }
 0xf2d   :  { %v5205_v19 = vadd.f32 %v5204_v48, %v5203_v53  ;;  %v5206_v28 = vpop.f32.mrb[86].mxu0 }
 0xf2e   :  { %v5207_v31 = vpop.f32.mrb[87].mxu0 }
 0xf2f   :  { %v3833_v22 = vmul.f32 %v5205_v19, %v11383_v42  ;;  %v5208_v3 = vadd.f32 %v5207_v31, %v5206_v28 }
 0xf31   :  { %v3891_v17 = vsel %vm3839_vm0, %v3833_v22, 0.0  ;;  %v3834_v24 = vmul.f32 %v5208_v3, %v11384_v33 }
 0xf32   :  { %v3892_v36 = vadd.f32 %v3891_v17, %v3890_v46 }
 0xf33   :  { %v3893_v60 = vsel %vm3839_vm0, %v3834_v24, 0.0  ;;  %v5209_v39 = vpop.f32.mrb[88].mxu0 }
 0xf34   :  { %v3894_v16 = vadd.f32 %v3893_v60, %v3892_v36  ;;  %v5210_v50 = vpop.f32.mrb[89].mxu0 }
 0xf35   :  { %v5211_v2 = vadd.f32 %v5210_v50, %v5209_v39  ;;  %v5212_v21 = vpop.f32.mrb[90].mxu0 }
 0xf36   :  { %v5213_v57 = vpop.f32.mrb[91].mxu0 }
 0xf37   :  { %v3835_v20 = vmul.f32 %v5211_v2, %v11385_v30  ;;  %v5214_v35 = vadd.f32 %v5213_v57, %v5212_v21 }
 0xf39   :  { %v3895_v41 = vsel %vm3839_vm0, %v3835_v20, 0.0  ;;  %v3836_v18 = vmul.f32 %v5214_v35, %v11386_v27 }
 0xf3a   :  { %v3896_v6 = vadd.f32 %v3895_v41, %v3894_v16 }
 0xf3b   :  { %v3897_v0 = vsel %vm3839_vm0, %v3836_v18, 0.0  ;;  %v5215_v1 = vpop.f32.mrb[92].mxu0 }
 0xf3c   :  { %v3898_v29 = vadd.f32 %v3897_v0, %v3896_v6  ;;  %v5216_v37 = vpop.f32.mrb[93].mxu0 }
 0xf3d   :  { %v5217_v44 = vadd.f32 %v5216_v37, %v5215_v1  ;;  %v5218_v32 = vpop.f32.mrb[94].mxu0 }
 0xf3e   :  { %v5219_v62 = vpop.f32.mrb[95].mxu0 }
 0xf3f   :  { %v3837_v9 = vmul.f32 %v5217_v44, %v11387_v15  ;;  %v5220_v11 = vadd.f32 %v5219_v62, %v5218_v32 }
 0xf41   :  { %v3899_v25 = vsel %vm3839_vm0, %v3837_v9, 0.0  ;;  %v3838_v58 = vmul.f32 %v5220_v11, %v11388_v13 }
 0xf42   :  { %v3900_v55 = vadd.f32 %v3899_v25, %v3898_v29 }
 0xf43   :  { %v3901_v38 = vsel %vm3839_vm0, %v3838_v58, 0.0 }
 0xf44   :  { %v3902_v56 = vadd.f32 %v3901_v38, %v3900_v55 }
 0xf46   :  { %v3903_v49 = vrot.slane %v3902_v56, 4 }
 0xf48   :  { %v3904_v59 = vadd.f32 %v3903_v49, %v3902_v56 }
 0xf4a   :  { %v3905_v4 = vrot.slane %v3904_v59, 2 }
 0xf4c   :  { %v3906_v47 = vadd.f32 %v3905_v4, %v3904_v59 }
 0xf4e   :  { %v3907_v12 = vrot.slane %v3906_v47, 1 }
 0xf50   :  { %v3908_v7 = vadd.f32 %v3907_v12, %v3906_v47 }
 0xf52   :  { %3910 = vst.msk [vmem:[#allocation2] sm:$0x1] %vm3909_vm1, %v3908_v7 }
 0xf53   :  { %6369 = shalt.err (!%p6366_p4)
}
 0xf54   :  { %s6370_s0 = scalar_lea.hbm %s10396_s4, 16 }
 0xf55   :  { %p6371_p5 = scmp.ne.s32.totalorder %s10396_s4, %s6370_s0  ;;  %p6374_p6 = scmp.lt.u32.totalorder %s6370_s0, %s10396_s4 }
 0xf57   :  { %p6376_p7 = pnand %p6374_p6, %p6371_p5 }
 0xf59   :  { %6379 = shalt.err (!%p6376_p7)
}
 0xf5a   :  { %3920 = dma.vmem_to_hbm [thread:$0]  %s3918_s3, 16, %s10396_s4, [#allocation3]  }
 0xf5b   :  { %6380 = dma.done.wait [#allocation3], 16  }
 0xf5c   :  { %6381 = vsyncadd [#allocation3], 4294967280 }
 0xf5d   :  { %3924 = vsyncpa [#allocation3], 1 }

</bundles_post_ra>
